<compile_context>
chip_gen: v6e
topology: v6e:2x2x1
jax: 0.10.0
libtpu: 0.0.40
codegen_flags: <defaults>
</compile_context>

<pallas_src>
import functools

import jax
import jax.numpy as jnp
from jax import lax
from jax.experimental import pallas as pl
from jax.experimental.pallas import tpu as pltpu

# Small problem sizes consistent with a video-latent ODE state.
B, C, H, W = 2, 4, 16, 16   # batch, latent channels, spatial
U = 8                       # hidden units of the ode_func_net conv stack
T = 8                       # number of time steps to predict


# ----------------------------------------------------------------------------
# Kernel
# ----------------------------------------------------------------------------
def _solver_kernel(dts_ref, y0_ref,
                   m1_ref, b1_ref, m2_ref, b2_ref, m3_ref, b3_ref,
                   o_ref, *, num_steps):
    """Fused Euler solve.

    State layout: (H, B*W*C).  Each conv layer is a single MXU dot of the
    (H, 3*Lin) shifted-row slab against the stacked banded weight matrix
    (3*Lin, Lout), plus a bias row.
    """
    h = y0_ref.shape[0]

    # Border masks hoisted out of the time loop (built once per kernel launch).
    row = lax.broadcasted_iota(jnp.int32, (h, 1), 0)
    mask_top = (row > 0).astype(jnp.float32)       # zeroes row 0 after shift(+1)
    mask_bot = (row < h - 1).astype(jnp.float32)   # zeroes row h-1 after shift(-1)

    def conv_layer(x, m_ref, b_ref):
        # out[y] = sum_ky x[y + ky - 1] @ M_ky  -> one stacked dot.
        up = pltpu.roll(x, shift=1, axis=0) * mask_top      # x[y-1] (ky = 0 tap)
        dn = pltpu.roll(x, shift=h - 1, axis=0) * mask_bot  # x[y+1] (ky = 2 tap)
        slab = jnp.concatenate([up, x, dn], axis=1)         # (h, 3*Lin)
        return (jnp.dot(slab, m_ref[...], preferred_element_type=jnp.float32)
                + b_ref[...])

    def rhs(y):
        h1 = jnp.tanh(conv_layer(y, m1_ref, b1_ref))
        h2 = jnp.tanh(conv_layer(h1, m2_ref, b2_ref))
        return conv_layer(h2, m3_ref, b3_ref)

    def euler_step(t, y):
        o_ref[t] = y.astype(o_ref.dtype)             # sample state at time t
        return y + dts_ref[t] * rhs(y)               # y_{t+1} = y_t + dt_t * f(y_t)

    # Static trip count (num_steps-1): fully unroll so loop-invariant weight
    # pushes and next-step work overlap the current step's VPU/EUP chain.
    y_last = lax.fori_loop(0, num_steps - 1, euler_step,
                           y0_ref[...].astype(jnp.float32), unroll=True)
    o_ref[num_steps - 1] = y_last.astype(o_ref.dtype)


# ----------------------------------------------------------------------------
# Weight packing (hoist out of the per-solve call path; cache per weight set)
# ----------------------------------------------------------------------------
def _band_matrix_stacked(w_hwio, batch, width):
    """Fold horizontal taps + channel contraction of a 3x3 conv into matrices
    and stack the 3 vertical taps.

    Returns M of shape (3*batch*width*cin, batch*width*cout) such that
        out_row = concat([row_shift(+1), row, row_shift(-1)], lanes) @ M
    reproduces the zero-padded 3x3 cross-correlation on rows packed as
    lane index = b*(W*cin) + w*cin + ci.
    """
    eye_b = jnp.eye(batch, dtype=jnp.float32)
    mats = []
    for ky in range(3):
        m = sum(jnp.kron(jnp.eye(width, k=-(kx - 1), dtype=jnp.float32),
                         w_hwio[ky, kx].astype(jnp.float32))
                for kx in range(3))
        mats.append(jnp.kron(eye_b, m))
    return jnp.concatenate(mats, axis=0)


def pack_ode_func_params(layers_hwio, batch, width):
    """Build banded matmul operands + tiled biases ONCE per weight set."""
    (w1, b1), (w2, b2), (w3, b3) = layers_hwio
    m1 = _band_matrix_stacked(w1, batch, width)            # (3*128, 256)
    m2 = _band_matrix_stacked(w2, batch, width)            # (3*256, 256)
    m3 = _band_matrix_stacked(w3, batch, width)            # (3*256, 128)
    b1p = jnp.tile(b1, batch * width)[None, :].astype(jnp.float32)
    b2p = jnp.tile(b2, batch * width)[None, :].astype(jnp.float32)
    b3p = jnp.tile(b3, batch * width)[None, :].astype(jnp.float32)
    return (m1, b1p, m2, b2p, m3, b3p)


# ----------------------------------------------------------------------------
# Wrapper
# ----------------------------------------------------------------------------
@functools.partial(jax.jit, static_argnames=("backwards",))
def diffeq_solver_forward(first_point, time_steps_to_predict, packed_params,
                          backwards=False):
    """Pallas equivalent of DiffeqSolver.forward.

    first_point: (B, C, H, W) f32, time_steps_to_predict: (T,) f32.
    packed_params: output of pack_ode_func_params (cached per weight set).
    Returns pred_y of shape (B, T, C, H, W)  (== odeint output permuted (1,0,2,3,4)).
    """
    del backwards  # DiffeqSolver.forward accepts but ignores `backwards` (as in PyTorch).
    m1, b1p, m2, b2p, m3, b3p = packed_params
    num_steps = time_steps_to_predict.shape[0]
    b_, c_, h_, w_ = first_point.shape

    lanes_in = b_ * w_ * c_
    lanes_hid = b2p.shape[1]
    # Lane-dense / sublane-aligned layout assumptions (see correctness notes).
    assert lanes_in % 128 == 0, "B*W*C must be a multiple of 128 (lane width)"
    assert lanes_hid % 128 == 0, "B*W*U must be a multiple of 128 (lane width)"
    assert h_ % 8 == 0, "H must be a multiple of 8 (sublane width)"

    # Pack state NCHW -> lane-dense rows (H, B*W*C); lane index = b*(W*C) + w*C + c.
    y0 = jnp.transpose(first_point, (2, 0, 3, 1)).reshape(h_, lanes_in)
    y0 = y0.astype(jnp.float32)

    # Per-step Euler dt (last entry unused).
    dts = jnp.concatenate(
        [time_steps_to_predict[1:] - time_steps_to_predict[:-1],
         jnp.zeros((1,), time_steps_to_predict.dtype)]).astype(jnp.float32)

    kernel = functools.partial(_solver_kernel, num_steps=num_steps)
    vmem = pl.BlockSpec(memory_space=pltpu.MemorySpace.VMEM)
    smem = pl.BlockSpec(memory_space=pltpu.MemorySpace.SMEM)

    out = pl.pallas_call(
        kernel,
        out_shape=jax.ShapeDtypeStruct((num_steps, h_, lanes_in), jnp.float32),
        in_specs=[smem] + [vmem] * 7,
        out_specs=vmem,
    )(dts, y0, m1, b1p, m2, b2p, m3, b3p)

    # (T, H, B*W*C) -> (B, T, C, H, W)   (== pred_y.permute(1, 0, 2, 3, 4))
    pred = out.reshape(num_steps, h_, b_, w_, c_).transpose(2, 0, 4, 1, 3)
    return pred


# ----------------------------------------------------------------------------
# Deterministic parameter init + pure-JAX reference
# ----------------------------------------------------------------------------
def init_params(key):
    """PyTorch Conv2d-style uniform(+-1/sqrt(fan_in)) init (HWIO layout)."""
    def conv_init(k, cin, cout):
        kw, kb = jax.random.split(k)
        bound = 1.0 / jnp.sqrt(cin * 9.0)
        w = jax.random.uniform(kw, (3, 3, cin, cout), jnp.float32, -bound, bound)
        b = jax.random.uniform(kb, (cout,), jnp.float32, -bound, bound)
        return w, b

    k1, k2, k3 = jax.random.split(key, 3)
    return (conv_init(k1, C, U), conv_init(k2, U, U), conv_init(k3, U, C))


def ref_forward(first_point, time_steps, layers_hwio):
    """Pure-JAX fixed-step Euler reference using lax.conv (NCHW in/out)."""
    (w1, b1), (w2, b2), (w3, b3) = layers_hwio

    def conv(x, w, b):
        o = lax.conv_general_dilated(x, w, (1, 1), "SAME",
                                     dimension_numbers=("NHWC", "HWIO", "NHWC"))
        return o + b

    def rhs(y_nchw):
        y = jnp.transpose(y_nchw, (0, 2, 3, 1))
        h = jnp.tanh(conv(y, w1, b1))
        h = jnp.tanh(conv(h, w2, b2))
        g = conv(h, w3, b3)
        return jnp.transpose(g, (0, 3, 1, 2))

    t_count = time_steps.shape[0]
    y = first_point
    ys = [y]
    for i in range(t_count - 1):
        dt = time_steps[i + 1] - time_steps[i]
        y = y + dt * rhs(y)
        ys.append(y)
    pred = jnp.stack(ys, axis=0)                 # (T, B, C, H, W)
    return jnp.transpose(pred, (1, 0, 2, 3, 4))  # (B, T, C, H, W)


if __name__ == "__main__":
    key = jax.random.PRNGKey(0)
    k_param, k_y = jax.random.split(key)
    layers_hwio = init_params(k_param)

    # Built ONCE per weight set (hoisted off the per-solve critical path).
    packed_params = pack_ode_func_params(layers_hwio, B, W)
    packed_params = jax.tree_util.tree_map(jax.block_until_ready, packed_params)

    first_point = jax.random.normal(k_y, (B, C, H, W), jnp.float32)   # NCHW like PyTorch
    # Non-uniform time grid to exercise per-step dt handling.
    time_steps = jnp.cumsum(
        jnp.array([0.0, 0.05, 0.10, 0.07, 0.12, 0.06, 0.09, 0.11], jnp.float32))

    pred = diffeq_solver_forward(first_point, time_steps, packed_params)
    jax.block_until_ready(pred)

    ref = ref_forward(first_point, time_steps, layers_hwio)
    assert pred.shape == (B, T, C, H, W) and pred.dtype == jnp.float32
    max_err = float(jnp.max(jnp.abs(pred - ref)))
    assert jnp.allclose(pred, ref, atol=1e-4, rtol=1e-4), f"max abs err {max_err}"
    print("KERNEL_OK")
</pallas_src>

<mosaic_0001>
module attributes {stable_mosaic.version = 11 : i64} {
  func.func @_solver_kernel(%arg0: memref<8xf32, #tpu.memory_space<smem>>, %arg1: memref<16x128xf32, #tpu.memory_space<vmem>>, %arg2: memref<384x256xf32, #tpu.memory_space<vmem>>, %arg3: memref<1x256xf32, #tpu.memory_space<vmem>>, %arg4: memref<768x256xf32, #tpu.memory_space<vmem>>, %arg5: memref<1x256xf32, #tpu.memory_space<vmem>>, %arg6: memref<768x128xf32, #tpu.memory_space<vmem>>, %arg7: memref<1x128xf32, #tpu.memory_space<vmem>>, %arg8: memref<8x16x128xf32, #tpu.memory_space<vmem>>) attributes {dimension_semantics = [], scalar_prefetch = 0 : i64, scratch_operands = 0 : i64, tpu.core_type = #tpu.core_type<tc>} {
    %0 = tpu.iota {dimensions = array<i32: 0>} : vector<16x1xi32>
    %c0_i32 = arith.constant 0 : i32
    %1 = vector.broadcast %c0_i32 : i32 to vector<16x1xi32>
    %2 = arith.cmpi sgt, %0, %1 : vector<16x1xi32>
    %3 = arith.extui %2 : vector<16x1xi1> to vector<16x1xi32>
    %4 = arith.sitofp %3 : vector<16x1xi32> to vector<16x1xf32>
    %c15_i32 = arith.constant 15 : i32
    %5 = vector.broadcast %c15_i32 : i32 to vector<16x1xi32>
    %6 = arith.cmpi slt, %0, %5 : vector<16x1xi32>
    %7 = arith.extui %6 : vector<16x1xi1> to vector<16x1xi32>
    %8 = arith.sitofp %7 : vector<16x1xi32> to vector<16x1xf32>
    %c0 = arith.constant 0 : index
    %c0_0 = arith.constant 0 : index
    %9 = vector.load %arg1[%c0, %c0_0] : memref<16x128xf32, #tpu.memory_space<vmem>>, vector<16x128xf32>
    %c0_i32_1 = arith.constant 0 : i32
    %10 = arith.index_cast %c0_i32_1 : i32 to index
    %c0_2 = arith.constant 0 : index
    %c0_3 = arith.constant 0 : index
    %11 = vector.load %arg8[%10, %c0_2, %c0_3] : memref<8x16x128xf32, #tpu.memory_space<vmem>>, vector<1x16x128xf32>
    %12 = vector.shape_cast %11 : vector<1x16x128xf32> to vector<16x128xf32>
    %13 = vector.shape_cast %9 : vector<16x128xf32> to vector<1x16x128xf32>
    tpu.vector_store %arg8[%10, %c0_2, %c0_3], %13 {strides = array<i32>} : memref<8x16x128xf32, #tpu.memory_space<vmem>>, vector<1x16x128xf32>,
    %14 = arith.index_cast %c0_i32_1 : i32 to index
    %15 = memref.load %arg0[%14] : memref<8xf32, #tpu.memory_space<smem>>
    %c1_i32 = arith.constant 1 : i32
    %16 = tpu.dynamic_rotate %9 by %c1_i32 dim 0 : vector<16x128xf32>, i32 -> vector<16x128xf32>
    %17 = vector.broadcast %4 : vector<16x1xf32> to vector<16x128xf32>
    %18 = arith.mulf %16, %17 : vector<16x128xf32>
    %c15_i32_4 = arith.constant 15 : i32
    %19 = tpu.dynamic_rotate %9 by %c15_i32_4 dim 0 : vector<16x128xf32>, i32 -> vector<16x128xf32>
    %20 = vector.broadcast %8 : vector<16x1xf32> to vector<16x128xf32>
    %21 = arith.mulf %19, %20 : vector<16x128xf32>
    %22 = tpu.concatenate %18, %9, %21 in 1 : vector<16x128xf32>, vector<16x128xf32>, vector<16x128xf32> -> vector<16x384xf32>
    %c0_5 = arith.constant 0 : index
    %c0_6 = arith.constant 0 : index
    %23 = vector.load %arg2[%c0_5, %c0_6] : memref<384x256xf32, #tpu.memory_space<vmem>>, vector<384x256xf32>
    %cst = arith.constant dense<0.000000e+00> : vector<16x256xf32>
    %24 = tpu.matmul %22, %23, %cst {dimension_numbers = #tpu.dot_dimension_numbers<[1], [0], [0], [1], [0, 0, 1, 1], [], []>} : vector<16x384xf32>, vector<384x256xf32>, vector<16x256xf32> -> vector<16x256xf32>
    %c0_7 = arith.constant 0 : index
    %c0_8 = arith.constant 0 : index
    %25 = vector.load %arg3[%c0_7, %c0_8] : memref<1x256xf32, #tpu.memory_space<vmem>>, vector<1x256xf32>
    %26 = vector.broadcast %25 : vector<1x256xf32> to vector<16x256xf32>
    %27 = arith.addf %24, %26 : vector<16x256xf32>
    %28 = math.tanh %27 : vector<16x256xf32>
    %c1_i32_9 = arith.constant 1 : i32
    %29 = tpu.dynamic_rotate %28 by %c1_i32_9 dim 0 : vector<16x256xf32>, i32 -> vector<16x256xf32>
    %30 = vector.broadcast %4 : vector<16x1xf32> to vector<16x256xf32>
    %31 = arith.mulf %29, %30 : vector<16x256xf32>
    %c15_i32_10 = arith.constant 15 : i32
    %32 = tpu.dynamic_rotate %28 by %c15_i32_10 dim 0 : vector<16x256xf32>, i32 -> vector<16x256xf32>
    %33 = vector.broadcast %8 : vector<16x1xf32> to vector<16x256xf32>
    %34 = arith.mulf %32, %33 : vector<16x256xf32>
    %35 = tpu.concatenate %31, %28, %34 in 1 : vector<16x256xf32>, vector<16x256xf32>, vector<16x256xf32> -> vector<16x768xf32>
    %c0_11 = arith.constant 0 : index
    %c0_12 = arith.constant 0 : index
    %36 = vector.load %arg4[%c0_11, %c0_12] : memref<768x256xf32, #tpu.memory_space<vmem>>, vector<768x256xf32>
    %cst_13 = arith.constant dense<0.000000e+00> : vector<16x256xf32>
    %37 = tpu.matmul %35, %36, %cst_13 {dimension_numbers = #tpu.dot_dimension_numbers<[1], [0], [0], [1], [0, 0, 1, 1], [], []>} : vector<16x768xf32>, vector<768x256xf32>, vector<16x256xf32> -> vector<16x256xf32>
    %c0_14 = arith.constant 0 : index
    %c0_15 = arith.constant 0 : index
    %38 = vector.load %arg5[%c0_14, %c0_15] : memref<1x256xf32, #tpu.memory_space<vmem>>, vector<1x256xf32>
    %39 = vector.broadcast %38 : vector<1x256xf32> to vector<16x256xf32>
    %40 = arith.addf %37, %39 : vector<16x256xf32>
    %41 = math.tanh %40 : vector<16x256xf32>
    %c1_i32_16 = arith.constant 1 : i32
    %42 = tpu.dynamic_rotate %41 by %c1_i32_16 dim 0 : vector<16x256xf32>, i32 -> vector<16x256xf32>
    %43 = vector.broadcast %4 : vector<16x1xf32> to vector<16x256xf32>
    %44 = arith.mulf %42, %43 : vector<16x256xf32>
    %c15_i32_17 = arith.constant 15 : i32
    %45 = tpu.dynamic_rotate %41 by %c15_i32_17 dim 0 : vector<16x256xf32>, i32 -> vector<16x256xf32>
    %46 = vector.broadcast %8 : vector<16x1xf32> to vector<16x256xf32>
    %47 = arith.mulf %45, %46 : vector<16x256xf32>
    %48 = tpu.concatenate %44, %41, %47 in 1 : vector<16x256xf32>, vector<16x256xf32>, vector<16x256xf32> -> vector<16x768xf32>
    %c0_18 = arith.constant 0 : index
    %c0_19 = arith.constant 0 : index
    %49 = vector.load %arg6[%c0_18, %c0_19] : memref<768x128xf32, #tpu.memory_space<vmem>>, vector<768x128xf32>
    %cst_20 = arith.constant dense<0.000000e+00> : vector<16x128xf32>
    %50 = tpu.matmul %48, %49, %cst_20 {dimension_numbers = #tpu.dot_dimension_numbers<[1], [0], [0], [1], [0, 0, 1, 1], [], []>} : vector<16x768xf32>, vector<768x128xf32>, vector<16x128xf32> -> vector<16x128xf32>
    %c0_21 = arith.constant 0 : index
    %c0_22 = arith.constant 0 : index
    %51 = vector.load %arg7[%c0_21, %c0_22] : memref<1x128xf32, #tpu.memory_space<vmem>>, vector<1x128xf32>
    %52 = vector.broadcast %51 : vector<1x128xf32> to vector<16x128xf32>
    %53 = arith.addf %50, %52 : vector<16x128xf32>
    %54 = vector.broadcast %15 : f32 to vector<16x128xf32>
    %55 = arith.mulf %54, %53 : vector<16x128xf32>
    %56 = arith.addf %9, %55 : vector<16x128xf32>
    %c1_i32_23 = arith.constant 1 : i32
    %57 = arith.index_cast %c1_i32_23 : i32 to index
    %c0_24 = arith.constant 0 : index
    %c0_25 = arith.constant 0 : index
    %58 = vector.load %arg8[%57, %c0_24, %c0_25] : memref<8x16x128xf32, #tpu.memory_space<vmem>>, vector<1x16x128xf32>
    %59 = vector.shape_cast %58 : vector<1x16x128xf32> to vector<16x128xf32>
    %60 = vector.shape_cast %56 : vector<16x128xf32> to vector<1x16x128xf32>
    tpu.vector_store %arg8[%57, %c0_24, %c0_25], %60 {strides = array<i32>} : memref<8x16x128xf32, #tpu.memory_space<vmem>>, vector<1x16x128xf32>,
    %61 = arith.index_cast %c1_i32_23 : i32 to index
    %62 = memref.load %arg0[%61] : memref<8xf32, #tpu.memory_space<smem>>
    %c1_i32_26 = arith.constant 1 : i32
    %63 = tpu.dynamic_rotate %56 by %c1_i32_26 dim 0 : vector<16x128xf32>, i32 -> vector<16x128xf32>
    %64 = vector.broadcast %4 : vector<16x1xf32> to vector<16x128xf32>
    %65 = arith.mulf %63, %64 : vector<16x128xf32>
    %c15_i32_27 = arith.constant 15 : i32
    %66 = tpu.dynamic_rotate %56 by %c15_i32_27 dim 0 : vector<16x128xf32>, i32 -> vector<16x128xf32>
    %67 = vector.broadcast %8 : vector<16x1xf32> to vector<16x128xf32>
    %68 = arith.mulf %66, %67 : vector<16x128xf32>
    %69 = tpu.concatenate %65, %56, %68 in 1 : vector<16x128xf32>, vector<16x128xf32>, vector<16x128xf32> -> vector<16x384xf32>
    %c0_28 = arith.constant 0 : index
    %c0_29 = arith.constant 0 : index
    %70 = vector.load %arg2[%c0_28, %c0_29] : memref<384x256xf32, #tpu.memory_space<vmem>>, vector<384x256xf32>
    %cst_30 = arith.constant dense<0.000000e+00> : vector<16x256xf32>
    %71 = tpu.matmul %69, %70, %cst_30 {dimension_numbers = #tpu.dot_dimension_numbers<[1], [0], [0], [1], [0, 0, 1, 1], [], []>} : vector<16x384xf32>, vector<384x256xf32>, vector<16x256xf32> -> vector<16x256xf32>
    %c0_31 = arith.constant 0 : index
    %c0_32 = arith.constant 0 : index
    %72 = vector.load %arg3[%c0_31, %c0_32] : memref<1x256xf32, #tpu.memory_space<vmem>>, vector<1x256xf32>
    %73 = vector.broadcast %72 : vector<1x256xf32> to vector<16x256xf32>
    %74 = arith.addf %71, %73 : vector<16x256xf32>
    %75 = math.tanh %74 : vector<16x256xf32>
    %c1_i32_33 = arith.constant 1 : i32
    %76 = tpu.dynamic_rotate %75 by %c1_i32_33 dim 0 : vector<16x256xf32>, i32 -> vector<16x256xf32>
    %77 = vector.broadcast %4 : vector<16x1xf32> to vector<16x256xf32>
    %78 = arith.mulf %76, %77 : vector<16x256xf32>
    %c15_i32_34 = arith.constant 15 : i32
    %79 = tpu.dynamic_rotate %75 by %c15_i32_34 dim 0 : vector<16x256xf32>, i32 -> vector<16x256xf32>
    %80 = vector.broadcast %8 : vector<16x1xf32> to vector<16x256xf32>
    %81 = arith.mulf %79, %80 : vector<16x256xf32>
    %82 = tpu.concatenate %78, %75, %81 in 1 : vector<16x256xf32>, vector<16x256xf32>, vector<16x256xf32> -> vector<16x768xf32>
    %c0_35 = arith.constant 0 : index
    %c0_36 = arith.constant 0 : index
    %83 = vector.load %arg4[%c0_35, %c0_36] : memref<768x256xf32, #tpu.memory_space<vmem>>, vector<768x256xf32>
    %cst_37 = arith.constant dense<0.000000e+00> : vector<16x256xf32>
    %84 = tpu.matmul %82, %83, %cst_37 {dimension_numbers = #tpu.dot_dimension_numbers<[1], [0], [0], [1], [0, 0, 1, 1], [], []>} : vector<16x768xf32>, vector<768x256xf32>, vector<16x256xf32> -> vector<16x256xf32>
    %c0_38 = arith.constant 0 : index
    %c0_39 = arith.constant 0 : index
    %85 = vector.load %arg5[%c0_38, %c0_39] : memref<1x256xf32, #tpu.memory_space<vmem>>, vector<1x256xf32>
    %86 = vector.broadcast %85 : vector<1x256xf32> to vector<16x256xf32>
    %87 = arith.addf %84, %86 : vector<16x256xf32>
    %88 = math.tanh %87 : vector<16x256xf32>
    %c1_i32_40 = arith.constant 1 : i32
    %89 = tpu.dynamic_rotate %88 by %c1_i32_40 dim 0 : vector<16x256xf32>, i32 -> vector<16x256xf32>
    %90 = vector.broadcast %4 : vector<16x1xf32> to vector<16x256xf32>
    %91 = arith.mulf %89, %90 : vector<16x256xf32>
    %c15_i32_41 = arith.constant 15 : i32
    %92 = tpu.dynamic_rotate %88 by %c15_i32_41 dim 0 : vector<16x256xf32>, i32 -> vector<16x256xf32>
    %93 = vector.broadcast %8 : vector<16x1xf32> to vector<16x256xf32>
    %94 = arith.mulf %92, %93 : vector<16x256xf32>
    %95 = tpu.concatenate %91, %88, %94 in 1 : vector<16x256xf32>, vector<16x256xf32>, vector<16x256xf32> -> vector<16x768xf32>
    %c0_42 = arith.constant 0 : index
    %c0_43 = arith.constant 0 : index
    %96 = vector.load %arg6[%c0_42, %c0_43] : memref<768x128xf32, #tpu.memory_space<vmem>>, vector<768x128xf32>
    %cst_44 = arith.constant dense<0.000000e+00> : vector<16x128xf32>
    %97 = tpu.matmul %95, %96, %cst_44 {dimension_numbers = #tpu.dot_dimension_numbers<[1], [0], [0], [1], [0, 0, 1, 1], [], []>} : vector<16x768xf32>, vector<768x128xf32>, vector<16x128xf32> -> vector<16x128xf32>
    %c0_45 = arith.constant 0 : index
    %c0_46 = arith.constant 0 : index
    %98 = vector.load %arg7[%c0_45, %c0_46] : memref<1x128xf32, #tpu.memory_space<vmem>>, vector<1x128xf32>
    %99 = vector.broadcast %98 : vector<1x128xf32> to vector<16x128xf32>
    %100 = arith.addf %97, %99 : vector<16x128xf32>
    %101 = vector.broadcast %62 : f32 to vector<16x128xf32>
    %102 = arith.mulf %101, %100 : vector<16x128xf32>
    %103 = arith.addf %56, %102 : vector<16x128xf32>
    %c2_i32 = arith.constant 2 : i32
    %104 = arith.index_cast %c2_i32 : i32 to index
    %c0_47 = arith.constant 0 : index
    %c0_48 = arith.constant 0 : index
    %105 = vector.load %arg8[%104, %c0_47, %c0_48] : memref<8x16x128xf32, #tpu.memory_space<vmem>>, vector<1x16x128xf32>
    %106 = vector.shape_cast %105 : vector<1x16x128xf32> to vector<16x128xf32>
    %107 = vector.shape_cast %103 : vector<16x128xf32> to vector<1x16x128xf32>
    tpu.vector_store %arg8[%104, %c0_47, %c0_48], %107 {strides = array<i32>} : memref<8x16x128xf32, #tpu.memory_space<vmem>>, vector<1x16x128xf32>,
    %108 = arith.index_cast %c2_i32 : i32 to index
    %109 = memref.load %arg0[%108] : memref<8xf32, #tpu.memory_space<smem>>
    %c1_i32_49 = arith.constant 1 : i32
    %110 = tpu.dynamic_rotate %103 by %c1_i32_49 dim 0 : vector<16x128xf32>, i32 -> vector<16x128xf32>
    %111 = vector.broadcast %4 : vector<16x1xf32> to vector<16x128xf32>
    %112 = arith.mulf %110, %111 : vector<16x128xf32>
    %c15_i32_50 = arith.constant 15 : i32
    %113 = tpu.dynamic_rotate %103 by %c15_i32_50 dim 0 : vector<16x128xf32>, i32 -> vector<16x128xf32>
    %114 = vector.broadcast %8 : vector<16x1xf32> to vector<16x128xf32>
    %115 = arith.mulf %113, %114 : vector<16x128xf32>
    %116 = tpu.concatenate %112, %103, %115 in 1 : vector<16x128xf32>, vector<16x128xf32>, vector<16x128xf32> -> vector<16x384xf32>
    %c0_51 = arith.constant 0 : index
    %c0_52 = arith.constant 0 : index
    %117 = vector.load %arg2[%c0_51, %c0_52] : memref<384x256xf32, #tpu.memory_space<vmem>>, vector<384x256xf32>
    %cst_53 = arith.constant dense<0.000000e+00> : vector<16x256xf32>
    %118 = tpu.matmul %116, %117, %cst_53 {dimension_numbers = #tpu.dot_dimension_numbers<[1], [0], [0], [1], [0, 0, 1, 1], [], []>} : vector<16x384xf32>, vector<384x256xf32>, vector<16x256xf32> -> vector<16x256xf32>
    %c0_54 = arith.constant 0 : index
    %c0_55 = arith.constant 0 : index
    %119 = vector.load %arg3[%c0_54, %c0_55] : memref<1x256xf32, #tpu.memory_space<vmem>>, vector<1x256xf32>
    %120 = vector.broadcast %119 : vector<1x256xf32> to vector<16x256xf32>
    %121 = arith.addf %118, %120 : vector<16x256xf32>
    %122 = math.tanh %121 : vector<16x256xf32>
    %c1_i32_56 = arith.constant 1 : i32
    %123 = tpu.dynamic_rotate %122 by %c1_i32_56 dim 0 : vector<16x256xf32>, i32 -> vector<16x256xf32>
    %124 = vector.broadcast %4 : vector<16x1xf32> to vector<16x256xf32>
    %125 = arith.mulf %123, %124 : vector<16x256xf32>
    %c15_i32_57 = arith.constant 15 : i32
    %126 = tpu.dynamic_rotate %122 by %c15_i32_57 dim 0 : vector<16x256xf32>, i32 -> vector<16x256xf32>
    %127 = vector.broadcast %8 : vector<16x1xf32> to vector<16x256xf32>
    %128 = arith.mulf %126, %127 : vector<16x256xf32>
    %129 = tpu.concatenate %125, %122, %128 in 1 : vector<16x256xf32>, vector<16x256xf32>, vector<16x256xf32> -> vector<16x768xf32>
    %c0_58 = arith.constant 0 : index
    %c0_59 = arith.constant 0 : index
    %130 = vector.load %arg4[%c0_58, %c0_59] : memref<768x256xf32, #tpu.memory_space<vmem>>, vector<768x256xf32>
    %cst_60 = arith.constant dense<0.000000e+00> : vector<16x256xf32>
    %131 = tpu.matmul %129, %130, %cst_60 {dimension_numbers = #tpu.dot_dimension_numbers<[1], [0], [0], [1], [0, 0, 1, 1], [], []>} : vector<16x768xf32>, vector<768x256xf32>, vector<16x256xf32> -> vector<16x256xf32>
    %c0_61 = arith.constant 0 : index
    %c0_62 = arith.constant 0 : index
    %132 = vector.load %arg5[%c0_61, %c0_62] : memref<1x256xf32, #tpu.memory_space<vmem>>, vector<1x256xf32>
    %133 = vector.broadcast %132 : vector<1x256xf32> to vector<16x256xf32>
    %134 = arith.addf %131, %133 : vector<16x256xf32>
    %135 = math.tanh %134 : vector<16x256xf32>
    %c1_i32_63 = arith.constant 1 : i32
    %136 = tpu.dynamic_rotate %135 by %c1_i32_63 dim 0 : vector<16x256xf32>, i32 -> vector<16x256xf32>
    %137 = vector.broadcast %4 : vector<16x1xf32> to vector<16x256xf32>
    %138 = arith.mulf %136, %137 : vector<16x256xf32>
    %c15_i32_64 = arith.constant 15 : i32
    %139 = tpu.dynamic_rotate %135 by %c15_i32_64 dim 0 : vector<16x256xf32>, i32 -> vector<16x256xf32>
    %140 = vector.broadcast %8 : vector<16x1xf32> to vector<16x256xf32>
    %141 = arith.mulf %139, %140 : vector<16x256xf32>
    %142 = tpu.concatenate %138, %135, %141 in 1 : vector<16x256xf32>, vector<16x256xf32>, vector<16x256xf32> -> vector<16x768xf32>
    %c0_65 = arith.constant 0 : index
    %c0_66 = arith.constant 0 : index
    %143 = vector.load %arg6[%c0_65, %c0_66] : memref<768x128xf32, #tpu.memory_space<vmem>>, vector<768x128xf32>
    %cst_67 = arith.constant dense<0.000000e+00> : vector<16x128xf32>
    %144 = tpu.matmul %142, %143, %cst_67 {dimension_numbers = #tpu.dot_dimension_numbers<[1], [0], [0], [1], [0, 0, 1, 1], [], []>} : vector<16x768xf32>, vector<768x128xf32>, vector<16x128xf32> -> vector<16x128xf32>
    %c0_68 = arith.constant 0 : index
    %c0_69 = arith.constant 0 : index
    %145 = vector.load %arg7[%c0_68, %c0_69] : memref<1x128xf32, #tpu.memory_space<vmem>>, vector<1x128xf32>
    %146 = vector.broadcast %145 : vector<1x128xf32> to vector<16x128xf32>
    %147 = arith.addf %144, %146 : vector<16x128xf32>
    %148 = vector.broadcast %109 : f32 to vector<16x128xf32>
    %149 = arith.mulf %148, %147 : vector<16x128xf32>
    %150 = arith.addf %103, %149 : vector<16x128xf32>
    %c3_i32 = arith.constant 3 : i32
    %151 = arith.index_cast %c3_i32 : i32 to index
    %c0_70 = arith.constant 0 : index
    %c0_71 = arith.constant 0 : index
    %152 = vector.load %arg8[%151, %c0_70, %c0_71] : memref<8x16x128xf32, #tpu.memory_space<vmem>>, vector<1x16x128xf32>
    %153 = vector.shape_cast %152 : vector<1x16x128xf32> to vector<16x128xf32>
    %154 = vector.shape_cast %150 : vector<16x128xf32> to vector<1x16x128xf32>
    tpu.vector_store %arg8[%151, %c0_70, %c0_71], %154 {strides = array<i32>} : memref<8x16x128xf32, #tpu.memory_space<vmem>>, vector<1x16x128xf32>,
    %155 = arith.index_cast %c3_i32 : i32 to index
    %156 = memref.load %arg0[%155] : memref<8xf32, #tpu.memory_space<smem>>
    %c1_i32_72 = arith.constant 1 : i32
    %157 = tpu.dynamic_rotate %150 by %c1_i32_72 dim 0 : vector<16x128xf32>, i32 -> vector<16x128xf32>
    %158 = vector.broadcast %4 : vector<16x1xf32> to vector<16x128xf32>
    %159 = arith.mulf %157, %158 : vector<16x128xf32>
    %c15_i32_73 = arith.constant 15 : i32
    %160 = tpu.dynamic_rotate %150 by %c15_i32_73 dim 0 : vector<16x128xf32>, i32 -> vector<16x128xf32>
    %161 = vector.broadcast %8 : vector<16x1xf32> to vector<16x128xf32>
    %162 = arith.mulf %160, %161 : vector<16x128xf32>
    %163 = tpu.concatenate %159, %150, %162 in 1 : vector<16x128xf32>, vector<16x128xf32>, vector<16x128xf32> -> vector<16x384xf32>
    %c0_74 = arith.constant 0 : index
    %c0_75 = arith.constant 0 : index
    %164 = vector.load %arg2[%c0_74, %c0_75] : memref<384x256xf32, #tpu.memory_space<vmem>>, vector<384x256xf32>
    %cst_76 = arith.constant dense<0.000000e+00> : vector<16x256xf32>
    %165 = tpu.matmul %163, %164, %cst_76 {dimension_numbers = #tpu.dot_dimension_numbers<[1], [0], [0], [1], [0, 0, 1, 1], [], []>} : vector<16x384xf32>, vector<384x256xf32>, vector<16x256xf32> -> vector<16x256xf32>
    %c0_77 = arith.constant 0 : index
    %c0_78 = arith.constant 0 : index
    %166 = vector.load %arg3[%c0_77, %c0_78] : memref<1x256xf32, #tpu.memory_space<vmem>>, vector<1x256xf32>
    %167 = vector.broadcast %166 : vector<1x256xf32> to vector<16x256xf32>
    %168 = arith.addf %165, %167 : vector<16x256xf32>
    %169 = math.tanh %168 : vector<16x256xf32>
    %c1_i32_79 = arith.constant 1 : i32
    %170 = tpu.dynamic_rotate %169 by %c1_i32_79 dim 0 : vector<16x256xf32>, i32 -> vector<16x256xf32>
    %171 = vector.broadcast %4 : vector<16x1xf32> to vector<16x256xf32>
    %172 = arith.mulf %170, %171 : vector<16x256xf32>
    %c15_i32_80 = arith.constant 15 : i32
    %173 = tpu.dynamic_rotate %169 by %c15_i32_80 dim 0 : vector<16x256xf32>, i32 -> vector<16x256xf32>
    %174 = vector.broadcast %8 : vector<16x1xf32> to vector<16x256xf32>
    %175 = arith.mulf %173, %174 : vector<16x256xf32>
    %176 = tpu.concatenate %172, %169, %175 in 1 : vector<16x256xf32>, vector<16x256xf32>, vector<16x256xf32> -> vector<16x768xf32>
    %c0_81 = arith.constant 0 : index
    %c0_82 = arith.constant 0 : index
    %177 = vector.load %arg4[%c0_81, %c0_82] : memref<768x256xf32, #tpu.memory_space<vmem>>, vector<768x256xf32>
    %cst_83 = arith.constant dense<0.000000e+00> : vector<16x256xf32>
    %178 = tpu.matmul %176, %177, %cst_83 {dimension_numbers = #tpu.dot_dimension_numbers<[1], [0], [0], [1], [0, 0, 1, 1], [], []>} : vector<16x768xf32>, vector<768x256xf32>, vector<16x256xf32> -> vector<16x256xf32>
    %c0_84 = arith.constant 0 : index
    %c0_85 = arith.constant 0 : index
    %179 = vector.load %arg5[%c0_84, %c0_85] : memref<1x256xf32, #tpu.memory_space<vmem>>, vector<1x256xf32>
    %180 = vector.broadcast %179 : vector<1x256xf32> to vector<16x256xf32>
    %181 = arith.addf %178, %180 : vector<16x256xf32>
    %182 = math.tanh %181 : vector<16x256xf32>
    %c1_i32_86 = arith.constant 1 : i32
    %183 = tpu.dynamic_rotate %182 by %c1_i32_86 dim 0 : vector<16x256xf32>, i32 -> vector<16x256xf32>
    %184 = vector.broadcast %4 : vector<16x1xf32> to vector<16x256xf32>
    %185 = arith.mulf %183, %184 : vector<16x256xf32>
    %c15_i32_87 = arith.constant 15 : i32
    %186 = tpu.dynamic_rotate %182 by %c15_i32_87 dim 0 : vector<16x256xf32>, i32 -> vector<16x256xf32>
    %187 = vector.broadcast %8 : vector<16x1xf32> to vector<16x256xf32>
    %188 = arith.mulf %186, %187 : vector<16x256xf32>
    %189 = tpu.concatenate %185, %182, %188 in 1 : vector<16x256xf32>, vector<16x256xf32>, vector<16x256xf32> -> vector<16x768xf32>
    %c0_88 = arith.constant 0 : index
    %c0_89 = arith.constant 0 : index
    %190 = vector.load %arg6[%c0_88, %c0_89] : memref<768x128xf32, #tpu.memory_space<vmem>>, vector<768x128xf32>
    %cst_90 = arith.constant dense<0.000000e+00> : vector<16x128xf32>
    %191 = tpu.matmul %189, %190, %cst_90 {dimension_numbers = #tpu.dot_dimension_numbers<[1], [0], [0], [1], [0, 0, 1, 1], [], []>} : vector<16x768xf32>, vector<768x128xf32>, vector<16x128xf32> -> vector<16x128xf32>
    %c0_91 = arith.constant 0 : index
    %c0_92 = arith.constant 0 : index
    %192 = vector.load %arg7[%c0_91, %c0_92] : memref<1x128xf32, #tpu.memory_space<vmem>>, vector<1x128xf32>
    %193 = vector.broadcast %192 : vector<1x128xf32> to vector<16x128xf32>
    %194 = arith.addf %191, %193 : vector<16x128xf32>
    %195 = vector.broadcast %156 : f32 to vector<16x128xf32>
    %196 = arith.mulf %195, %194 : vector<16x128xf32>
    %197 = arith.addf %150, %196 : vector<16x128xf32>
    %c4_i32 = arith.constant 4 : i32
    %198 = arith.index_cast %c4_i32 : i32 to index
    %c0_93 = arith.constant 0 : index
    %c0_94 = arith.constant 0 : index
    %199 = vector.load %arg8[%198, %c0_93, %c0_94] : memref<8x16x128xf32, #tpu.memory_space<vmem>>, vector<1x16x128xf32>
    %200 = vector.shape_cast %199 : vector<1x16x128xf32> to vector<16x128xf32>
    %201 = vector.shape_cast %197 : vector<16x128xf32> to vector<1x16x128xf32>
    tpu.vector_store %arg8[%198, %c0_93, %c0_94], %201 {strides = array<i32>} : memref<8x16x128xf32, #tpu.memory_space<vmem>>, vector<1x16x128xf32>,
    %202 = arith.index_cast %c4_i32 : i32 to index
    %203 = memref.load %arg0[%202] : memref<8xf32, #tpu.memory_space<smem>>
    %c1_i32_95 = arith.constant 1 : i32
    %204 = tpu.dynamic_rotate %197 by %c1_i32_95 dim 0 : vector<16x128xf32>, i32 -> vector<16x128xf32>
    %205 = vector.broadcast %4 : vector<16x1xf32> to vector<16x128xf32>
    %206 = arith.mulf %204, %205 : vector<16x128xf32>
    %c15_i32_96 = arith.constant 15 : i32
    %207 = tpu.dynamic_rotate %197 by %c15_i32_96 dim 0 : vector<16x128xf32>, i32 -> vector<16x128xf32>
    %208 = vector.broadcast %8 : vector<16x1xf32> to vector<16x128xf32>
    %209 = arith.mulf %207, %208 : vector<16x128xf32>
    %210 = tpu.concatenate %206, %197, %209 in 1 : vector<16x128xf32>, vector<16x128xf32>, vector<16x128xf32> -> vector<16x384xf32>
    %c0_97 = arith.constant 0 : index
    %c0_98 = arith.constant 0 : index
    %211 = vector.load %arg2[%c0_97, %c0_98] : memref<384x256xf32, #tpu.memory_space<vmem>>, vector<384x256xf32>
    %cst_99 = arith.constant dense<0.000000e+00> : vector<16x256xf32>
    %212 = tpu.matmul %210, %211, %cst_99 {dimension_numbers = #tpu.dot_dimension_numbers<[1], [0], [0], [1], [0, 0, 1, 1], [], []>} : vector<16x384xf32>, vector<384x256xf32>, vector<16x256xf32> -> vector<16x256xf32>
    %c0_100 = arith.constant 0 : index
    %c0_101 = arith.constant 0 : index
    %213 = vector.load %arg3[%c0_100, %c0_101] : memref<1x256xf32, #tpu.memory_space<vmem>>, vector<1x256xf32>
    %214 = vector.broadcast %213 : vector<1x256xf32> to vector<16x256xf32>
    %215 = arith.addf %212, %214 : vector<16x256xf32>
    %216 = math.tanh %215 : vector<16x256xf32>
    %c1_i32_102 = arith.constant 1 : i32
    %217 = tpu.dynamic_rotate %216 by %c1_i32_102 dim 0 : vector<16x256xf32>, i32 -> vector<16x256xf32>
    %218 = vector.broadcast %4 : vector<16x1xf32> to vector<16x256xf32>
    %219 = arith.mulf %217, %218 : vector<16x256xf32>
    %c15_i32_103 = arith.constant 15 : i32
    %220 = tpu.dynamic_rotate %216 by %c15_i32_103 dim 0 : vector<16x256xf32>, i32 -> vector<16x256xf32>
    %221 = vector.broadcast %8 : vector<16x1xf32> to vector<16x256xf32>
    %222 = arith.mulf %220, %221 : vector<16x256xf32>
    %223 = tpu.concatenate %219, %216, %222 in 1 : vector<16x256xf32>, vector<16x256xf32>, vector<16x256xf32> -> vector<16x768xf32>
    %c0_104 = arith.constant 0 : index
    %c0_105 = arith.constant 0 : index
    %224 = vector.load %arg4[%c0_104, %c0_105] : memref<768x256xf32, #tpu.memory_space<vmem>>, vector<768x256xf32>
    %cst_106 = arith.constant dense<0.000000e+00> : vector<16x256xf32>
    %225 = tpu.matmul %223, %224, %cst_106 {dimension_numbers = #tpu.dot_dimension_numbers<[1], [0], [0], [1], [0, 0, 1, 1], [], []>} : vector<16x768xf32>, vector<768x256xf32>, vector<16x256xf32> -> vector<16x256xf32>
    %c0_107 = arith.constant 0 : index
    %c0_108 = arith.constant 0 : index
    %226 = vector.load %arg5[%c0_107, %c0_108] : memref<1x256xf32, #tpu.memory_space<vmem>>, vector<1x256xf32>
    %227 = vector.broadcast %226 : vector<1x256xf32> to vector<16x256xf32>
    %228 = arith.addf %225, %227 : vector<16x256xf32>
    %229 = math.tanh %228 : vector<16x256xf32>
    %c1_i32_109 = arith.constant 1 : i32
    %230 = tpu.dynamic_rotate %229 by %c1_i32_109 dim 0 : vector<16x256xf32>, i32 -> vector<16x256xf32>
    %231 = vector.broadcast %4 : vector<16x1xf32> to vector<16x256xf32>
    %232 = arith.mulf %230, %231 : vector<16x256xf32>
    %c15_i32_110 = arith.constant 15 : i32
    %233 = tpu.dynamic_rotate %229 by %c15_i32_110 dim 0 : vector<16x256xf32>, i32 -> vector<16x256xf32>
    %234 = vector.broadcast %8 : vector<16x1xf32> to vector<16x256xf32>
    %235 = arith.mulf %233, %234 : vector<16x256xf32>
    %236 = tpu.concatenate %232, %229, %235 in 1 : vector<16x256xf32>, vector<16x256xf32>, vector<16x256xf32> -> vector<16x768xf32>
    %c0_111 = arith.constant 0 : index
    %c0_112 = arith.constant 0 : index
    %237 = vector.load %arg6[%c0_111, %c0_112] : memref<768x128xf32, #tpu.memory_space<vmem>>, vector<768x128xf32>
    %cst_113 = arith.constant dense<0.000000e+00> : vector<16x128xf32>
    %238 = tpu.matmul %236, %237, %cst_113 {dimension_numbers = #tpu.dot_dimension_numbers<[1], [0], [0], [1], [0, 0, 1, 1], [], []>} : vector<16x768xf32>, vector<768x128xf32>, vector<16x128xf32> -> vector<16x128xf32>
    %c0_114 = arith.constant 0 : index
    %c0_115 = arith.constant 0 : index
    %239 = vector.load %arg7[%c0_114, %c0_115] : memref<1x128xf32, #tpu.memory_space<vmem>>, vector<1x128xf32>
    %240 = vector.broadcast %239 : vector<1x128xf32> to vector<16x128xf32>
    %241 = arith.addf %238, %240 : vector<16x128xf32>
    %242 = vector.broadcast %203 : f32 to vector<16x128xf32>
    %243 = arith.mulf %242, %241 : vector<16x128xf32>
    %244 = arith.addf %197, %243 : vector<16x128xf32>
    %c5_i32 = arith.constant 5 : i32
    %245 = arith.index_cast %c5_i32 : i32 to index
    %c0_116 = arith.constant 0 : index
    %c0_117 = arith.constant 0 : index
    %246 = vector.load %arg8[%245, %c0_116, %c0_117] : memref<8x16x128xf32, #tpu.memory_space<vmem>>, vector<1x16x128xf32>
    %247 = vector.shape_cast %246 : vector<1x16x128xf32> to vector<16x128xf32>
    %248 = vector.shape_cast %244 : vector<16x128xf32> to vector<1x16x128xf32>
    tpu.vector_store %arg8[%245, %c0_116, %c0_117], %248 {strides = array<i32>} : memref<8x16x128xf32, #tpu.memory_space<vmem>>, vector<1x16x128xf32>,
    %249 = arith.index_cast %c5_i32 : i32 to index
    %250 = memref.load %arg0[%249] : memref<8xf32, #tpu.memory_space<smem>>
    %c1_i32_118 = arith.constant 1 : i32
    %251 = tpu.dynamic_rotate %244 by %c1_i32_118 dim 0 : vector<16x128xf32>, i32 -> vector<16x128xf32>
    %252 = vector.broadcast %4 : vector<16x1xf32> to vector<16x128xf32>
    %253 = arith.mulf %251, %252 : vector<16x128xf32>
    %c15_i32_119 = arith.constant 15 : i32
    %254 = tpu.dynamic_rotate %244 by %c15_i32_119 dim 0 : vector<16x128xf32>, i32 -> vector<16x128xf32>
    %255 = vector.broadcast %8 : vector<16x1xf32> to vector<16x128xf32>
    %256 = arith.mulf %254, %255 : vector<16x128xf32>
    %257 = tpu.concatenate %253, %244, %256 in 1 : vector<16x128xf32>, vector<16x128xf32>, vector<16x128xf32> -> vector<16x384xf32>
    %c0_120 = arith.constant 0 : index
    %c0_121 = arith.constant 0 : index
    %258 = vector.load %arg2[%c0_120, %c0_121] : memref<384x256xf32, #tpu.memory_space<vmem>>, vector<384x256xf32>
    %cst_122 = arith.constant dense<0.000000e+00> : vector<16x256xf32>
    %259 = tpu.matmul %257, %258, %cst_122 {dimension_numbers = #tpu.dot_dimension_numbers<[1], [0], [0], [1], [0, 0, 1, 1], [], []>} : vector<16x384xf32>, vector<384x256xf32>, vector<16x256xf32> -> vector<16x256xf32>
    %c0_123 = arith.constant 0 : index
    %c0_124 = arith.constant 0 : index
    %260 = vector.load %arg3[%c0_123, %c0_124] : memref<1x256xf32, #tpu.memory_space<vmem>>, vector<1x256xf32>
    %261 = vector.broadcast %260 : vector<1x256xf32> to vector<16x256xf32>
    %262 = arith.addf %259, %261 : vector<16x256xf32>
    %263 = math.tanh %262 : vector<16x256xf32>
    %c1_i32_125 = arith.constant 1 : i32
    %264 = tpu.dynamic_rotate %263 by %c1_i32_125 dim 0 : vector<16x256xf32>, i32 -> vector<16x256xf32>
    %265 = vector.broadcast %4 : vector<16x1xf32> to vector<16x256xf32>
    %266 = arith.mulf %264, %265 : vector<16x256xf32>
    %c15_i32_126 = arith.constant 15 : i32
    %267 = tpu.dynamic_rotate %263 by %c15_i32_126 dim 0 : vector<16x256xf32>, i32 -> vector<16x256xf32>
    %268 = vector.broadcast %8 : vector<16x1xf32> to vector<16x256xf32>
    %269 = arith.mulf %267, %268 : vector<16x256xf32>
    %270 = tpu.concatenate %266, %263, %269 in 1 : vector<16x256xf32>, vector<16x256xf32>, vector<16x256xf32> -> vector<16x768xf32>
    %c0_127 = arith.constant 0 : index
    %c0_128 = arith.constant 0 : index
    %271 = vector.load %arg4[%c0_127, %c0_128] : memref<768x256xf32, #tpu.memory_space<vmem>>, vector<768x256xf32>
    %cst_129 = arith.constant dense<0.000000e+00> : vector<16x256xf32>
    %272 = tpu.matmul %270, %271, %cst_129 {dimension_numbers = #tpu.dot_dimension_numbers<[1], [0], [0], [1], [0, 0, 1, 1], [], []>} : vector<16x768xf32>, vector<768x256xf32>, vector<16x256xf32> -> vector<16x256xf32>
    %c0_130 = arith.constant 0 : index
    %c0_131 = arith.constant 0 : index
    %273 = vector.load %arg5[%c0_130, %c0_131] : memref<1x256xf32, #tpu.memory_space<vmem>>, vector<1x256xf32>
    %274 = vector.broadcast %273 : vector<1x256xf32> to vector<16x256xf32>
    %275 = arith.addf %272, %274 : vector<16x256xf32>
    %276 = math.tanh %275 : vector<16x256xf32>
    %c1_i32_132 = arith.constant 1 : i32
    %277 = tpu.dynamic_rotate %276 by %c1_i32_132 dim 0 : vector<16x256xf32>, i32 -> vector<16x256xf32>
    %278 = vector.broadcast %4 : vector<16x1xf32> to vector<16x256xf32>
    %279 = arith.mulf %277, %278 : vector<16x256xf32>
    %c15_i32_133 = arith.constant 15 : i32
    %280 = tpu.dynamic_rotate %276 by %c15_i32_133 dim 0 : vector<16x256xf32>, i32 -> vector<16x256xf32>
    %281 = vector.broadcast %8 : vector<16x1xf32> to vector<16x256xf32>
    %282 = arith.mulf %280, %281 : vector<16x256xf32>
    %283 = tpu.concatenate %279, %276, %282 in 1 : vector<16x256xf32>, vector<16x256xf32>, vector<16x256xf32> -> vector<16x768xf32>
    %c0_134 = arith.constant 0 : index
    %c0_135 = arith.constant 0 : index
    %284 = vector.load %arg6[%c0_134, %c0_135] : memref<768x128xf32, #tpu.memory_space<vmem>>, vector<768x128xf32>
    %cst_136 = arith.constant dense<0.000000e+00> : vector<16x128xf32>
    %285 = tpu.matmul %283, %284, %cst_136 {dimension_numbers = #tpu.dot_dimension_numbers<[1], [0], [0], [1], [0, 0, 1, 1], [], []>} : vector<16x768xf32>, vector<768x128xf32>, vector<16x128xf32> -> vector<16x128xf32>
    %c0_137 = arith.constant 0 : index
    %c0_138 = arith.constant 0 : index
    %286 = vector.load %arg7[%c0_137, %c0_138] : memref<1x128xf32, #tpu.memory_space<vmem>>, vector<1x128xf32>
    %287 = vector.broadcast %286 : vector<1x128xf32> to vector<16x128xf32>
    %288 = arith.addf %285, %287 : vector<16x128xf32>
    %289 = vector.broadcast %250 : f32 to vector<16x128xf32>
    %290 = arith.mulf %289, %288 : vector<16x128xf32>
    %291 = arith.addf %244, %290 : vector<16x128xf32>
    %c6_i32 = arith.constant 6 : i32
    %292 = arith.index_cast %c6_i32 : i32 to index
    %c0_139 = arith.constant 0 : index
    %c0_140 = arith.constant 0 : index
    %293 = vector.load %arg8[%292, %c0_139, %c0_140] : memref<8x16x128xf32, #tpu.memory_space<vmem>>, vector<1x16x128xf32>
    %294 = vector.shape_cast %293 : vector<1x16x128xf32> to vector<16x128xf32>
    %295 = vector.shape_cast %291 : vector<16x128xf32> to vector<1x16x128xf32>
    tpu.vector_store %arg8[%292, %c0_139, %c0_140], %295 {strides = array<i32>} : memref<8x16x128xf32, #tpu.memory_space<vmem>>, vector<1x16x128xf32>,
    %296 = arith.index_cast %c6_i32 : i32 to index
    %297 = memref.load %arg0[%296] : memref<8xf32, #tpu.memory_space<smem>>
    %c1_i32_141 = arith.constant 1 : i32
    %298 = tpu.dynamic_rotate %291 by %c1_i32_141 dim 0 : vector<16x128xf32>, i32 -> vector<16x128xf32>
    %299 = vector.broadcast %4 : vector<16x1xf32> to vector<16x128xf32>
    %300 = arith.mulf %298, %299 : vector<16x128xf32>
    %c15_i32_142 = arith.constant 15 : i32
    %301 = tpu.dynamic_rotate %291 by %c15_i32_142 dim 0 : vector<16x128xf32>, i32 -> vector<16x128xf32>
    %302 = vector.broadcast %8 : vector<16x1xf32> to vector<16x128xf32>
    %303 = arith.mulf %301, %302 : vector<16x128xf32>
    %304 = tpu.concatenate %300, %291, %303 in 1 : vector<16x128xf32>, vector<16x128xf32>, vector<16x128xf32> -> vector<16x384xf32>
    %c0_143 = arith.constant 0 : index
    %c0_144 = arith.constant 0 : index
    %305 = vector.load %arg2[%c0_143, %c0_144] : memref<384x256xf32, #tpu.memory_space<vmem>>, vector<384x256xf32>
    %cst_145 = arith.constant dense<0.000000e+00> : vector<16x256xf32>
    %306 = tpu.matmul %304, %305, %cst_145 {dimension_numbers = #tpu.dot_dimension_numbers<[1], [0], [0], [1], [0, 0, 1, 1], [], []>} : vector<16x384xf32>, vector<384x256xf32>, vector<16x256xf32> -> vector<16x256xf32>
    %c0_146 = arith.constant 0 : index
    %c0_147 = arith.constant 0 : index
    %307 = vector.load %arg3[%c0_146, %c0_147] : memref<1x256xf32, #tpu.memory_space<vmem>>, vector<1x256xf32>
    %308 = vector.broadcast %307 : vector<1x256xf32> to vector<16x256xf32>
    %309 = arith.addf %306, %308 : vector<16x256xf32>
    %310 = math.tanh %309 : vector<16x256xf32>
    %c1_i32_148 = arith.constant 1 : i32
    %311 = tpu.dynamic_rotate %310 by %c1_i32_148 dim 0 : vector<16x256xf32>, i32 -> vector<16x256xf32>
    %312 = vector.broadcast %4 : vector<16x1xf32> to vector<16x256xf32>
    %313 = arith.mulf %311, %312 : vector<16x256xf32>
    %c15_i32_149 = arith.constant 15 : i32
    %314 = tpu.dynamic_rotate %310 by %c15_i32_149 dim 0 : vector<16x256xf32>, i32 -> vector<16x256xf32>
    %315 = vector.broadcast %8 : vector<16x1xf32> to vector<16x256xf32>
    %316 = arith.mulf %314, %315 : vector<16x256xf32>
    %317 = tpu.concatenate %313, %310, %316 in 1 : vector<16x256xf32>, vector<16x256xf32>, vector<16x256xf32> -> vector<16x768xf32>
    %c0_150 = arith.constant 0 : index
    %c0_151 = arith.constant 0 : index
    %318 = vector.load %arg4[%c0_150, %c0_151] : memref<768x256xf32, #tpu.memory_space<vmem>>, vector<768x256xf32>
    %cst_152 = arith.constant dense<0.000000e+00> : vector<16x256xf32>
    %319 = tpu.matmul %317, %318, %cst_152 {dimension_numbers = #tpu.dot_dimension_numbers<[1], [0], [0], [1], [0, 0, 1, 1], [], []>} : vector<16x768xf32>, vector<768x256xf32>, vector<16x256xf32> -> vector<16x256xf32>
    %c0_153 = arith.constant 0 : index
    %c0_154 = arith.constant 0 : index
    %320 = vector.load %arg5[%c0_153, %c0_154] : memref<1x256xf32, #tpu.memory_space<vmem>>, vector<1x256xf32>
    %321 = vector.broadcast %320 : vector<1x256xf32> to vector<16x256xf32>
    %322 = arith.addf %319, %321 : vector<16x256xf32>
    %323 = math.tanh %322 : vector<16x256xf32>
    %c1_i32_155 = arith.constant 1 : i32
    %324 = tpu.dynamic_rotate %323 by %c1_i32_155 dim 0 : vector<16x256xf32>, i32 -> vector<16x256xf32>
    %325 = vector.broadcast %4 : vector<16x1xf32> to vector<16x256xf32>
    %326 = arith.mulf %324, %325 : vector<16x256xf32>
    %c15_i32_156 = arith.constant 15 : i32
    %327 = tpu.dynamic_rotate %323 by %c15_i32_156 dim 0 : vector<16x256xf32>, i32 -> vector<16x256xf32>
    %328 = vector.broadcast %8 : vector<16x1xf32> to vector<16x256xf32>
    %329 = arith.mulf %327, %328 : vector<16x256xf32>
    %330 = tpu.concatenate %326, %323, %329 in 1 : vector<16x256xf32>, vector<16x256xf32>, vector<16x256xf32> -> vector<16x768xf32>
    %c0_157 = arith.constant 0 : index
    %c0_158 = arith.constant 0 : index
    %331 = vector.load %arg6[%c0_157, %c0_158] : memref<768x128xf32, #tpu.memory_space<vmem>>, vector<768x128xf32>
    %cst_159 = arith.constant dense<0.000000e+00> : vector<16x128xf32>
    %332 = tpu.matmul %330, %331, %cst_159 {dimension_numbers = #tpu.dot_dimension_numbers<[1], [0], [0], [1], [0, 0, 1, 1], [], []>} : vector<16x768xf32>, vector<768x128xf32>, vector<16x128xf32> -> vector<16x128xf32>
    %c0_160 = arith.constant 0 : index
    %c0_161 = arith.constant 0 : index
    %333 = vector.load %arg7[%c0_160, %c0_161] : memref<1x128xf32, #tpu.memory_space<vmem>>, vector<1x128xf32>
    %334 = vector.broadcast %333 : vector<1x128xf32> to vector<16x128xf32>
    %335 = arith.addf %332, %334 : vector<16x128xf32>
    %336 = vector.broadcast %297 : f32 to vector<16x128xf32>
    %337 = arith.mulf %336, %335 : vector<16x128xf32>
    %338 = arith.addf %291, %337 : vector<16x128xf32>
    %c7_i32 = arith.constant 7 : i32
    %c7 = arith.constant 7 : index
    %c0_162 = arith.constant 0 : index
    %c0_163 = arith.constant 0 : index
    %339 = vector.load %arg8[%c7, %c0_162, %c0_163] : memref<8x16x128xf32, #tpu.memory_space<vmem>>, vector<1x16x128xf32>
    %340 = vector.shape_cast %339 : vector<1x16x128xf32> to vector<16x128xf32>
    %341 = vector.shape_cast %338 : vector<16x128xf32> to vector<1x16x128xf32>
    tpu.vector_store %arg8[%c7, %c0_162, %c0_163], %341 {strides = array<i32>} : memref<8x16x128xf32, #tpu.memory_space<vmem>>, vector<1x16x128xf32>,
    return
  }
}

</mosaic_0001>

<bundles_post_ra>
// kernel: diffeq_solver_forward.1
= control target key start
LH: loop header
LB: loop body
LE: loop exit
PB: predicated region body
PF: predicated region fallthrough
CT: control target
= control target key end

     0   :  { %13 = vsyncpa [#allocation4], 0  ;;  %s9785_s0 = inlined_call_operand.vmem [shape: f32[8], index: 0, kind: input, shape index: {}]   ;;  %s9786_s1 = inlined_call_operand.vmem [shape: f32[16,128], index: 1, kind: input, shape index: {}]   ;;  %s9787_s2 = inlined_call_operand.hbm [shape: f32[384,256], index: 2, kind: input, shape index: {}]   ;;  %s9788_s3 = inlined_call_operand.vmem [shape: f32[1,256], index: 3, kind: input, shape index: {}]   ;;  %s9789_s4 = inlined_call_operand.hbm [shape: f32[768,256], index: 4, kind: input, shape index: {}]   ;;  %s9790_s5 = inlined_call_operand.vmem [shape: f32[1,256], index: 5, kind: input, shape index: {}]   ;;  %s9791_s6 = inlined_call_operand.hbm [shape: f32[768,128], index: 6, kind: input, shape index: {}]   ;;  %s9792_s7 = inlined_call_operand.vmem [shape: f32[1,128], index: 7, kind: input, shape index: {}]   ;;  %s9793_s8 = inlined_call_operand.vmem [shape: f32[8,16,128], index: 8, kind: output, shape index: {}]  }
   0x1   :  { %14 = vsyncpa [#allocation3], 0 }
   0x2   :  { %15 = vsyncpa [#allocation7], 0  ;;  %s22_s29 = sshll.u32 %s9785_s0, 4  ;;  %s8865_s30 = smov [#allocation6]   ;;  %s23_s29 = int_to_ptr.vmem [resolvable:$true] %s22_s29 }
   0x3   :  { %s47_s9 = sshll.u32 %s8865_s30, 4  ;;  %s48_s9 = int_to_ptr.vmem [resolvable:$true] %s47_s9 }
   0x4   :  { %s8795_s10 = scalar_lea.vmem %s48_s9, 24576  ;;  %p8800_p1 = scmp.lt.s32.totalorder %s48_s9, %s48_s9 }
   0x5   :  { %p8796_p0 = scmp.ne.s32.totalorder %s48_s9, %s8795_s10  ;;  %p8801_p2 = scmp.lt.s32.totalorder %s8795_s10, %s8795_s10 }
   0x7   :  { %p8802_p3 = por %p8801_p2, %p8800_p1 }
   0x9   :  { %p8803_p4 = pnand %p8802_p3, %p8796_p0 }
   0xb   :  { %8806 = shalt.err (!%p8803_p4)
}
   0xc   :  { %s8866_s11 = smov 256   ;;  %s8867_s12 = smov 16  }
   0xd   :  { %53 = dma.hbm_to_vmem [thread:$0]  %s9789_s4, 24576, %s48_s9, [#allocation7], %s8866_s11, %s8866_s11, %s8867_s12  }
   0xe   :  { %s8807_s15 = scalar_lea.vmem %s23_s29, 16  ;;  %p8812_p6 = scmp.lt.s32.totalorder %s23_s29, %s23_s29 }
   0xf   :  { %p8808_p5 = scmp.ne.s32.totalorder %s23_s29, %s8807_s15  ;;  %p8813_p7 = scmp.lt.s32.totalorder %s8807_s15, %s8807_s15 }
  0x11   :  { %p8814_p8 = por %p8813_p7, %p8812_p6 }
  0x13   :  { %p8815_p9 = pnand %p8814_p8, %p8808_p5 }
  0x15   :  { %8818 = shalt.err (!%p8815_p9)
}
  0x16   :  { %s8868_s0 = smov [#allocation2]   ;;  %s8869_s16 = smov [#allocation5]  }
  0x17   :  { %25 = dma.vmem_to_smem %s23_s29, 16, %s8868_s0, [#allocation4]  }
  0x18   :  { %s33_s17 = sshll.u32 %s8869_s16, 4  ;;  %s8870_s18 = smov [#allocation8]   ;;  %s34_s17 = int_to_ptr.vmem [resolvable:$true] %s33_s17 }
  0x19   :  { %s61_s19 = sshll.u32 %s8870_s18, 4  ;;  %s8827_s20 = scalar_lea.vmem %s34_s17, 12288  ;;  %s62_s19 = int_to_ptr.vmem [resolvable:$true] %s61_s19 }
  0x1a   :  { %p8828_p10 = scmp.ne.s32.totalorder %s34_s17, %s8827_s20  ;;  %p8832_p11 = scmp.lt.s32.totalorder %s34_s17, %s34_s17 }
  0x1b   :  { %p8833_p12 = scmp.lt.s32.totalorder %s8827_s20, %s8827_s20 }
  0x1d   :  { %p8834_p13 = por %p8833_p12, %p8832_p11 }
  0x1f   :  { %p8835_p0 = pnand %p8834_p13, %p8828_p10 }
  0x21   :  { %8838 = shalt.err (!%p8835_p0)
}
  0x22   :  { %39 = dma.hbm_to_vmem [thread:$0]  %s9787_s2, 12288, %s34_s17, [#allocation3], %s8866_s11, %s8866_s11, %s8867_s12  }
  0x23   :  { %s8847_s22 = scalar_lea.vmem %s62_s19, 12288  ;;  %p8852_p2 = scmp.lt.s32.totalorder %s62_s19, %s62_s19 }
  0x24   :  { %p8848_p1 = scmp.ne.s32.totalorder %s62_s19, %s8847_s22  ;;  %p8853_p3 = scmp.lt.s32.totalorder %s8847_s22, %s8847_s22 }
  0x26   :  { %p8854_p4 = por %p8853_p3, %p8852_p2 }
  0x28   :  { %p8855_p5 = pnand %p8854_p4, %p8848_p1 }
  0x2a   :  { %8858 = shalt.err (!%p8855_p5)
}
  0x2b   :  { %s8871_s23 = smov 128   ;;  %s8872_s24 = smov 8  }
  0x2c   :  { %67 = dma.hbm_to_vmem [thread:$0]  %s9791_s6, 12288, %s62_s19, [#allocation7], %s8871_s23, %s8871_s23, %s8872_s24  }
  0x2d   :  { %8859 = dma.done.wait [#allocation4], 16  }
  0x2e   :  { %8860 = vsyncadd [#allocation4], 4294967280 }
  0x2f   :  { %8861 = dma.done.wait [#allocation3], 12288  }
  0x30   :  { %8862 = vsyncadd [#allocation3], 4294955008 }
  0x31   :  { %8863 = dma.done.wait [#allocation7], 36864  }
  0x32   :  { %8864 = vsyncadd [#allocation7], 4294930432 }
  0x33   :  { %82 = sfence }
  0x34   :  { %v148_v0 = vld [vmem:[#allocation5 + $0xf8] sm:$0xff]  ;;  %v147_v1 = vld [vmem:[#allocation5 + $0xf0] sm:$0xff]  ;;  %v146_v2 = vld [vmem:[#allocation5 + $0xe8] sm:$0xff]  ;;  %v8873_v4 = vmov 0.0   ;;  %v83_v54 = vlaneseq  ;;  %s102_s14 = sld [smem:[#allocation2]] }
  0x35   :  { %225 = vmatprep.subr.mxu0 %v148_v0  ;;  %v145_v3 = vld [vmem:[#allocation5 + $0xe0] sm:$0xff]  ;;  %366 = vmatprep.mubr.f32.mxu1 %v8873_v4  ;;  %v144_v5 = vld [vmem:[#allocation5 + $0xd8] sm:$0xff]  ;;  %v143_v6 = vld [vmem:[#allocation5 + $0xd0] sm:$0xff]  ;;  %s7830_s2 = sld [smem:[#allocation2 + $0x1]] }
  0x36   :  { %226 = vmatpush1.msra.mxu0 %v147_v1  ;;  %v142_v7 = vld [vmem:[#allocation5 + $0xc8] sm:$0xff]  ;;  %v141_v8 = vld [vmem:[#allocation5 + $0xc0] sm:$0xff]  ;;  %v140_v9 = vld [vmem:[#allocation5 + $0xb8] sm:$0xff]  ;;  %v8946_v1 = vshrl.u32 %v83_v54, 7  ;;  %s7834_s16 = sld [smem:[#allocation2 + $0x2]] }
  0x37   :  { %227 = vmatprep.subr.mxu0 %v146_v2  ;;  %v139_v10 = vld [vmem:[#allocation5 + $0xb0] sm:$0xff]  ;;  %v138_v11 = vld [vmem:[#allocation5 + $0xa8] sm:$0xff]  ;;  %v137_v12 = vld [vmem:[#allocation5 + $0xa0] sm:$0xff]  ;;  %s7838_s28 = sld [smem:[#allocation2 + $0x3]] }
  0x38   :  { %228 = vmatpush1.msra.mxu0 %v145_v3  ;;  %v136_v13 = vld [vmem:[#allocation5 + $0x98] sm:$0xff]  ;;  %v135_v14 = vld [vmem:[#allocation5 + $0x90] sm:$0xff]  ;;  %v134_v17 = vld [vmem:[#allocation5 + $0x88] sm:$0xff]  ;;  %vm112_vm1 = vcmp.lt.s32.totalorder %v8946_v1, 7  ;;  %vm86_vm2 = vcmp.gt.s32.totalorder %v8946_v1, 0  ;;  %vm105_vm3 = vcmp.lt.s32.totalorder %v8946_v1, 1 }
  0x39   :  { %229 = vmatprep.subr.mxu0 %v144_v5  ;;  %v212_v15 = vld [vmem:[#allocation5 + $0x2f8] sm:$0xff]  ;;  %v211_v16 = vld [vmem:[#allocation5 + $0x2f0] sm:$0xff]  ;;  %v210_v18 = vld [vmem:[#allocation5 + $0x2e8] sm:$0xff]  ;;  %s7842_s19 = sld [smem:[#allocation2 + $0x4]] }
  0x3a   :  { %230 = vmatpush1.msra.mxu0 %v143_v6  ;;  %302 = vmatprep.subr.mxu1 %v212_v15  ;;  %v133_v19 = vld [vmem:[#allocation5 + $0x80] sm:$0xff]  ;;  %v208_v21 = vld [vmem:[#allocation5 + $0x2d8] sm:$0xff]  ;;  %v207_v23 = vld [vmem:[#allocation5 + $0x2d0] sm:$0xff]  ;;  %s7846_s9 = sld [smem:[#allocation2 + $0x5]] }
  0x3b   :  { %231 = vmatprep.subr.mxu0 %v142_v7  ;;  %303 = vmatpush1.msra.mxu1 %v211_v16  ;;  %v209_v20 = vld [vmem:[#allocation5 + $0x2e0] sm:$0xff]  ;;  %v132_v22 = vld [vmem:[#allocation5 + $0x78] sm:$0xff]  ;;  %v131_v24 = vld [vmem:[#allocation5 + $0x70] sm:$0xff]  ;;  %v85_v7 = vadd.s32 8, %v8946_v1 }
  0x3c   :  { %232 = vmatpush1.msra.mxu0 %v141_v8  ;;  %304 = vmatprep.subr.mxu1 %v210_v18  ;;  %v206_v25 = vld [vmem:[#allocation5 + $0x2c8] sm:$0xff]  ;;  %v205_v27 = vld [vmem:[#allocation5 + $0x2c0] sm:$0xff]  ;;  %v204_v29 = vld [vmem:[#allocation5 + $0x2b8] sm:$0xff] }
  0x3d   :  { %233 = vmatprep.subr.mxu0 %v140_v9  ;;  %305 = vmatpush1.msra.mxu1 %v209_v20  ;;  %v130_v26 = vld [vmem:[#allocation5 + $0x68] sm:$0xff]  ;;  %v129_v28 = vld [vmem:[#allocation5 + $0x60] sm:$0xff]  ;;  %v128_v30 = vld [vmem:[#allocation5 + $0x58] sm:$0xff]  ;;  %vm93_vm0 = vcmp.lt.s32.totalorder %v85_v7, 15 }
  0x3e   :  { %234 = vmatpush1.msra.mxu0 %v139_v10  ;;  %306 = vmatprep.subr.mxu1 %v208_v21  ;;  %v203_v31 = vld [vmem:[#allocation5 + $0x2b0] sm:$0xff]  ;;  %v202_v33 = vld [vmem:[#allocation5 + $0x2a8] sm:$0xff]  ;;  %v201_v35 = vld [vmem:[#allocation5 + $0x2a0] sm:$0xff] }
  0x3f   :  { %235 = vmatprep.subr.mxu0 %v138_v11  ;;  %307 = vmatpush1.msra.mxu1 %v207_v23  ;;  %v127_v32 = vld [vmem:[#allocation5 + $0x50] sm:$0xff]  ;;  %v126_v34 = vld [vmem:[#allocation5 + $0x48] sm:$0xff]  ;;  %v125_v36 = vld [vmem:[#allocation5 + $0x40] sm:$0xff] }
  0x40   :  { %236 = vmatpush1.msra.mxu0 %v137_v12  ;;  %308 = vmatprep.subr.mxu1 %v206_v25  ;;  %v200_v37 = vld [vmem:[#allocation5 + $0x298] sm:$0xff]  ;;  %v199_v39 = vld [vmem:[#allocation5 + $0x290] sm:$0xff]  ;;  %v198_v41 = vld [vmem:[#allocation5 + $0x288] sm:$0xff] }
  0x41   :  { %237 = vmatprep.subr.mxu0 %v136_v13  ;;  %309 = vmatpush1.msra.mxu1 %v205_v27  ;;  %v124_v38 = vld [vmem:[#allocation5 + $0x38] sm:$0xff]  ;;  %v123_v40 = vld [vmem:[#allocation5 + $0x30] sm:$0xff]  ;;  %v122_v42 = vld [vmem:[#allocation5 + $0x28] sm:$0xff] }
  0x42   :  { %238 = vmatpush1.msra.mxu0 %v135_v14  ;;  %310 = vmatprep.subr.mxu1 %v204_v29  ;;  %v197_v43 = vld [vmem:[#allocation5 + $0x280] sm:$0xff]  ;;  %v196_v45 = vld [vmem:[#allocation5 + $0x278] sm:$0xff]  ;;  %v195_v47 = vld [vmem:[#allocation5 + $0x270] sm:$0xff] }
  0x43   :  { %239 = vmatprep.subr.mxu0 %v134_v17  ;;  %311 = vmatpush1.msra.mxu1 %v203_v31  ;;  %v121_v44 = vld [vmem:[#allocation5 + $0x20] sm:$0xff]  ;;  %v120_v46 = vld [vmem:[#allocation5 + $0x18] sm:$0xff]  ;;  %v119_v48 = vld [vmem:[#allocation5 + $0x10] sm:$0xff] }
  0x44   :  { %240 = vmatpush1.msra.mxu0 %v133_v19  ;;  %312 = vmatprep.subr.mxu1 %v202_v33  ;;  %v194_v49 = vld [vmem:[#allocation5 + $0x268] sm:$0xff]  ;;  %v193_v51 = vld [vmem:[#allocation5 + $0x260] sm:$0xff]  ;;  %v192_v53 = vld [vmem:[#allocation5 + $0x258] sm:$0xff] }
  0x45   :  { %241 = vmatprep.subr.mxu0 %v132_v22  ;;  %313 = vmatpush1.msra.mxu1 %v201_v35  ;;  %v118_v50 = vld [vmem:[#allocation5 + $0x8] sm:$0xff]  ;;  %v117_v52 = vld [vmem:[#allocation5] sm:$0xff]  ;;  %v180_v55 = vld [vmem:[#allocation5 + $0x1f8] sm:$0xff]  ;;  %v8957_v22 = vsel %vm93_vm0, 1.0, %v8873_v4 }
  0x46   :  { %242 = vmatpush1.msra.mxu0 %v131_v24  ;;  %314 = vmatprep.subr.mxu1 %v200_v37  ;;  %v191_v56 = vld [vmem:[#allocation5 + $0x250] sm:$0xff]  ;;  %v190_v58 = vld [vmem:[#allocation5 + $0x248] sm:$0xff]  ;;  %v8935_v59 = vld [vmem:[%s9786_s1] sm:$0xff] }
  0x47   :  { %243 = vmatprep.subr.mxu0 %v130_v26  ;;  %315 = vmatpush1.msra.mxu1 %v199_v39  ;;  %v179_v57 = vld [vmem:[#allocation5 + $0x1f0] sm:$0xff]  ;;  %v178_v60 = vld [vmem:[#allocation5 + $0x1e8] sm:$0xff]  ;;  %v189_v61 = vld [vmem:[#allocation5 + $0x240] sm:$0xff]  ;;  %100 = vst [vmem:[%s9793_s8] sm:$0xff] %v8935_v59  ;;  %v110_v14 = vrot.slane %v8935_v59, 1 }
  0x48   :  { %244 = vmatpush1.msra.mxu0 %v129_v28  ;;  %316 = vmatprep.subr.mxu1 %v198_v41  ;;  %v8944_v62 = vld [vmem:[%s9786_s1 + $0x8] sm:$0xff]  ;;  %v177_v63 = vld [vmem:[#allocation5 + $0x1e0] sm:$0xff]  ;;  %v188_v0 = vld [vmem:[#allocation5 + $0x238] sm:$0xff] }
  0x49   :  { %245 = vmatprep.subr.mxu0 %v128_v30  ;;  %317 = vmatpush1.msra.mxu1 %v197_v43  ;;  %101 = vst [vmem:[%s9793_s8 + $0x8] sm:$0xff] %v8944_v62  ;;  %v176_v2 = vld [vmem:[#allocation5 + $0x1d8] sm:$0xff]  ;;  %v187_v3 = vld [vmem:[#allocation5 + $0x230] sm:$0xff]  ;;  %v186_v6 = vld [vmem:[#allocation5 + $0x228] sm:$0xff]  ;;  %v111_v15 = vrot.slane %v8944_v62, 1 }
  0x4a   :  { %246 = vmatpush1.msra.mxu0 %v127_v32  ;;  %318 = vmatprep.subr.mxu1 %v196_v45  ;;  %v175_v5 = vld [vmem:[#allocation5 + $0x1d0] sm:$0xff]  ;;  %v174_v8 = vld [vmem:[#allocation5 + $0x1c8] sm:$0xff]  ;;  %v185_v9 = vld [vmem:[#allocation5 + $0x220] sm:$0xff] }
  0x4b   :  { %247 = vmatprep.subr.mxu0 %v126_v34  ;;  %319 = vmatpush1.msra.mxu1 %v195_v47  ;;  %v173_v10 = vld [vmem:[#allocation5 + $0x1c0] sm:$0xff]  ;;  %v184_v11 = vld [vmem:[#allocation5 + $0x218] sm:$0xff]  ;;  %v183_v13 = vld [vmem:[#allocation5 + $0x210] sm:$0xff]  ;;  %v113_v23 = vsel %vm112_vm1, %v110_v14, %v111_v15  ;;  %v114_v24 = vsel %vm112_vm1, %v111_v15, %v110_v14  ;;  %v103_v47 = vrot.slane %v8935_v59, 7 }
  0x4c   :  { %248 = vmatpush1.msra.mxu0 %v125_v36  ;;  %320 = vmatprep.subr.mxu1 %v194_v49  ;;  %v172_v12 = vld [vmem:[#allocation5 + $0x1b8] sm:$0xff]  ;;  %v171_v16 = vld [vmem:[#allocation5 + $0x1b0] sm:$0xff]  ;;  %v182_v17 = vld [vmem:[#allocation5 + $0x208] sm:$0xff]  ;;  %v116_v29 = vmul.f32 %v8957_v22, %v114_v24 }
  0x4d   :  { %249 = vmatprep.subr.mxu0 %v124_v38  ;;  %321 = vmatpush1.msra.mxu1 %v193_v51  ;;  %v170_v18 = vld [vmem:[#allocation5 + $0x1a8] sm:$0xff]  ;;  %v169_v19 = vld [vmem:[#allocation5 + $0x1a0] sm:$0xff]  ;;  %v168_v21 = vld [vmem:[#allocation5 + $0x198] sm:$0xff] }
  0x4e   :  { %250 = vmatpush1.msra.mxu0 %v123_v40  ;;  %322 = vmatprep.subr.mxu1 %v192_v53  ;;  %v181_v20 = vld [vmem:[#allocation5 + $0x200] sm:$0xff]  ;;  %v167_v25 = vld [vmem:[#allocation5 + $0x190] sm:$0xff]  ;;  %v166_v26 = vld [vmem:[#allocation5 + $0x188] sm:$0xff] }
  0x4f   :  { %251 = vmatprep.subr.mxu0 %v122_v42  ;;  %323 = vmatpush1.msra.mxu1 %v191_v56  ;;  %v438_v27 = vld [vmem:[#allocation6 + $0xf8] sm:$0xff]  ;;  %v165_v28 = vld [vmem:[#allocation5 + $0x180] sm:$0xff]  ;;  %v437_v30 = vld [vmem:[#allocation6 + $0xf0] sm:$0xff] }
  0x50   :  { %252 = vmatpush1.msra.mxu0 %v121_v44  ;;  %324 = vmatprep.subr.mxu1 %v190_v58  ;;  %v164_v31 = vld [vmem:[#allocation5 + $0x178] sm:$0xff]  ;;  %v163_v32 = vld [vmem:[#allocation5 + $0x170] sm:$0xff]  ;;  %v436_v33 = vld [vmem:[#allocation6 + $0xe8] sm:$0xff] }
  0x51   :  { %253 = vmatprep.subr.mxu0 %v120_v46  ;;  %325 = vmatpush1.msra.mxu1 %v189_v61  ;;  %v162_v34 = vld [vmem:[#allocation5 + $0x168] sm:$0xff]  ;;  %v435_v35 = vld [vmem:[#allocation6 + $0xe0] sm:$0xff]  ;;  %v434_v37 = vld [vmem:[#allocation6 + $0xd8] sm:$0xff] }
  0x52   :  { %254 = vmatpush1.msra.mxu0 %v119_v48  ;;  %326 = vmatprep.subr.mxu1 %v188_v0  ;;  %v161_v36 = vld [vmem:[#allocation5 + $0x160] sm:$0xff]  ;;  %v160_v38 = vld [vmem:[#allocation5 + $0x158] sm:$0xff]  ;;  %v433_v39 = vld [vmem:[#allocation6 + $0xd0] sm:$0xff]  ;;  %v104_v48 = vrot.slane %v8944_v62, 7 }
  0x53   :  { %255 = vmatprep.subr.mxu0 %v118_v50  ;;  %327 = vmatpush1.msra.mxu1 %v187_v3  ;;  %v159_v40 = vld [vmem:[#allocation5 + $0x150] sm:$0xff]  ;;  %v432_v41 = vld [vmem:[#allocation6 + $0xc8] sm:$0xff]  ;;  %v431_v43 = vld [vmem:[#allocation6 + $0xc0] sm:$0xff] }
  0x54   :  { %256 = vmatpush1.msra.mxu0 %v117_v52  ;;  %328 = vmatprep.subr.mxu1 %v186_v6  ;;  %v158_v42 = vld [vmem:[#allocation5 + $0x148] sm:$0xff]  ;;  %v157_v44 = vld [vmem:[#allocation5 + $0x140] sm:$0xff]  ;;  %v430_v45 = vld [vmem:[#allocation6 + $0xb8] sm:$0xff]  ;;  %v107_v58 = vsel %vm105_vm3, %v104_v48, %v103_v47 }
  0x55   :  { %257 = vmatprep.subr.mxu0 %v180_v55  ;;  %329 = vmatpush1.msra.mxu1 %v185_v9  ;;  %v156_v46 = vld [vmem:[#allocation5 + $0x138] sm:$0xff]  ;;  %v429_v49 = vld [vmem:[#allocation6 + $0xb0] sm:$0xff]  ;;  %v428_v51 = vld [vmem:[#allocation6 + $0xa8] sm:$0xff] }
  0x56   :  { %258 = vmatpush2.msra.mxu0 %v179_v57  ;;  %330 = vmatprep.subr.mxu1 %v184_v11  ;;  %v155_v50 = vld [vmem:[#allocation5 + $0x130] sm:$0xff]  ;;  %v154_v52 = vld [vmem:[#allocation5 + $0x128] sm:$0xff]  ;;  %v427_v53 = vld [vmem:[#allocation6 + $0xa0] sm:$0xff]  ;;  %v8971_v57 = vsel %vm86_vm2, 1.0, %v8873_v4 }
  0x57   :  { %259 = vmatprep.subr.mxu0 %v178_v60  ;;  %331 = vmatpush1.msra.mxu1 %v183_v13  ;;  %v153_v54 = vld [vmem:[#allocation5 + $0x120] sm:$0xff]  ;;  %v426_v55 = vld [vmem:[#allocation6 + $0x98] sm:$0xff]  ;;  %v151_v60 = vld [vmem:[#allocation5 + $0x110] sm:$0xff]  ;;  %v108_v3 = vmul.f32 %v8971_v57, %v107_v58 }
  0x58   :  { %260 = vmatpush2.msra.mxu0 %v177_v63  ;;  %332 = vmatprep.subr.mxu1 %v182_v17  ;;  %v152_v56 = vld [vmem:[#allocation5 + $0x118] sm:$0xff]  ;;  %v424_v61 = vld [vmem:[#allocation6 + $0x88] sm:$0xff]  ;;  %v423_v0 = vld [vmem:[#allocation6 + $0x80] sm:$0xff] }
  0x59   :  { %261 = vmatprep.subr.mxu0 %v176_v2  ;;  %289 = vmatprep.mubr.f32.mxu0 %v8935_v59  ;;  %v425_v59 = vld [vmem:[#allocation6 + $0x90] sm:$0xff]  ;;  %v150_v63 = vld [vmem:[#allocation5 + $0x108] sm:$0xff]  ;;  %v149_v2 = vld [vmem:[#allocation5 + $0x100] sm:$0xff] }
  0x5a   :  { %262 = vmatpush2.msra.mxu0 %v175_v5  ;;  %333 = vmatpush1.msra.mxu1 %v181_v20  ;;  %v422_v5 = vld [vmem:[#allocation6 + $0x78] sm:$0xff]  ;;  %v501_v7 = vld [vmem:[#allocation6 + $0x2f0] sm:$0xff]  ;;  %v420_v11 = vld [vmem:[#allocation6 + $0x68] sm:$0xff] }
  0x5b   :  { %263 = vmatprep.subr.mxu0 %v174_v8  ;;  %367 = vmatmul.mubr.f32.vlgmr.msra.gmra.mxu1 %v113_v23  ;;  %v502_v6 = vld [vmem:[#allocation6 + $0x2f8] sm:$0xff]  ;;  %v500_v8 = vld [vmem:[#allocation6 + $0x2e8] sm:$0xff]  ;;  %v421_v9 = vld [vmem:[#allocation6 + $0x70] sm:$0xff] }
  0x5c   :  { %264 = vmatpush2.msra.mxu0 %v173_v10  ;;  %372 = vmatprep.mubr.f32.mxu1 %v8873_v4  ;;  %v499_v10 = vld [vmem:[#allocation6 + $0x2e0] sm:$0xff]  ;;  %v498_v13 = vld [vmem:[#allocation6 + $0x2d8] sm:$0xff]  ;;  %v497_v14 = vld [vmem:[#allocation6 + $0x2d0] sm:$0xff] }
  0x5d   :  { %265 = vmatprep.subr.mxu0 %v172_v12  ;;  %611 = vmatprep.subr.mxu1 %v438_v27  ;;  %v106_v12 = vsel %vm105_vm3, %v103_v47, %v104_v48  ;;  %v419_v15 = vld [vmem:[#allocation6 + $0x60] sm:$0xff]  ;;  %v418_v17 = vld [vmem:[#allocation6 + $0x58] sm:$0xff]  ;;  %v492_v24 = vld [vmem:[#allocation6 + $0x2a8] sm:$0xff] }
  0x5e   :  { %266 = vmatpush2.msra.mxu0 %v171_v16  ;;  %612 = vmatpush1.msra.mxu1 %v437_v30  ;;  %v496_v16 = vld [vmem:[#allocation6 + $0x2c8] sm:$0xff]  ;;  %v494_v20 = vld [vmem:[#allocation6 + $0x2b8] sm:$0xff]  ;;  %v415_v23 = vld [vmem:[#allocation6 + $0x40] sm:$0xff] }
  0x5f   :  { %267 = vmatprep.subr.mxu0 %v170_v18  ;;  %373 = vmatmul.mubr.f32.gmra.mxu1 %v116_v29  ;;  %v495_v18 = vld [vmem:[#allocation6 + $0x2c0] sm:$0xff]  ;;  %v413_v27 = vld [vmem:[#allocation6 + $0x30] sm:$0xff]  ;;  %v412_v29 = vld [vmem:[#allocation6 + $0x28] sm:$0xff] }
  0x60   :  { %268 = vmatpush2.msra.mxu0 %v169_v19  ;;  %613 = vmatprep.subr.mxu1 %v436_v33  ;;  %v417_v19 = vld [vmem:[#allocation6 + $0x50] sm:$0xff]  ;;  %v410_v33 = vld [vmem:[#allocation6 + $0x18] sm:$0xff]  ;;  %v479_v47 = vld [vmem:[#allocation6 + $0x240] sm:$0xff] }
  0x61   :  { %269 = vmatprep.subr.mxu0 %v168_v21  ;;  %614 = vmatpush1.msra.mxu1 %v435_v35  ;;  %v493_v21 = vld [vmem:[#allocation6 + $0x2b0] sm:$0xff]  ;;  %v478_v48 = vld [vmem:[#allocation6 + $0x238] sm:$0xff] }
  0x62   :  { %270 = vmatpush2.msra.mxu0 %v167_v25  ;;  %615 = vmatprep.subr.mxu1 %v434_v37  ;;  %v414_v25 = vld [vmem:[#allocation6 + $0x38] sm:$0xff]  ;;  %v489_v30 = vld [vmem:[#allocation6 + $0x290] sm:$0xff]  ;;  %v408_v37 = vld [vmem:[#allocation6 + $0x8] sm:$0xff] }
  0x63   :  { %271 = vmatprep.subr.mxu0 %v166_v26  ;;  %616 = vmatpush1.msra.mxu1 %v433_v39  ;;  %v491_v26 = vld [vmem:[#allocation6 + $0x2a0] sm:$0xff]  ;;  %v409_v35 = vld [vmem:[#allocation6 + $0x10] sm:$0xff] }
  0x64   :  { %272 = vmatpush2.msra.mxu0 %v165_v28  ;;  %617 = vmatprep.subr.mxu1 %v432_v41  ;;  %v490_v28 = vld [vmem:[#allocation6 + $0x298] sm:$0xff]  ;;  %v407_v39 = vld [vmem:[#allocation6] sm:$0xff]  ;;  %v533_v58 = vld [vmem:[#allocation6 + $0x3f0] sm:$0xff] }
  0x65   :  { %273 = vmatprep.subr.mxu0 %v164_v31  ;;  %618 = vmatpush1.msra.mxu1 %v431_v43  ;;  %v411_v31 = vld [vmem:[#allocation6 + $0x20] sm:$0xff]  ;;  %v470_v41 = vld [vmem:[#allocation6 + $0x1f8] sm:$0xff]  ;;  %v469_v43 = vld [vmem:[#allocation6 + $0x1f0] sm:$0xff] }
  0x66   :  { %274 = vmatpush2.msra.mxu0 %v163_v32  ;;  %619 = vmatprep.subr.mxu1 %v430_v45  ;;  %v488_v32 = vld [vmem:[#allocation6 + $0x288] sm:$0xff]  ;;  %v481_v45 = vld [vmem:[#allocation6 + $0x250] sm:$0xff] }
  0x67   :  { %275 = vmatprep.subr.mxu0 %v162_v34  ;;  %620 = vmatpush1.msra.mxu1 %v429_v49  ;;  %v487_v34 = vld [vmem:[#allocation6 + $0x280] sm:$0xff]  ;;  %v477_v49 = vld [vmem:[#allocation6 + $0x230] sm:$0xff] }
  0x68   :  { %276 = vmatpush2.msra.mxu0 %v161_v36  ;;  %621 = vmatprep.subr.mxu1 %v428_v51  ;;  %v486_v36 = vld [vmem:[#allocation6 + $0x278] sm:$0xff]  ;;  %v475_v51 = vld [vmem:[#allocation6 + $0x220] sm:$0xff] }
  0x69   :  { %277 = vmatprep.subr.mxu0 %v160_v38  ;;  %622 = vmatpush1.msra.mxu1 %v427_v53  ;;  %v485_v38 = vld [vmem:[#allocation6 + $0x270] sm:$0xff] }
  0x6a   :  { %278 = vmatpush2.msra.mxu0 %v159_v40  ;;  %623 = vmatprep.subr.mxu1 %v426_v55  ;;  %v484_v40 = vld [vmem:[#allocation6 + $0x268] sm:$0xff]  ;;  %v473_v53 = vld [vmem:[#allocation6 + $0x210] sm:$0xff]  ;;  %v471_v55 = vld [vmem:[#allocation6 + $0x200] sm:$0xff] }
  0x6b   :  { %279 = vmatprep.subr.mxu0 %v158_v42  ;;  %624 = vmatpush1.msra.mxu1 %v425_v59  ;;  %v483_v42 = vld [vmem:[#allocation6 + $0x260] sm:$0xff]  ;;  %v532_v59 = vld [vmem:[#allocation6 + $0x3e8] sm:$0xff] }
  0x6c   :  { %280 = vmatpush2.msra.mxu0 %v157_v44  ;;  %625 = vmatprep.subr.mxu1 %v424_v61  ;;  %v482_v44 = vld [vmem:[#allocation6 + $0x258] sm:$0xff] }
  0x6d   :  { %281 = vmatprep.subr.mxu0 %v156_v46  ;;  %626 = vmatpush1.msra.mxu1 %v423_v0  ;;  %v480_v46 = vld [vmem:[#allocation6 + $0x248] sm:$0xff]  ;;  %v530_v61 = vld [vmem:[#allocation6 + $0x3d8] sm:$0xff] }
  0x6e   :  { %282 = vmatpush2.msra.mxu0 %v155_v50  ;;  %627 = vmatprep.subr.mxu1 %v422_v5  ;;  %v476_v50 = vld [vmem:[#allocation6 + $0x228] sm:$0xff]  ;;  %v525_v5 = vld [vmem:[#allocation6 + $0x3b0] sm:$0xff] }
  0x6f   :  { %283 = vmatprep.subr.mxu0 %v154_v52  ;;  %628 = vmatpush1.msra.mxu1 %v421_v9  ;;  %v474_v52 = vld [vmem:[#allocation6 + $0x218] sm:$0xff]  ;;  %v528_v0 = vld [vmem:[#allocation6 + $0x3c8] sm:$0xff]  ;;  %v523_v9 = vld [vmem:[#allocation6 + $0x3a0] sm:$0xff] }
  0x70   :  { %284 = vmatpush2.msra.mxu0 %v153_v54  ;;  %629 = vmatprep.subr.mxu1 %v420_v11  ;;  %v472_v54 = vld [vmem:[#allocation6 + $0x208] sm:$0xff]  ;;  %v522_v11 = vld [vmem:[#allocation6 + $0x398] sm:$0xff] }
  0x71   :  { %285 = vmatprep.subr.mxu0 %v152_v56  ;;  %630 = vmatpush1.msra.mxu1 %v419_v15  ;;  %v534_v56 = vld [vmem:[#allocation6 + $0x3f8] sm:$0xff]  ;;  %v520_v15 = vld [vmem:[#allocation6 + $0x388] sm:$0xff] }
  0x72   :  { %286 = vmatpush2.msra.mxu0 %v151_v60  ;;  %631 = vmatprep.subr.mxu1 %v418_v17  ;;  %v531_v60 = vld [vmem:[#allocation6 + $0x3e0] sm:$0xff] }
  0x73   :  { %287 = vmatprep.subr.mxu0 %v150_v63  ;;  %632 = vmatpush1.msra.mxu1 %v417_v19  ;;  %v529_v63 = vld [vmem:[#allocation6 + $0x3d0] sm:$0xff]  ;;  %v519_v17 = vld [vmem:[#allocation6 + $0x380] sm:$0xff]  ;;  %v518_v19 = vld [vmem:[#allocation6 + $0x378] sm:$0xff] }
  0x74   :  { %288 = vmatpush2.msra.mxu0 %v149_v2  ;;  %v527_v2 = vld [vmem:[#allocation6 + $0x3c0] sm:$0xff] }
  0x75   :  { %290 = vmatmul.mubr.f32.vlgmr.msra.gmra.mxu0 %v108_v3  ;;  %688 = vmatprep.subr.mxu0 %v502_v6  ;;  %v526_v3 = vld [vmem:[#allocation6 + $0x3b8] sm:$0xff]  ;;  %v468_v6 = vld [vmem:[#allocation6 + $0x1e8] sm:$0xff] }
  0x76   :  { %295 = vmatprep.mubr.f32.mxu0 %v8944_v62  ;;  %689 = vmatpush1.msra.mxu0 %v501_v7  ;;  %v416_v62 = vld [vmem:[#allocation6 + $0x48] sm:$0xff] }
  0x77   :  { %690 = vmatprep.subr.mxu0 %v500_v8  ;;  %633 = vmatprep.subr.mxu1 %v416_v62  ;;  %v524_v7 = vld [vmem:[#allocation6 + $0x3a8] sm:$0xff]  ;;  %v467_v8 = vld [vmem:[#allocation6 + $0x1e0] sm:$0xff]  ;;  %v517_v62 = vld [vmem:[#allocation6 + $0x370] sm:$0xff] }
  0x78   :  { %691 = vmatpush1.msra.mxu0 %v499_v10  ;;  %634 = vmatpush1.msra.mxu1 %v415_v23  ;;  %v466_v10 = vld [vmem:[#allocation6 + $0x1d8] sm:$0xff]  ;;  %v516_v23 = vld [vmem:[#allocation6 + $0x368] sm:$0xff] }
  0x79   :  { %296 = vmatmul.mubr.f32.gmra.mxu0 %v106_v12  ;;  %692 = vmatprep.subr.mxu0 %v498_v13  ;;  %v465_v12 = vld [vmem:[#allocation6 + $0x1d0] sm:$0xff] }
  0x7a   :  { %693 = vmatpush1.msra.mxu0 %v497_v14  ;;  %635 = vmatprep.subr.mxu1 %v414_v25  ;;  %v521_v13 = vld [vmem:[#allocation6 + $0x390] sm:$0xff]  ;;  %v464_v14 = vld [vmem:[#allocation6 + $0x1c8] sm:$0xff]  ;;  %v515_v25 = vld [vmem:[#allocation6 + $0x360] sm:$0xff] }
  0x7b   :  { %694 = vmatprep.subr.mxu0 %v496_v16  ;;  %636 = vmatpush1.msra.mxu1 %v413_v27  ;;  %v463_v16 = vld [vmem:[#allocation6 + $0x1c0] sm:$0xff]  ;;  %v514_v27 = vld [vmem:[#allocation6 + $0x358] sm:$0xff] }
  0x7c   :  { %695 = vmatpush1.msra.mxu0 %v495_v18  ;;  %637 = vmatprep.subr.mxu1 %v412_v29  ;;  %v462_v18 = vld [vmem:[#allocation6 + $0x1b8] sm:$0xff]  ;;  %v513_v29 = vld [vmem:[#allocation6 + $0x350] sm:$0xff] }
  0x7d   :  { %696 = vmatprep.subr.mxu0 %v494_v20  ;;  %638 = vmatpush1.msra.mxu1 %v411_v31  ;;  %v461_v20 = vld [vmem:[#allocation6 + $0x1b0] sm:$0xff]  ;;  %v512_v31 = vld [vmem:[#allocation6 + $0x348] sm:$0xff] }
  0x7e   :  { %697 = vmatpush1.msra.mxu0 %v493_v21  ;;  %639 = vmatprep.subr.mxu1 %v410_v33  ;;  %v460_v21 = vld [vmem:[#allocation6 + $0x1a8] sm:$0xff]  ;;  %v511_v33 = vld [vmem:[#allocation6 + $0x340] sm:$0xff] }
  0x7f   :  { %698 = vmatprep.subr.mxu0 %v492_v24  ;;  %640 = vmatpush1.msra.mxu1 %v409_v35  ;;  %v459_v24 = vld [vmem:[#allocation6 + $0x1a0] sm:$0xff]  ;;  %v510_v35 = vld [vmem:[#allocation6 + $0x338] sm:$0xff] }
  0x80   :  { %699 = vmatpush1.msra.mxu0 %v491_v26  ;;  %641 = vmatprep.subr.mxu1 %v408_v37  ;;  %v458_v26 = vld [vmem:[#allocation6 + $0x198] sm:$0xff]  ;;  %v509_v37 = vld [vmem:[#allocation6 + $0x330] sm:$0xff] }
  0x81   :  { %700 = vmatprep.subr.mxu0 %v490_v28  ;;  %642 = vmatpush1.msra.mxu1 %v407_v39  ;;  %v457_v28 = vld [vmem:[#allocation6 + $0x190] sm:$0xff]  ;;  %v508_v39 = vld [vmem:[#allocation6 + $0x328] sm:$0xff] }
  0x82   :  { %701 = vmatpush1.msra.mxu0 %v489_v30  ;;  %643 = vmatprep.subr.mxu1 %v470_v41  ;;  %v456_v30 = vld [vmem:[#allocation6 + $0x188] sm:$0xff]  ;;  %v507_v41 = vld [vmem:[#allocation6 + $0x320] sm:$0xff] }
  0x83   :  { %702 = vmatprep.subr.mxu0 %v488_v32  ;;  %644 = vmatpush2.msra.mxu1 %v469_v43  ;;  %v455_v32 = vld [vmem:[#allocation6 + $0x180] sm:$0xff]  ;;  %v506_v43 = vld [vmem:[#allocation6 + $0x318] sm:$0xff] }
  0x84   :  { %703 = vmatpush1.msra.mxu0 %v487_v34  ;;  %645 = vmatprep.subr.mxu1 %v468_v6  ;;  %v454_v34 = vld [vmem:[#allocation6 + $0x178] sm:$0xff] }
  0x85   :  { %704 = vmatprep.subr.mxu0 %v486_v36  ;;  %646 = vmatpush2.msra.mxu1 %v467_v8  ;;  %v453_v36 = vld [vmem:[#allocation6 + $0x170] sm:$0xff] }
  0x86   :  { %705 = vmatpush1.msra.mxu0 %v485_v38  ;;  %647 = vmatprep.subr.mxu1 %v466_v10  ;;  %v452_v38 = vld [vmem:[#allocation6 + $0x168] sm:$0xff] }
  0x87   :  { %706 = vmatprep.subr.mxu0 %v484_v40  ;;  %648 = vmatpush2.msra.mxu1 %v465_v12  ;;  %v451_v40 = vld [vmem:[#allocation6 + $0x160] sm:$0xff] }
  0x88   :  { %707 = vmatpush1.msra.mxu0 %v483_v42  ;;  %649 = vmatprep.subr.mxu1 %v464_v14  ;;  %v450_v42 = vld [vmem:[#allocation6 + $0x158] sm:$0xff] }
  0x89   :  { %708 = vmatprep.subr.mxu0 %v482_v44  ;;  %650 = vmatpush2.msra.mxu1 %v463_v16  ;;  %v449_v44 = vld [vmem:[#allocation6 + $0x150] sm:$0xff] }
  0x8a   :  { %709 = vmatpush1.msra.mxu0 %v481_v45  ;;  %651 = vmatprep.subr.mxu1 %v462_v18  ;;  %v505_v45 = vld [vmem:[#allocation6 + $0x310] sm:$0xff] }
  0x8b   :  { %710 = vmatprep.subr.mxu0 %v480_v46  ;;  %652 = vmatpush2.msra.mxu1 %v461_v20  ;;  %v448_v46 = vld [vmem:[#allocation6 + $0x148] sm:$0xff] }
  0x8c   :  { %711 = vmatpush1.msra.mxu0 %v479_v47  ;;  %653 = vmatprep.subr.mxu1 %v460_v21  ;;  %v504_v47 = vld [vmem:[#allocation6 + $0x308] sm:$0xff] }
  0x8d   :  { %712 = vmatprep.subr.mxu0 %v478_v48  ;;  %654 = vmatpush2.msra.mxu1 %v459_v24  ;;  %v447_v48 = vld [vmem:[#allocation6 + $0x140] sm:$0xff] }
  0x8e   :  { %713 = vmatpush1.msra.mxu0 %v477_v49  ;;  %655 = vmatprep.subr.mxu1 %v458_v26  ;;  %v503_v49 = vld [vmem:[#allocation6 + $0x300] sm:$0xff] }
  0x8f   :  { %714 = vmatprep.subr.mxu0 %v476_v50  ;;  %656 = vmatpush2.msra.mxu1 %v457_v28  ;;  %v446_v50 = vld [vmem:[#allocation6 + $0x138] sm:$0xff] }
  0x90   :  { %715 = vmatpush1.msra.mxu0 %v475_v51  ;;  %657 = vmatprep.subr.mxu1 %v456_v30  ;;  %v445_v51 = vld [vmem:[#allocation6 + $0x130] sm:$0xff] }
  0x91   :  { %716 = vmatprep.subr.mxu0 %v474_v52  ;;  %658 = vmatpush2.msra.mxu1 %v455_v32  ;;  %v444_v52 = vld [vmem:[#allocation6 + $0x128] sm:$0xff] }
  0x92   :  { %717 = vmatpush1.msra.mxu0 %v473_v53  ;;  %659 = vmatprep.subr.mxu1 %v454_v34  ;;  %v443_v53 = vld [vmem:[#allocation6 + $0x120] sm:$0xff] }
  0x93   :  { %718 = vmatprep.subr.mxu0 %v472_v54  ;;  %660 = vmatpush2.msra.mxu1 %v453_v36  ;;  %v442_v54 = vld [vmem:[#allocation6 + $0x118] sm:$0xff]  ;;  %v565_v36 = vld [vmem:[#allocation6 + $0x4f0] sm:$0xff] }
  0x94   :  { %719 = vmatpush1.msra.mxu0 %v471_v55  ;;  %661 = vmatprep.subr.mxu1 %v452_v38  ;;  %v441_v55 = vld [vmem:[#allocation6 + $0x110] sm:$0xff] }
  0x95   :  { %720 = vmatprep.subr.mxu0 %v534_v56  ;;  %662 = vmatpush2.msra.mxu1 %v451_v40  ;;  %v440_v56 = vld [vmem:[#allocation6 + $0x108] sm:$0xff] }
  0x96   :  { %721 = vmatpush2.msra.mxu0 %v533_v58  ;;  %663 = vmatprep.subr.mxu1 %v450_v42  ;;  %v439_v58 = vld [vmem:[#allocation6 + $0x100] sm:$0xff]  ;;  %v561_v42 = vld [vmem:[#allocation6 + $0x4d0] sm:$0xff] }
  0x97   :  { %722 = vmatprep.subr.mxu0 %v532_v59  ;;  %664 = vmatpush2.msra.mxu1 %v449_v44  ;;  %v566_v59 = vld [vmem:[#allocation6 + $0x4f8] sm:$0xff] }
  0x98   :  { %723 = vmatpush2.msra.mxu0 %v531_v60  ;;  %665 = vmatprep.subr.mxu1 %v448_v46  ;;  %v8980_v60 = vsub.s32 0, %v8946_v1 }
  0x99   :  { %724 = vmatprep.subr.mxu0 %v530_v61  ;;  %666 = vmatpush2.msra.mxu1 %v447_v48  ;;  %v213_v61 = vld [vmem:[%s9788_s3] sm:$0x3]  ;;  %v558_v48 = vld [vmem:[#allocation6 + $0x4b8] sm:$0xff] }
  0x9a   :  { %725 = vmatpush2.msra.mxu0 %v529_v63  ;;  %667 = vmatprep.subr.mxu1 %v446_v50  ;;  %v8986_v63 = vsub.s32 1, %v8946_v1  ;;  %v556_v50 = vld [vmem:[#allocation6 + $0x4a8] sm:$0xff]  ;;  %v7538_v1 = vld [vmem:[#allocation8 + $0x1c0] sm:$0xff] }
  0x9b   :  { %726 = vmatprep.subr.mxu0 %v528_v0  ;;  %668 = vmatpush2.msra.mxu1 %v445_v51  ;;  %v555_v51 = vld [vmem:[#allocation6 + $0x4a0] sm:$0xff] }
  0x9c   :  { %727 = vmatpush2.msra.mxu0 %v527_v2  ;;  %669 = vmatprep.subr.mxu1 %v444_v52  ;;  %v218_v2 = vrot.slane %v213_v61, %v8980_v60  ;;  %v554_v52 = vld [vmem:[#allocation6 + $0x498] sm:$0xff] }
  0x9d   :  { %728 = vmatprep.subr.mxu0 %v526_v3  ;;  %670 = vmatpush2.msra.mxu1 %v443_v53  ;;  %v222_v3 = vrot.slane %v213_v61, %v8986_v63  ;;  %v553_v53 = vld [vmem:[#allocation6 + $0x490] sm:$0xff]  ;;  %v547_v61 = vld [vmem:[#allocation6 + $0x460] sm:$0xff] }
  0x9e   :  { %729 = vmatpush2.msra.mxu0 %v525_v5  ;;  %671 = vmatprep.subr.mxu1 %v442_v54  ;;  %v552_v54 = vld [vmem:[#allocation6 + $0x488] sm:$0xff] }
  0x9f   :  { %730 = vmatprep.subr.mxu0 %v524_v7  ;;  %672 = vmatpush2.msra.mxu1 %v441_v55  ;;  %v551_v55 = vld [vmem:[#allocation6 + $0x480] sm:$0xff] }
  0xa0   :  { %731 = vmatpush2.msra.mxu0 %v523_v9  ;;  %673 = vmatprep.subr.mxu1 %v440_v56  ;;  %v550_v56 = vld [vmem:[#allocation6 + $0x478] sm:$0xff] }
  0xa1   :  { %732 = vmatprep.subr.mxu0 %v522_v11  ;;  %674 = vmatpush2.msra.mxu1 %v439_v58  ;;  %v549_v58 = vld [vmem:[#allocation6 + $0x470] sm:$0xff] }
  0xa2   :  { %733 = vmatpush2.msra.mxu0 %v521_v13  ;;  %765 = vmatprep.subr.mxu1 %v566_v59  ;;  %v548_v59 = vld [vmem:[#allocation6 + $0x468] sm:$0xff] }
  0xa3   :  { %734 = vmatprep.subr.mxu0 %v520_v15 }
  0xa4   :  { %735 = vmatpush2.msra.mxu0 %v519_v17 }
  0xa5   :  { %736 = vmatprep.subr.mxu0 %v518_v19 }
  0xa6   :  { %737 = vmatpush2.msra.mxu0 %v517_v62 }
  0xa7   :  { %738 = vmatprep.subr.mxu0 %v516_v23 }
  0xa8   :  { %739 = vmatpush2.msra.mxu0 %v515_v25 }
  0xa9   :  { %740 = vmatprep.subr.mxu0 %v514_v27 }
  0xaa   :  { %741 = vmatpush2.msra.mxu0 %v513_v29 }
  0xab   :  { %742 = vmatprep.subr.mxu0 %v512_v31 }
  0xac   :  { %743 = vmatpush2.msra.mxu0 %v511_v33 }
  0xad   :  { %744 = vmatprep.subr.mxu0 %v510_v35 }
  0xae   :  { %745 = vmatpush2.msra.mxu0 %v509_v37  ;;  %v564_v37 = vld [vmem:[#allocation6 + $0x4e8] sm:$0xff] }
  0xaf   :  { %746 = vmatprep.subr.mxu0 %v508_v39  ;;  %v563_v39 = vld [vmem:[#allocation6 + $0x4e0] sm:$0xff] }
  0xb0   :  { %747 = vmatpush2.msra.mxu0 %v507_v41  ;;  %v562_v41 = vld [vmem:[#allocation6 + $0x4d8] sm:$0xff] }
  0xb1   :  { %748 = vmatprep.subr.mxu0 %v506_v43 }
  0xb2   :  { %749 = vmatpush2.msra.mxu0 %v505_v45  ;;  %v560_v45 = vld [vmem:[#allocation6 + $0x4c8] sm:$0xff] }
  0xb3   :  { %750 = vmatprep.subr.mxu0 %v504_v47  ;;  %v559_v47 = vld [vmem:[#allocation6 + $0x4c0] sm:$0xff] }
  0xb4   :  { %751 = vmatpush2.msra.mxu0 %v503_v49  ;;  %v557_v49 = vld [vmem:[#allocation6 + $0x4b0] sm:$0xff] }
 0x11b   :  { %v368_v0 = vpop.f32.mrf.mxu1 }
 0x11d   :  { %v370_v6 = vpop.f32.mrf.mxu1 }
 0x11f   :  { %v374_v12 = vpop.f32.mrf.mxu1 }
 0x121   :  { %v376_v18 = vpop.f32.mrf.mxu1 }
 0x135   :  { %v291_v5 = vpop.f32.mrf.mxu0 }
 0x136   :  { %v292_v7 = vadd.f32 %v291_v5, %v218_v2  ;;  %v543_v5 = vld [vmem:[#allocation6 + $0x440] sm:$0xff] }
 0x137   :  { %v293_v8 = vpop.f32.mrf.mxu0 }
 0x138   :  { %v294_v9 = vadd.f32 %v293_v8, %v222_v3  ;;  %v369_v10 = vadd.f32 %v368_v0, %v292_v7  ;;  %v546_v0 = vld [vmem:[#allocation6 + $0x458] sm:$0xff]  ;;  %v541_v7 = vld [vmem:[#allocation6 + $0x430] sm:$0xff]  ;;  %v540_v8 = vld [vmem:[#allocation6 + $0x428] sm:$0xff] }
 0x139   :  { %v297_v11 = vpop.f32.mrf.mxu0 }
 0x13a   :  { %v371_v13 = vadd.f32 %v370_v6, %v294_v9  ;;  %v298_v14 = vadd.f32 %v297_v11, %v218_v2  ;;  %v545_v2 = vld [vmem:[#allocation6 + $0x450] sm:$0xff]  ;;  %v542_v6 = vld [vmem:[#allocation6 + $0x438] sm:$0xff]  ;;  %v539_v9 = vld [vmem:[#allocation6 + $0x420] sm:$0xff] }
 0x13b   :  { %v299_v15 = vpop.f32.mrf.mxu0  ;;  %v537_v11 = vld [vmem:[#allocation6 + $0x410] sm:$0xff] }
 0x13c   :  { %8661 = vtanh.f32 %v371_v13  ;;  %v375_v16 = vadd.f32 %v374_v12, %v298_v14  ;;  %v300_v17 = vadd.f32 %v299_v15, %v222_v3  ;;  %v544_v3 = vld [vmem:[#allocation6 + $0x448] sm:$0xff]  ;;  %v535_v13 = vld [vmem:[#allocation6 + $0x400] sm:$0xff]  ;;  %v598_v14 = vld [vmem:[#allocation6 + $0x5f8] sm:$0xff] }
 0x13d   :  { %8663 = vtanh.f32 %v369_v10  ;;  %v538_v10 = vld [vmem:[#allocation6 + $0x418] sm:$0xff]  ;;  %v536_v12 = vld [vmem:[#allocation6 + $0x408] sm:$0xff]  ;;  %v597_v15 = vld [vmem:[#allocation6 + $0x5f0] sm:$0xff] }
 0x13e   :  { %8665 = vtanh.f32 %v375_v16  ;;  %v377_v19 = vadd.f32 %v376_v18, %v300_v17  ;;  %v596_v16 = vld [vmem:[#allocation6 + $0x5e8] sm:$0xff]  ;;  %v595_v17 = vld [vmem:[#allocation6 + $0x5e0] sm:$0xff]  ;;  %v594_v18 = vld [vmem:[#allocation6 + $0x5d8] sm:$0xff] }
 0x140   :  { %8667 = vtanh.f32 %v377_v19  ;;  %v593_v19 = vld [vmem:[#allocation6 + $0x5d0] sm:$0xff] }
 0x149   :  { %v8990_v20 = vpop.eup %8661 }
 0x14a   :  { %v8664_v62 = vpop.eup %8663  ;;  %752 = vmatprep.mubr.f32.mxu0 %v8990_v20  ;;  %v384_v28 = vrot.slane %v8990_v20, 7  ;;  %v396_v43 = vrot.slane %v8990_v20, 1  ;;  %v949_v20 = vld [vmem:[#allocation8 + $0x278] sm:$0xff] }
 0x14b   :  { %v8666_v21 = vpop.eup %8665  ;;  %753 = vmatmul.mubr.f32.vlgmr.msra.gmra.mxu0 %v8664_v62  ;;  %v383_v26 = vrot.slane %v8664_v62, 7  ;;  %v395_v27 = vrot.slane %v8664_v62, 1  ;;  %v592_v62 = vld [vmem:[#allocation6 + $0x5c8] sm:$0xff] }
 0x14c   :  { %v385_v23 = vrot.slane %v8666_v21, 7  ;;  %v397_v24 = vrot.slane %v8666_v21, 1 }
 0x14d   :  { %v8993_v25 = vpop.eup %8667 }
 0x14e   :  { %758 = vmatprep.mubr.f32.mxu0 %v8993_v25  ;;  %v386_v29 = vrot.slane %v8993_v25, 7  ;;  %v389_v30 = vsel %vm105_vm3, %v385_v23, %v383_v26  ;;  %v9002_v31 = vsel %vm112_vm1, %v395_v27, %v397_v24  ;;  %v9006_v32 = vsel %vm112_vm1, %v397_v24, %v395_v27  ;;  %v589_v24 = vld [vmem:[#allocation6 + $0x5b0] sm:$0xff]  ;;  %v587_v27 = vld [vmem:[#allocation6 + $0x5a0] sm:$0xff] }
 0x14f   :  { %759 = vmatmul.mubr.f32.gmra.mxu0 %v8666_v21  ;;  %v391_v35 = vmul.f32 %v8971_v57, %v389_v30  ;;  %v398_v40 = vrot.slane %v8993_v25, 1  ;;  %v387_v44 = vsel %vm105_vm3, %v383_v26, %v385_v23  ;;  %v591_v21 = vld [vmem:[#allocation6 + $0x5c0] sm:$0xff]  ;;  %v590_v23 = vld [vmem:[#allocation6 + $0x5b8] sm:$0xff]  ;;  %v588_v26 = vld [vmem:[#allocation6 + $0x5a8] sm:$0xff] }
 0x150   :  { %v390_v33 = vsel %vm105_vm3, %v386_v29, %v384_v28  ;;  %v388_v38 = vsel %vm105_vm3, %v384_v28, %v386_v29  ;;  %v586_v28 = vld [vmem:[#allocation6 + $0x598] sm:$0xff]  ;;  %v585_v29 = vld [vmem:[#allocation6 + $0x590] sm:$0xff]  ;;  %v584_v30 = vld [vmem:[#allocation6 + $0x588] sm:$0xff] }
 0x151   :  { %v392_v34 = vmul.f32 %v8971_v57, %v390_v33  ;;  %v400_v46 = vsel %vm112_vm1, %v396_v43, %v398_v40  ;;  %v583_v33 = vld [vmem:[#allocation6 + $0x580] sm:$0xff]  ;;  %v885_v25 = vld [vmem:[#allocation8 + $0x78] sm:$0xff] }
 0x153   :  { %675 = vmatprep.mubr.f32.mxu1 %v392_v34  ;;  %v582_v34 = vld [vmem:[#allocation6 + $0x578] sm:$0xff] }
 0x154   :  { %676 = vmatmul.mubr.f32.vlgmr.msra.gmra.mxu1 %v391_v35  ;;  %v581_v35 = vld [vmem:[#allocation6 + $0x570] sm:$0xff] }
 0x155   :  { %766 = vmatpush1.msra.mxu1 %v565_v36  ;;  %681 = vmatprep.mubr.f32.mxu1 %v388_v38  ;;  %v580_v36 = vld [vmem:[#allocation6 + $0x568] sm:$0xff]  ;;  %v578_v38 = vld [vmem:[#allocation6 + $0x558] sm:$0xff] }
 0x156   :  { %767 = vmatprep.subr.mxu1 %v564_v37  ;;  %v579_v37 = vld [vmem:[#allocation6 + $0x560] sm:$0xff] }
 0x157   :  { %768 = vmatpush1.msra.mxu1 %v563_v39  ;;  %v577_v39 = vld [vmem:[#allocation6 + $0x550] sm:$0xff] }
 0x158   :  { %769 = vmatprep.subr.mxu1 %v562_v41  ;;  %682 = vmatmul.mubr.f32.gmra.mxu1 %v387_v44  ;;  %v576_v41 = vld [vmem:[#allocation6 + $0x548] sm:$0xff]  ;;  %v574_v44 = vld [vmem:[#allocation6 + $0x538] sm:$0xff] }
 0x159   :  { %770 = vmatpush1.msra.mxu1 %v561_v42  ;;  %829 = vmatprep.mubr.f32.mxu1 %v400_v46  ;;  %v575_v42 = vld [vmem:[#allocation6 + $0x540] sm:$0xff]  ;;  %v572_v46 = vld [vmem:[#allocation6 + $0x528] sm:$0xff] }
 0x15a   :  { %771 = vmatprep.subr.mxu1 %v560_v45  ;;  %v573_v45 = vld [vmem:[#allocation6 + $0x530] sm:$0xff] }
 0x15b   :  { %772 = vmatpush1.msra.mxu1 %v559_v47  ;;  %v571_v47 = vld [vmem:[#allocation6 + $0x520] sm:$0xff] }
 0x15c   :  { %773 = vmatprep.subr.mxu1 %v558_v48  ;;  %v570_v48 = vld [vmem:[#allocation6 + $0x518] sm:$0xff] }
 0x15d   :  { %774 = vmatpush1.msra.mxu1 %v557_v49  ;;  %v569_v49 = vld [vmem:[#allocation6 + $0x510] sm:$0xff] }
 0x15e   :  { %775 = vmatprep.subr.mxu1 %v556_v50  ;;  %v568_v50 = vld [vmem:[#allocation6 + $0x508] sm:$0xff] }
 0x15f   :  { %776 = vmatpush1.msra.mxu1 %v555_v51  ;;  %v567_v51 = vld [vmem:[#allocation6 + $0x500] sm:$0xff] }
 0x160   :  { %777 = vmatprep.subr.mxu1 %v554_v52  ;;  %v402_v52 = vsel %vm112_vm1, %v398_v40, %v396_v43  ;;  %v900_v40 = vld [vmem:[#allocation8 + $0xf0] sm:$0xff] }
 0x161   :  { %778 = vmatpush1.msra.mxu1 %v553_v53  ;;  %v406_v53 = vmul.f32 %v8957_v22, %v402_v52  ;;  %v948_v43 = vld [vmem:[#allocation8 + $0x270] sm:$0xff] }
 0x162   :  { %779 = vmatprep.subr.mxu1 %v552_v54  ;;  %v405_v54 = vmul.f32 %v8957_v22, %v9006_v32  ;;  %v947_v32 = vld [vmem:[#allocation8 + $0x268] sm:$0xff]  ;;  %v872_v52 = vld [vmem:[#allocation8 + $0x10] sm:$0xff] }
 0x163   :  { %780 = vmatpush1.msra.mxu1 %v551_v55  ;;  %v965_v55 = vld [vmem:[#allocation8 + $0x2f8] sm:$0xff] }
 0x164   :  { %781 = vmatprep.subr.mxu1 %v550_v56  ;;  %v901_v56 = vld [vmem:[#allocation8 + $0xf8] sm:$0xff] }
 0x165   :  { %782 = vmatpush1.msra.mxu1 %v549_v58  ;;  %7854 = vmatprep.subr.mxu0 %v901_v56  ;;  %v964_v58 = vld [vmem:[#allocation8 + $0x2f0] sm:$0xff]  ;;  %v871_v56 = vld [vmem:[#allocation8 + $0x8] sm:$0xff] }
 0x166   :  { %783 = vmatprep.subr.mxu1 %v548_v59  ;;  %7855 = vmatpush3.msra.mxu0 %v885_v25  ;;  %v884_v59 = vld [vmem:[#allocation8 + $0x70] sm:$0xff]  ;;  %v886_v25 = vld [vmem:[#allocation8 + $0x80] sm:$0xff] }
 0x167   :  { %784 = vmatpush1.msra.mxu1 %v547_v61  ;;  %v963_v61 = vld [vmem:[#allocation8 + $0x2e8] sm:$0xff]  ;;  %7856 = vmatprep.subr.mxu0 %v900_v40  ;;  %v870_v40 = vld [vmem:[#allocation8] sm:$0xff] }
 0x168   :  { %785 = vmatprep.subr.mxu1 %v546_v0  ;;  %7857 = vmatpush3.msra.mxu0 %v884_v59  ;;  %v883_v0 = vld [vmem:[#allocation8 + $0x68] sm:$0xff] }
 0x169   :  { %786 = vmatpush1.msra.mxu1 %v545_v2  ;;  %v962_v2 = vld [vmem:[#allocation8 + $0x2e0] sm:$0xff] }
 0x16a   :  { %787 = vmatprep.subr.mxu1 %v544_v3  ;;  %v898_v3 = vld [vmem:[#allocation8 + $0xe0] sm:$0xff] }
 0x16b   :  { %788 = vmatpush1.msra.mxu1 %v543_v5  ;;  %v946_v5 = vld [vmem:[#allocation8 + $0x260] sm:$0xff] }
 0x16c   :  { %789 = vmatprep.subr.mxu1 %v542_v6  ;;  %v882_v6 = vld [vmem:[#allocation8 + $0x60] sm:$0xff] }
 0x16d   :  { %790 = vmatpush1.msra.mxu1 %v541_v7  ;;  %v961_v7 = vld [vmem:[#allocation8 + $0x2d8] sm:$0xff] }
 0x16e   :  { %791 = vmatprep.subr.mxu1 %v540_v8  ;;  %v897_v8 = vld [vmem:[#allocation8 + $0xd8] sm:$0xff] }
 0x16f   :  { %792 = vmatpush1.msra.mxu1 %v539_v9  ;;  %v945_v9 = vld [vmem:[#allocation8 + $0x258] sm:$0xff] }
 0x170   :  { %793 = vmatprep.subr.mxu1 %v538_v10  ;;  %v881_v10 = vld [vmem:[#allocation8 + $0x58] sm:$0xff] }
 0x171   :  { %794 = vmatpush1.msra.mxu1 %v537_v11  ;;  %v960_v11 = vld [vmem:[#allocation8 + $0x2d0] sm:$0xff] }
 0x172   :  { %795 = vmatprep.subr.mxu1 %v536_v12  ;;  %v896_v12 = vld [vmem:[#allocation8 + $0xd0] sm:$0xff] }
 0x173   :  { %796 = vmatpush1.msra.mxu1 %v535_v13  ;;  %v944_v13 = vld [vmem:[#allocation8 + $0x250] sm:$0xff] }
 0x174   :  { %797 = vmatprep.subr.mxu1 %v598_v14  ;;  %v880_v14 = vld [vmem:[#allocation8 + $0x50] sm:$0xff] }
 0x175   :  { %798 = vmatpush2.msra.mxu1 %v597_v15  ;;  %v959_v15 = vld [vmem:[#allocation8 + $0x2c8] sm:$0xff] }
 0x176   :  { %799 = vmatprep.subr.mxu1 %v596_v16  ;;  %v895_v16 = vld [vmem:[#allocation8 + $0xc8] sm:$0xff] }
 0x177   :  { %800 = vmatpush2.msra.mxu1 %v595_v17  ;;  %v943_v17 = vld [vmem:[#allocation8 + $0x248] sm:$0xff] }
 0x178   :  { %801 = vmatprep.subr.mxu1 %v594_v18  ;;  %v879_v18 = vld [vmem:[#allocation8 + $0x48] sm:$0xff] }
 0x179   :  { %802 = vmatpush2.msra.mxu1 %v593_v19  ;;  %v958_v19 = vld [vmem:[#allocation8 + $0x2c0] sm:$0xff] }
 0x17a   :  { %803 = vmatprep.subr.mxu1 %v592_v62  ;;  %v894_v62 = vld [vmem:[#allocation8 + $0xc0] sm:$0xff] }
 0x17b   :  { %804 = vmatpush2.msra.mxu1 %v591_v21  ;;  %v942_v21 = vld [vmem:[#allocation8 + $0x240] sm:$0xff] }
 0x17c   :  { %805 = vmatprep.subr.mxu1 %v590_v23  ;;  %v878_v23 = vld [vmem:[#allocation8 + $0x40] sm:$0xff] }
 0x17d   :  { %806 = vmatpush2.msra.mxu1 %v589_v24  ;;  %v957_v24 = vld [vmem:[#allocation8 + $0x2b8] sm:$0xff] }
 0x17e   :  { %807 = vmatprep.subr.mxu1 %v588_v26  ;;  %v893_v26 = vld [vmem:[#allocation8 + $0xb8] sm:$0xff] }
 0x17f   :  { %808 = vmatpush2.msra.mxu1 %v587_v27  ;;  %v941_v27 = vld [vmem:[#allocation8 + $0x238] sm:$0xff] }
 0x180   :  { %809 = vmatprep.subr.mxu1 %v586_v28  ;;  %v877_v28 = vld [vmem:[#allocation8 + $0x38] sm:$0xff] }
 0x181   :  { %810 = vmatpush2.msra.mxu1 %v585_v29  ;;  %v956_v29 = vld [vmem:[#allocation8 + $0x2b0] sm:$0xff] }
 0x182   :  { %811 = vmatprep.subr.mxu1 %v584_v30  ;;  %v892_v30 = vld [vmem:[#allocation8 + $0xb0] sm:$0xff] }
 0x183   :  { %812 = vmatpush2.msra.mxu1 %v583_v33  ;;  %v940_v33 = vld [vmem:[#allocation8 + $0x230] sm:$0xff] }
 0x184   :  { %813 = vmatprep.subr.mxu1 %v582_v34  ;;  %v876_v34 = vld [vmem:[#allocation8 + $0x30] sm:$0xff] }
 0x185   :  { %814 = vmatpush2.msra.mxu1 %v581_v35  ;;  %v955_v35 = vld [vmem:[#allocation8 + $0x2a8] sm:$0xff] }
 0x186   :  { %815 = vmatprep.subr.mxu1 %v580_v36  ;;  %v891_v36 = vld [vmem:[#allocation8 + $0xa8] sm:$0xff] }
 0x187   :  { %816 = vmatpush2.msra.mxu1 %v579_v37  ;;  %v939_v37 = vld [vmem:[#allocation8 + $0x228] sm:$0xff] }
 0x188   :  { %817 = vmatprep.subr.mxu1 %v578_v38  ;;  %v875_v38 = vld [vmem:[#allocation8 + $0x28] sm:$0xff] }
 0x189   :  { %818 = vmatpush2.msra.mxu1 %v577_v39  ;;  %v954_v39 = vld [vmem:[#allocation8 + $0x2a0] sm:$0xff] }
 0x18a   :  { %819 = vmatprep.subr.mxu1 %v576_v41  ;;  %v890_v41 = vld [vmem:[#allocation8 + $0xa0] sm:$0xff] }
 0x18b   :  { %820 = vmatpush2.msra.mxu1 %v575_v42  ;;  %v938_v42 = vld [vmem:[#allocation8 + $0x220] sm:$0xff] }
 0x18c   :  { %821 = vmatprep.subr.mxu1 %v574_v44  ;;  %v874_v44 = vld [vmem:[#allocation8 + $0x20] sm:$0xff] }
 0x18d   :  { %822 = vmatpush2.msra.mxu1 %v573_v45  ;;  %v953_v45 = vld [vmem:[#allocation8 + $0x298] sm:$0xff] }
 0x18e   :  { %823 = vmatprep.subr.mxu1 %v572_v46  ;;  %v889_v46 = vld [vmem:[#allocation8 + $0x98] sm:$0xff] }
 0x18f   :  { %824 = vmatpush2.msra.mxu1 %v571_v47  ;;  %v937_v47 = vld [vmem:[#allocation8 + $0x218] sm:$0xff] }
 0x190   :  { %825 = vmatprep.subr.mxu1 %v570_v48  ;;  %v873_v48 = vld [vmem:[#allocation8 + $0x18] sm:$0xff] }
 0x191   :  { %826 = vmatpush2.msra.mxu1 %v569_v49  ;;  %v952_v49 = vld [vmem:[#allocation8 + $0x290] sm:$0xff] }
 0x192   :  { %827 = vmatprep.subr.mxu1 %v568_v50  ;;  %v888_v50 = vld [vmem:[#allocation8 + $0x90] sm:$0xff] }
 0x193   :  { %828 = vmatpush2.msra.mxu1 %v567_v51  ;;  %v936_v51 = vld [vmem:[#allocation8 + $0x210] sm:$0xff] }
 0x194   :  { %830 = vmatmul.mubr.f32.vlgmr.msra.gmra.mxu1 %v9002_v31  ;;  %7930 = vmatprep.subr.mxu1 %v965_v55  ;;  %v899_v31 = vld [vmem:[#allocation8 + $0xe8] sm:$0xff] }
 0x195   :  { %835 = vmatprep.mubr.f32.mxu1 %v406_v53  ;;  %7931 = vmatpush3.msra.mxu1 %v949_v20  ;;  %v951_v53 = vld [vmem:[#allocation8 + $0x288] sm:$0xff]  ;;  %v950_v20 = vld [vmem:[#allocation8 + $0x280] sm:$0xff] }
 0x196   :  { %7932 = vmatprep.subr.mxu1 %v964_v58  ;;  %7858 = vmatprep.subr.mxu0 %v899_v31  ;;  %v935_v55 = vld [vmem:[#allocation8 + $0x208] sm:$0xff]  ;;  %v934_v58 = vld [vmem:[#allocation8 + $0x200] sm:$0xff] }
 0x197   :  { %7933 = vmatpush3.msra.mxu1 %v948_v43  ;;  %7859 = vmatpush3.msra.mxu0 %v883_v0  ;;  %v933_v43 = vld [vmem:[#allocation8 + $0x1f8] sm:$0xff] }
 0x198   :  { %836 = vmatmul.mubr.f32.gmra.mxu1 %v405_v54  ;;  %7934 = vmatprep.subr.mxu1 %v963_v61  ;;  %v887_v54 = vld [vmem:[#allocation8 + $0x88] sm:$0xff]  ;;  %v599_v61 = vld [vmem:[%s9790_s5] sm:$0x3] }
 0x199   :  { %7935 = vmatpush3.msra.mxu1 %v947_v32  ;;  %7860 = vmatprep.subr.mxu0 %v898_v3  ;;  %v604_v32 = vrot.slane %v599_v61, %v8980_v60 }
 0x19a   :  { %7936 = vmatprep.subr.mxu1 %v962_v2  ;;  %7861 = vmatpush3.msra.mxu0 %v882_v6  ;;  %v608_v2 = vrot.slane %v599_v61, %v8986_v63  ;;  %v913_v61 = vld [vmem:[#allocation8 + $0x158] sm:$0xff] }
 0x19b   :  { %7937 = vmatpush3.msra.mxu1 %v946_v5  ;;  %7862 = vmatprep.subr.mxu0 %v897_v8 }
 0x19c   :  { %7938 = vmatprep.subr.mxu1 %v961_v7  ;;  %7863 = vmatpush3.msra.mxu0 %v881_v10 }
 0x19d   :  { %7939 = vmatpush3.msra.mxu1 %v945_v9  ;;  %7864 = vmatprep.subr.mxu0 %v896_v12 }
 0x19e   :  { %7940 = vmatprep.subr.mxu1 %v960_v11  ;;  %7865 = vmatpush3.msra.mxu0 %v880_v14 }
 0x19f   :  { %7941 = vmatpush3.msra.mxu1 %v944_v13  ;;  %7866 = vmatprep.subr.mxu0 %v895_v16 }
 0x1a0   :  { %7942 = vmatprep.subr.mxu1 %v959_v15  ;;  %7867 = vmatpush3.msra.mxu0 %v879_v18 }
 0x1a1   :  { %7943 = vmatpush3.msra.mxu1 %v943_v17  ;;  %7868 = vmatprep.subr.mxu0 %v894_v62 }
 0x1a2   :  { %7944 = vmatprep.subr.mxu1 %v958_v19  ;;  %7869 = vmatpush3.msra.mxu0 %v878_v23 }
 0x1a3   :  { %7945 = vmatpush3.msra.mxu1 %v942_v21  ;;  %7870 = vmatprep.subr.mxu0 %v893_v26 }
 0x1a4   :  { %7946 = vmatprep.subr.mxu1 %v957_v24  ;;  %7871 = vmatpush3.msra.mxu0 %v877_v28 }
 0x1a5   :  { %7947 = vmatpush3.msra.mxu1 %v941_v27  ;;  %7872 = vmatprep.subr.mxu0 %v892_v30 }
 0x1a6   :  { %7948 = vmatprep.subr.mxu1 %v956_v29  ;;  %7873 = vmatpush3.msra.mxu0 %v876_v34 }
 0x1a7   :  { %7949 = vmatpush3.msra.mxu1 %v940_v33  ;;  %7874 = vmatprep.subr.mxu0 %v891_v36 }
 0x1a8   :  { %7950 = vmatprep.subr.mxu1 %v955_v35  ;;  %7875 = vmatpush3.msra.mxu0 %v875_v38 }
 0x1a9   :  { %7951 = vmatpush3.msra.mxu1 %v939_v37  ;;  %7876 = vmatprep.subr.mxu0 %v890_v41 }
 0x1aa   :  { %7952 = vmatprep.subr.mxu1 %v954_v39  ;;  %7877 = vmatpush3.msra.mxu0 %v874_v44 }
 0x1ab   :  { %7953 = vmatpush3.msra.mxu1 %v938_v42  ;;  %7878 = vmatprep.subr.mxu0 %v889_v46 }
 0x1ac   :  { %7954 = vmatprep.subr.mxu1 %v953_v45  ;;  %7879 = vmatpush3.msra.mxu0 %v873_v48 }
 0x1ad   :  { %7955 = vmatpush3.msra.mxu1 %v937_v47  ;;  %7880 = vmatprep.subr.mxu0 %v888_v50 }
 0x1ae   :  { %7956 = vmatprep.subr.mxu1 %v952_v49  ;;  %7881 = vmatpush3.msra.mxu0 %v872_v52  ;;  %v917_v52 = vld [vmem:[#allocation8 + $0x178] sm:$0xff] }
 0x1af   :  { %7957 = vmatpush3.msra.mxu1 %v936_v51  ;;  %7882 = vmatprep.subr.mxu0 %v887_v54 }
 0x1b0   :  { %7958 = vmatprep.subr.mxu1 %v951_v53  ;;  %7883 = vmatpush3.msra.mxu0 %v871_v56  ;;  %v932_v53 = vld [vmem:[#allocation8 + $0x1f0] sm:$0xff] }
 0x1b1   :  { %7959 = vmatpush3.msra.mxu1 %v935_v55  ;;  %7884 = vmatprep.subr.mxu0 %v886_v25  ;;  %v916_v55 = vld [vmem:[#allocation8 + $0x170] sm:$0xff]  ;;  %v915_v25 = vld [vmem:[#allocation8 + $0x168] sm:$0xff] }
 0x1b2   :  { %7960 = vmatprep.subr.mxu1 %v950_v20  ;;  %7885 = vmatpush3.msra.mxu0 %v870_v40  ;;  %v931_v20 = vld [vmem:[#allocation8 + $0x1e8] sm:$0xff]  ;;  %v930_v40 = vld [vmem:[#allocation8 + $0x1e0] sm:$0xff] }
 0x1b3   :  { %7961 = vmatpush3.msra.mxu1 %v934_v58  ;;  %7892 = vmatprep.subr.mxu0 %v933_v43  ;;  %v914_v43 = vld [vmem:[#allocation8 + $0x160] sm:$0xff] }
 0x20b   :  { %v754_v0 = vpop.f32.mrf.mxu0 }
 0x20d   :  { %v756_v6 = vpop.f32.mrf.mxu0 }
 0x20f   :  { %v760_v11 = vpop.f32.mrf.mxu0 }
 0x211   :  { %v762_v19 = vpop.f32.mrf.mxu0 }
 0x214   :  { %v677_v59 = vpop.f32.mrf.mxu1 }
 0x215   :  { %v678_v5 = vadd.f32 %v677_v59, %v604_v32  ;;  %v929_v59 = vld [vmem:[#allocation8 + $0x1d8] sm:$0xff] }
 0x216   :  { %v679_v31 = vpop.f32.mrf.mxu1 }
 0x217   :  { %v680_v7 = vadd.f32 %v679_v31, %v608_v2  ;;  %v755_v10 = vadd.f32 %v754_v0, %v678_v5  ;;  %v928_v31 = vld [vmem:[#allocation8 + $0x1d0] sm:$0xff]  ;;  %v927_v0 = vld [vmem:[#allocation8 + $0x1c8] sm:$0xff]  ;;  %v910_v5 = vld [vmem:[#allocation8 + $0x140] sm:$0xff] }
 0x218   :  { %v683_v3 = vpop.f32.mrf.mxu1 }
 0x219   :  { %v684_v9 = vadd.f32 %v683_v3, %v604_v32  ;;  %v757_v15 = vadd.f32 %v756_v6, %v680_v7  ;;  %v912_v32 = vld [vmem:[#allocation8 + $0x150] sm:$0xff]  ;;  %v926_v3 = vld [vmem:[#allocation8 + $0x1c0] sm:$0xff]  ;;  %v925_v6 = vld [vmem:[#allocation8 + $0x1b8] sm:$0xff] }
 0x21a   :  { %v685_v8 = vpop.f32.mrf.mxu1  ;;  %v909_v7 = vld [vmem:[#allocation8 + $0x138] sm:$0xff] }
 0x21b   :  { %v686_v13 = vadd.f32 %v685_v8, %v608_v2  ;;  %v761_v18 = vadd.f32 %v760_v11, %v684_v9  ;;  %v911_v2 = vld [vmem:[#allocation8 + $0x148] sm:$0xff]  ;;  %v924_v8 = vld [vmem:[#allocation8 + $0x1b0] sm:$0xff] }
 0x21c   :  { %v908_v9 = vld [vmem:[#allocation8 + $0x130] sm:$0xff]  ;;  %v907_v11 = vld [vmem:[#allocation8 + $0x128] sm:$0xff] }
 0x21d   :  { %v763_v23 = vadd.f32 %v762_v19, %v686_v13  ;;  %v906_v13 = vld [vmem:[#allocation8 + $0x120] sm:$0xff]  ;;  %v903_v19 = vld [vmem:[#allocation8 + $0x108] sm:$0xff] }
 0x254   :  { %v831_v12 = vpop.f32.mrf.mxu1 }
 0x255   :  { %v832_v14 = vadd.f32 %v831_v12, %v755_v10  ;;  %v923_v10 = vld [vmem:[#allocation8 + $0x1a8] sm:$0xff]  ;;  %v922_v12 = vld [vmem:[#allocation8 + $0x1a0] sm:$0xff] }
 0x256   :  { %v833_v16 = vpop.f32.mrf.mxu1 }
 0x257   :  { %v834_v17 = vadd.f32 %v833_v16, %v757_v15  ;;  %8669 = vtanh.f32 %v832_v14  ;;  %v921_v14 = vld [vmem:[#allocation8 + $0x198] sm:$0xff]  ;;  %v920_v16 = vld [vmem:[#allocation8 + $0x190] sm:$0xff] }
 0x258   :  { %v837_v62 = vpop.f32.mrf.mxu1  ;;  %v905_v15 = vld [vmem:[#allocation8 + $0x118] sm:$0xff] }
 0x259   :  { %v838_v21 = vadd.f32 %v837_v62, %v761_v18  ;;  %8671 = vtanh.f32 %v834_v17  ;;  %v904_v17 = vld [vmem:[#allocation8 + $0x110] sm:$0xff]  ;;  %v919_v18 = vld [vmem:[#allocation8 + $0x188] sm:$0xff]  ;;  %v918_v62 = vld [vmem:[#allocation8 + $0x180] sm:$0xff] }
 0x25a   :  { %v839_v24 = vpop.f32.mrf.mxu1 }
 0x25b   :  { %8673 = vtanh.f32 %v838_v21  ;;  %v840_v26 = vadd.f32 %v839_v24, %v763_v23  ;;  %v902_v21 = vld [vmem:[#allocation8 + $0x100] sm:$0xff]  ;;  %v1250_v23 = vld [vmem:[#allocation5 + $0xf8] sm:$0xff]  ;;  %v1249_v24 = vld [vmem:[#allocation5 + $0xf0] sm:$0xff] }
 0x25d   :  { %8675 = vtanh.f32 %v840_v26  ;;  %v1248_v26 = vld [vmem:[#allocation5 + $0xe8] sm:$0xff] }
 0x264   :  { %v9039_v27 = vpop.eup %8669 }
 0x265   :  { %v846_v35 = vrot.slane %v9039_v27, 7  ;;  %v858_v41 = vrot.slane %v9039_v27, 1 }
 0x266   :  { %v8672_v28 = vpop.eup %8671 }
 0x267   :  { %v859_v36 = vrot.slane %v8672_v28, 1  ;;  %v847_v38 = vrot.slane %v8672_v28, 7 }
 0x268   :  { %v9041_v29 = vpop.eup %8673 }
 0x269   :  { %v848_v30 = vrot.slane %v9041_v29, 7  ;;  %v860_v34 = vrot.slane %v9041_v29, 1 }
 0x26a   :  { %v9044_v33 = vpop.eup %8675 }
 0x26b   :  { %v861_v37 = vrot.slane %v9044_v33, 1  ;;  %v849_v39 = vrot.slane %v9044_v33, 7  ;;  %v852_v42 = vsel %vm105_vm3, %v848_v30, %v846_v35  ;;  %v862_v47 = vsel %vm112_vm1, %v858_v41, %v860_v34 }
 0x26c   :  { %v864_v50 = vsel %vm112_vm1, %v860_v34, %v858_v41  ;;  %v854_v51 = vmul.f32 %v8971_v57, %v852_v42  ;;  %v850_v58 = vsel %vm105_vm3, %v846_v35, %v848_v30  ;;  %v1246_v30 = vld [vmem:[#allocation5 + $0xd8] sm:$0xff]  ;;  %v1245_v34 = vld [vmem:[#allocation5 + $0xd0] sm:$0xff]  ;;  %v1244_v35 = vld [vmem:[#allocation5 + $0xc8] sm:$0xff] }
 0x26d   :  { %v863_v44 = vsel %vm112_vm1, %v859_v36, %v861_v37  ;;  %v853_v45 = vsel %vm105_vm3, %v849_v39, %v847_v38  ;;  %v865_v46 = vsel %vm112_vm1, %v861_v37, %v859_v36  ;;  %v851_v54 = vsel %vm105_vm3, %v847_v38, %v849_v39  ;;  %v1243_v36 = vld [vmem:[#allocation5 + $0xc0] sm:$0xff]  ;;  %v1242_v37 = vld [vmem:[#allocation5 + $0xb8] sm:$0xff]  ;;  %v1240_v38 = vld [vmem:[#allocation5 + $0xa8] sm:$0xff] }
 0x26e   :  { %1187 = vmatprep.mubr.f32.mxu1 %v863_v44  ;;  %v855_v48 = vmul.f32 %v8971_v57, %v853_v45  ;;  %v869_v49 = vmul.f32 %v8957_v22, %v865_v46  ;;  %v868_v56 = vmul.f32 %v8957_v22, %v864_v50  ;;  %v1238_v39 = vld [vmem:[#allocation5 + $0x98] sm:$0xff]  ;;  %v1237_v41 = vld [vmem:[#allocation5 + $0x90] sm:$0xff]  ;;  %v1236_v42 = vld [vmem:[#allocation5 + $0x88] sm:$0xff] }
 0x26f   :  { %1188 = vmatmul.mubr.f32.vlgmr.msra.gmra.mxu1 %v862_v47  ;;  %v1234_v44 = vld [vmem:[#allocation5 + $0x78] sm:$0xff]  ;;  %v1233_v45 = vld [vmem:[#allocation5 + $0x70] sm:$0xff]  ;;  %v1232_v46 = vld [vmem:[#allocation5 + $0x68] sm:$0xff] }
 0x270   :  { %1037 = vmatprep.mubr.f32.mxu0 %v855_v48  ;;  %1192 = vmatprep.mubr.f32.mxu1 %v869_v49  ;;  %v1231_v47 = vld [vmem:[#allocation5 + $0x60] sm:$0xff]  ;;  %v1230_v48 = vld [vmem:[#allocation5 + $0x58] sm:$0xff]  ;;  %v1229_v49 = vld [vmem:[#allocation5 + $0x50] sm:$0xff] }
 0x271   :  { %1038 = vmatmul.mubr.f32.vlgmr.msra.gmra.mxu0 %v854_v51  ;;  %v1228_v50 = vld [vmem:[#allocation5 + $0x48] sm:$0xff]  ;;  %v1227_v51 = vld [vmem:[#allocation5 + $0x40] sm:$0xff] }
 0x272   :  { %7893 = vmatpush3.msra.mxu0 %v917_v52  ;;  %1042 = vmatprep.mubr.f32.mxu0 %v851_v54  ;;  %v1226_v52 = vld [vmem:[#allocation5 + $0x38] sm:$0xff] }
 0x273   :  { %7894 = vmatprep.subr.mxu0 %v932_v53  ;;  %1193 = vmatmul.mubr.f32.gmra.mxu1 %v868_v56  ;;  %v1225_v53 = vld [vmem:[#allocation5 + $0x30] sm:$0xff]  ;;  %v1314_v54 = vld [vmem:[#allocation5 + $0x2f8] sm:$0xff]  ;;  %v1224_v56 = vld [vmem:[#allocation5 + $0x28] sm:$0xff] }
 0x274   :  { %7895 = vmatpush3.msra.mxu0 %v916_v55  ;;  %1468 = vmatprep.mubr.f32.mxu1 %v8873_v4  ;;  %v1313_v55 = vld [vmem:[#allocation5 + $0x2f0] sm:$0xff] }
 0x275   :  { %7896 = vmatprep.subr.mxu0 %v931_v20  ;;  %1043 = vmatmul.mubr.f32.gmra.mxu0 %v850_v58  ;;  %v1312_v20 = vld [vmem:[#allocation5 + $0x2e8] sm:$0xff]  ;;  %v1311_v58 = vld [vmem:[#allocation5 + $0x2e0] sm:$0xff] }
 0x276   :  { %7897 = vmatpush3.msra.mxu0 %v915_v25  ;;  %1112 = vmatprep.mubr.f32.mxu0 %v8672_v28  ;;  %v1247_v28 = vld [vmem:[#allocation5 + $0xe0] sm:$0xff] }
 0x277   :  { %7898 = vmatprep.subr.mxu0 %v930_v40  ;;  %1404 = vmatprep.subr.mxu1 %v1314_v54  ;;  %v1223_v25 = vld [vmem:[#allocation5 + $0x20] sm:$0xff]  ;;  %v1310_v40 = vld [vmem:[#allocation5 + $0x2d8] sm:$0xff]  ;;  %v1257_v54 = vld [vmem:[#allocation5 + $0x130] sm:$0xff] }
 0x278   :  { %7899 = vmatpush3.msra.mxu0 %v914_v43  ;;  %1405 = vmatpush1.msra.mxu1 %v1313_v55  ;;  %v1222_v43 = vld [vmem:[#allocation5 + $0x18] sm:$0xff]  ;;  %v1287_v55 = vld [vmem:[#allocation5 + $0x220] sm:$0xff] }
 0x279   :  { %7900 = vmatprep.subr.mxu0 %v929_v59  ;;  %1406 = vmatprep.subr.mxu1 %v1312_v20  ;;  %v1309_v59 = vld [vmem:[#allocation5 + $0x2d0] sm:$0xff]  ;;  %v1286_v20 = vld [vmem:[#allocation5 + $0x218] sm:$0xff] }
 0x27a   :  { %7901 = vmatpush3.msra.mxu0 %v913_v61  ;;  %v1221_v61 = vld [vmem:[#allocation5 + $0x10] sm:$0xff]  ;;  %1407 = vmatpush1.msra.mxu1 %v1311_v58 }
 0x27b   :  { %7902 = vmatprep.subr.mxu0 %v928_v31  ;;  %v1308_v31 = vld [vmem:[#allocation5 + $0x2c8] sm:$0xff]  ;;  %1408 = vmatprep.subr.mxu1 %v1310_v40  ;;  %v1285_v58 = vld [vmem:[#allocation5 + $0x210] sm:$0xff]  ;;  %v1254_v40 = vld [vmem:[#allocation5 + $0x118] sm:$0xff] }
 0x27c   :  { %7903 = vmatpush3.msra.mxu0 %v912_v32  ;;  %v1220_v32 = vld [vmem:[#allocation5 + $0x8] sm:$0xff]  ;;  %1409 = vmatpush1.msra.mxu1 %v1309_v59  ;;  %v1253_v59 = vld [vmem:[#allocation5 + $0x110] sm:$0xff] }
 0x27d   :  { %7904 = vmatprep.subr.mxu0 %v927_v0  ;;  %v1307_v0 = vld [vmem:[#allocation5 + $0x2c0] sm:$0xff]  ;;  %1410 = vmatprep.subr.mxu1 %v1308_v31  ;;  %v1252_v31 = vld [vmem:[#allocation5 + $0x108] sm:$0xff] }
 0x27e   :  { %7905 = vmatpush3.msra.mxu0 %v911_v2  ;;  %v1219_v2 = vld [vmem:[#allocation5] sm:$0xff]  ;;  %1411 = vmatpush1.msra.mxu1 %v1307_v0  ;;  %v1604_v0 = vld [vmem:[#allocation6 + $0x2f8] sm:$0xff] }
 0x27f   :  { %7906 = vmatprep.subr.mxu0 %v926_v3  ;;  %v1306_v3 = vld [vmem:[#allocation5 + $0x2b8] sm:$0xff] }
 0x280   :  { %7907 = vmatpush3.msra.mxu0 %v910_v5  ;;  %v1282_v5 = vld [vmem:[#allocation5 + $0x1f8] sm:$0xff]  ;;  %1412 = vmatprep.subr.mxu1 %v1306_v3 }
 0x281   :  { %7908 = vmatprep.subr.mxu0 %v925_v6  ;;  %v1305_v6 = vld [vmem:[#allocation5 + $0x2b0] sm:$0xff] }
 0x282   :  { %7909 = vmatpush3.msra.mxu0 %v909_v7  ;;  %v1281_v7 = vld [vmem:[#allocation5 + $0x1f0] sm:$0xff]  ;;  %1413 = vmatpush1.msra.mxu1 %v1305_v6 }
 0x283   :  { %7910 = vmatprep.subr.mxu0 %v924_v8  ;;  %v1304_v8 = vld [vmem:[#allocation5 + $0x2a8] sm:$0xff] }
 0x284   :  { %7911 = vmatpush3.msra.mxu0 %v908_v9  ;;  %v1280_v9 = vld [vmem:[#allocation5 + $0x1e8] sm:$0xff]  ;;  %1414 = vmatprep.subr.mxu1 %v1304_v8 }
 0x285   :  { %7912 = vmatprep.subr.mxu0 %v923_v10  ;;  %v1303_v10 = vld [vmem:[#allocation5 + $0x2a0] sm:$0xff] }
 0x286   :  { %7913 = vmatpush3.msra.mxu0 %v907_v11  ;;  %v1279_v11 = vld [vmem:[#allocation5 + $0x1e0] sm:$0xff]  ;;  %1415 = vmatpush1.msra.mxu1 %v1303_v10 }
 0x287   :  { %7914 = vmatprep.subr.mxu0 %v922_v12  ;;  %v1278_v12 = vld [vmem:[#allocation5 + $0x1d8] sm:$0xff] }
 0x288   :  { %7915 = vmatpush3.msra.mxu0 %v906_v13  ;;  %v1277_v13 = vld [vmem:[#allocation5 + $0x1d0] sm:$0xff] }
 0x289   :  { %7916 = vmatprep.subr.mxu0 %v921_v14  ;;  %v1276_v14 = vld [vmem:[#allocation5 + $0x1c8] sm:$0xff] }
 0x28a   :  { %7917 = vmatpush3.msra.mxu0 %v905_v15  ;;  %v1275_v15 = vld [vmem:[#allocation5 + $0x1c0] sm:$0xff] }
 0x28b   :  { %7918 = vmatprep.subr.mxu0 %v920_v16  ;;  %v1274_v16 = vld [vmem:[#allocation5 + $0x1b8] sm:$0xff] }
 0x28c   :  { %7919 = vmatpush3.msra.mxu0 %v904_v17  ;;  %v1273_v17 = vld [vmem:[#allocation5 + $0x1b0] sm:$0xff] }
 0x28d   :  { %7920 = vmatprep.subr.mxu0 %v919_v18  ;;  %v1272_v18 = vld [vmem:[#allocation5 + $0x1a8] sm:$0xff] }
 0x28e   :  { %7921 = vmatpush3.msra.mxu0 %v903_v19  ;;  %v1302_v19 = vld [vmem:[#allocation5 + $0x298] sm:$0xff] }
 0x28f   :  { %7922 = vmatprep.subr.mxu0 %v918_v62  ;;  %v1271_v62 = vld [vmem:[#allocation5 + $0x1a0] sm:$0xff]  ;;  %1416 = vmatprep.subr.mxu1 %v1302_v19 }
 0x290   :  { %7923 = vmatpush3.msra.mxu0 %v902_v21  ;;  %v1301_v21 = vld [vmem:[#allocation5 + $0x290] sm:$0xff] }
 0x291   :  { %1113 = vmatmul.mubr.f32.vlgmr.msra.gmra.mxu0 %v9039_v27  ;;  %1327 = vmatprep.subr.mxu0 %v1250_v23  ;;  %v1241_v27 = vld [vmem:[#allocation5 + $0xb0] sm:$0xff]  ;;  %v1270_v23 = vld [vmem:[#allocation5 + $0x198] sm:$0xff] }
 0x292   :  { %1117 = vmatprep.mubr.f32.mxu0 %v9044_v33  ;;  %1328 = vmatpush1.msra.mxu0 %v1249_v24  ;;  %v1239_v33 = vld [vmem:[#allocation5 + $0xa0] sm:$0xff]  ;;  %v1300_v24 = vld [vmem:[#allocation5 + $0x288] sm:$0xff] }
 0x293   :  { %1329 = vmatprep.subr.mxu0 %v1248_v26  ;;  %1417 = vmatpush1.msra.mxu1 %v1301_v21  ;;  %v1269_v26 = vld [vmem:[#allocation5 + $0x190] sm:$0xff] }
 0x294   :  { %1330 = vmatpush1.msra.mxu0 %v1247_v28  ;;  %1418 = vmatprep.subr.mxu1 %v1300_v24  ;;  %v1299_v28 = vld [vmem:[#allocation5 + $0x280] sm:$0xff] }
 0x295   :  { %1118 = vmatmul.mubr.f32.gmra.mxu0 %v9041_v29  ;;  %1331 = vmatprep.subr.mxu0 %v1246_v30  ;;  %v1235_v29 = vld [vmem:[#allocation5 + $0x80] sm:$0xff]  ;;  %v1268_v30 = vld [vmem:[#allocation5 + $0x188] sm:$0xff] }
 0x296   :  { %1332 = vmatpush1.msra.mxu0 %v1245_v34  ;;  %1419 = vmatpush1.msra.mxu1 %v1299_v28  ;;  %v1298_v34 = vld [vmem:[#allocation5 + $0x278] sm:$0xff] }
 0x297   :  { %1333 = vmatprep.subr.mxu0 %v1244_v35  ;;  %1420 = vmatprep.subr.mxu1 %v1298_v34  ;;  %v1267_v35 = vld [vmem:[#allocation5 + $0x180] sm:$0xff] }
 0x298   :  { %1334 = vmatpush1.msra.mxu0 %v1243_v36  ;;  %v1297_v36 = vld [vmem:[#allocation5 + $0x270] sm:$0xff] }
 0x299   :  { %1335 = vmatprep.subr.mxu0 %v1242_v37  ;;  %1421 = vmatpush1.msra.mxu1 %v1297_v36  ;;  %v1266_v37 = vld [vmem:[#allocation5 + $0x178] sm:$0xff] }
 0x29a   :  { %1336 = vmatpush1.msra.mxu0 %v1241_v27  ;;  %v1296_v27 = vld [vmem:[#allocation5 + $0x268] sm:$0xff] }
 0x29b   :  { %1337 = vmatprep.subr.mxu0 %v1240_v38  ;;  %1422 = vmatprep.subr.mxu1 %v1296_v27  ;;  %v1265_v38 = vld [vmem:[#allocation5 + $0x170] sm:$0xff] }
 0x29c   :  { %1338 = vmatpush1.msra.mxu0 %v1239_v33  ;;  %v1295_v33 = vld [vmem:[#allocation5 + $0x260] sm:$0xff] }
 0x29d   :  { %1339 = vmatprep.subr.mxu0 %v1238_v39  ;;  %1423 = vmatpush1.msra.mxu1 %v1295_v33  ;;  %v1264_v39 = vld [vmem:[#allocation5 + $0x168] sm:$0xff] }
 0x29e   :  { %1340 = vmatpush1.msra.mxu0 %v1237_v41  ;;  %v1294_v41 = vld [vmem:[#allocation5 + $0x258] sm:$0xff] }
 0x29f   :  { %1341 = vmatprep.subr.mxu0 %v1236_v42  ;;  %1424 = vmatprep.subr.mxu1 %v1294_v41  ;;  %v1263_v42 = vld [vmem:[#allocation5 + $0x160] sm:$0xff] }
 0x2a0   :  { %1342 = vmatpush1.msra.mxu0 %v1235_v29  ;;  %v1293_v29 = vld [vmem:[#allocation5 + $0x250] sm:$0xff] }
 0x2a1   :  { %1343 = vmatprep.subr.mxu0 %v1234_v44  ;;  %1425 = vmatpush1.msra.mxu1 %v1293_v29  ;;  %v1262_v44 = vld [vmem:[#allocation5 + $0x158] sm:$0xff] }
 0x2a2   :  { %1344 = vmatpush1.msra.mxu0 %v1233_v45  ;;  %v1292_v45 = vld [vmem:[#allocation5 + $0x248] sm:$0xff] }
 0x2a3   :  { %1345 = vmatprep.subr.mxu0 %v1232_v46  ;;  %1426 = vmatprep.subr.mxu1 %v1292_v45  ;;  %v1261_v46 = vld [vmem:[#allocation5 + $0x150] sm:$0xff] }
 0x2a4   :  { %1346 = vmatpush1.msra.mxu0 %v1231_v47  ;;  %v1291_v47 = vld [vmem:[#allocation5 + $0x240] sm:$0xff] }
 0x2a5   :  { %1347 = vmatprep.subr.mxu0 %v1230_v48  ;;  %1427 = vmatpush1.msra.mxu1 %v1291_v47  ;;  %v1260_v48 = vld [vmem:[#allocation5 + $0x148] sm:$0xff] }
 0x2a6   :  { %1348 = vmatpush1.msra.mxu0 %v1229_v49  ;;  %v1290_v49 = vld [vmem:[#allocation5 + $0x238] sm:$0xff] }
 0x2a7   :  { %1349 = vmatprep.subr.mxu0 %v1228_v50  ;;  %1428 = vmatprep.subr.mxu1 %v1290_v49  ;;  %v1259_v50 = vld [vmem:[#allocation5 + $0x140] sm:$0xff] }
 0x2a8   :  { %1350 = vmatpush1.msra.mxu0 %v1227_v51  ;;  %v1289_v51 = vld [vmem:[#allocation5 + $0x230] sm:$0xff] }
 0x2a9   :  { %1351 = vmatprep.subr.mxu0 %v1226_v52  ;;  %1429 = vmatpush1.msra.mxu1 %v1289_v51  ;;  %v1258_v52 = vld [vmem:[#allocation5 + $0x138] sm:$0xff] }
 0x2aa   :  { %1352 = vmatpush1.msra.mxu0 %v1225_v53  ;;  %v1288_v53 = vld [vmem:[#allocation5 + $0x228] sm:$0xff] }
 0x2ab   :  { %1353 = vmatprep.subr.mxu0 %v1224_v56  ;;  %1430 = vmatprep.subr.mxu1 %v1288_v53  ;;  %v1256_v56 = vld [vmem:[#allocation5 + $0x128] sm:$0xff] }
 0x2ac   :  { %1354 = vmatpush1.msra.mxu0 %v1223_v25  ;;  %1431 = vmatpush1.msra.mxu1 %v1287_v55  ;;  %v1255_v25 = vld [vmem:[#allocation5 + $0x120] sm:$0xff]  ;;  %v1602_v53 = vld [vmem:[#allocation6 + $0x2e8] sm:$0xff] }
 0x2ad   :  { %1355 = vmatprep.subr.mxu0 %v1222_v43  ;;  %1432 = vmatprep.subr.mxu1 %v1286_v20  ;;  %v1284_v43 = vld [vmem:[#allocation5 + $0x208] sm:$0xff]  ;;  %v1601_v55 = vld [vmem:[#allocation6 + $0x2e0] sm:$0xff]  ;;  %v1600_v20 = vld [vmem:[#allocation6 + $0x2d8] sm:$0xff] }
 0x2ae   :  { %1356 = vmatpush1.msra.mxu0 %v1221_v61  ;;  %1433 = vmatpush1.msra.mxu1 %v1285_v58  ;;  %v1283_v61 = vld [vmem:[#allocation5 + $0x200] sm:$0xff]  ;;  %v1536_v58 = vld [vmem:[#allocation6 + $0xd8] sm:$0xff] }
 0x2af   :  { %1357 = vmatprep.subr.mxu0 %v1220_v32  ;;  %1434 = vmatprep.subr.mxu1 %v1284_v43  ;;  %v1251_v32 = vld [vmem:[#allocation5 + $0x100] sm:$0xff]  ;;  %v1598_v43 = vld [vmem:[#allocation6 + $0x2c8] sm:$0xff] }
 0x2b0   :  { %1358 = vmatpush1.msra.mxu0 %v1219_v2  ;;  %1435 = vmatpush1.msra.mxu1 %v1283_v61  ;;  %v1540_v2 = vld [vmem:[#allocation6 + $0xf8] sm:$0xff]  ;;  %v1597_v61 = vld [vmem:[#allocation6 + $0x2c0] sm:$0xff] }
 0x2b1   :  { %1359 = vmatprep.subr.mxu0 %v1282_v5  ;;  %1713 = vmatprep.subr.mxu1 %v1540_v2  ;;  %v1595_v2 = vld [vmem:[#allocation6 + $0x2b0] sm:$0xff] }
 0x2b2   :  { %1360 = vmatpush2.msra.mxu0 %v1281_v7 }
 0x2b3   :  { %1361 = vmatprep.subr.mxu0 %v1280_v9 }
 0x2b4   :  { %1362 = vmatpush2.msra.mxu0 %v1279_v11  ;;  %v7827_v11 = vld [vmem:[%s9792_s7] ss:$0 sm:$0xff] }
 0x2b5   :  { %1363 = vmatprep.subr.mxu0 %v1278_v12 }
 0x2b6   :  { %1364 = vmatpush2.msra.mxu0 %v1277_v13 }
 0x2b7   :  { %1365 = vmatprep.subr.mxu0 %v1276_v14 }
 0x2b8   :  { %1366 = vmatpush2.msra.mxu0 %v1275_v15 }
 0x2b9   :  { %1367 = vmatprep.subr.mxu0 %v1274_v16 }
 0x2ba   :  { %1368 = vmatpush2.msra.mxu0 %v1273_v17 }
 0x2bb   :  { %1369 = vmatprep.subr.mxu0 %v1272_v18 }
 0x2bc   :  { %1370 = vmatpush2.msra.mxu0 %v1271_v62 }
 0x2bd   :  { %1371 = vmatprep.subr.mxu0 %v1270_v23  ;;  %v1198_v23 = vstv %s102_s14 }
 0x2be   :  { %1372 = vmatpush2.msra.mxu0 %v1269_v26 }
 0x2bf   :  { %1373 = vmatprep.subr.mxu0 %v1268_v30 }
 0x2c0   :  { %1374 = vmatpush2.msra.mxu0 %v1267_v35 }
 0x2c1   :  { %1375 = vmatprep.subr.mxu0 %v1266_v37  ;;  %v8773_v37 = vld [vmem:[%s9793_s8] sm:$0xff] }
 0x2c2   :  { %1376 = vmatpush2.msra.mxu0 %v1265_v38 }
 0x2c3   :  { %1377 = vmatprep.subr.mxu0 %v1264_v39  ;;  %v8774_v39 = vld [vmem:[%s9793_s8 + $0x8] sm:$0xff] }
 0x2c4   :  { %1378 = vmatpush2.msra.mxu0 %v1263_v42 }
 0x2c5   :  { %1379 = vmatprep.subr.mxu0 %v1262_v44 }
 0x2c6   :  { %1380 = vmatpush2.msra.mxu0 %v1261_v46  ;;  %v1539_v46 = vld [vmem:[#allocation6 + $0xf0] sm:$0xff] }
 0x2c7   :  { %1381 = vmatprep.subr.mxu0 %v1260_v48 }
 0x2c8   :  { %1382 = vmatpush2.msra.mxu0 %v1259_v50  ;;  %v1538_v50 = vld [vmem:[#allocation6 + $0xe8] sm:$0xff] }
 0x2c9   :  { %1383 = vmatprep.subr.mxu0 %v1258_v52  ;;  %v1603_v52 = vld [vmem:[#allocation6 + $0x2f0] sm:$0xff] }
 0x2ca   :  { %1384 = vmatpush2.msra.mxu0 %v1257_v54 }
 0x2cb   :  { %1385 = vmatprep.subr.mxu0 %v1256_v56  ;;  %v1537_v56 = vld [vmem:[#allocation6 + $0xe0] sm:$0xff] }
 0x2cc   :  { %1386 = vmatpush2.msra.mxu0 %v1255_v25  ;;  %v1599_v25 = vld [vmem:[#allocation6 + $0x2d0] sm:$0xff] }
 0x2cd   :  { %1387 = vmatprep.subr.mxu0 %v1254_v40 }
 0x2ce   :  { %1388 = vmatpush2.msra.mxu0 %v1253_v59  ;;  %v1535_v59 = vld [vmem:[#allocation6 + $0xd0] sm:$0xff] }
 0x2cf   :  { %1389 = vmatprep.subr.mxu0 %v1252_v31  ;;  %v1534_v31 = vld [vmem:[#allocation6 + $0xc8] sm:$0xff] }
 0x2d0   :  { %1390 = vmatpush2.msra.mxu0 %v1251_v32  ;;  %v1596_v32 = vld [vmem:[#allocation6 + $0x2b8] sm:$0xff] }
 0x2d1   :  { %1790 = vmatprep.subr.mxu0 %v1604_v0  ;;  %v1533_v0 = vld [vmem:[#allocation6 + $0xc0] sm:$0xff] }
 0x32f   :  { %v7962_v6 = vpop.f32.mrf.mxu1 }
 0x331   :  { %v7886_v3 = vpop.f32.mrf.mxu0  ;;  %v7963_v8 = vpop.f32.mrf.mxu1 }
 0x332   :  { %v7964_v19 = vadd.f32 %v7963_v8, %v7962_v6  ;;  %v1531_v6 = vld [vmem:[#allocation6 + $0xb0] sm:$0xff]  ;;  %v1530_v8 = vld [vmem:[#allocation6 + $0xa8] sm:$0xff] }
 0x333   :  { %v7887_v5 = vpop.f32.mrf.mxu0  ;;  %v7965_v13 = vpop.f32.mrf.mxu1 }
 0x334   :  { %v7888_v10 = vadd.f32 %v7887_v5, %v7886_v3  ;;  %v1532_v3 = vld [vmem:[#allocation6 + $0xb8] sm:$0xff]  ;;  %v1594_v5 = vld [vmem:[#allocation6 + $0x2a8] sm:$0xff] }
 0x335   :  { %v7889_v7 = vpop.f32.mrf.mxu0  ;;  %v7966_v21 = vpop.f32.mrf.mxu1 }
 0x336   :  { %v1040_v15 = vadd.f32 %v7888_v10, %v7827_v11  ;;  %v7967_v34 = vadd.f32 %v7966_v21, %v7965_v13  ;;  %v1529_v10 = vld [vmem:[#allocation6 + $0xa0] sm:$0xff]  ;;  %v1590_v13 = vld [vmem:[#allocation6 + $0x288] sm:$0xff] }
 0x337   :  { %v7890_v9 = vpop.f32.mrf.mxu0  ;;  %v1586_v21 = vld [vmem:[#allocation6 + $0x268] sm:$0xff] }
 0x338   :  { %v7891_v16 = vadd.f32 %v7890_v9, %v7889_v7  ;;  %v1593_v7 = vld [vmem:[#allocation6 + $0x2a0] sm:$0xff]  ;;  %v1592_v9 = vld [vmem:[#allocation6 + $0x298] sm:$0xff] }
 0x33a   :  { %v1045_v26 = vadd.f32 %v7891_v16, %v7827_v11  ;;  %v1591_v11 = vld [vmem:[#allocation6 + $0x290] sm:$0xff]  ;;  %v1526_v16 = vld [vmem:[#allocation6 + $0x88] sm:$0xff] }
 0x351   :  { %v7924_v12 = vpop.f32.mrf.mxu0 }
 0x353   :  { %v7925_v14 = vpop.f32.mrf.mxu0 }
 0x354   :  { %v7926_v17 = vadd.f32 %v7925_v14, %v7924_v12  ;;  %v1528_v12 = vld [vmem:[#allocation6 + $0x98] sm:$0xff]  ;;  %v1527_v14 = vld [vmem:[#allocation6 + $0x90] sm:$0xff] }
 0x355   :  { %v7927_v18 = vpop.f32.mrf.mxu0 }
 0x356   :  { %v1115_v62 = vadd.f32 %v7926_v17, %v1040_v15  ;;  %v1589_v15 = vld [vmem:[#allocation6 + $0x280] sm:$0xff]  ;;  %v1588_v17 = vld [vmem:[#allocation6 + $0x278] sm:$0xff] }
 0x357   :  { %v7928_v24 = vpop.f32.mrf.mxu0 }
 0x358   :  { %v1190_v28 = vadd.f32 %v7964_v19, %v1115_v62  ;;  %v7929_v30 = vadd.f32 %v7928_v24, %v7927_v18  ;;  %v1525_v18 = vld [vmem:[#allocation6 + $0x80] sm:$0xff]  ;;  %v1587_v19 = vld [vmem:[#allocation6 + $0x270] sm:$0xff]  ;;  %v1524_v62 = vld [vmem:[#allocation6 + $0x78] sm:$0xff] }
 0x359   :  { %v1585_v24 = vld [vmem:[#allocation6 + $0x260] sm:$0xff] }
 0x35a   :  { %v1199_v35 = vmul.f32 %v1198_v23, %v1190_v28  ;;  %v1120_v36 = vadd.f32 %v7929_v30, %v1045_v26  ;;  %v1522_v26 = vld [vmem:[#allocation6 + $0x68] sm:$0xff]  ;;  %v1584_v28 = vld [vmem:[#allocation6 + $0x258] sm:$0xff]  ;;  %v1521_v30 = vld [vmem:[#allocation6 + $0x60] sm:$0xff] }
 0x35c   :  { %v1201_v27 = vadd.f32 %v8773_v37, %v1199_v35  ;;  %v1195_v38 = vadd.f32 %v7967_v34, %v1120_v36  ;;  %v1583_v34 = vld [vmem:[#allocation6 + $0x250] sm:$0xff]  ;;  %v1520_v35 = vld [vmem:[#allocation6 + $0x58] sm:$0xff]  ;;  %v1582_v36 = vld [vmem:[#allocation6 + $0x248] sm:$0xff] }
 0x35d   :  { %v1519_v37 = vld [vmem:[#allocation6 + $0x50] sm:$0xff] }
 0x35e   :  { %7828 = vst [vmem:[%s9793_s8 + $0x10] sm:$0xff] %v1201_v27  ;;  %v1200_v33 = vmul.f32 %v1198_v23, %v1195_v38  ;;  %1391 = vmatprep.mubr.f32.mxu0 %v1201_v27  ;;  %v1213_v42 = vrot.slane %v1201_v27, 1  ;;  %v1207_v44 = vrot.slane %v1201_v27, 7  ;;  %v1523_v23 = vld [vmem:[#allocation6 + $0x70] sm:$0xff]  ;;  %v1581_v27 = vld [vmem:[#allocation6 + $0x240] sm:$0xff]  ;;  %v1518_v38 = vld [vmem:[#allocation6 + $0x48] sm:$0xff] }
 0x360   :  { %v1202_v41 = vadd.f32 %v8774_v39, %v1200_v33  ;;  %v1580_v33 = vld [vmem:[#allocation6 + $0x238] sm:$0xff]  ;;  %v1517_v39 = vld [vmem:[#allocation6 + $0x40] sm:$0xff] }
 0x362   :  { %7829 = vst [vmem:[%s9793_s8 + $0x18] sm:$0xff] %v1202_v41  ;;  %v1214_v29 = vrot.slane %v1202_v41, 1  ;;  %v1208_v45 = vrot.slane %v1202_v41, 7 }
 0x364   :  { %v1215_v47 = vsel %vm112_vm1, %v1213_v42, %v1214_v29  ;;  %v1210_v48 = vsel %vm105_vm3, %v1208_v45, %v1207_v44  ;;  %v1216_v49 = vsel %vm112_vm1, %v1214_v29, %v1213_v42  ;;  %v1209_v40 = vsel %vm105_vm3, %v1207_v44, %v1208_v45  ;;  %v1516_v42 = vld [vmem:[#allocation6 + $0x38] sm:$0xff]  ;;  %v1578_v29 = vld [vmem:[#allocation6 + $0x228] sm:$0xff]  ;;  %v1515_v44 = vld [vmem:[#allocation6 + $0x30] sm:$0xff] }
 0x365   :  { %1469 = vmatmul.mubr.f32.vlgmr.msra.gmra.mxu1 %v1215_v47  ;;  %v1211_v51 = vmul.f32 %v8971_v57, %v1210_v48  ;;  %v1218_v54 = vmul.f32 %v8957_v22, %v1216_v49  ;;  %v1577_v45 = vld [vmem:[#allocation6 + $0x220] sm:$0xff]  ;;  %v1576_v47 = vld [vmem:[#allocation6 + $0x218] sm:$0xff]  ;;  %v1575_v49 = vld [vmem:[#allocation6 + $0x210] sm:$0xff] }
 0x366   :  { %1474 = vmatprep.mubr.f32.mxu1 %v8873_v4  ;;  %1714 = vmatpush1.msra.mxu1 %v1539_v46  ;;  %v1514_v46 = vld [vmem:[#allocation6 + $0x28] sm:$0xff]  ;;  %v1513_v48 = vld [vmem:[#allocation6 + $0x20] sm:$0xff] }
 0x367   :  { %1392 = vmatmul.mubr.f32.vlgmr.msra.gmra.mxu0 %v1211_v51  ;;  %1715 = vmatprep.subr.mxu1 %v1538_v50  ;;  %v1512_v50 = vld [vmem:[#allocation6 + $0x18] sm:$0xff]  ;;  %v1574_v51 = vld [vmem:[#allocation6 + $0x208] sm:$0xff] }
 0x368   :  { %1397 = vmatprep.mubr.f32.mxu0 %v1202_v41  ;;  %1791 = vmatpush1.msra.mxu0 %v1603_v52  ;;  %v1579_v41 = vld [vmem:[#allocation6 + $0x230] sm:$0xff] }
 0x369   :  { %1475 = vmatmul.mubr.f32.gmra.mxu1 %v1218_v54  ;;  %1792 = vmatprep.subr.mxu0 %v1602_v53  ;;  %v1511_v52 = vld [vmem:[#allocation6 + $0x10] sm:$0xff]  ;;  %v1573_v53 = vld [vmem:[#allocation6 + $0x200] sm:$0xff]  ;;  %v1510_v54 = vld [vmem:[#allocation6 + $0x8] sm:$0xff] }
 0x36a   :  { %1793 = vmatpush1.msra.mxu0 %v1601_v55  ;;  %1716 = vmatpush1.msra.mxu1 %v1537_v56  ;;  %v1636_v55 = vld [vmem:[#allocation6 + $0x3f8] sm:$0xff]  ;;  %v1509_v56 = vld [vmem:[#allocation6] sm:$0xff] }
 0x36b   :  { %1398 = vmatmul.mubr.f32.gmra.mxu0 %v1209_v40  ;;  %1794 = vmatprep.subr.mxu0 %v1600_v20  ;;  %v1635_v20 = vld [vmem:[#allocation6 + $0x3f0] sm:$0xff]  ;;  %v1632_v40 = vld [vmem:[#allocation6 + $0x3d8] sm:$0xff] }
 0x36c   :  { %1795 = vmatpush1.msra.mxu0 %v1599_v25  ;;  %1717 = vmatprep.subr.mxu1 %v1536_v58  ;;  %v1634_v25 = vld [vmem:[#allocation6 + $0x3e8] sm:$0xff]  ;;  %v1633_v58 = vld [vmem:[#allocation6 + $0x3e0] sm:$0xff] }
 0x36d   :  { %1796 = vmatprep.subr.mxu0 %v1598_v43  ;;  %1718 = vmatpush1.msra.mxu1 %v1535_v59  ;;  %v1631_v43 = vld [vmem:[#allocation6 + $0x3d0] sm:$0xff]  ;;  %v1630_v59 = vld [vmem:[#allocation6 + $0x3c8] sm:$0xff] }
 0x36e   :  { %1797 = vmatpush1.msra.mxu0 %v1597_v61  ;;  %1719 = vmatprep.subr.mxu1 %v1534_v31  ;;  %v1629_v61 = vld [vmem:[#allocation6 + $0x3c0] sm:$0xff]  ;;  %v1572_v31 = vld [vmem:[#allocation6 + $0x1f8] sm:$0xff] }
 0x36f   :  { %1798 = vmatprep.subr.mxu0 %v1596_v32  ;;  %1720 = vmatpush1.msra.mxu1 %v1533_v0  ;;  %v1628_v32 = vld [vmem:[#allocation6 + $0x3b8] sm:$0xff]  ;;  %v1571_v0 = vld [vmem:[#allocation6 + $0x1f0] sm:$0xff] }
 0x370   :  { %1799 = vmatpush1.msra.mxu0 %v1595_v2  ;;  %1721 = vmatprep.subr.mxu1 %v1532_v3  ;;  %v1627_v2 = vld [vmem:[#allocation6 + $0x3b0] sm:$0xff]  ;;  %v1570_v3 = vld [vmem:[#allocation6 + $0x1e8] sm:$0xff] }
 0x371   :  { %1800 = vmatprep.subr.mxu0 %v1594_v5  ;;  %1722 = vmatpush1.msra.mxu1 %v1531_v6  ;;  %v1626_v5 = vld [vmem:[#allocation6 + $0x3a8] sm:$0xff]  ;;  %v1569_v6 = vld [vmem:[#allocation6 + $0x1e0] sm:$0xff] }
 0x372   :  { %1801 = vmatpush1.msra.mxu0 %v1593_v7  ;;  %1723 = vmatprep.subr.mxu1 %v1530_v8  ;;  %v1625_v7 = vld [vmem:[#allocation6 + $0x3a0] sm:$0xff]  ;;  %v1568_v8 = vld [vmem:[#allocation6 + $0x1d8] sm:$0xff] }
 0x373   :  { %1802 = vmatprep.subr.mxu0 %v1592_v9  ;;  %1724 = vmatpush1.msra.mxu1 %v1529_v10  ;;  %v1624_v9 = vld [vmem:[#allocation6 + $0x398] sm:$0xff]  ;;  %v1567_v10 = vld [vmem:[#allocation6 + $0x1d0] sm:$0xff] }
 0x374   :  { %1803 = vmatpush1.msra.mxu0 %v1591_v11  ;;  %1725 = vmatprep.subr.mxu1 %v1528_v12  ;;  %v1623_v11 = vld [vmem:[#allocation6 + $0x390] sm:$0xff]  ;;  %v1566_v12 = vld [vmem:[#allocation6 + $0x1c8] sm:$0xff] }
 0x375   :  { %1804 = vmatprep.subr.mxu0 %v1590_v13  ;;  %1726 = vmatpush1.msra.mxu1 %v1527_v14  ;;  %v1622_v13 = vld [vmem:[#allocation6 + $0x388] sm:$0xff]  ;;  %v1565_v14 = vld [vmem:[#allocation6 + $0x1c0] sm:$0xff] }
 0x376   :  { %1805 = vmatpush1.msra.mxu0 %v1589_v15  ;;  %1727 = vmatprep.subr.mxu1 %v1526_v16  ;;  %v1621_v15 = vld [vmem:[#allocation6 + $0x380] sm:$0xff]  ;;  %v1564_v16 = vld [vmem:[#allocation6 + $0x1b8] sm:$0xff] }
 0x377   :  { %1806 = vmatprep.subr.mxu0 %v1588_v17  ;;  %1728 = vmatpush1.msra.mxu1 %v1525_v18  ;;  %v1620_v17 = vld [vmem:[#allocation6 + $0x378] sm:$0xff]  ;;  %v1563_v18 = vld [vmem:[#allocation6 + $0x1b0] sm:$0xff] }
 0x378   :  { %1807 = vmatpush1.msra.mxu0 %v1587_v19  ;;  %1729 = vmatprep.subr.mxu1 %v1524_v62  ;;  %v1619_v19 = vld [vmem:[#allocation6 + $0x370] sm:$0xff]  ;;  %v1562_v62 = vld [vmem:[#allocation6 + $0x1a8] sm:$0xff] }
 0x379   :  { %1808 = vmatprep.subr.mxu0 %v1586_v21  ;;  %1730 = vmatpush1.msra.mxu1 %v1523_v23  ;;  %v1618_v21 = vld [vmem:[#allocation6 + $0x368] sm:$0xff]  ;;  %v1561_v23 = vld [vmem:[#allocation6 + $0x1a0] sm:$0xff] }
 0x37a   :  { %1809 = vmatpush1.msra.mxu0 %v1585_v24  ;;  %1731 = vmatprep.subr.mxu1 %v1522_v26  ;;  %v1617_v24 = vld [vmem:[#allocation6 + $0x360] sm:$0xff]  ;;  %v1560_v26 = vld [vmem:[#allocation6 + $0x198] sm:$0xff] }
 0x37b   :  { %1810 = vmatprep.subr.mxu0 %v1584_v28  ;;  %1732 = vmatpush1.msra.mxu1 %v1521_v30  ;;  %v1616_v28 = vld [vmem:[#allocation6 + $0x358] sm:$0xff]  ;;  %v1559_v30 = vld [vmem:[#allocation6 + $0x190] sm:$0xff] }
 0x37c   :  { %1811 = vmatpush1.msra.mxu0 %v1583_v34  ;;  %1733 = vmatprep.subr.mxu1 %v1520_v35  ;;  %v1615_v34 = vld [vmem:[#allocation6 + $0x350] sm:$0xff]  ;;  %v1558_v35 = vld [vmem:[#allocation6 + $0x188] sm:$0xff] }
 0x37d   :  { %1812 = vmatprep.subr.mxu0 %v1582_v36  ;;  %1734 = vmatpush1.msra.mxu1 %v1519_v37  ;;  %v1614_v36 = vld [vmem:[#allocation6 + $0x348] sm:$0xff]  ;;  %v1557_v37 = vld [vmem:[#allocation6 + $0x180] sm:$0xff] }
 0x37e   :  { %1813 = vmatpush1.msra.mxu0 %v1581_v27  ;;  %1735 = vmatprep.subr.mxu1 %v1518_v38  ;;  %v1613_v27 = vld [vmem:[#allocation6 + $0x340] sm:$0xff]  ;;  %v1556_v38 = vld [vmem:[#allocation6 + $0x178] sm:$0xff] }
 0x37f   :  { %1814 = vmatprep.subr.mxu0 %v1580_v33  ;;  %1736 = vmatpush1.msra.mxu1 %v1517_v39  ;;  %v1612_v33 = vld [vmem:[#allocation6 + $0x338] sm:$0xff]  ;;  %v1555_v39 = vld [vmem:[#allocation6 + $0x170] sm:$0xff] }
 0x380   :  { %1815 = vmatpush1.msra.mxu0 %v1579_v41  ;;  %1737 = vmatprep.subr.mxu1 %v1516_v42  ;;  %v1611_v41 = vld [vmem:[#allocation6 + $0x330] sm:$0xff]  ;;  %v1554_v42 = vld [vmem:[#allocation6 + $0x168] sm:$0xff] }
 0x381   :  { %1816 = vmatprep.subr.mxu0 %v1578_v29  ;;  %1738 = vmatpush1.msra.mxu1 %v1515_v44  ;;  %v1610_v29 = vld [vmem:[#allocation6 + $0x328] sm:$0xff]  ;;  %v1553_v44 = vld [vmem:[#allocation6 + $0x160] sm:$0xff] }
 0x382   :  { %1817 = vmatpush1.msra.mxu0 %v1577_v45  ;;  %1739 = vmatprep.subr.mxu1 %v1514_v46  ;;  %v1609_v45 = vld [vmem:[#allocation6 + $0x320] sm:$0xff]  ;;  %v1552_v46 = vld [vmem:[#allocation6 + $0x158] sm:$0xff] }
 0x383   :  { %1818 = vmatprep.subr.mxu0 %v1576_v47  ;;  %1740 = vmatpush1.msra.mxu1 %v1513_v48  ;;  %v1608_v47 = vld [vmem:[#allocation6 + $0x318] sm:$0xff]  ;;  %v1551_v48 = vld [vmem:[#allocation6 + $0x150] sm:$0xff] }
 0x384   :  { %1819 = vmatpush1.msra.mxu0 %v1575_v49  ;;  %1741 = vmatprep.subr.mxu1 %v1512_v50  ;;  %v1607_v49 = vld [vmem:[#allocation6 + $0x310] sm:$0xff]  ;;  %v1550_v50 = vld [vmem:[#allocation6 + $0x148] sm:$0xff] }
 0x385   :  { %1820 = vmatprep.subr.mxu0 %v1574_v51  ;;  %1742 = vmatpush1.msra.mxu1 %v1511_v52  ;;  %v1606_v51 = vld [vmem:[#allocation6 + $0x308] sm:$0xff]  ;;  %v1549_v52 = vld [vmem:[#allocation6 + $0x140] sm:$0xff] }
 0x386   :  { %1821 = vmatpush1.msra.mxu0 %v1573_v53  ;;  %1743 = vmatprep.subr.mxu1 %v1510_v54  ;;  %v1605_v53 = vld [vmem:[#allocation6 + $0x300] sm:$0xff]  ;;  %v1548_v54 = vld [vmem:[#allocation6 + $0x138] sm:$0xff] }
 0x387   :  { %1822 = vmatprep.subr.mxu0 %v1636_v55  ;;  %1744 = vmatpush1.msra.mxu1 %v1509_v56  ;;  %v1547_v55 = vld [vmem:[#allocation6 + $0x130] sm:$0xff]  ;;  %v1546_v56 = vld [vmem:[#allocation6 + $0x128] sm:$0xff] }
 0x388   :  { %1823 = vmatpush2.msra.mxu0 %v1635_v20  ;;  %1745 = vmatprep.subr.mxu1 %v1572_v31  ;;  %v1545_v20 = vld [vmem:[#allocation6 + $0x120] sm:$0xff] }
 0x389   :  { %1824 = vmatprep.subr.mxu0 %v1634_v25  ;;  %1746 = vmatpush2.msra.mxu1 %v1571_v0  ;;  %v1544_v25 = vld [vmem:[#allocation6 + $0x118] sm:$0xff] }
 0x38a   :  { %1825 = vmatpush2.msra.mxu0 %v1633_v58  ;;  %1747 = vmatprep.subr.mxu1 %v1570_v3  ;;  %v1543_v58 = vld [vmem:[#allocation6 + $0x110] sm:$0xff] }
 0x38b   :  { %1826 = vmatprep.subr.mxu0 %v1632_v40  ;;  %1748 = vmatpush2.msra.mxu1 %v1569_v6  ;;  %v1542_v40 = vld [vmem:[#allocation6 + $0x108] sm:$0xff] }
 0x38c   :  { %1827 = vmatpush2.msra.mxu0 %v1631_v43  ;;  %1749 = vmatprep.subr.mxu1 %v1568_v8  ;;  %v1541_v43 = vld [vmem:[#allocation6 + $0x100] sm:$0xff] }
 0x38d   :  { %1828 = vmatprep.subr.mxu0 %v1630_v59  ;;  %1750 = vmatpush2.msra.mxu1 %v1567_v10  ;;  %v1668_v59 = vld [vmem:[#allocation6 + $0x4f8] sm:$0xff] }
 0x38e   :  { %1829 = vmatpush2.msra.mxu0 %v1629_v61  ;;  %1751 = vmatprep.subr.mxu1 %v1566_v12  ;;  %v1315_v61 = vld [vmem:[%s9788_s3] sm:$0x3] }
 0x38f   :  { %1830 = vmatprep.subr.mxu0 %v1628_v32  ;;  %1752 = vmatpush2.msra.mxu1 %v1565_v14  ;;  %v1320_v31 = vrot.slane %v1315_v61, %v8980_v60  ;;  %v1324_v0 = vrot.slane %v1315_v61, %v8986_v63  ;;  %v1649_v61 = vld [vmem:[#allocation6 + $0x460] sm:$0xff] }
 0x390   :  { %1831 = vmatpush2.msra.mxu0 %v1627_v2  ;;  %1753 = vmatprep.subr.mxu1 %v1564_v16 }
 0x391   :  { %1832 = vmatprep.subr.mxu0 %v1626_v5  ;;  %1754 = vmatpush2.msra.mxu1 %v1563_v18 }
 0x392   :  { %1833 = vmatpush2.msra.mxu0 %v1625_v7  ;;  %1755 = vmatprep.subr.mxu1 %v1562_v62 }
 0x393   :  { %1834 = vmatprep.subr.mxu0 %v1624_v9  ;;  %1756 = vmatpush2.msra.mxu1 %v1561_v23 }
 0x394   :  { %1835 = vmatpush2.msra.mxu0 %v1623_v11  ;;  %1757 = vmatprep.subr.mxu1 %v1560_v26 }
 0x395   :  { %1836 = vmatprep.subr.mxu0 %v1622_v13  ;;  %1758 = vmatpush2.msra.mxu1 %v1559_v30 }
 0x396   :  { %1837 = vmatpush2.msra.mxu0 %v1621_v15  ;;  %1759 = vmatprep.subr.mxu1 %v1558_v35 }
 0x397   :  { %1838 = vmatprep.subr.mxu0 %v1620_v17  ;;  %1760 = vmatpush2.msra.mxu1 %v1557_v37 }
 0x398   :  { %1839 = vmatpush2.msra.mxu0 %v1619_v19  ;;  %1761 = vmatprep.subr.mxu1 %v1556_v38 }
 0x399   :  { %1840 = vmatprep.subr.mxu0 %v1618_v21  ;;  %1762 = vmatpush2.msra.mxu1 %v1555_v39  ;;  %v1667_v39 = vld [vmem:[#allocation6 + $0x4f0] sm:$0xff] }
 0x39a   :  { %1841 = vmatpush2.msra.mxu0 %v1617_v24  ;;  %1763 = vmatprep.subr.mxu1 %v1554_v42 }
 0x39b   :  { %1842 = vmatprep.subr.mxu0 %v1616_v28  ;;  %1764 = vmatpush2.msra.mxu1 %v1553_v44 }
 0x39c   :  { %1843 = vmatpush2.msra.mxu0 %v1615_v34  ;;  %1765 = vmatprep.subr.mxu1 %v1552_v46  ;;  %v1663_v46 = vld [vmem:[#allocation6 + $0x4d0] sm:$0xff] }
 0x39d   :  { %1844 = vmatprep.subr.mxu0 %v1614_v36  ;;  %1766 = vmatpush2.msra.mxu1 %v1551_v48 }
 0x39e   :  { %1845 = vmatpush2.msra.mxu0 %v1613_v27  ;;  %1767 = vmatprep.subr.mxu1 %v1550_v50 }
 0x39f   :  { %1846 = vmatprep.subr.mxu0 %v1612_v33  ;;  %1768 = vmatpush2.msra.mxu1 %v1549_v52  ;;  %v1660_v52 = vld [vmem:[#allocation6 + $0x4b8] sm:$0xff] }
 0x3a0   :  { %1847 = vmatpush2.msra.mxu0 %v1611_v41  ;;  %1769 = vmatprep.subr.mxu1 %v1548_v54  ;;  %v1666_v41 = vld [vmem:[#allocation6 + $0x4e8] sm:$0xff] }
 0x3a1   :  { %1848 = vmatprep.subr.mxu0 %v1610_v29  ;;  %1770 = vmatpush2.msra.mxu1 %v1547_v55  ;;  %v1665_v29 = vld [vmem:[#allocation6 + $0x4e0] sm:$0xff]  ;;  %v1658_v54 = vld [vmem:[#allocation6 + $0x4a8] sm:$0xff] }
 0x3a2   :  { %1849 = vmatpush2.msra.mxu0 %v1609_v45  ;;  %1771 = vmatprep.subr.mxu1 %v1546_v56  ;;  %v1664_v45 = vld [vmem:[#allocation6 + $0x4d8] sm:$0xff]  ;;  %v1657_v55 = vld [vmem:[#allocation6 + $0x4a0] sm:$0xff] }
 0x3a3   :  { %1850 = vmatprep.subr.mxu0 %v1608_v47  ;;  %1772 = vmatpush2.msra.mxu1 %v1545_v20  ;;  %v1656_v56 = vld [vmem:[#allocation6 + $0x498] sm:$0xff]  ;;  %v1655_v20 = vld [vmem:[#allocation6 + $0x490] sm:$0xff] }
 0x3a4   :  { %1851 = vmatpush2.msra.mxu0 %v1607_v49  ;;  %1773 = vmatprep.subr.mxu1 %v1544_v25  ;;  %v1662_v49 = vld [vmem:[#allocation6 + $0x4c8] sm:$0xff] }
 0x3a5   :  { %1852 = vmatprep.subr.mxu0 %v1606_v51  ;;  %1774 = vmatpush2.msra.mxu1 %v1543_v58  ;;  %v1661_v51 = vld [vmem:[#allocation6 + $0x4c0] sm:$0xff]  ;;  %v1654_v25 = vld [vmem:[#allocation6 + $0x488] sm:$0xff] }
 0x3a6   :  { %1853 = vmatpush2.msra.mxu0 %v1605_v53  ;;  %1775 = vmatprep.subr.mxu1 %v1542_v40  ;;  %v1659_v53 = vld [vmem:[#allocation6 + $0x4b0] sm:$0xff]  ;;  %v1653_v58 = vld [vmem:[#allocation6 + $0x480] sm:$0xff]  ;;  %v1652_v40 = vld [vmem:[#allocation6 + $0x478] sm:$0xff] }
 0x3a7   :  { %1776 = vmatpush2.msra.mxu1 %v1541_v43  ;;  %v1651_v43 = vld [vmem:[#allocation6 + $0x470] sm:$0xff] }
 0x3a8   :  { %1867 = vmatprep.subr.mxu1 %v1668_v59  ;;  %v1650_v59 = vld [vmem:[#allocation6 + $0x468] sm:$0xff] }
 0x425   :  { %v1470_v32 = vpop.f32.mrf.mxu1 }
 0x427   :  { %v1393_v2 = vpop.f32.mrf.mxu0  ;;  %v1472_v3 = vpop.f32.mrf.mxu1 }
 0x428   :  { %v1394_v5 = vadd.f32 %v1393_v2, %v1320_v31  ;;  %v1645_v2 = vld [vmem:[#allocation6 + $0x440] sm:$0xff] }
 0x429   :  { %v1395_v6 = vpop.f32.mrf.mxu0  ;;  %v1476_v9 = vpop.f32.mrf.mxu1 }
 0x42a   :  { %v1396_v7 = vadd.f32 %v1395_v6, %v1324_v0  ;;  %v1471_v8 = vadd.f32 %v1470_v32, %v1394_v5  ;;  %v1647_v32 = vld [vmem:[#allocation6 + $0x450] sm:$0xff]  ;;  %v1642_v6 = vld [vmem:[#allocation6 + $0x428] sm:$0xff] }
 0x42b   :  { %v1399_v10 = vpop.f32.mrf.mxu0  ;;  %v1478_v16 = vpop.f32.mrf.mxu1  ;;  %v1643_v5 = vld [vmem:[#allocation6 + $0x430] sm:$0xff] }
 0x42c   :  { %v1473_v11 = vadd.f32 %v1472_v3, %v1396_v7  ;;  %v1400_v12 = vadd.f32 %v1399_v10, %v1320_v31  ;;  %v1648_v31 = vld [vmem:[#allocation6 + $0x458] sm:$0xff]  ;;  %v1641_v7 = vld [vmem:[#allocation6 + $0x420] sm:$0xff]  ;;  %v1638_v10 = vld [vmem:[#allocation6 + $0x408] sm:$0xff] }
 0x42d   :  { %v1401_v13 = vpop.f32.mrf.mxu0  ;;  %v1644_v3 = vld [vmem:[#allocation6 + $0x438] sm:$0xff] }
 0x42e   :  { %8677 = vtanh.f32 %v1473_v11  ;;  %v1477_v14 = vadd.f32 %v1476_v9, %v1400_v12  ;;  %v1402_v15 = vadd.f32 %v1401_v13, %v1324_v0  ;;  %v1646_v0 = vld [vmem:[#allocation6 + $0x448] sm:$0xff]  ;;  %v1639_v9 = vld [vmem:[#allocation6 + $0x410] sm:$0xff]  ;;  %v1637_v11 = vld [vmem:[#allocation6 + $0x400] sm:$0xff] }
 0x42f   :  { %8679 = vtanh.f32 %v1471_v8  ;;  %v1640_v8 = vld [vmem:[#allocation6 + $0x418] sm:$0xff]  ;;  %v1699_v13 = vld [vmem:[#allocation6 + $0x5f0] sm:$0xff] }
 0x430   :  { %8681 = vtanh.f32 %v1477_v14  ;;  %v1479_v17 = vadd.f32 %v1478_v16, %v1402_v15  ;;  %v1700_v12 = vld [vmem:[#allocation6 + $0x5f8] sm:$0xff]  ;;  %v1698_v14 = vld [vmem:[#allocation6 + $0x5e8] sm:$0xff]  ;;  %v1697_v15 = vld [vmem:[#allocation6 + $0x5e0] sm:$0xff] }
 0x431   :  { %v1696_v16 = vld [vmem:[#allocation6 + $0x5d8] sm:$0xff] }
 0x432   :  { %8683 = vtanh.f32 %v1479_v17  ;;  %v1695_v17 = vld [vmem:[#allocation6 + $0x5d0] sm:$0xff] }
 0x43b   :  { %v9106_v18 = vpop.eup %8677 }
 0x43c   :  { %v8680_v19 = vpop.eup %8679  ;;  %1854 = vmatprep.mubr.f32.mxu0 %v9106_v18  ;;  %v1486_v30 = vrot.slane %v9106_v18, 7  ;;  %v1498_v47 = vrot.slane %v9106_v18, 1  ;;  %v2051_v18 = vld [vmem:[#allocation8 + $0x278] sm:$0xff] }
 0x43d   :  { %v8682_v62 = vpop.eup %8681  ;;  %1855 = vmatmul.mubr.f32.vlgmr.msra.gmra.mxu0 %v8680_v19  ;;  %v1485_v26 = vrot.slane %v8680_v19, 7  ;;  %v1497_v28 = vrot.slane %v8680_v19, 1  ;;  %v1694_v19 = vld [vmem:[#allocation6 + $0x5c8] sm:$0xff] }
 0x43e   :  { %v1487_v21 = vrot.slane %v8682_v62, 7  ;;  %v1499_v23 = vrot.slane %v8682_v62, 1 }
 0x43f   :  { %v9109_v24 = vpop.eup %8683 }
 0x440   :  { %1860 = vmatprep.mubr.f32.mxu0 %v9109_v24  ;;  %v1488_v34 = vrot.slane %v9109_v24, 7  ;;  %v1491_v35 = vsel %vm105_vm3, %v1487_v21, %v1485_v26  ;;  %v9118_v36 = vsel %vm112_vm1, %v1497_v28, %v1499_v23  ;;  %v9122_v37 = vsel %vm112_vm1, %v1499_v23, %v1497_v28  ;;  %v1691_v23 = vld [vmem:[#allocation6 + $0x5b0] sm:$0xff]  ;;  %v1689_v28 = vld [vmem:[#allocation6 + $0x5a0] sm:$0xff] }
 0x441   :  { %1861 = vmatmul.mubr.f32.gmra.mxu0 %v8682_v62  ;;  %v1493_v33 = vmul.f32 %v8971_v57, %v1491_v35  ;;  %v1500_v44 = vrot.slane %v9109_v24, 1  ;;  %v1489_v48 = vsel %vm105_vm3, %v1485_v26, %v1487_v21  ;;  %v1693_v62 = vld [vmem:[#allocation6 + $0x5c0] sm:$0xff]  ;;  %v1692_v21 = vld [vmem:[#allocation6 + $0x5b8] sm:$0xff]  ;;  %v1690_v26 = vld [vmem:[#allocation6 + $0x5a8] sm:$0xff] }
 0x442   :  { %v1492_v27 = vsel %vm105_vm3, %v1488_v34, %v1486_v30  ;;  %v1490_v42 = vsel %vm105_vm3, %v1486_v30, %v1488_v34  ;;  %v1688_v30 = vld [vmem:[#allocation6 + $0x598] sm:$0xff]  ;;  %v1687_v34 = vld [vmem:[#allocation6 + $0x590] sm:$0xff]  ;;  %v1686_v35 = vld [vmem:[#allocation6 + $0x588] sm:$0xff] }
 0x443   :  { %v1494_v38 = vmul.f32 %v8971_v57, %v1492_v27  ;;  %v1502_v50 = vsel %vm112_vm1, %v1498_v47, %v1500_v44  ;;  %v1685_v27 = vld [vmem:[#allocation6 + $0x580] sm:$0xff]  ;;  %v1987_v24 = vld [vmem:[#allocation8 + $0x78] sm:$0xff] }
 0x445   :  { %1777 = vmatprep.mubr.f32.mxu1 %v1494_v38  ;;  %v1684_v38 = vld [vmem:[#allocation6 + $0x578] sm:$0xff] }
 0x446   :  { %1778 = vmatmul.mubr.f32.vlgmr.msra.gmra.mxu1 %v1493_v33  ;;  %v1683_v33 = vld [vmem:[#allocation6 + $0x570] sm:$0xff] }
 0x447   :  { %1868 = vmatpush1.msra.mxu1 %v1667_v39  ;;  %1783 = vmatprep.mubr.f32.mxu1 %v1490_v42  ;;  %v1682_v39 = vld [vmem:[#allocation6 + $0x568] sm:$0xff]  ;;  %v1680_v42 = vld [vmem:[#allocation6 + $0x558] sm:$0xff] }
 0x448   :  { %1869 = vmatprep.subr.mxu1 %v1666_v41  ;;  %v1681_v41 = vld [vmem:[#allocation6 + $0x560] sm:$0xff] }
 0x449   :  { %1870 = vmatpush1.msra.mxu1 %v1665_v29  ;;  %v1679_v29 = vld [vmem:[#allocation6 + $0x550] sm:$0xff] }
 0x44a   :  { %1871 = vmatprep.subr.mxu1 %v1664_v45  ;;  %1784 = vmatmul.mubr.f32.gmra.mxu1 %v1489_v48  ;;  %v1678_v45 = vld [vmem:[#allocation6 + $0x548] sm:$0xff]  ;;  %v1676_v48 = vld [vmem:[#allocation6 + $0x538] sm:$0xff] }
 0x44b   :  { %1872 = vmatpush1.msra.mxu1 %v1663_v46  ;;  %1931 = vmatprep.mubr.f32.mxu1 %v1502_v50  ;;  %v1677_v46 = vld [vmem:[#allocation6 + $0x540] sm:$0xff]  ;;  %v1674_v50 = vld [vmem:[#allocation6 + $0x528] sm:$0xff] }
 0x44c   :  { %1873 = vmatprep.subr.mxu1 %v1662_v49  ;;  %v1675_v49 = vld [vmem:[#allocation6 + $0x530] sm:$0xff] }
 0x44d   :  { %1874 = vmatpush1.msra.mxu1 %v1661_v51  ;;  %v1673_v51 = vld [vmem:[#allocation6 + $0x520] sm:$0xff] }
 0x44e   :  { %1875 = vmatprep.subr.mxu1 %v1660_v52  ;;  %v1672_v52 = vld [vmem:[#allocation6 + $0x518] sm:$0xff] }
 0x44f   :  { %1876 = vmatpush1.msra.mxu1 %v1659_v53  ;;  %v1671_v53 = vld [vmem:[#allocation6 + $0x510] sm:$0xff] }
 0x450   :  { %1877 = vmatprep.subr.mxu1 %v1658_v54  ;;  %v1670_v54 = vld [vmem:[#allocation6 + $0x508] sm:$0xff] }
 0x451   :  { %1878 = vmatpush1.msra.mxu1 %v1657_v55  ;;  %v1669_v55 = vld [vmem:[#allocation6 + $0x500] sm:$0xff] }
 0x452   :  { %1879 = vmatprep.subr.mxu1 %v1656_v56  ;;  %v1504_v56 = vsel %vm112_vm1, %v1500_v44, %v1498_v47  ;;  %v2002_v44 = vld [vmem:[#allocation8 + $0xf0] sm:$0xff] }
 0x453   :  { %1880 = vmatpush1.msra.mxu1 %v1655_v20  ;;  %v1508_v20 = vmul.f32 %v8957_v22, %v1504_v56  ;;  %v2050_v47 = vld [vmem:[#allocation8 + $0x270] sm:$0xff] }
 0x454   :  { %1881 = vmatprep.subr.mxu1 %v1654_v25  ;;  %v1507_v25 = vmul.f32 %v8957_v22, %v9122_v37  ;;  %v2049_v37 = vld [vmem:[#allocation8 + $0x268] sm:$0xff]  ;;  %v1974_v56 = vld [vmem:[#allocation8 + $0x10] sm:$0xff] }
 0x455   :  { %1882 = vmatpush1.msra.mxu1 %v1653_v58  ;;  %v2067_v58 = vld [vmem:[#allocation8 + $0x2f8] sm:$0xff] }
 0x456   :  { %1883 = vmatprep.subr.mxu1 %v1652_v40  ;;  %v2003_v40 = vld [vmem:[#allocation8 + $0xf8] sm:$0xff] }
 0x457   :  { %1884 = vmatpush1.msra.mxu1 %v1651_v43  ;;  %7968 = vmatprep.subr.mxu0 %v2003_v40  ;;  %v2066_v43 = vld [vmem:[#allocation8 + $0x2f0] sm:$0xff]  ;;  %v1973_v40 = vld [vmem:[#allocation8 + $0x8] sm:$0xff] }
 0x458   :  { %1885 = vmatprep.subr.mxu1 %v1650_v59  ;;  %7969 = vmatpush3.msra.mxu0 %v1987_v24  ;;  %v1986_v59 = vld [vmem:[#allocation8 + $0x70] sm:$0xff]  ;;  %v1988_v24 = vld [vmem:[#allocation8 + $0x80] sm:$0xff] }
 0x459   :  { %1886 = vmatpush1.msra.mxu1 %v1649_v61  ;;  %v2065_v61 = vld [vmem:[#allocation8 + $0x2e8] sm:$0xff]  ;;  %7970 = vmatprep.subr.mxu0 %v2002_v44  ;;  %v1972_v44 = vld [vmem:[#allocation8] sm:$0xff] }
 0x45a   :  { %1887 = vmatprep.subr.mxu1 %v1648_v31  ;;  %7971 = vmatpush3.msra.mxu0 %v1986_v59  ;;  %v1985_v31 = vld [vmem:[#allocation8 + $0x68] sm:$0xff] }
 0x45b   :  { %1888 = vmatpush1.msra.mxu1 %v1647_v32  ;;  %v2064_v32 = vld [vmem:[#allocation8 + $0x2e0] sm:$0xff] }
 0x45c   :  { %1889 = vmatprep.subr.mxu1 %v1646_v0  ;;  %v2000_v0 = vld [vmem:[#allocation8 + $0xe0] sm:$0xff] }
 0x45d   :  { %1890 = vmatpush1.msra.mxu1 %v1645_v2  ;;  %v2048_v2 = vld [vmem:[#allocation8 + $0x260] sm:$0xff] }
 0x45e   :  { %1891 = vmatprep.subr.mxu1 %v1644_v3  ;;  %v1984_v3 = vld [vmem:[#allocation8 + $0x60] sm:$0xff] }
 0x45f   :  { %1892 = vmatpush1.msra.mxu1 %v1643_v5  ;;  %v2063_v5 = vld [vmem:[#allocation8 + $0x2d8] sm:$0xff] }
 0x460   :  { %1893 = vmatprep.subr.mxu1 %v1642_v6  ;;  %v1999_v6 = vld [vmem:[#allocation8 + $0xd8] sm:$0xff] }
 0x461   :  { %1894 = vmatpush1.msra.mxu1 %v1641_v7  ;;  %v2047_v7 = vld [vmem:[#allocation8 + $0x258] sm:$0xff] }
 0x462   :  { %1895 = vmatprep.subr.mxu1 %v1640_v8  ;;  %v1983_v8 = vld [vmem:[#allocation8 + $0x58] sm:$0xff] }
 0x463   :  { %1896 = vmatpush1.msra.mxu1 %v1639_v9  ;;  %v2062_v9 = vld [vmem:[#allocation8 + $0x2d0] sm:$0xff] }
 0x464   :  { %1897 = vmatprep.subr.mxu1 %v1638_v10  ;;  %v1998_v10 = vld [vmem:[#allocation8 + $0xd0] sm:$0xff] }
 0x465   :  { %1898 = vmatpush1.msra.mxu1 %v1637_v11  ;;  %v2046_v11 = vld [vmem:[#allocation8 + $0x250] sm:$0xff] }
 0x466   :  { %1899 = vmatprep.subr.mxu1 %v1700_v12  ;;  %v1982_v12 = vld [vmem:[#allocation8 + $0x50] sm:$0xff] }
 0x467   :  { %1900 = vmatpush2.msra.mxu1 %v1699_v13  ;;  %v2061_v13 = vld [vmem:[#allocation8 + $0x2c8] sm:$0xff] }
 0x468   :  { %1901 = vmatprep.subr.mxu1 %v1698_v14  ;;  %v1997_v14 = vld [vmem:[#allocation8 + $0xc8] sm:$0xff] }
 0x469   :  { %1902 = vmatpush2.msra.mxu1 %v1697_v15  ;;  %v2045_v15 = vld [vmem:[#allocation8 + $0x248] sm:$0xff] }
 0x46a   :  { %1903 = vmatprep.subr.mxu1 %v1696_v16  ;;  %v1981_v16 = vld [vmem:[#allocation8 + $0x48] sm:$0xff] }
 0x46b   :  { %1904 = vmatpush2.msra.mxu1 %v1695_v17  ;;  %v2060_v17 = vld [vmem:[#allocation8 + $0x2c0] sm:$0xff] }
 0x46c   :  { %1905 = vmatprep.subr.mxu1 %v1694_v19  ;;  %v1996_v19 = vld [vmem:[#allocation8 + $0xc0] sm:$0xff] }
 0x46d   :  { %1906 = vmatpush2.msra.mxu1 %v1693_v62  ;;  %v2044_v62 = vld [vmem:[#allocation8 + $0x240] sm:$0xff] }
 0x46e   :  { %1907 = vmatprep.subr.mxu1 %v1692_v21  ;;  %v1980_v21 = vld [vmem:[#allocation8 + $0x40] sm:$0xff] }
 0x46f   :  { %1908 = vmatpush2.msra.mxu1 %v1691_v23  ;;  %v2059_v23 = vld [vmem:[#allocation8 + $0x2b8] sm:$0xff] }
 0x470   :  { %1909 = vmatprep.subr.mxu1 %v1690_v26  ;;  %v1995_v26 = vld [vmem:[#allocation8 + $0xb8] sm:$0xff] }
 0x471   :  { %1910 = vmatpush2.msra.mxu1 %v1689_v28  ;;  %v2043_v28 = vld [vmem:[#allocation8 + $0x238] sm:$0xff] }
 0x472   :  { %1911 = vmatprep.subr.mxu1 %v1688_v30  ;;  %v1979_v30 = vld [vmem:[#allocation8 + $0x38] sm:$0xff] }
 0x473   :  { %1912 = vmatpush2.msra.mxu1 %v1687_v34  ;;  %v2058_v34 = vld [vmem:[#allocation8 + $0x2b0] sm:$0xff] }
 0x474   :  { %1913 = vmatprep.subr.mxu1 %v1686_v35  ;;  %v1994_v35 = vld [vmem:[#allocation8 + $0xb0] sm:$0xff] }
 0x475   :  { %1914 = vmatpush2.msra.mxu1 %v1685_v27  ;;  %v2042_v27 = vld [vmem:[#allocation8 + $0x230] sm:$0xff] }
 0x476   :  { %1915 = vmatprep.subr.mxu1 %v1684_v38  ;;  %v1978_v38 = vld [vmem:[#allocation8 + $0x30] sm:$0xff] }
 0x477   :  { %1916 = vmatpush2.msra.mxu1 %v1683_v33  ;;  %v2057_v33 = vld [vmem:[#allocation8 + $0x2a8] sm:$0xff] }
 0x478   :  { %1917 = vmatprep.subr.mxu1 %v1682_v39  ;;  %v1993_v39 = vld [vmem:[#allocation8 + $0xa8] sm:$0xff] }
 0x479   :  { %1918 = vmatpush2.msra.mxu1 %v1681_v41  ;;  %v2041_v41 = vld [vmem:[#allocation8 + $0x228] sm:$0xff] }
 0x47a   :  { %1919 = vmatprep.subr.mxu1 %v1680_v42  ;;  %v1977_v42 = vld [vmem:[#allocation8 + $0x28] sm:$0xff] }
 0x47b   :  { %1920 = vmatpush2.msra.mxu1 %v1679_v29  ;;  %v2056_v29 = vld [vmem:[#allocation8 + $0x2a0] sm:$0xff] }
 0x47c   :  { %1921 = vmatprep.subr.mxu1 %v1678_v45  ;;  %v1992_v45 = vld [vmem:[#allocation8 + $0xa0] sm:$0xff] }
 0x47d   :  { %1922 = vmatpush2.msra.mxu1 %v1677_v46  ;;  %v2040_v46 = vld [vmem:[#allocation8 + $0x220] sm:$0xff] }
 0x47e   :  { %1923 = vmatprep.subr.mxu1 %v1676_v48  ;;  %v1976_v48 = vld [vmem:[#allocation8 + $0x20] sm:$0xff] }
 0x47f   :  { %1924 = vmatpush2.msra.mxu1 %v1675_v49  ;;  %v2055_v49 = vld [vmem:[#allocation8 + $0x298] sm:$0xff] }
 0x480   :  { %1925 = vmatprep.subr.mxu1 %v1674_v50  ;;  %v1991_v50 = vld [vmem:[#allocation8 + $0x98] sm:$0xff] }
 0x481   :  { %1926 = vmatpush2.msra.mxu1 %v1673_v51  ;;  %v2039_v51 = vld [vmem:[#allocation8 + $0x218] sm:$0xff] }
 0x482   :  { %1927 = vmatprep.subr.mxu1 %v1672_v52  ;;  %v1975_v52 = vld [vmem:[#allocation8 + $0x18] sm:$0xff] }
 0x483   :  { %1928 = vmatpush2.msra.mxu1 %v1671_v53  ;;  %v2054_v53 = vld [vmem:[#allocation8 + $0x290] sm:$0xff] }
 0x484   :  { %1929 = vmatprep.subr.mxu1 %v1670_v54  ;;  %v1990_v54 = vld [vmem:[#allocation8 + $0x90] sm:$0xff] }
 0x485   :  { %1930 = vmatpush2.msra.mxu1 %v1669_v55  ;;  %v2038_v55 = vld [vmem:[#allocation8 + $0x210] sm:$0xff] }
 0x486   :  { %1932 = vmatmul.mubr.f32.vlgmr.msra.gmra.mxu1 %v9118_v36  ;;  %8044 = vmatprep.subr.mxu1 %v2067_v58  ;;  %v2001_v36 = vld [vmem:[#allocation8 + $0xe8] sm:$0xff] }
 0x487   :  { %1937 = vmatprep.mubr.f32.mxu1 %v1508_v20  ;;  %8045 = vmatpush3.msra.mxu1 %v2051_v18  ;;  %v2053_v20 = vld [vmem:[#allocation8 + $0x288] sm:$0xff]  ;;  %v2052_v18 = vld [vmem:[#allocation8 + $0x280] sm:$0xff] }
 0x488   :  { %8046 = vmatprep.subr.mxu1 %v2066_v43  ;;  %7972 = vmatprep.subr.mxu0 %v2001_v36  ;;  %v2037_v58 = vld [vmem:[#allocation8 + $0x208] sm:$0xff]  ;;  %v2036_v43 = vld [vmem:[#allocation8 + $0x200] sm:$0xff] }
 0x489   :  { %8047 = vmatpush3.msra.mxu1 %v2050_v47  ;;  %7973 = vmatpush3.msra.mxu0 %v1985_v31  ;;  %v2035_v47 = vld [vmem:[#allocation8 + $0x1f8] sm:$0xff] }
 0x48a   :  { %1938 = vmatmul.mubr.f32.gmra.mxu1 %v1507_v25  ;;  %8048 = vmatprep.subr.mxu1 %v2065_v61  ;;  %v1989_v25 = vld [vmem:[#allocation8 + $0x88] sm:$0xff]  ;;  %v1701_v61 = vld [vmem:[%s9790_s5] sm:$0x3] }
 0x48b   :  { %8049 = vmatpush3.msra.mxu1 %v2049_v37  ;;  %7974 = vmatprep.subr.mxu0 %v2000_v0  ;;  %v1706_v37 = vrot.slane %v1701_v61, %v8980_v60 }
 0x48c   :  { %8050 = vmatprep.subr.mxu1 %v2064_v32  ;;  %7975 = vmatpush3.msra.mxu0 %v1984_v3  ;;  %v1710_v32 = vrot.slane %v1701_v61, %v8986_v63  ;;  %v2015_v61 = vld [vmem:[#allocation8 + $0x158] sm:$0xff] }
 0x48d   :  { %8051 = vmatpush3.msra.mxu1 %v2048_v2  ;;  %7976 = vmatprep.subr.mxu0 %v1999_v6 }
 0x48e   :  { %8052 = vmatprep.subr.mxu1 %v2063_v5  ;;  %7977 = vmatpush3.msra.mxu0 %v1983_v8 }
 0x48f   :  { %8053 = vmatpush3.msra.mxu1 %v2047_v7  ;;  %7978 = vmatprep.subr.mxu0 %v1998_v10 }
 0x490   :  { %8054 = vmatprep.subr.mxu1 %v2062_v9  ;;  %7979 = vmatpush3.msra.mxu0 %v1982_v12 }
 0x491   :  { %8055 = vmatpush3.msra.mxu1 %v2046_v11  ;;  %7980 = vmatprep.subr.mxu0 %v1997_v14 }
 0x492   :  { %8056 = vmatprep.subr.mxu1 %v2061_v13  ;;  %7981 = vmatpush3.msra.mxu0 %v1981_v16 }
 0x493   :  { %8057 = vmatpush3.msra.mxu1 %v2045_v15  ;;  %7982 = vmatprep.subr.mxu0 %v1996_v19 }
 0x494   :  { %8058 = vmatprep.subr.mxu1 %v2060_v17  ;;  %7983 = vmatpush3.msra.mxu0 %v1980_v21 }
 0x495   :  { %8059 = vmatpush3.msra.mxu1 %v2044_v62  ;;  %7984 = vmatprep.subr.mxu0 %v1995_v26 }
 0x496   :  { %8060 = vmatprep.subr.mxu1 %v2059_v23  ;;  %7985 = vmatpush3.msra.mxu0 %v1979_v30 }
 0x497   :  { %8061 = vmatpush3.msra.mxu1 %v2043_v28  ;;  %7986 = vmatprep.subr.mxu0 %v1994_v35 }
 0x498   :  { %8062 = vmatprep.subr.mxu1 %v2058_v34  ;;  %7987 = vmatpush3.msra.mxu0 %v1978_v38 }
 0x499   :  { %8063 = vmatpush3.msra.mxu1 %v2042_v27  ;;  %7988 = vmatprep.subr.mxu0 %v1993_v39 }
 0x49a   :  { %8064 = vmatprep.subr.mxu1 %v2057_v33  ;;  %7989 = vmatpush3.msra.mxu0 %v1977_v42 }
 0x49b   :  { %8065 = vmatpush3.msra.mxu1 %v2041_v41  ;;  %7990 = vmatprep.subr.mxu0 %v1992_v45 }
 0x49c   :  { %8066 = vmatprep.subr.mxu1 %v2056_v29  ;;  %7991 = vmatpush3.msra.mxu0 %v1976_v48 }
 0x49d   :  { %8067 = vmatpush3.msra.mxu1 %v2040_v46  ;;  %7992 = vmatprep.subr.mxu0 %v1991_v50 }
 0x49e   :  { %8068 = vmatprep.subr.mxu1 %v2055_v49  ;;  %7993 = vmatpush3.msra.mxu0 %v1975_v52 }
 0x49f   :  { %8069 = vmatpush3.msra.mxu1 %v2039_v51  ;;  %7994 = vmatprep.subr.mxu0 %v1990_v54 }
 0x4a0   :  { %8070 = vmatprep.subr.mxu1 %v2054_v53  ;;  %7995 = vmatpush3.msra.mxu0 %v1974_v56  ;;  %v2019_v56 = vld [vmem:[#allocation8 + $0x178] sm:$0xff] }
 0x4a1   :  { %8071 = vmatpush3.msra.mxu1 %v2038_v55  ;;  %7996 = vmatprep.subr.mxu0 %v1989_v25 }
 0x4a2   :  { %8072 = vmatprep.subr.mxu1 %v2053_v20  ;;  %7997 = vmatpush3.msra.mxu0 %v1973_v40  ;;  %v2034_v20 = vld [vmem:[#allocation8 + $0x1f0] sm:$0xff] }
 0x4a3   :  { %8073 = vmatpush3.msra.mxu1 %v2037_v58  ;;  %7998 = vmatprep.subr.mxu0 %v1988_v24  ;;  %v2018_v58 = vld [vmem:[#allocation8 + $0x170] sm:$0xff]  ;;  %v2017_v24 = vld [vmem:[#allocation8 + $0x168] sm:$0xff] }
 0x4a4   :  { %8074 = vmatprep.subr.mxu1 %v2052_v18  ;;  %7999 = vmatpush3.msra.mxu0 %v1972_v44  ;;  %v2033_v18 = vld [vmem:[#allocation8 + $0x1e8] sm:$0xff]  ;;  %v2032_v44 = vld [vmem:[#allocation8 + $0x1e0] sm:$0xff] }
 0x4a5   :  { %8075 = vmatpush3.msra.mxu1 %v2036_v43  ;;  %8006 = vmatprep.subr.mxu0 %v2035_v47  ;;  %v2016_v47 = vld [vmem:[#allocation8 + $0x160] sm:$0xff] }
 0x4fd   :  { %v1856_v31 = vpop.f32.mrf.mxu0 }
 0x4ff   :  { %v1858_v3 = vpop.f32.mrf.mxu0 }
 0x501   :  { %v1862_v9 = vpop.f32.mrf.mxu0 }
 0x503   :  { %v1864_v17 = vpop.f32.mrf.mxu0 }
 0x506   :  { %v1779_v59 = vpop.f32.mrf.mxu1 }
 0x507   :  { %v1780_v2 = vadd.f32 %v1779_v59, %v1706_v37  ;;  %v2031_v59 = vld [vmem:[#allocation8 + $0x1d8] sm:$0xff] }
 0x508   :  { %v1781_v36 = vpop.f32.mrf.mxu1 }
 0x509   :  { %v1782_v5 = vadd.f32 %v1781_v36, %v1710_v32  ;;  %v1857_v8 = vadd.f32 %v1856_v31, %v1780_v2  ;;  %v2030_v36 = vld [vmem:[#allocation8 + $0x1d0] sm:$0xff]  ;;  %v2029_v31 = vld [vmem:[#allocation8 + $0x1c8] sm:$0xff]  ;;  %v2012_v2 = vld [vmem:[#allocation8 + $0x140] sm:$0xff] }
 0x50a   :  { %v1785_v0 = vpop.f32.mrf.mxu1 }
 0x50b   :  { %v1786_v7 = vadd.f32 %v1785_v0, %v1706_v37  ;;  %v1859_v13 = vadd.f32 %v1858_v3, %v1782_v5  ;;  %v2014_v37 = vld [vmem:[#allocation8 + $0x150] sm:$0xff]  ;;  %v2028_v0 = vld [vmem:[#allocation8 + $0x1c0] sm:$0xff]  ;;  %v2027_v3 = vld [vmem:[#allocation8 + $0x1b8] sm:$0xff] }
 0x50c   :  { %v1787_v6 = vpop.f32.mrf.mxu1  ;;  %v2011_v5 = vld [vmem:[#allocation8 + $0x138] sm:$0xff] }
 0x50d   :  { %v1788_v11 = vadd.f32 %v1787_v6, %v1710_v32  ;;  %v1863_v16 = vadd.f32 %v1862_v9, %v1786_v7  ;;  %v2013_v32 = vld [vmem:[#allocation8 + $0x148] sm:$0xff]  ;;  %v2026_v6 = vld [vmem:[#allocation8 + $0x1b0] sm:$0xff] }
 0x50e   :  { %v2010_v7 = vld [vmem:[#allocation8 + $0x130] sm:$0xff]  ;;  %v2009_v9 = vld [vmem:[#allocation8 + $0x128] sm:$0xff] }
 0x50f   :  { %v1865_v21 = vadd.f32 %v1864_v17, %v1788_v11  ;;  %v2008_v11 = vld [vmem:[#allocation8 + $0x120] sm:$0xff]  ;;  %v2005_v17 = vld [vmem:[#allocation8 + $0x108] sm:$0xff] }
 0x546   :  { %v1933_v10 = vpop.f32.mrf.mxu1 }
 0x547   :  { %v1934_v12 = vadd.f32 %v1933_v10, %v1857_v8  ;;  %v2025_v8 = vld [vmem:[#allocation8 + $0x1a8] sm:$0xff]  ;;  %v2024_v10 = vld [vmem:[#allocation8 + $0x1a0] sm:$0xff] }
 0x548   :  { %v1935_v14 = vpop.f32.mrf.mxu1 }
 0x549   :  { %v1936_v15 = vadd.f32 %v1935_v14, %v1859_v13  ;;  %8685 = vtanh.f32 %v1934_v12  ;;  %v2023_v12 = vld [vmem:[#allocation8 + $0x198] sm:$0xff]  ;;  %v2022_v14 = vld [vmem:[#allocation8 + $0x190] sm:$0xff] }
 0x54a   :  { %v1939_v19 = vpop.f32.mrf.mxu1  ;;  %v2007_v13 = vld [vmem:[#allocation8 + $0x118] sm:$0xff] }
 0x54b   :  { %v1940_v62 = vadd.f32 %v1939_v19, %v1863_v16  ;;  %8687 = vtanh.f32 %v1936_v15  ;;  %v2006_v15 = vld [vmem:[#allocation8 + $0x110] sm:$0xff]  ;;  %v2021_v16 = vld [vmem:[#allocation8 + $0x188] sm:$0xff]  ;;  %v2020_v19 = vld [vmem:[#allocation8 + $0x180] sm:$0xff] }
 0x54c   :  { %v1941_v23 = vpop.f32.mrf.mxu1 }
 0x54d   :  { %8689 = vtanh.f32 %v1940_v62  ;;  %v1942_v26 = vadd.f32 %v1941_v23, %v1865_v21  ;;  %v2004_v62 = vld [vmem:[#allocation8 + $0x100] sm:$0xff]  ;;  %v2352_v21 = vld [vmem:[#allocation5 + $0xf8] sm:$0xff]  ;;  %v2351_v23 = vld [vmem:[#allocation5 + $0xf0] sm:$0xff] }
 0x54f   :  { %8691 = vtanh.f32 %v1942_v26  ;;  %v2350_v26 = vld [vmem:[#allocation5 + $0xe8] sm:$0xff] }
 0x556   :  { %v9155_v28 = vpop.eup %8685 }
 0x557   :  { %v1948_v33 = vrot.slane %v9155_v28, 7  ;;  %v1960_v45 = vrot.slane %v9155_v28, 1 }
 0x558   :  { %v8688_v30 = vpop.eup %8687 }
 0x559   :  { %v1961_v39 = vrot.slane %v8688_v30, 1  ;;  %v1949_v42 = vrot.slane %v8688_v30, 7 }
 0x55a   :  { %v9157_v34 = vpop.eup %8689 }
 0x55b   :  { %v1950_v35 = vrot.slane %v9157_v34, 7  ;;  %v1962_v38 = vrot.slane %v9157_v34, 1 }
 0x55c   :  { %v9160_v27 = vpop.eup %8691 }
 0x55d   :  { %v1963_v41 = vrot.slane %v9160_v27, 1  ;;  %v1951_v29 = vrot.slane %v9160_v27, 7  ;;  %v1954_v46 = vsel %vm105_vm3, %v1950_v35, %v1948_v33  ;;  %v1964_v51 = vsel %vm112_vm1, %v1960_v45, %v1962_v38 }
 0x55e   :  { %v1966_v54 = vsel %vm112_vm1, %v1962_v38, %v1960_v45  ;;  %v1956_v55 = vmul.f32 %v8971_v57, %v1954_v46  ;;  %v1952_v43 = vsel %vm105_vm3, %v1948_v33, %v1950_v35  ;;  %v2348_v35 = vld [vmem:[#allocation5 + $0xd8] sm:$0xff]  ;;  %v2347_v38 = vld [vmem:[#allocation5 + $0xd0] sm:$0xff]  ;;  %v2346_v33 = vld [vmem:[#allocation5 + $0xc8] sm:$0xff] }
 0x55f   :  { %v1965_v48 = vsel %vm112_vm1, %v1961_v39, %v1963_v41  ;;  %v1955_v49 = vsel %vm105_vm3, %v1951_v29, %v1949_v42  ;;  %v1967_v50 = vsel %vm112_vm1, %v1963_v41, %v1961_v39  ;;  %v1953_v25 = vsel %vm105_vm3, %v1949_v42, %v1951_v29  ;;  %v2345_v39 = vld [vmem:[#allocation5 + $0xc0] sm:$0xff]  ;;  %v2344_v41 = vld [vmem:[#allocation5 + $0xb8] sm:$0xff]  ;;  %v2342_v42 = vld [vmem:[#allocation5 + $0xa8] sm:$0xff] }
 0x560   :  { %2289 = vmatprep.mubr.f32.mxu1 %v1965_v48  ;;  %v1957_v52 = vmul.f32 %v8971_v57, %v1955_v49  ;;  %v1971_v53 = vmul.f32 %v8957_v22, %v1967_v50  ;;  %v1970_v40 = vmul.f32 %v8957_v22, %v1966_v54  ;;  %v2340_v29 = vld [vmem:[#allocation5 + $0x98] sm:$0xff]  ;;  %v2339_v45 = vld [vmem:[#allocation5 + $0x90] sm:$0xff]  ;;  %v2338_v46 = vld [vmem:[#allocation5 + $0x88] sm:$0xff] }
 0x561   :  { %2290 = vmatmul.mubr.f32.vlgmr.msra.gmra.mxu1 %v1964_v51  ;;  %v2336_v48 = vld [vmem:[#allocation5 + $0x78] sm:$0xff]  ;;  %v2335_v49 = vld [vmem:[#allocation5 + $0x70] sm:$0xff]  ;;  %v2334_v50 = vld [vmem:[#allocation5 + $0x68] sm:$0xff] }
 0x562   :  { %2139 = vmatprep.mubr.f32.mxu0 %v1957_v52  ;;  %2294 = vmatprep.mubr.f32.mxu1 %v1971_v53  ;;  %v2333_v51 = vld [vmem:[#allocation5 + $0x60] sm:$0xff]  ;;  %v2332_v52 = vld [vmem:[#allocation5 + $0x58] sm:$0xff]  ;;  %v2331_v53 = vld [vmem:[#allocation5 + $0x50] sm:$0xff] }
 0x563   :  { %2140 = vmatmul.mubr.f32.vlgmr.msra.gmra.mxu0 %v1956_v55  ;;  %v2330_v54 = vld [vmem:[#allocation5 + $0x48] sm:$0xff]  ;;  %v2329_v55 = vld [vmem:[#allocation5 + $0x40] sm:$0xff] }
 0x564   :  { %8007 = vmatpush3.msra.mxu0 %v2019_v56  ;;  %2144 = vmatprep.mubr.f32.mxu0 %v1953_v25  ;;  %v2328_v56 = vld [vmem:[#allocation5 + $0x38] sm:$0xff] }
 0x565   :  { %8008 = vmatprep.subr.mxu0 %v2034_v20  ;;  %2295 = vmatmul.mubr.f32.gmra.mxu1 %v1970_v40  ;;  %v2327_v20 = vld [vmem:[#allocation5 + $0x30] sm:$0xff]  ;;  %v2416_v25 = vld [vmem:[#allocation5 + $0x2f8] sm:$0xff]  ;;  %v2326_v40 = vld [vmem:[#allocation5 + $0x28] sm:$0xff] }
 0x566   :  { %8009 = vmatpush3.msra.mxu0 %v2018_v58  ;;  %2570 = vmatprep.mubr.f32.mxu1 %v8873_v4  ;;  %v2415_v58 = vld [vmem:[#allocation5 + $0x2f0] sm:$0xff] }
 0x567   :  { %8010 = vmatprep.subr.mxu0 %v2033_v18  ;;  %2145 = vmatmul.mubr.f32.gmra.mxu0 %v1952_v43  ;;  %v2414_v18 = vld [vmem:[#allocation5 + $0x2e8] sm:$0xff]  ;;  %v2413_v43 = vld [vmem:[#allocation5 + $0x2e0] sm:$0xff] }
 0x568   :  { %8011 = vmatpush3.msra.mxu0 %v2017_v24  ;;  %2214 = vmatprep.mubr.f32.mxu0 %v8688_v30  ;;  %v2349_v30 = vld [vmem:[#allocation5 + $0xe0] sm:$0xff] }
 0x569   :  { %8012 = vmatprep.subr.mxu0 %v2032_v44  ;;  %2506 = vmatprep.subr.mxu1 %v2416_v25  ;;  %v2325_v24 = vld [vmem:[#allocation5 + $0x20] sm:$0xff]  ;;  %v2412_v44 = vld [vmem:[#allocation5 + $0x2d8] sm:$0xff]  ;;  %v2359_v25 = vld [vmem:[#allocation5 + $0x130] sm:$0xff] }
 0x56a   :  { %8013 = vmatpush3.msra.mxu0 %v2016_v47  ;;  %2507 = vmatpush1.msra.mxu1 %v2415_v58  ;;  %v2324_v47 = vld [vmem:[#allocation5 + $0x18] sm:$0xff]  ;;  %v2389_v58 = vld [vmem:[#allocation5 + $0x220] sm:$0xff] }
 0x56b   :  { %8014 = vmatprep.subr.mxu0 %v2031_v59  ;;  %2508 = vmatprep.subr.mxu1 %v2414_v18  ;;  %v2411_v59 = vld [vmem:[#allocation5 + $0x2d0] sm:$0xff]  ;;  %v2388_v18 = vld [vmem:[#allocation5 + $0x218] sm:$0xff] }
 0x56c   :  { %8015 = vmatpush3.msra.mxu0 %v2015_v61  ;;  %v2323_v61 = vld [vmem:[#allocation5 + $0x10] sm:$0xff]  ;;  %2509 = vmatpush1.msra.mxu1 %v2413_v43 }
 0x56d   :  { %8016 = vmatprep.subr.mxu0 %v2030_v36  ;;  %v2410_v36 = vld [vmem:[#allocation5 + $0x2c8] sm:$0xff]  ;;  %2510 = vmatprep.subr.mxu1 %v2412_v44  ;;  %v2387_v43 = vld [vmem:[#allocation5 + $0x210] sm:$0xff]  ;;  %v2356_v44 = vld [vmem:[#allocation5 + $0x118] sm:$0xff] }
 0x56e   :  { %8017 = vmatpush3.msra.mxu0 %v2014_v37  ;;  %v2322_v37 = vld [vmem:[#allocation5 + $0x8] sm:$0xff]  ;;  %2511 = vmatpush1.msra.mxu1 %v2411_v59  ;;  %v2355_v59 = vld [vmem:[#allocation5 + $0x110] sm:$0xff] }
 0x56f   :  { %8018 = vmatprep.subr.mxu0 %v2029_v31  ;;  %v2409_v31 = vld [vmem:[#allocation5 + $0x2c0] sm:$0xff]  ;;  %2512 = vmatprep.subr.mxu1 %v2410_v36  ;;  %v2354_v36 = vld [vmem:[#allocation5 + $0x108] sm:$0xff] }
 0x570   :  { %8019 = vmatpush3.msra.mxu0 %v2013_v32  ;;  %v2321_v32 = vld [vmem:[#allocation5] sm:$0xff]  ;;  %2513 = vmatpush1.msra.mxu1 %v2409_v31  ;;  %v2706_v31 = vld [vmem:[#allocation6 + $0x2f8] sm:$0xff] }
 0x571   :  { %8020 = vmatprep.subr.mxu0 %v2028_v0  ;;  %v2408_v0 = vld [vmem:[#allocation5 + $0x2b8] sm:$0xff] }
 0x572   :  { %8021 = vmatpush3.msra.mxu0 %v2012_v2  ;;  %v2384_v2 = vld [vmem:[#allocation5 + $0x1f8] sm:$0xff]  ;;  %2514 = vmatprep.subr.mxu1 %v2408_v0 }
 0x573   :  { %8022 = vmatprep.subr.mxu0 %v2027_v3  ;;  %v2407_v3 = vld [vmem:[#allocation5 + $0x2b0] sm:$0xff] }
 0x574   :  { %8023 = vmatpush3.msra.mxu0 %v2011_v5  ;;  %v2383_v5 = vld [vmem:[#allocation5 + $0x1f0] sm:$0xff]  ;;  %2515 = vmatpush1.msra.mxu1 %v2407_v3 }
 0x575   :  { %8024 = vmatprep.subr.mxu0 %v2026_v6  ;;  %v2406_v6 = vld [vmem:[#allocation5 + $0x2a8] sm:$0xff] }
 0x576   :  { %8025 = vmatpush3.msra.mxu0 %v2010_v7  ;;  %v2382_v7 = vld [vmem:[#allocation5 + $0x1e8] sm:$0xff]  ;;  %2516 = vmatprep.subr.mxu1 %v2406_v6 }
 0x577   :  { %8026 = vmatprep.subr.mxu0 %v2025_v8  ;;  %v2405_v8 = vld [vmem:[#allocation5 + $0x2a0] sm:$0xff] }
 0x578   :  { %8027 = vmatpush3.msra.mxu0 %v2009_v9  ;;  %v2381_v9 = vld [vmem:[#allocation5 + $0x1e0] sm:$0xff]  ;;  %2517 = vmatpush1.msra.mxu1 %v2405_v8 }
 0x579   :  { %8028 = vmatprep.subr.mxu0 %v2024_v10  ;;  %v2380_v10 = vld [vmem:[#allocation5 + $0x1d8] sm:$0xff] }
 0x57a   :  { %8029 = vmatpush3.msra.mxu0 %v2008_v11  ;;  %v2379_v11 = vld [vmem:[#allocation5 + $0x1d0] sm:$0xff] }
 0x57b   :  { %8030 = vmatprep.subr.mxu0 %v2023_v12  ;;  %v2378_v12 = vld [vmem:[#allocation5 + $0x1c8] sm:$0xff] }
 0x57c   :  { %8031 = vmatpush3.msra.mxu0 %v2007_v13  ;;  %v2377_v13 = vld [vmem:[#allocation5 + $0x1c0] sm:$0xff] }
 0x57d   :  { %8032 = vmatprep.subr.mxu0 %v2022_v14  ;;  %v2376_v14 = vld [vmem:[#allocation5 + $0x1b8] sm:$0xff] }
 0x57e   :  { %8033 = vmatpush3.msra.mxu0 %v2006_v15  ;;  %v2375_v15 = vld [vmem:[#allocation5 + $0x1b0] sm:$0xff] }
 0x57f   :  { %8034 = vmatprep.subr.mxu0 %v2021_v16  ;;  %v2374_v16 = vld [vmem:[#allocation5 + $0x1a8] sm:$0xff] }
 0x580   :  { %8035 = vmatpush3.msra.mxu0 %v2005_v17  ;;  %v2404_v17 = vld [vmem:[#allocation5 + $0x298] sm:$0xff] }
 0x581   :  { %8036 = vmatprep.subr.mxu0 %v2020_v19  ;;  %v2373_v19 = vld [vmem:[#allocation5 + $0x1a0] sm:$0xff]  ;;  %2518 = vmatprep.subr.mxu1 %v2404_v17 }
 0x582   :  { %8037 = vmatpush3.msra.mxu0 %v2004_v62  ;;  %v2403_v62 = vld [vmem:[#allocation5 + $0x290] sm:$0xff] }
 0x583   :  { %2215 = vmatmul.mubr.f32.vlgmr.msra.gmra.mxu0 %v9155_v28  ;;  %2429 = vmatprep.subr.mxu0 %v2352_v21  ;;  %v2343_v28 = vld [vmem:[#allocation5 + $0xb0] sm:$0xff]  ;;  %v2372_v21 = vld [vmem:[#allocation5 + $0x198] sm:$0xff] }
 0x584   :  { %2219 = vmatprep.mubr.f32.mxu0 %v9160_v27  ;;  %2430 = vmatpush1.msra.mxu0 %v2351_v23  ;;  %v2341_v27 = vld [vmem:[#allocation5 + $0xa0] sm:$0xff]  ;;  %v2402_v23 = vld [vmem:[#allocation5 + $0x288] sm:$0xff] }
 0x585   :  { %2431 = vmatprep.subr.mxu0 %v2350_v26  ;;  %2519 = vmatpush1.msra.mxu1 %v2403_v62  ;;  %v2371_v26 = vld [vmem:[#allocation5 + $0x190] sm:$0xff] }
 0x586   :  { %2432 = vmatpush1.msra.mxu0 %v2349_v30  ;;  %2520 = vmatprep.subr.mxu1 %v2402_v23  ;;  %v2401_v30 = vld [vmem:[#allocation5 + $0x280] sm:$0xff] }
 0x587   :  { %2220 = vmatmul.mubr.f32.gmra.mxu0 %v9157_v34  ;;  %2433 = vmatprep.subr.mxu0 %v2348_v35  ;;  %v2337_v34 = vld [vmem:[#allocation5 + $0x80] sm:$0xff]  ;;  %v2370_v35 = vld [vmem:[#allocation5 + $0x188] sm:$0xff] }
 0x588   :  { %2434 = vmatpush1.msra.mxu0 %v2347_v38  ;;  %2521 = vmatpush1.msra.mxu1 %v2401_v30  ;;  %v2400_v38 = vld [vmem:[#allocation5 + $0x278] sm:$0xff] }
 0x589   :  { %2435 = vmatprep.subr.mxu0 %v2346_v33  ;;  %2522 = vmatprep.subr.mxu1 %v2400_v38  ;;  %v2369_v33 = vld [vmem:[#allocation5 + $0x180] sm:$0xff] }
 0x58a   :  { %2436 = vmatpush1.msra.mxu0 %v2345_v39  ;;  %v2399_v39 = vld [vmem:[#allocation5 + $0x270] sm:$0xff] }
 0x58b   :  { %2437 = vmatprep.subr.mxu0 %v2344_v41  ;;  %2523 = vmatpush1.msra.mxu1 %v2399_v39  ;;  %v2368_v41 = vld [vmem:[#allocation5 + $0x178] sm:$0xff] }
 0x58c   :  { %2438 = vmatpush1.msra.mxu0 %v2343_v28  ;;  %v2398_v28 = vld [vmem:[#allocation5 + $0x268] sm:$0xff] }
 0x58d   :  { %2439 = vmatprep.subr.mxu0 %v2342_v42  ;;  %2524 = vmatprep.subr.mxu1 %v2398_v28  ;;  %v2367_v42 = vld [vmem:[#allocation5 + $0x170] sm:$0xff] }
 0x58e   :  { %2440 = vmatpush1.msra.mxu0 %v2341_v27  ;;  %v2397_v27 = vld [vmem:[#allocation5 + $0x260] sm:$0xff] }
 0x58f   :  { %2441 = vmatprep.subr.mxu0 %v2340_v29  ;;  %2525 = vmatpush1.msra.mxu1 %v2397_v27  ;;  %v2366_v29 = vld [vmem:[#allocation5 + $0x168] sm:$0xff] }
 0x590   :  { %2442 = vmatpush1.msra.mxu0 %v2339_v45  ;;  %v2396_v45 = vld [vmem:[#allocation5 + $0x258] sm:$0xff] }
 0x591   :  { %2443 = vmatprep.subr.mxu0 %v2338_v46  ;;  %2526 = vmatprep.subr.mxu1 %v2396_v45  ;;  %v2365_v46 = vld [vmem:[#allocation5 + $0x160] sm:$0xff] }
 0x592   :  { %2444 = vmatpush1.msra.mxu0 %v2337_v34  ;;  %v2395_v34 = vld [vmem:[#allocation5 + $0x250] sm:$0xff] }
 0x593   :  { %2445 = vmatprep.subr.mxu0 %v2336_v48  ;;  %2527 = vmatpush1.msra.mxu1 %v2395_v34  ;;  %v2364_v48 = vld [vmem:[#allocation5 + $0x158] sm:$0xff] }
 0x594   :  { %2446 = vmatpush1.msra.mxu0 %v2335_v49  ;;  %v2394_v49 = vld [vmem:[#allocation5 + $0x248] sm:$0xff] }
 0x595   :  { %2447 = vmatprep.subr.mxu0 %v2334_v50  ;;  %2528 = vmatprep.subr.mxu1 %v2394_v49  ;;  %v2363_v50 = vld [vmem:[#allocation5 + $0x150] sm:$0xff] }
 0x596   :  { %2448 = vmatpush1.msra.mxu0 %v2333_v51  ;;  %v2393_v51 = vld [vmem:[#allocation5 + $0x240] sm:$0xff] }
 0x597   :  { %2449 = vmatprep.subr.mxu0 %v2332_v52  ;;  %2529 = vmatpush1.msra.mxu1 %v2393_v51  ;;  %v2362_v52 = vld [vmem:[#allocation5 + $0x148] sm:$0xff] }
 0x598   :  { %2450 = vmatpush1.msra.mxu0 %v2331_v53  ;;  %v2392_v53 = vld [vmem:[#allocation5 + $0x238] sm:$0xff] }
 0x599   :  { %2451 = vmatprep.subr.mxu0 %v2330_v54  ;;  %2530 = vmatprep.subr.mxu1 %v2392_v53  ;;  %v2361_v54 = vld [vmem:[#allocation5 + $0x140] sm:$0xff] }
 0x59a   :  { %2452 = vmatpush1.msra.mxu0 %v2329_v55  ;;  %v2391_v55 = vld [vmem:[#allocation5 + $0x230] sm:$0xff] }
 0x59b   :  { %2453 = vmatprep.subr.mxu0 %v2328_v56  ;;  %2531 = vmatpush1.msra.mxu1 %v2391_v55  ;;  %v2360_v56 = vld [vmem:[#allocation5 + $0x138] sm:$0xff] }
 0x59c   :  { %2454 = vmatpush1.msra.mxu0 %v2327_v20  ;;  %v2390_v20 = vld [vmem:[#allocation5 + $0x228] sm:$0xff] }
 0x59d   :  { %2455 = vmatprep.subr.mxu0 %v2326_v40  ;;  %2532 = vmatprep.subr.mxu1 %v2390_v20  ;;  %v2358_v40 = vld [vmem:[#allocation5 + $0x128] sm:$0xff] }
 0x59e   :  { %2456 = vmatpush1.msra.mxu0 %v2325_v24  ;;  %2533 = vmatpush1.msra.mxu1 %v2389_v58  ;;  %v2357_v24 = vld [vmem:[#allocation5 + $0x120] sm:$0xff]  ;;  %v2704_v20 = vld [vmem:[#allocation6 + $0x2e8] sm:$0xff] }
 0x59f   :  { %2457 = vmatprep.subr.mxu0 %v2324_v47  ;;  %2534 = vmatprep.subr.mxu1 %v2388_v18  ;;  %v2386_v47 = vld [vmem:[#allocation5 + $0x208] sm:$0xff]  ;;  %v2703_v58 = vld [vmem:[#allocation6 + $0x2e0] sm:$0xff]  ;;  %v2702_v18 = vld [vmem:[#allocation6 + $0x2d8] sm:$0xff] }
 0x5a0   :  { %2458 = vmatpush1.msra.mxu0 %v2323_v61  ;;  %2535 = vmatpush1.msra.mxu1 %v2387_v43  ;;  %v2385_v61 = vld [vmem:[#allocation5 + $0x200] sm:$0xff]  ;;  %v2638_v43 = vld [vmem:[#allocation6 + $0xd8] sm:$0xff] }
 0x5a1   :  { %2459 = vmatprep.subr.mxu0 %v2322_v37  ;;  %2536 = vmatprep.subr.mxu1 %v2386_v47  ;;  %v2353_v37 = vld [vmem:[#allocation5 + $0x100] sm:$0xff]  ;;  %v2700_v47 = vld [vmem:[#allocation6 + $0x2c8] sm:$0xff] }
 0x5a2   :  { %2460 = vmatpush1.msra.mxu0 %v2321_v32  ;;  %2537 = vmatpush1.msra.mxu1 %v2385_v61  ;;  %v2642_v32 = vld [vmem:[#allocation6 + $0xf8] sm:$0xff]  ;;  %v2699_v61 = vld [vmem:[#allocation6 + $0x2c0] sm:$0xff] }
 0x5a3   :  { %2461 = vmatprep.subr.mxu0 %v2384_v2  ;;  %2815 = vmatprep.subr.mxu1 %v2642_v32  ;;  %v2697_v32 = vld [vmem:[#allocation6 + $0x2b0] sm:$0xff] }
 0x5a4   :  { %2462 = vmatpush2.msra.mxu0 %v2383_v5 }
 0x5a5   :  { %2463 = vmatprep.subr.mxu0 %v2382_v7 }
 0x5a6   :  { %2464 = vmatpush2.msra.mxu0 %v2381_v9  ;;  %v7831_v9 = vld [vmem:[%s9792_s7] ss:$0 sm:$0xff] }
 0x5a7   :  { %2465 = vmatprep.subr.mxu0 %v2380_v10 }
 0x5a8   :  { %2466 = vmatpush2.msra.mxu0 %v2379_v11 }
 0x5a9   :  { %2467 = vmatprep.subr.mxu0 %v2378_v12 }
 0x5aa   :  { %2468 = vmatpush2.msra.mxu0 %v2377_v13 }
 0x5ab   :  { %2469 = vmatprep.subr.mxu0 %v2376_v14 }
 0x5ac   :  { %2470 = vmatpush2.msra.mxu0 %v2375_v15 }
 0x5ad   :  { %2471 = vmatprep.subr.mxu0 %v2374_v16 }
 0x5ae   :  { %2472 = vmatpush2.msra.mxu0 %v2373_v19 }
 0x5af   :  { %2473 = vmatprep.subr.mxu0 %v2372_v21  ;;  %v2300_v21 = vstv %s7830_s2 }
 0x5b0   :  { %2474 = vmatpush2.msra.mxu0 %v2371_v26 }
 0x5b1   :  { %2475 = vmatprep.subr.mxu0 %v2370_v35 }
 0x5b2   :  { %2476 = vmatpush2.msra.mxu0 %v2369_v33 }
 0x5b3   :  { %2477 = vmatprep.subr.mxu0 %v2368_v41  ;;  %v8775_v41 = vld [vmem:[%s9793_s8 + $0x10] sm:$0xff] }
 0x5b4   :  { %2478 = vmatpush2.msra.mxu0 %v2367_v42 }
 0x5b5   :  { %2479 = vmatprep.subr.mxu0 %v2366_v29  ;;  %v8776_v29 = vld [vmem:[%s9793_s8 + $0x18] sm:$0xff] }
 0x5b6   :  { %2480 = vmatpush2.msra.mxu0 %v2365_v46 }
 0x5b7   :  { %2481 = vmatprep.subr.mxu0 %v2364_v48 }
 0x5b8   :  { %2482 = vmatpush2.msra.mxu0 %v2363_v50  ;;  %v2641_v50 = vld [vmem:[#allocation6 + $0xf0] sm:$0xff] }
 0x5b9   :  { %2483 = vmatprep.subr.mxu0 %v2362_v52 }
 0x5ba   :  { %2484 = vmatpush2.msra.mxu0 %v2361_v54  ;;  %v2640_v54 = vld [vmem:[#allocation6 + $0xe8] sm:$0xff] }
 0x5bb   :  { %2485 = vmatprep.subr.mxu0 %v2360_v56  ;;  %v2705_v56 = vld [vmem:[#allocation6 + $0x2f0] sm:$0xff] }
 0x5bc   :  { %2486 = vmatpush2.msra.mxu0 %v2359_v25 }
 0x5bd   :  { %2487 = vmatprep.subr.mxu0 %v2358_v40  ;;  %v2639_v40 = vld [vmem:[#allocation6 + $0xe0] sm:$0xff] }
 0x5be   :  { %2488 = vmatpush2.msra.mxu0 %v2357_v24  ;;  %v2701_v24 = vld [vmem:[#allocation6 + $0x2d0] sm:$0xff] }
 0x5bf   :  { %2489 = vmatprep.subr.mxu0 %v2356_v44 }
 0x5c0   :  { %2490 = vmatpush2.msra.mxu0 %v2355_v59  ;;  %v2637_v59 = vld [vmem:[#allocation6 + $0xd0] sm:$0xff] }
 0x5c1   :  { %2491 = vmatprep.subr.mxu0 %v2354_v36  ;;  %v2636_v36 = vld [vmem:[#allocation6 + $0xc8] sm:$0xff] }
 0x5c2   :  { %2492 = vmatpush2.msra.mxu0 %v2353_v37  ;;  %v2698_v37 = vld [vmem:[#allocation6 + $0x2b8] sm:$0xff] }
 0x5c3   :  { %2892 = vmatprep.subr.mxu0 %v2706_v31  ;;  %v2635_v31 = vld [vmem:[#allocation6 + $0xc0] sm:$0xff] }
 0x621   :  { %v8076_v3 = vpop.f32.mrf.mxu1 }
 0x623   :  { %v8000_v0 = vpop.f32.mrf.mxu0  ;;  %v8077_v6 = vpop.f32.mrf.mxu1 }
 0x624   :  { %v8078_v17 = vadd.f32 %v8077_v6, %v8076_v3  ;;  %v2633_v3 = vld [vmem:[#allocation6 + $0xb0] sm:$0xff]  ;;  %v2632_v6 = vld [vmem:[#allocation6 + $0xa8] sm:$0xff] }
 0x625   :  { %v8001_v2 = vpop.f32.mrf.mxu0  ;;  %v8079_v11 = vpop.f32.mrf.mxu1 }
 0x626   :  { %v8002_v8 = vadd.f32 %v8001_v2, %v8000_v0  ;;  %v2634_v0 = vld [vmem:[#allocation6 + $0xb8] sm:$0xff]  ;;  %v2696_v2 = vld [vmem:[#allocation6 + $0x2a8] sm:$0xff] }
 0x627   :  { %v8003_v5 = vpop.f32.mrf.mxu0  ;;  %v8080_v62 = vpop.f32.mrf.mxu1 }
 0x628   :  { %v2142_v13 = vadd.f32 %v8002_v8, %v7831_v9  ;;  %v8081_v38 = vadd.f32 %v8080_v62, %v8079_v11  ;;  %v2631_v8 = vld [vmem:[#allocation6 + $0xa0] sm:$0xff]  ;;  %v2692_v11 = vld [vmem:[#allocation6 + $0x288] sm:$0xff] }
 0x629   :  { %v8004_v7 = vpop.f32.mrf.mxu0  ;;  %v2688_v62 = vld [vmem:[#allocation6 + $0x268] sm:$0xff] }
 0x62a   :  { %v8005_v14 = vadd.f32 %v8004_v7, %v8003_v5  ;;  %v2695_v5 = vld [vmem:[#allocation6 + $0x2a0] sm:$0xff]  ;;  %v2694_v7 = vld [vmem:[#allocation6 + $0x298] sm:$0xff] }
 0x62c   :  { %v2147_v26 = vadd.f32 %v8005_v14, %v7831_v9  ;;  %v2693_v9 = vld [vmem:[#allocation6 + $0x290] sm:$0xff]  ;;  %v2628_v14 = vld [vmem:[#allocation6 + $0x88] sm:$0xff] }
 0x643   :  { %v8038_v10 = vpop.f32.mrf.mxu0 }
 0x645   :  { %v8039_v12 = vpop.f32.mrf.mxu0 }
 0x646   :  { %v8040_v15 = vadd.f32 %v8039_v12, %v8038_v10  ;;  %v2630_v10 = vld [vmem:[#allocation6 + $0x98] sm:$0xff]  ;;  %v2629_v12 = vld [vmem:[#allocation6 + $0x90] sm:$0xff] }
 0x647   :  { %v8041_v16 = vpop.f32.mrf.mxu0 }
 0x648   :  { %v2217_v19 = vadd.f32 %v8040_v15, %v2142_v13  ;;  %v2691_v13 = vld [vmem:[#allocation6 + $0x280] sm:$0xff]  ;;  %v2690_v15 = vld [vmem:[#allocation6 + $0x278] sm:$0xff] }
 0x649   :  { %v8042_v23 = vpop.f32.mrf.mxu0 }
 0x64a   :  { %v2292_v30 = vadd.f32 %v8078_v17, %v2217_v19  ;;  %v8043_v35 = vadd.f32 %v8042_v23, %v8041_v16  ;;  %v2627_v16 = vld [vmem:[#allocation6 + $0x80] sm:$0xff]  ;;  %v2689_v17 = vld [vmem:[#allocation6 + $0x270] sm:$0xff]  ;;  %v2626_v19 = vld [vmem:[#allocation6 + $0x78] sm:$0xff] }
 0x64b   :  { %v2687_v23 = vld [vmem:[#allocation6 + $0x260] sm:$0xff] }
 0x64c   :  { %v2301_v33 = vmul.f32 %v2300_v21, %v2292_v30  ;;  %v2222_v39 = vadd.f32 %v8043_v35, %v2147_v26  ;;  %v2624_v26 = vld [vmem:[#allocation6 + $0x68] sm:$0xff]  ;;  %v2686_v30 = vld [vmem:[#allocation6 + $0x258] sm:$0xff]  ;;  %v2623_v35 = vld [vmem:[#allocation6 + $0x60] sm:$0xff] }
 0x64e   :  { %v2303_v28 = vadd.f32 %v8775_v41, %v2301_v33  ;;  %v2297_v42 = vadd.f32 %v8081_v38, %v2222_v39  ;;  %v2685_v38 = vld [vmem:[#allocation6 + $0x250] sm:$0xff]  ;;  %v2622_v33 = vld [vmem:[#allocation6 + $0x58] sm:$0xff]  ;;  %v2684_v39 = vld [vmem:[#allocation6 + $0x248] sm:$0xff] }
 0x64f   :  { %v2621_v41 = vld [vmem:[#allocation6 + $0x50] sm:$0xff] }
 0x650   :  { %7832 = vst [vmem:[%s9793_s8 + $0x20] sm:$0xff] %v2303_v28  ;;  %v2302_v27 = vmul.f32 %v2300_v21, %v2297_v42  ;;  %2493 = vmatprep.mubr.f32.mxu0 %v2303_v28  ;;  %v2315_v46 = vrot.slane %v2303_v28, 1  ;;  %v2309_v48 = vrot.slane %v2303_v28, 7  ;;  %v2625_v21 = vld [vmem:[#allocation6 + $0x70] sm:$0xff]  ;;  %v2683_v28 = vld [vmem:[#allocation6 + $0x240] sm:$0xff]  ;;  %v2620_v42 = vld [vmem:[#allocation6 + $0x48] sm:$0xff] }
 0x652   :  { %v2304_v45 = vadd.f32 %v8776_v29, %v2302_v27  ;;  %v2682_v27 = vld [vmem:[#allocation6 + $0x238] sm:$0xff]  ;;  %v2619_v29 = vld [vmem:[#allocation6 + $0x40] sm:$0xff] }
 0x654   :  { %7833 = vst [vmem:[%s9793_s8 + $0x28] sm:$0xff] %v2304_v45  ;;  %v2316_v34 = vrot.slane %v2304_v45, 1  ;;  %v2310_v49 = vrot.slane %v2304_v45, 7 }
 0x656   :  { %v2317_v51 = vsel %vm112_vm1, %v2315_v46, %v2316_v34  ;;  %v2312_v52 = vsel %vm105_vm3, %v2310_v49, %v2309_v48  ;;  %v2318_v53 = vsel %vm112_vm1, %v2316_v34, %v2315_v46  ;;  %v2311_v44 = vsel %vm105_vm3, %v2309_v48, %v2310_v49  ;;  %v2618_v46 = vld [vmem:[#allocation6 + $0x38] sm:$0xff]  ;;  %v2680_v34 = vld [vmem:[#allocation6 + $0x228] sm:$0xff]  ;;  %v2617_v48 = vld [vmem:[#allocation6 + $0x30] sm:$0xff] }
 0x657   :  { %2571 = vmatmul.mubr.f32.vlgmr.msra.gmra.mxu1 %v2317_v51  ;;  %v2313_v55 = vmul.f32 %v8971_v57, %v2312_v52  ;;  %v2320_v25 = vmul.f32 %v8957_v22, %v2318_v53  ;;  %v2679_v49 = vld [vmem:[#allocation6 + $0x220] sm:$0xff]  ;;  %v2678_v51 = vld [vmem:[#allocation6 + $0x218] sm:$0xff]  ;;  %v2677_v53 = vld [vmem:[#allocation6 + $0x210] sm:$0xff] }
 0x658   :  { %2576 = vmatprep.mubr.f32.mxu1 %v8873_v4  ;;  %2816 = vmatpush1.msra.mxu1 %v2641_v50  ;;  %v2616_v50 = vld [vmem:[#allocation6 + $0x28] sm:$0xff]  ;;  %v2615_v52 = vld [vmem:[#allocation6 + $0x20] sm:$0xff] }
 0x659   :  { %2494 = vmatmul.mubr.f32.vlgmr.msra.gmra.mxu0 %v2313_v55  ;;  %2817 = vmatprep.subr.mxu1 %v2640_v54  ;;  %v2614_v54 = vld [vmem:[#allocation6 + $0x18] sm:$0xff]  ;;  %v2676_v55 = vld [vmem:[#allocation6 + $0x208] sm:$0xff] }
 0x65a   :  { %2499 = vmatprep.mubr.f32.mxu0 %v2304_v45  ;;  %2893 = vmatpush1.msra.mxu0 %v2705_v56  ;;  %v2681_v45 = vld [vmem:[#allocation6 + $0x230] sm:$0xff] }
 0x65b   :  { %2577 = vmatmul.mubr.f32.gmra.mxu1 %v2320_v25  ;;  %2894 = vmatprep.subr.mxu0 %v2704_v20  ;;  %v2613_v56 = vld [vmem:[#allocation6 + $0x10] sm:$0xff]  ;;  %v2675_v20 = vld [vmem:[#allocation6 + $0x200] sm:$0xff]  ;;  %v2612_v25 = vld [vmem:[#allocation6 + $0x8] sm:$0xff] }
 0x65c   :  { %2895 = vmatpush1.msra.mxu0 %v2703_v58  ;;  %2818 = vmatpush1.msra.mxu1 %v2639_v40  ;;  %v2738_v58 = vld [vmem:[#allocation6 + $0x3f8] sm:$0xff]  ;;  %v2611_v40 = vld [vmem:[#allocation6] sm:$0xff] }
 0x65d   :  { %2500 = vmatmul.mubr.f32.gmra.mxu0 %v2311_v44  ;;  %2896 = vmatprep.subr.mxu0 %v2702_v18  ;;  %v2737_v18 = vld [vmem:[#allocation6 + $0x3f0] sm:$0xff]  ;;  %v2734_v44 = vld [vmem:[#allocation6 + $0x3d8] sm:$0xff] }
 0x65e   :  { %2897 = vmatpush1.msra.mxu0 %v2701_v24  ;;  %2819 = vmatprep.subr.mxu1 %v2638_v43  ;;  %v2736_v24 = vld [vmem:[#allocation6 + $0x3e8] sm:$0xff]  ;;  %v2735_v43 = vld [vmem:[#allocation6 + $0x3e0] sm:$0xff] }
 0x65f   :  { %2898 = vmatprep.subr.mxu0 %v2700_v47  ;;  %2820 = vmatpush1.msra.mxu1 %v2637_v59  ;;  %v2733_v47 = vld [vmem:[#allocation6 + $0x3d0] sm:$0xff]  ;;  %v2732_v59 = vld [vmem:[#allocation6 + $0x3c8] sm:$0xff] }
 0x660   :  { %2899 = vmatpush1.msra.mxu0 %v2699_v61  ;;  %2821 = vmatprep.subr.mxu1 %v2636_v36  ;;  %v2731_v61 = vld [vmem:[#allocation6 + $0x3c0] sm:$0xff]  ;;  %v2674_v36 = vld [vmem:[#allocation6 + $0x1f8] sm:$0xff] }
 0x661   :  { %2900 = vmatprep.subr.mxu0 %v2698_v37  ;;  %2822 = vmatpush1.msra.mxu1 %v2635_v31  ;;  %v2730_v37 = vld [vmem:[#allocation6 + $0x3b8] sm:$0xff]  ;;  %v2673_v31 = vld [vmem:[#allocation6 + $0x1f0] sm:$0xff] }
 0x662   :  { %2901 = vmatpush1.msra.mxu0 %v2697_v32  ;;  %2823 = vmatprep.subr.mxu1 %v2634_v0  ;;  %v2729_v32 = vld [vmem:[#allocation6 + $0x3b0] sm:$0xff]  ;;  %v2672_v0 = vld [vmem:[#allocation6 + $0x1e8] sm:$0xff] }
 0x663   :  { %2902 = vmatprep.subr.mxu0 %v2696_v2  ;;  %2824 = vmatpush1.msra.mxu1 %v2633_v3  ;;  %v2728_v2 = vld [vmem:[#allocation6 + $0x3a8] sm:$0xff]  ;;  %v2671_v3 = vld [vmem:[#allocation6 + $0x1e0] sm:$0xff] }
 0x664   :  { %2903 = vmatpush1.msra.mxu0 %v2695_v5  ;;  %2825 = vmatprep.subr.mxu1 %v2632_v6  ;;  %v2727_v5 = vld [vmem:[#allocation6 + $0x3a0] sm:$0xff]  ;;  %v2670_v6 = vld [vmem:[#allocation6 + $0x1d8] sm:$0xff] }
 0x665   :  { %2904 = vmatprep.subr.mxu0 %v2694_v7  ;;  %2826 = vmatpush1.msra.mxu1 %v2631_v8  ;;  %v2726_v7 = vld [vmem:[#allocation6 + $0x398] sm:$0xff]  ;;  %v2669_v8 = vld [vmem:[#allocation6 + $0x1d0] sm:$0xff] }
 0x666   :  { %2905 = vmatpush1.msra.mxu0 %v2693_v9  ;;  %2827 = vmatprep.subr.mxu1 %v2630_v10  ;;  %v2725_v9 = vld [vmem:[#allocation6 + $0x390] sm:$0xff]  ;;  %v2668_v10 = vld [vmem:[#allocation6 + $0x1c8] sm:$0xff] }
 0x667   :  { %2906 = vmatprep.subr.mxu0 %v2692_v11  ;;  %2828 = vmatpush1.msra.mxu1 %v2629_v12  ;;  %v2724_v11 = vld [vmem:[#allocation6 + $0x388] sm:$0xff]  ;;  %v2667_v12 = vld [vmem:[#allocation6 + $0x1c0] sm:$0xff] }
 0x668   :  { %2907 = vmatpush1.msra.mxu0 %v2691_v13  ;;  %2829 = vmatprep.subr.mxu1 %v2628_v14  ;;  %v2723_v13 = vld [vmem:[#allocation6 + $0x380] sm:$0xff]  ;;  %v2666_v14 = vld [vmem:[#allocation6 + $0x1b8] sm:$0xff] }
 0x669   :  { %2908 = vmatprep.subr.mxu0 %v2690_v15  ;;  %2830 = vmatpush1.msra.mxu1 %v2627_v16  ;;  %v2722_v15 = vld [vmem:[#allocation6 + $0x378] sm:$0xff]  ;;  %v2665_v16 = vld [vmem:[#allocation6 + $0x1b0] sm:$0xff] }
 0x66a   :  { %2909 = vmatpush1.msra.mxu0 %v2689_v17  ;;  %2831 = vmatprep.subr.mxu1 %v2626_v19  ;;  %v2721_v17 = vld [vmem:[#allocation6 + $0x370] sm:$0xff]  ;;  %v2664_v19 = vld [vmem:[#allocation6 + $0x1a8] sm:$0xff] }
 0x66b   :  { %2910 = vmatprep.subr.mxu0 %v2688_v62  ;;  %2832 = vmatpush1.msra.mxu1 %v2625_v21  ;;  %v2720_v62 = vld [vmem:[#allocation6 + $0x368] sm:$0xff]  ;;  %v2663_v21 = vld [vmem:[#allocation6 + $0x1a0] sm:$0xff] }
 0x66c   :  { %2911 = vmatpush1.msra.mxu0 %v2687_v23  ;;  %2833 = vmatprep.subr.mxu1 %v2624_v26  ;;  %v2719_v23 = vld [vmem:[#allocation6 + $0x360] sm:$0xff]  ;;  %v2662_v26 = vld [vmem:[#allocation6 + $0x198] sm:$0xff] }
 0x66d   :  { %2912 = vmatprep.subr.mxu0 %v2686_v30  ;;  %2834 = vmatpush1.msra.mxu1 %v2623_v35  ;;  %v2718_v30 = vld [vmem:[#allocation6 + $0x358] sm:$0xff]  ;;  %v2661_v35 = vld [vmem:[#allocation6 + $0x190] sm:$0xff] }
 0x66e   :  { %2913 = vmatpush1.msra.mxu0 %v2685_v38  ;;  %2835 = vmatprep.subr.mxu1 %v2622_v33  ;;  %v2717_v38 = vld [vmem:[#allocation6 + $0x350] sm:$0xff]  ;;  %v2660_v33 = vld [vmem:[#allocation6 + $0x188] sm:$0xff] }
 0x66f   :  { %2914 = vmatprep.subr.mxu0 %v2684_v39  ;;  %2836 = vmatpush1.msra.mxu1 %v2621_v41  ;;  %v2716_v39 = vld [vmem:[#allocation6 + $0x348] sm:$0xff]  ;;  %v2659_v41 = vld [vmem:[#allocation6 + $0x180] sm:$0xff] }
 0x670   :  { %2915 = vmatpush1.msra.mxu0 %v2683_v28  ;;  %2837 = vmatprep.subr.mxu1 %v2620_v42  ;;  %v2715_v28 = vld [vmem:[#allocation6 + $0x340] sm:$0xff]  ;;  %v2658_v42 = vld [vmem:[#allocation6 + $0x178] sm:$0xff] }
 0x671   :  { %2916 = vmatprep.subr.mxu0 %v2682_v27  ;;  %2838 = vmatpush1.msra.mxu1 %v2619_v29  ;;  %v2714_v27 = vld [vmem:[#allocation6 + $0x338] sm:$0xff]  ;;  %v2657_v29 = vld [vmem:[#allocation6 + $0x170] sm:$0xff] }
 0x672   :  { %2917 = vmatpush1.msra.mxu0 %v2681_v45  ;;  %2839 = vmatprep.subr.mxu1 %v2618_v46  ;;  %v2713_v45 = vld [vmem:[#allocation6 + $0x330] sm:$0xff]  ;;  %v2656_v46 = vld [vmem:[#allocation6 + $0x168] sm:$0xff] }
 0x673   :  { %2918 = vmatprep.subr.mxu0 %v2680_v34  ;;  %2840 = vmatpush1.msra.mxu1 %v2617_v48  ;;  %v2712_v34 = vld [vmem:[#allocation6 + $0x328] sm:$0xff]  ;;  %v2655_v48 = vld [vmem:[#allocation6 + $0x160] sm:$0xff] }
 0x674   :  { %2919 = vmatpush1.msra.mxu0 %v2679_v49  ;;  %2841 = vmatprep.subr.mxu1 %v2616_v50  ;;  %v2711_v49 = vld [vmem:[#allocation6 + $0x320] sm:$0xff]  ;;  %v2654_v50 = vld [vmem:[#allocation6 + $0x158] sm:$0xff] }
 0x675   :  { %2920 = vmatprep.subr.mxu0 %v2678_v51  ;;  %2842 = vmatpush1.msra.mxu1 %v2615_v52  ;;  %v2710_v51 = vld [vmem:[#allocation6 + $0x318] sm:$0xff]  ;;  %v2653_v52 = vld [vmem:[#allocation6 + $0x150] sm:$0xff] }
 0x676   :  { %2921 = vmatpush1.msra.mxu0 %v2677_v53  ;;  %2843 = vmatprep.subr.mxu1 %v2614_v54  ;;  %v2709_v53 = vld [vmem:[#allocation6 + $0x310] sm:$0xff]  ;;  %v2652_v54 = vld [vmem:[#allocation6 + $0x148] sm:$0xff] }
 0x677   :  { %2922 = vmatprep.subr.mxu0 %v2676_v55  ;;  %2844 = vmatpush1.msra.mxu1 %v2613_v56  ;;  %v2708_v55 = vld [vmem:[#allocation6 + $0x308] sm:$0xff]  ;;  %v2651_v56 = vld [vmem:[#allocation6 + $0x140] sm:$0xff] }
 0x678   :  { %2923 = vmatpush1.msra.mxu0 %v2675_v20  ;;  %2845 = vmatprep.subr.mxu1 %v2612_v25  ;;  %v2707_v20 = vld [vmem:[#allocation6 + $0x300] sm:$0xff]  ;;  %v2650_v25 = vld [vmem:[#allocation6 + $0x138] sm:$0xff] }
 0x679   :  { %2924 = vmatprep.subr.mxu0 %v2738_v58  ;;  %2846 = vmatpush1.msra.mxu1 %v2611_v40  ;;  %v2649_v58 = vld [vmem:[#allocation6 + $0x130] sm:$0xff]  ;;  %v2648_v40 = vld [vmem:[#allocation6 + $0x128] sm:$0xff] }
 0x67a   :  { %2925 = vmatpush2.msra.mxu0 %v2737_v18  ;;  %2847 = vmatprep.subr.mxu1 %v2674_v36  ;;  %v2647_v18 = vld [vmem:[#allocation6 + $0x120] sm:$0xff] }
 0x67b   :  { %2926 = vmatprep.subr.mxu0 %v2736_v24  ;;  %2848 = vmatpush2.msra.mxu1 %v2673_v31  ;;  %v2646_v24 = vld [vmem:[#allocation6 + $0x118] sm:$0xff] }
 0x67c   :  { %2927 = vmatpush2.msra.mxu0 %v2735_v43  ;;  %2849 = vmatprep.subr.mxu1 %v2672_v0  ;;  %v2645_v43 = vld [vmem:[#allocation6 + $0x110] sm:$0xff] }
 0x67d   :  { %2928 = vmatprep.subr.mxu0 %v2734_v44  ;;  %2850 = vmatpush2.msra.mxu1 %v2671_v3  ;;  %v2644_v44 = vld [vmem:[#allocation6 + $0x108] sm:$0xff] }
 0x67e   :  { %2929 = vmatpush2.msra.mxu0 %v2733_v47  ;;  %2851 = vmatprep.subr.mxu1 %v2670_v6  ;;  %v2643_v47 = vld [vmem:[#allocation6 + $0x100] sm:$0xff] }
 0x67f   :  { %2930 = vmatprep.subr.mxu0 %v2732_v59  ;;  %2852 = vmatpush2.msra.mxu1 %v2669_v8  ;;  %v2770_v59 = vld [vmem:[#allocation6 + $0x4f8] sm:$0xff] }
 0x680   :  { %2931 = vmatpush2.msra.mxu0 %v2731_v61  ;;  %2853 = vmatprep.subr.mxu1 %v2668_v10  ;;  %v2417_v61 = vld [vmem:[%s9788_s3] sm:$0x3] }
 0x681   :  { %2932 = vmatprep.subr.mxu0 %v2730_v37  ;;  %2854 = vmatpush2.msra.mxu1 %v2667_v12  ;;  %v2422_v36 = vrot.slane %v2417_v61, %v8980_v60  ;;  %v2426_v31 = vrot.slane %v2417_v61, %v8986_v63  ;;  %v2751_v61 = vld [vmem:[#allocation6 + $0x460] sm:$0xff] }
 0x682   :  { %2933 = vmatpush2.msra.mxu0 %v2729_v32  ;;  %2855 = vmatprep.subr.mxu1 %v2666_v14 }
 0x683   :  { %2934 = vmatprep.subr.mxu0 %v2728_v2  ;;  %2856 = vmatpush2.msra.mxu1 %v2665_v16 }
 0x684   :  { %2935 = vmatpush2.msra.mxu0 %v2727_v5  ;;  %2857 = vmatprep.subr.mxu1 %v2664_v19 }
 0x685   :  { %2936 = vmatprep.subr.mxu0 %v2726_v7  ;;  %2858 = vmatpush2.msra.mxu1 %v2663_v21 }
 0x686   :  { %2937 = vmatpush2.msra.mxu0 %v2725_v9  ;;  %2859 = vmatprep.subr.mxu1 %v2662_v26 }
 0x687   :  { %2938 = vmatprep.subr.mxu0 %v2724_v11  ;;  %2860 = vmatpush2.msra.mxu1 %v2661_v35 }
 0x688   :  { %2939 = vmatpush2.msra.mxu0 %v2723_v13  ;;  %2861 = vmatprep.subr.mxu1 %v2660_v33 }
 0x689   :  { %2940 = vmatprep.subr.mxu0 %v2722_v15  ;;  %2862 = vmatpush2.msra.mxu1 %v2659_v41 }
 0x68a   :  { %2941 = vmatpush2.msra.mxu0 %v2721_v17  ;;  %2863 = vmatprep.subr.mxu1 %v2658_v42 }
 0x68b   :  { %2942 = vmatprep.subr.mxu0 %v2720_v62  ;;  %2864 = vmatpush2.msra.mxu1 %v2657_v29  ;;  %v2769_v29 = vld [vmem:[#allocation6 + $0x4f0] sm:$0xff] }
 0x68c   :  { %2943 = vmatpush2.msra.mxu0 %v2719_v23  ;;  %2865 = vmatprep.subr.mxu1 %v2656_v46 }
 0x68d   :  { %2944 = vmatprep.subr.mxu0 %v2718_v30  ;;  %2866 = vmatpush2.msra.mxu1 %v2655_v48 }
 0x68e   :  { %2945 = vmatpush2.msra.mxu0 %v2717_v38  ;;  %2867 = vmatprep.subr.mxu1 %v2654_v50  ;;  %v2765_v50 = vld [vmem:[#allocation6 + $0x4d0] sm:$0xff] }
 0x68f   :  { %2946 = vmatprep.subr.mxu0 %v2716_v39  ;;  %2868 = vmatpush2.msra.mxu1 %v2653_v52 }
 0x690   :  { %2947 = vmatpush2.msra.mxu0 %v2715_v28  ;;  %2869 = vmatprep.subr.mxu1 %v2652_v54 }
 0x691   :  { %2948 = vmatprep.subr.mxu0 %v2714_v27  ;;  %2870 = vmatpush2.msra.mxu1 %v2651_v56  ;;  %v2762_v56 = vld [vmem:[#allocation6 + $0x4b8] sm:$0xff] }
 0x692   :  { %2949 = vmatpush2.msra.mxu0 %v2713_v45  ;;  %2871 = vmatprep.subr.mxu1 %v2650_v25  ;;  %v2768_v45 = vld [vmem:[#allocation6 + $0x4e8] sm:$0xff] }
 0x693   :  { %2950 = vmatprep.subr.mxu0 %v2712_v34  ;;  %2872 = vmatpush2.msra.mxu1 %v2649_v58  ;;  %v2767_v34 = vld [vmem:[#allocation6 + $0x4e0] sm:$0xff]  ;;  %v2760_v25 = vld [vmem:[#allocation6 + $0x4a8] sm:$0xff] }
 0x694   :  { %2951 = vmatpush2.msra.mxu0 %v2711_v49  ;;  %2873 = vmatprep.subr.mxu1 %v2648_v40  ;;  %v2766_v49 = vld [vmem:[#allocation6 + $0x4d8] sm:$0xff]  ;;  %v2759_v58 = vld [vmem:[#allocation6 + $0x4a0] sm:$0xff] }
 0x695   :  { %2952 = vmatprep.subr.mxu0 %v2710_v51  ;;  %2874 = vmatpush2.msra.mxu1 %v2647_v18  ;;  %v2758_v40 = vld [vmem:[#allocation6 + $0x498] sm:$0xff]  ;;  %v2757_v18 = vld [vmem:[#allocation6 + $0x490] sm:$0xff] }
 0x696   :  { %2953 = vmatpush2.msra.mxu0 %v2709_v53  ;;  %2875 = vmatprep.subr.mxu1 %v2646_v24  ;;  %v2764_v53 = vld [vmem:[#allocation6 + $0x4c8] sm:$0xff] }
 0x697   :  { %2954 = vmatprep.subr.mxu0 %v2708_v55  ;;  %2876 = vmatpush2.msra.mxu1 %v2645_v43  ;;  %v2763_v55 = vld [vmem:[#allocation6 + $0x4c0] sm:$0xff]  ;;  %v2756_v24 = vld [vmem:[#allocation6 + $0x488] sm:$0xff] }
 0x698   :  { %2955 = vmatpush2.msra.mxu0 %v2707_v20  ;;  %2877 = vmatprep.subr.mxu1 %v2644_v44  ;;  %v2761_v20 = vld [vmem:[#allocation6 + $0x4b0] sm:$0xff]  ;;  %v2755_v43 = vld [vmem:[#allocation6 + $0x480] sm:$0xff]  ;;  %v2754_v44 = vld [vmem:[#allocation6 + $0x478] sm:$0xff] }
 0x699   :  { %2878 = vmatpush2.msra.mxu1 %v2643_v47  ;;  %v2753_v47 = vld [vmem:[#allocation6 + $0x470] sm:$0xff] }
 0x69a   :  { %2969 = vmatprep.subr.mxu1 %v2770_v59  ;;  %v2752_v59 = vld [vmem:[#allocation6 + $0x468] sm:$0xff] }
 0x717   :  { %v2572_v37 = vpop.f32.mrf.mxu1 }
 0x719   :  { %v2495_v32 = vpop.f32.mrf.mxu0  ;;  %v2574_v0 = vpop.f32.mrf.mxu1 }
 0x71a   :  { %v2496_v2 = vadd.f32 %v2495_v32, %v2422_v36  ;;  %v2747_v32 = vld [vmem:[#allocation6 + $0x440] sm:$0xff] }
 0x71b   :  { %v2497_v3 = vpop.f32.mrf.mxu0  ;;  %v2578_v7 = vpop.f32.mrf.mxu1 }
 0x71c   :  { %v2498_v5 = vadd.f32 %v2497_v3, %v2426_v31  ;;  %v2573_v6 = vadd.f32 %v2572_v37, %v2496_v2  ;;  %v2749_v37 = vld [vmem:[#allocation6 + $0x450] sm:$0xff]  ;;  %v2744_v3 = vld [vmem:[#allocation6 + $0x428] sm:$0xff] }
 0x71d   :  { %v2501_v8 = vpop.f32.mrf.mxu0  ;;  %v2580_v14 = vpop.f32.mrf.mxu1  ;;  %v2745_v2 = vld [vmem:[#allocation6 + $0x430] sm:$0xff] }
 0x71e   :  { %v2575_v9 = vadd.f32 %v2574_v0, %v2498_v5  ;;  %v2502_v10 = vadd.f32 %v2501_v8, %v2422_v36  ;;  %v2750_v36 = vld [vmem:[#allocation6 + $0x458] sm:$0xff]  ;;  %v2743_v5 = vld [vmem:[#allocation6 + $0x420] sm:$0xff]  ;;  %v2740_v8 = vld [vmem:[#allocation6 + $0x408] sm:$0xff] }
 0x71f   :  { %v2503_v11 = vpop.f32.mrf.mxu0  ;;  %v2746_v0 = vld [vmem:[#allocation6 + $0x438] sm:$0xff] }
 0x720   :  { %8693 = vtanh.f32 %v2575_v9  ;;  %v2579_v12 = vadd.f32 %v2578_v7, %v2502_v10  ;;  %v2504_v13 = vadd.f32 %v2503_v11, %v2426_v31  ;;  %v2748_v31 = vld [vmem:[#allocation6 + $0x448] sm:$0xff]  ;;  %v2741_v7 = vld [vmem:[#allocation6 + $0x410] sm:$0xff]  ;;  %v2739_v9 = vld [vmem:[#allocation6 + $0x400] sm:$0xff] }
 0x721   :  { %8695 = vtanh.f32 %v2573_v6  ;;  %v2742_v6 = vld [vmem:[#allocation6 + $0x418] sm:$0xff]  ;;  %v2801_v11 = vld [vmem:[#allocation6 + $0x5f0] sm:$0xff] }
 0x722   :  { %8697 = vtanh.f32 %v2579_v12  ;;  %v2581_v15 = vadd.f32 %v2580_v14, %v2504_v13  ;;  %v2802_v10 = vld [vmem:[#allocation6 + $0x5f8] sm:$0xff]  ;;  %v2800_v12 = vld [vmem:[#allocation6 + $0x5e8] sm:$0xff]  ;;  %v2799_v13 = vld [vmem:[#allocation6 + $0x5e0] sm:$0xff] }
 0x723   :  { %v2798_v14 = vld [vmem:[#allocation6 + $0x5d8] sm:$0xff] }
 0x724   :  { %8699 = vtanh.f32 %v2581_v15  ;;  %v2797_v15 = vld [vmem:[#allocation6 + $0x5d0] sm:$0xff] }
 0x72d   :  { %v9222_v16 = vpop.eup %8693 }
 0x72e   :  { %v8696_v17 = vpop.eup %8695  ;;  %2956 = vmatprep.mubr.f32.mxu0 %v9222_v16  ;;  %v2588_v35 = vrot.slane %v9222_v16, 7  ;;  %v2600_v51 = vrot.slane %v9222_v16, 1  ;;  %v3153_v16 = vld [vmem:[#allocation8 + $0x278] sm:$0xff] }
 0x72f   :  { %v8698_v19 = vpop.eup %8697  ;;  %2957 = vmatmul.mubr.f32.vlgmr.msra.gmra.mxu0 %v8696_v17  ;;  %v2587_v26 = vrot.slane %v8696_v17, 7  ;;  %v2599_v30 = vrot.slane %v8696_v17, 1  ;;  %v2796_v17 = vld [vmem:[#allocation6 + $0x5c8] sm:$0xff] }
 0x730   :  { %v2589_v62 = vrot.slane %v8698_v19, 7  ;;  %v2601_v21 = vrot.slane %v8698_v19, 1 }
 0x731   :  { %v9225_v23 = vpop.eup %8699 }
 0x732   :  { %2962 = vmatprep.mubr.f32.mxu0 %v9225_v23  ;;  %v2590_v38 = vrot.slane %v9225_v23, 7  ;;  %v2593_v33 = vsel %vm105_vm3, %v2589_v62, %v2587_v26  ;;  %v9234_v39 = vsel %vm112_vm1, %v2599_v30, %v2601_v21  ;;  %v9238_v41 = vsel %vm112_vm1, %v2601_v21, %v2599_v30  ;;  %v2793_v21 = vld [vmem:[#allocation6 + $0x5b0] sm:$0xff]  ;;  %v2791_v30 = vld [vmem:[#allocation6 + $0x5a0] sm:$0xff] }
 0x733   :  { %2963 = vmatmul.mubr.f32.gmra.mxu0 %v8698_v19  ;;  %v2595_v27 = vmul.f32 %v8971_v57, %v2593_v33  ;;  %v2602_v48 = vrot.slane %v9225_v23, 1  ;;  %v2591_v52 = vsel %vm105_vm3, %v2587_v26, %v2589_v62  ;;  %v2795_v19 = vld [vmem:[#allocation6 + $0x5c0] sm:$0xff]  ;;  %v2794_v62 = vld [vmem:[#allocation6 + $0x5b8] sm:$0xff]  ;;  %v2792_v26 = vld [vmem:[#allocation6 + $0x5a8] sm:$0xff] }
 0x734   :  { %v2594_v28 = vsel %vm105_vm3, %v2590_v38, %v2588_v35  ;;  %v2592_v46 = vsel %vm105_vm3, %v2588_v35, %v2590_v38  ;;  %v2790_v35 = vld [vmem:[#allocation6 + $0x598] sm:$0xff]  ;;  %v2789_v38 = vld [vmem:[#allocation6 + $0x590] sm:$0xff]  ;;  %v2788_v33 = vld [vmem:[#allocation6 + $0x588] sm:$0xff] }
 0x735   :  { %v2596_v42 = vmul.f32 %v8971_v57, %v2594_v28  ;;  %v2604_v54 = vsel %vm112_vm1, %v2600_v51, %v2602_v48  ;;  %v2787_v28 = vld [vmem:[#allocation6 + $0x580] sm:$0xff]  ;;  %v3089_v23 = vld [vmem:[#allocation8 + $0x78] sm:$0xff] }
 0x737   :  { %2879 = vmatprep.mubr.f32.mxu1 %v2596_v42  ;;  %v2786_v42 = vld [vmem:[#allocation6 + $0x578] sm:$0xff] }
 0x738   :  { %2880 = vmatmul.mubr.f32.vlgmr.msra.gmra.mxu1 %v2595_v27  ;;  %v2785_v27 = vld [vmem:[#allocation6 + $0x570] sm:$0xff] }
 0x739   :  { %2970 = vmatpush1.msra.mxu1 %v2769_v29  ;;  %2885 = vmatprep.mubr.f32.mxu1 %v2592_v46  ;;  %v2784_v29 = vld [vmem:[#allocation6 + $0x568] sm:$0xff]  ;;  %v2782_v46 = vld [vmem:[#allocation6 + $0x558] sm:$0xff] }
 0x73a   :  { %2971 = vmatprep.subr.mxu1 %v2768_v45  ;;  %v2783_v45 = vld [vmem:[#allocation6 + $0x560] sm:$0xff] }
 0x73b   :  { %2972 = vmatpush1.msra.mxu1 %v2767_v34  ;;  %v2781_v34 = vld [vmem:[#allocation6 + $0x550] sm:$0xff] }
 0x73c   :  { %2973 = vmatprep.subr.mxu1 %v2766_v49  ;;  %2886 = vmatmul.mubr.f32.gmra.mxu1 %v2591_v52  ;;  %v2780_v49 = vld [vmem:[#allocation6 + $0x548] sm:$0xff]  ;;  %v2778_v52 = vld [vmem:[#allocation6 + $0x538] sm:$0xff] }
 0x73d   :  { %2974 = vmatpush1.msra.mxu1 %v2765_v50  ;;  %3033 = vmatprep.mubr.f32.mxu1 %v2604_v54  ;;  %v2779_v50 = vld [vmem:[#allocation6 + $0x540] sm:$0xff]  ;;  %v2776_v54 = vld [vmem:[#allocation6 + $0x528] sm:$0xff] }
 0x73e   :  { %2975 = vmatprep.subr.mxu1 %v2764_v53  ;;  %v2777_v53 = vld [vmem:[#allocation6 + $0x530] sm:$0xff] }
 0x73f   :  { %2976 = vmatpush1.msra.mxu1 %v2763_v55  ;;  %v2775_v55 = vld [vmem:[#allocation6 + $0x520] sm:$0xff] }
 0x740   :  { %2977 = vmatprep.subr.mxu1 %v2762_v56  ;;  %v2774_v56 = vld [vmem:[#allocation6 + $0x518] sm:$0xff] }
 0x741   :  { %2978 = vmatpush1.msra.mxu1 %v2761_v20  ;;  %v2773_v20 = vld [vmem:[#allocation6 + $0x510] sm:$0xff] }
 0x742   :  { %2979 = vmatprep.subr.mxu1 %v2760_v25  ;;  %v2772_v25 = vld [vmem:[#allocation6 + $0x508] sm:$0xff] }
 0x743   :  { %2980 = vmatpush1.msra.mxu1 %v2759_v58  ;;  %v2771_v58 = vld [vmem:[#allocation6 + $0x500] sm:$0xff] }
 0x744   :  { %2981 = vmatprep.subr.mxu1 %v2758_v40  ;;  %v2606_v40 = vsel %vm112_vm1, %v2602_v48, %v2600_v51  ;;  %v3104_v48 = vld [vmem:[#allocation8 + $0xf0] sm:$0xff] }
 0x745   :  { %2982 = vmatpush1.msra.mxu1 %v2757_v18  ;;  %v2610_v18 = vmul.f32 %v8957_v22, %v2606_v40  ;;  %v3152_v51 = vld [vmem:[#allocation8 + $0x270] sm:$0xff] }
 0x746   :  { %2983 = vmatprep.subr.mxu1 %v2756_v24  ;;  %v2609_v24 = vmul.f32 %v8957_v22, %v9238_v41  ;;  %v3151_v41 = vld [vmem:[#allocation8 + $0x268] sm:$0xff]  ;;  %v3076_v40 = vld [vmem:[#allocation8 + $0x10] sm:$0xff] }
 0x747   :  { %2984 = vmatpush1.msra.mxu1 %v2755_v43  ;;  %v3169_v43 = vld [vmem:[#allocation8 + $0x2f8] sm:$0xff] }
 0x748   :  { %2985 = vmatprep.subr.mxu1 %v2754_v44  ;;  %v3105_v44 = vld [vmem:[#allocation8 + $0xf8] sm:$0xff] }
 0x749   :  { %2986 = vmatpush1.msra.mxu1 %v2753_v47  ;;  %8082 = vmatprep.subr.mxu0 %v3105_v44  ;;  %v3168_v47 = vld [vmem:[#allocation8 + $0x2f0] sm:$0xff]  ;;  %v3075_v44 = vld [vmem:[#allocation8 + $0x8] sm:$0xff] }
 0x74a   :  { %2987 = vmatprep.subr.mxu1 %v2752_v59  ;;  %8083 = vmatpush3.msra.mxu0 %v3089_v23  ;;  %v3088_v59 = vld [vmem:[#allocation8 + $0x70] sm:$0xff]  ;;  %v3090_v23 = vld [vmem:[#allocation8 + $0x80] sm:$0xff] }
 0x74b   :  { %2988 = vmatpush1.msra.mxu1 %v2751_v61  ;;  %v3167_v61 = vld [vmem:[#allocation8 + $0x2e8] sm:$0xff]  ;;  %8084 = vmatprep.subr.mxu0 %v3104_v48  ;;  %v3074_v48 = vld [vmem:[#allocation8] sm:$0xff] }
 0x74c   :  { %2989 = vmatprep.subr.mxu1 %v2750_v36  ;;  %8085 = vmatpush3.msra.mxu0 %v3088_v59  ;;  %v3087_v36 = vld [vmem:[#allocation8 + $0x68] sm:$0xff] }
 0x74d   :  { %2990 = vmatpush1.msra.mxu1 %v2749_v37  ;;  %v3166_v37 = vld [vmem:[#allocation8 + $0x2e0] sm:$0xff] }
 0x74e   :  { %2991 = vmatprep.subr.mxu1 %v2748_v31  ;;  %v3102_v31 = vld [vmem:[#allocation8 + $0xe0] sm:$0xff] }
 0x74f   :  { %2992 = vmatpush1.msra.mxu1 %v2747_v32  ;;  %v3150_v32 = vld [vmem:[#allocation8 + $0x260] sm:$0xff] }
 0x750   :  { %2993 = vmatprep.subr.mxu1 %v2746_v0  ;;  %v3086_v0 = vld [vmem:[#allocation8 + $0x60] sm:$0xff] }
 0x751   :  { %2994 = vmatpush1.msra.mxu1 %v2745_v2  ;;  %v3165_v2 = vld [vmem:[#allocation8 + $0x2d8] sm:$0xff] }
 0x752   :  { %2995 = vmatprep.subr.mxu1 %v2744_v3  ;;  %v3101_v3 = vld [vmem:[#allocation8 + $0xd8] sm:$0xff] }
 0x753   :  { %2996 = vmatpush1.msra.mxu1 %v2743_v5  ;;  %v3149_v5 = vld [vmem:[#allocation8 + $0x258] sm:$0xff] }
 0x754   :  { %2997 = vmatprep.subr.mxu1 %v2742_v6  ;;  %v3085_v6 = vld [vmem:[#allocation8 + $0x58] sm:$0xff] }
 0x755   :  { %2998 = vmatpush1.msra.mxu1 %v2741_v7  ;;  %v3164_v7 = vld [vmem:[#allocation8 + $0x2d0] sm:$0xff] }
 0x756   :  { %2999 = vmatprep.subr.mxu1 %v2740_v8  ;;  %v3100_v8 = vld [vmem:[#allocation8 + $0xd0] sm:$0xff] }
 0x757   :  { %3000 = vmatpush1.msra.mxu1 %v2739_v9  ;;  %v3148_v9 = vld [vmem:[#allocation8 + $0x250] sm:$0xff] }
 0x758   :  { %3001 = vmatprep.subr.mxu1 %v2802_v10  ;;  %v3084_v10 = vld [vmem:[#allocation8 + $0x50] sm:$0xff] }
 0x759   :  { %3002 = vmatpush2.msra.mxu1 %v2801_v11  ;;  %v3163_v11 = vld [vmem:[#allocation8 + $0x2c8] sm:$0xff] }
 0x75a   :  { %3003 = vmatprep.subr.mxu1 %v2800_v12  ;;  %v3099_v12 = vld [vmem:[#allocation8 + $0xc8] sm:$0xff] }
 0x75b   :  { %3004 = vmatpush2.msra.mxu1 %v2799_v13  ;;  %v3147_v13 = vld [vmem:[#allocation8 + $0x248] sm:$0xff] }
 0x75c   :  { %3005 = vmatprep.subr.mxu1 %v2798_v14  ;;  %v3083_v14 = vld [vmem:[#allocation8 + $0x48] sm:$0xff] }
 0x75d   :  { %3006 = vmatpush2.msra.mxu1 %v2797_v15  ;;  %v3162_v15 = vld [vmem:[#allocation8 + $0x2c0] sm:$0xff] }
 0x75e   :  { %3007 = vmatprep.subr.mxu1 %v2796_v17  ;;  %v3098_v17 = vld [vmem:[#allocation8 + $0xc0] sm:$0xff] }
 0x75f   :  { %3008 = vmatpush2.msra.mxu1 %v2795_v19  ;;  %v3146_v19 = vld [vmem:[#allocation8 + $0x240] sm:$0xff] }
 0x760   :  { %3009 = vmatprep.subr.mxu1 %v2794_v62  ;;  %v3082_v62 = vld [vmem:[#allocation8 + $0x40] sm:$0xff] }
 0x761   :  { %3010 = vmatpush2.msra.mxu1 %v2793_v21  ;;  %v3161_v21 = vld [vmem:[#allocation8 + $0x2b8] sm:$0xff] }
 0x762   :  { %3011 = vmatprep.subr.mxu1 %v2792_v26  ;;  %v3097_v26 = vld [vmem:[#allocation8 + $0xb8] sm:$0xff] }
 0x763   :  { %3012 = vmatpush2.msra.mxu1 %v2791_v30  ;;  %v3145_v30 = vld [vmem:[#allocation8 + $0x238] sm:$0xff] }
 0x764   :  { %3013 = vmatprep.subr.mxu1 %v2790_v35  ;;  %v3081_v35 = vld [vmem:[#allocation8 + $0x38] sm:$0xff] }
 0x765   :  { %3014 = vmatpush2.msra.mxu1 %v2789_v38  ;;  %v3160_v38 = vld [vmem:[#allocation8 + $0x2b0] sm:$0xff] }
 0x766   :  { %3015 = vmatprep.subr.mxu1 %v2788_v33  ;;  %v3096_v33 = vld [vmem:[#allocation8 + $0xb0] sm:$0xff] }
 0x767   :  { %3016 = vmatpush2.msra.mxu1 %v2787_v28  ;;  %v3144_v28 = vld [vmem:[#allocation8 + $0x230] sm:$0xff] }
 0x768   :  { %3017 = vmatprep.subr.mxu1 %v2786_v42  ;;  %v3080_v42 = vld [vmem:[#allocation8 + $0x30] sm:$0xff] }
 0x769   :  { %3018 = vmatpush2.msra.mxu1 %v2785_v27  ;;  %v3159_v27 = vld [vmem:[#allocation8 + $0x2a8] sm:$0xff] }
 0x76a   :  { %3019 = vmatprep.subr.mxu1 %v2784_v29  ;;  %v3095_v29 = vld [vmem:[#allocation8 + $0xa8] sm:$0xff] }
 0x76b   :  { %3020 = vmatpush2.msra.mxu1 %v2783_v45  ;;  %v3143_v45 = vld [vmem:[#allocation8 + $0x228] sm:$0xff] }
 0x76c   :  { %3021 = vmatprep.subr.mxu1 %v2782_v46  ;;  %v3079_v46 = vld [vmem:[#allocation8 + $0x28] sm:$0xff] }
 0x76d   :  { %3022 = vmatpush2.msra.mxu1 %v2781_v34  ;;  %v3158_v34 = vld [vmem:[#allocation8 + $0x2a0] sm:$0xff] }
 0x76e   :  { %3023 = vmatprep.subr.mxu1 %v2780_v49  ;;  %v3094_v49 = vld [vmem:[#allocation8 + $0xa0] sm:$0xff] }
 0x76f   :  { %3024 = vmatpush2.msra.mxu1 %v2779_v50  ;;  %v3142_v50 = vld [vmem:[#allocation8 + $0x220] sm:$0xff] }
 0x770   :  { %3025 = vmatprep.subr.mxu1 %v2778_v52  ;;  %v3078_v52 = vld [vmem:[#allocation8 + $0x20] sm:$0xff] }
 0x771   :  { %3026 = vmatpush2.msra.mxu1 %v2777_v53  ;;  %v3157_v53 = vld [vmem:[#allocation8 + $0x298] sm:$0xff] }
 0x772   :  { %3027 = vmatprep.subr.mxu1 %v2776_v54  ;;  %v3093_v54 = vld [vmem:[#allocation8 + $0x98] sm:$0xff] }
 0x773   :  { %3028 = vmatpush2.msra.mxu1 %v2775_v55  ;;  %v3141_v55 = vld [vmem:[#allocation8 + $0x218] sm:$0xff] }
 0x774   :  { %3029 = vmatprep.subr.mxu1 %v2774_v56  ;;  %v3077_v56 = vld [vmem:[#allocation8 + $0x18] sm:$0xff] }
 0x775   :  { %3030 = vmatpush2.msra.mxu1 %v2773_v20  ;;  %v3156_v20 = vld [vmem:[#allocation8 + $0x290] sm:$0xff] }
 0x776   :  { %3031 = vmatprep.subr.mxu1 %v2772_v25  ;;  %v3092_v25 = vld [vmem:[#allocation8 + $0x90] sm:$0xff] }
 0x777   :  { %3032 = vmatpush2.msra.mxu1 %v2771_v58  ;;  %v3140_v58 = vld [vmem:[#allocation8 + $0x210] sm:$0xff] }
 0x778   :  { %3034 = vmatmul.mubr.f32.vlgmr.msra.gmra.mxu1 %v9234_v39  ;;  %8158 = vmatprep.subr.mxu1 %v3169_v43  ;;  %v3103_v39 = vld [vmem:[#allocation8 + $0xe8] sm:$0xff] }
 0x779   :  { %3039 = vmatprep.mubr.f32.mxu1 %v2610_v18  ;;  %8159 = vmatpush3.msra.mxu1 %v3153_v16  ;;  %v3155_v18 = vld [vmem:[#allocation8 + $0x288] sm:$0xff]  ;;  %v3154_v16 = vld [vmem:[#allocation8 + $0x280] sm:$0xff] }
 0x77a   :  { %8160 = vmatprep.subr.mxu1 %v3168_v47  ;;  %8086 = vmatprep.subr.mxu0 %v3103_v39  ;;  %v3139_v43 = vld [vmem:[#allocation8 + $0x208] sm:$0xff]  ;;  %v3138_v47 = vld [vmem:[#allocation8 + $0x200] sm:$0xff] }
 0x77b   :  { %8161 = vmatpush3.msra.mxu1 %v3152_v51  ;;  %8087 = vmatpush3.msra.mxu0 %v3087_v36  ;;  %v3137_v51 = vld [vmem:[#allocation8 + $0x1f8] sm:$0xff] }
 0x77c   :  { %3040 = vmatmul.mubr.f32.gmra.mxu1 %v2609_v24  ;;  %8162 = vmatprep.subr.mxu1 %v3167_v61  ;;  %v3091_v24 = vld [vmem:[#allocation8 + $0x88] sm:$0xff]  ;;  %v2803_v61 = vld [vmem:[%s9790_s5] sm:$0x3] }
 0x77d   :  { %8163 = vmatpush3.msra.mxu1 %v3151_v41  ;;  %8088 = vmatprep.subr.mxu0 %v3102_v31  ;;  %v2808_v41 = vrot.slane %v2803_v61, %v8980_v60 }
 0x77e   :  { %8164 = vmatprep.subr.mxu1 %v3166_v37  ;;  %8089 = vmatpush3.msra.mxu0 %v3086_v0  ;;  %v2812_v37 = vrot.slane %v2803_v61, %v8986_v63  ;;  %v3117_v61 = vld [vmem:[#allocation8 + $0x158] sm:$0xff] }
 0x77f   :  { %8165 = vmatpush3.msra.mxu1 %v3150_v32  ;;  %8090 = vmatprep.subr.mxu0 %v3101_v3 }
 0x780   :  { %8166 = vmatprep.subr.mxu1 %v3165_v2  ;;  %8091 = vmatpush3.msra.mxu0 %v3085_v6 }
 0x781   :  { %8167 = vmatpush3.msra.mxu1 %v3149_v5  ;;  %8092 = vmatprep.subr.mxu0 %v3100_v8 }
 0x782   :  { %8168 = vmatprep.subr.mxu1 %v3164_v7  ;;  %8093 = vmatpush3.msra.mxu0 %v3084_v10 }
 0x783   :  { %8169 = vmatpush3.msra.mxu1 %v3148_v9  ;;  %8094 = vmatprep.subr.mxu0 %v3099_v12 }
 0x784   :  { %8170 = vmatprep.subr.mxu1 %v3163_v11  ;;  %8095 = vmatpush3.msra.mxu0 %v3083_v14 }
 0x785   :  { %8171 = vmatpush3.msra.mxu1 %v3147_v13  ;;  %8096 = vmatprep.subr.mxu0 %v3098_v17 }
 0x786   :  { %8172 = vmatprep.subr.mxu1 %v3162_v15  ;;  %8097 = vmatpush3.msra.mxu0 %v3082_v62 }
 0x787   :  { %8173 = vmatpush3.msra.mxu1 %v3146_v19  ;;  %8098 = vmatprep.subr.mxu0 %v3097_v26 }
 0x788   :  { %8174 = vmatprep.subr.mxu1 %v3161_v21  ;;  %8099 = vmatpush3.msra.mxu0 %v3081_v35 }
 0x789   :  { %8175 = vmatpush3.msra.mxu1 %v3145_v30  ;;  %8100 = vmatprep.subr.mxu0 %v3096_v33 }
 0x78a   :  { %8176 = vmatprep.subr.mxu1 %v3160_v38  ;;  %8101 = vmatpush3.msra.mxu0 %v3080_v42 }
 0x78b   :  { %8177 = vmatpush3.msra.mxu1 %v3144_v28  ;;  %8102 = vmatprep.subr.mxu0 %v3095_v29 }
 0x78c   :  { %8178 = vmatprep.subr.mxu1 %v3159_v27  ;;  %8103 = vmatpush3.msra.mxu0 %v3079_v46 }
 0x78d   :  { %8179 = vmatpush3.msra.mxu1 %v3143_v45  ;;  %8104 = vmatprep.subr.mxu0 %v3094_v49 }
 0x78e   :  { %8180 = vmatprep.subr.mxu1 %v3158_v34  ;;  %8105 = vmatpush3.msra.mxu0 %v3078_v52 }
 0x78f   :  { %8181 = vmatpush3.msra.mxu1 %v3142_v50  ;;  %8106 = vmatprep.subr.mxu0 %v3093_v54 }
 0x790   :  { %8182 = vmatprep.subr.mxu1 %v3157_v53  ;;  %8107 = vmatpush3.msra.mxu0 %v3077_v56 }
 0x791   :  { %8183 = vmatpush3.msra.mxu1 %v3141_v55  ;;  %8108 = vmatprep.subr.mxu0 %v3092_v25 }
 0x792   :  { %8184 = vmatprep.subr.mxu1 %v3156_v20  ;;  %8109 = vmatpush3.msra.mxu0 %v3076_v40  ;;  %v3121_v40 = vld [vmem:[#allocation8 + $0x178] sm:$0xff] }
 0x793   :  { %8185 = vmatpush3.msra.mxu1 %v3140_v58  ;;  %8110 = vmatprep.subr.mxu0 %v3091_v24 }
 0x794   :  { %8186 = vmatprep.subr.mxu1 %v3155_v18  ;;  %8111 = vmatpush3.msra.mxu0 %v3075_v44  ;;  %v3136_v18 = vld [vmem:[#allocation8 + $0x1f0] sm:$0xff] }
 0x795   :  { %8187 = vmatpush3.msra.mxu1 %v3139_v43  ;;  %8112 = vmatprep.subr.mxu0 %v3090_v23  ;;  %v3120_v43 = vld [vmem:[#allocation8 + $0x170] sm:$0xff]  ;;  %v3119_v23 = vld [vmem:[#allocation8 + $0x168] sm:$0xff] }
 0x796   :  { %8188 = vmatprep.subr.mxu1 %v3154_v16  ;;  %8113 = vmatpush3.msra.mxu0 %v3074_v48  ;;  %v3135_v16 = vld [vmem:[#allocation8 + $0x1e8] sm:$0xff]  ;;  %v3134_v48 = vld [vmem:[#allocation8 + $0x1e0] sm:$0xff] }
 0x797   :  { %8189 = vmatpush3.msra.mxu1 %v3138_v47  ;;  %8120 = vmatprep.subr.mxu0 %v3137_v51  ;;  %v3118_v51 = vld [vmem:[#allocation8 + $0x160] sm:$0xff] }
 0x7ef   :  { %v2958_v36 = vpop.f32.mrf.mxu0 }
 0x7f1   :  { %v2960_v0 = vpop.f32.mrf.mxu0 }
 0x7f3   :  { %v2964_v7 = vpop.f32.mrf.mxu0 }
 0x7f5   :  { %v2966_v15 = vpop.f32.mrf.mxu0 }
 0x7f8   :  { %v2881_v59 = vpop.f32.mrf.mxu1 }
 0x7f9   :  { %v2882_v32 = vadd.f32 %v2881_v59, %v2808_v41  ;;  %v3133_v59 = vld [vmem:[#allocation8 + $0x1d8] sm:$0xff] }
 0x7fa   :  { %v2883_v39 = vpop.f32.mrf.mxu1 }
 0x7fb   :  { %v2884_v2 = vadd.f32 %v2883_v39, %v2812_v37  ;;  %v2959_v6 = vadd.f32 %v2958_v36, %v2882_v32  ;;  %v3132_v39 = vld [vmem:[#allocation8 + $0x1d0] sm:$0xff]  ;;  %v3131_v36 = vld [vmem:[#allocation8 + $0x1c8] sm:$0xff]  ;;  %v3114_v32 = vld [vmem:[#allocation8 + $0x140] sm:$0xff] }
 0x7fc   :  { %v2887_v31 = vpop.f32.mrf.mxu1 }
 0x7fd   :  { %v2888_v5 = vadd.f32 %v2887_v31, %v2808_v41  ;;  %v2961_v11 = vadd.f32 %v2960_v0, %v2884_v2  ;;  %v3116_v41 = vld [vmem:[#allocation8 + $0x150] sm:$0xff]  ;;  %v3130_v31 = vld [vmem:[#allocation8 + $0x1c0] sm:$0xff]  ;;  %v3129_v0 = vld [vmem:[#allocation8 + $0x1b8] sm:$0xff] }
 0x7fe   :  { %v2889_v3 = vpop.f32.mrf.mxu1  ;;  %v3113_v2 = vld [vmem:[#allocation8 + $0x138] sm:$0xff] }
 0x7ff   :  { %v2890_v9 = vadd.f32 %v2889_v3, %v2812_v37  ;;  %v2965_v14 = vadd.f32 %v2964_v7, %v2888_v5  ;;  %v3115_v37 = vld [vmem:[#allocation8 + $0x148] sm:$0xff]  ;;  %v3128_v3 = vld [vmem:[#allocation8 + $0x1b0] sm:$0xff] }
 0x800   :  { %v3112_v5 = vld [vmem:[#allocation8 + $0x130] sm:$0xff]  ;;  %v3111_v7 = vld [vmem:[#allocation8 + $0x128] sm:$0xff] }
 0x801   :  { %v2967_v62 = vadd.f32 %v2966_v15, %v2890_v9  ;;  %v3110_v9 = vld [vmem:[#allocation8 + $0x120] sm:$0xff]  ;;  %v3107_v15 = vld [vmem:[#allocation8 + $0x108] sm:$0xff] }
 0x838   :  { %v3035_v8 = vpop.f32.mrf.mxu1 }
 0x839   :  { %v3036_v10 = vadd.f32 %v3035_v8, %v2959_v6  ;;  %v3127_v6 = vld [vmem:[#allocation8 + $0x1a8] sm:$0xff]  ;;  %v3126_v8 = vld [vmem:[#allocation8 + $0x1a0] sm:$0xff] }
 0x83a   :  { %v3037_v12 = vpop.f32.mrf.mxu1 }
 0x83b   :  { %v3038_v13 = vadd.f32 %v3037_v12, %v2961_v11  ;;  %8701 = vtanh.f32 %v3036_v10  ;;  %v3125_v10 = vld [vmem:[#allocation8 + $0x198] sm:$0xff]  ;;  %v3124_v12 = vld [vmem:[#allocation8 + $0x190] sm:$0xff] }
 0x83c   :  { %v3041_v17 = vpop.f32.mrf.mxu1  ;;  %v3109_v11 = vld [vmem:[#allocation8 + $0x118] sm:$0xff] }
 0x83d   :  { %v3042_v19 = vadd.f32 %v3041_v17, %v2965_v14  ;;  %8703 = vtanh.f32 %v3038_v13  ;;  %v3108_v13 = vld [vmem:[#allocation8 + $0x110] sm:$0xff]  ;;  %v3123_v14 = vld [vmem:[#allocation8 + $0x188] sm:$0xff]  ;;  %v3122_v17 = vld [vmem:[#allocation8 + $0x180] sm:$0xff] }
 0x83e   :  { %v3043_v21 = vpop.f32.mrf.mxu1 }
 0x83f   :  { %8705 = vtanh.f32 %v3042_v19  ;;  %v3044_v26 = vadd.f32 %v3043_v21, %v2967_v62  ;;  %v3106_v19 = vld [vmem:[#allocation8 + $0x100] sm:$0xff]  ;;  %v3454_v62 = vld [vmem:[#allocation5 + $0xf8] sm:$0xff]  ;;  %v3453_v21 = vld [vmem:[#allocation5 + $0xf0] sm:$0xff] }
 0x841   :  { %8707 = vtanh.f32 %v3044_v26  ;;  %v3452_v26 = vld [vmem:[#allocation5 + $0xe8] sm:$0xff] }
 0x848   :  { %v9271_v30 = vpop.eup %8701 }
 0x849   :  { %v3050_v27 = vrot.slane %v9271_v30, 7  ;;  %v3062_v49 = vrot.slane %v9271_v30, 1 }
 0x84a   :  { %v8704_v35 = vpop.eup %8703 }
 0x84b   :  { %v3063_v29 = vrot.slane %v8704_v35, 1  ;;  %v3051_v46 = vrot.slane %v8704_v35, 7 }
 0x84c   :  { %v9273_v38 = vpop.eup %8705 }
 0x84d   :  { %v3052_v33 = vrot.slane %v9273_v38, 7  ;;  %v3064_v42 = vrot.slane %v9273_v38, 1 }
 0x84e   :  { %v9276_v28 = vpop.eup %8707 }
 0x84f   :  { %v3065_v45 = vrot.slane %v9276_v28, 1  ;;  %v3053_v34 = vrot.slane %v9276_v28, 7  ;;  %v3056_v50 = vsel %vm105_vm3, %v3052_v33, %v3050_v27  ;;  %v3066_v55 = vsel %vm112_vm1, %v3062_v49, %v3064_v42 }
 0x850   :  { %v3068_v25 = vsel %vm112_vm1, %v3064_v42, %v3062_v49  ;;  %v3058_v58 = vmul.f32 %v8971_v57, %v3056_v50  ;;  %v3054_v47 = vsel %vm105_vm3, %v3050_v27, %v3052_v33  ;;  %v3450_v33 = vld [vmem:[#allocation5 + $0xd8] sm:$0xff]  ;;  %v3449_v42 = vld [vmem:[#allocation5 + $0xd0] sm:$0xff]  ;;  %v3448_v27 = vld [vmem:[#allocation5 + $0xc8] sm:$0xff] }
 0x851   :  { %v3067_v52 = vsel %vm112_vm1, %v3063_v29, %v3065_v45  ;;  %v3057_v53 = vsel %vm105_vm3, %v3053_v34, %v3051_v46  ;;  %v3069_v54 = vsel %vm112_vm1, %v3065_v45, %v3063_v29  ;;  %v3055_v24 = vsel %vm105_vm3, %v3051_v46, %v3053_v34  ;;  %v3447_v29 = vld [vmem:[#allocation5 + $0xc0] sm:$0xff]  ;;  %v3446_v45 = vld [vmem:[#allocation5 + $0xb8] sm:$0xff]  ;;  %v3444_v46 = vld [vmem:[#allocation5 + $0xa8] sm:$0xff] }
 0x852   :  { %3391 = vmatprep.mubr.f32.mxu1 %v3067_v52  ;;  %v3059_v56 = vmul.f32 %v8971_v57, %v3057_v53  ;;  %v3073_v20 = vmul.f32 %v8957_v22, %v3069_v54  ;;  %v3072_v44 = vmul.f32 %v8957_v22, %v3068_v25  ;;  %v3442_v34 = vld [vmem:[#allocation5 + $0x98] sm:$0xff]  ;;  %v3441_v49 = vld [vmem:[#allocation5 + $0x90] sm:$0xff]  ;;  %v3440_v50 = vld [vmem:[#allocation5 + $0x88] sm:$0xff] }
 0x853   :  { %3392 = vmatmul.mubr.f32.vlgmr.msra.gmra.mxu1 %v3066_v55  ;;  %v3438_v52 = vld [vmem:[#allocation5 + $0x78] sm:$0xff]  ;;  %v3437_v53 = vld [vmem:[#allocation5 + $0x70] sm:$0xff]  ;;  %v3436_v54 = vld [vmem:[#allocation5 + $0x68] sm:$0xff] }
 0x854   :  { %3241 = vmatprep.mubr.f32.mxu0 %v3059_v56  ;;  %3396 = vmatprep.mubr.f32.mxu1 %v3073_v20  ;;  %v3435_v55 = vld [vmem:[#allocation5 + $0x60] sm:$0xff]  ;;  %v3434_v56 = vld [vmem:[#allocation5 + $0x58] sm:$0xff]  ;;  %v3433_v20 = vld [vmem:[#allocation5 + $0x50] sm:$0xff] }
 0x855   :  { %3242 = vmatmul.mubr.f32.vlgmr.msra.gmra.mxu0 %v3058_v58  ;;  %v3432_v25 = vld [vmem:[#allocation5 + $0x48] sm:$0xff]  ;;  %v3431_v58 = vld [vmem:[#allocation5 + $0x40] sm:$0xff] }
 0x856   :  { %8121 = vmatpush3.msra.mxu0 %v3121_v40  ;;  %3246 = vmatprep.mubr.f32.mxu0 %v3055_v24  ;;  %v3430_v40 = vld [vmem:[#allocation5 + $0x38] sm:$0xff] }
 0x857   :  { %8122 = vmatprep.subr.mxu0 %v3136_v18  ;;  %3397 = vmatmul.mubr.f32.gmra.mxu1 %v3072_v44  ;;  %v3429_v18 = vld [vmem:[#allocation5 + $0x30] sm:$0xff]  ;;  %v3518_v24 = vld [vmem:[#allocation5 + $0x2f8] sm:$0xff]  ;;  %v3428_v44 = vld [vmem:[#allocation5 + $0x28] sm:$0xff] }
 0x858   :  { %8123 = vmatpush3.msra.mxu0 %v3120_v43  ;;  %3672 = vmatprep.mubr.f32.mxu1 %v8873_v4  ;;  %v3517_v43 = vld [vmem:[#allocation5 + $0x2f0] sm:$0xff] }
 0x859   :  { %8124 = vmatprep.subr.mxu0 %v3135_v16  ;;  %3247 = vmatmul.mubr.f32.gmra.mxu0 %v3054_v47  ;;  %v3516_v16 = vld [vmem:[#allocation5 + $0x2e8] sm:$0xff]  ;;  %v3515_v47 = vld [vmem:[#allocation5 + $0x2e0] sm:$0xff] }
 0x85a   :  { %8125 = vmatpush3.msra.mxu0 %v3119_v23  ;;  %3316 = vmatprep.mubr.f32.mxu0 %v8704_v35  ;;  %v3451_v35 = vld [vmem:[#allocation5 + $0xe0] sm:$0xff] }
 0x85b   :  { %8126 = vmatprep.subr.mxu0 %v3134_v48  ;;  %3608 = vmatprep.subr.mxu1 %v3518_v24  ;;  %v3427_v23 = vld [vmem:[#allocation5 + $0x20] sm:$0xff]  ;;  %v3514_v48 = vld [vmem:[#allocation5 + $0x2d8] sm:$0xff]  ;;  %v3461_v24 = vld [vmem:[#allocation5 + $0x130] sm:$0xff] }
 0x85c   :  { %8127 = vmatpush3.msra.mxu0 %v3118_v51  ;;  %3609 = vmatpush1.msra.mxu1 %v3517_v43  ;;  %v3426_v51 = vld [vmem:[#allocation5 + $0x18] sm:$0xff]  ;;  %v3491_v43 = vld [vmem:[#allocation5 + $0x220] sm:$0xff] }
 0x85d   :  { %8128 = vmatprep.subr.mxu0 %v3133_v59  ;;  %3610 = vmatprep.subr.mxu1 %v3516_v16  ;;  %v3513_v59 = vld [vmem:[#allocation5 + $0x2d0] sm:$0xff]  ;;  %v3490_v16 = vld [vmem:[#allocation5 + $0x218] sm:$0xff] }
 0x85e   :  { %8129 = vmatpush3.msra.mxu0 %v3117_v61  ;;  %v3425_v61 = vld [vmem:[#allocation5 + $0x10] sm:$0xff]  ;;  %3611 = vmatpush1.msra.mxu1 %v3515_v47 }
 0x85f   :  { %8130 = vmatprep.subr.mxu0 %v3132_v39  ;;  %v3512_v39 = vld [vmem:[#allocation5 + $0x2c8] sm:$0xff]  ;;  %3612 = vmatprep.subr.mxu1 %v3514_v48  ;;  %v3489_v47 = vld [vmem:[#allocation5 + $0x210] sm:$0xff]  ;;  %v3458_v48 = vld [vmem:[#allocation5 + $0x118] sm:$0xff] }
 0x860   :  { %8131 = vmatpush3.msra.mxu0 %v3116_v41  ;;  %v3424_v41 = vld [vmem:[#allocation5 + $0x8] sm:$0xff]  ;;  %3613 = vmatpush1.msra.mxu1 %v3513_v59  ;;  %v3457_v59 = vld [vmem:[#allocation5 + $0x110] sm:$0xff] }
 0x861   :  { %8132 = vmatprep.subr.mxu0 %v3131_v36  ;;  %v3511_v36 = vld [vmem:[#allocation5 + $0x2c0] sm:$0xff]  ;;  %3614 = vmatprep.subr.mxu1 %v3512_v39  ;;  %v3456_v39 = vld [vmem:[#allocation5 + $0x108] sm:$0xff] }
 0x862   :  { %8133 = vmatpush3.msra.mxu0 %v3115_v37  ;;  %v3423_v37 = vld [vmem:[#allocation5] sm:$0xff]  ;;  %3615 = vmatpush1.msra.mxu1 %v3511_v36  ;;  %v3808_v36 = vld [vmem:[#allocation6 + $0x2f8] sm:$0xff] }
 0x863   :  { %8134 = vmatprep.subr.mxu0 %v3130_v31  ;;  %v3510_v31 = vld [vmem:[#allocation5 + $0x2b8] sm:$0xff] }
 0x864   :  { %8135 = vmatpush3.msra.mxu0 %v3114_v32  ;;  %v3486_v32 = vld [vmem:[#allocation5 + $0x1f8] sm:$0xff]  ;;  %3616 = vmatprep.subr.mxu1 %v3510_v31 }
 0x865   :  { %8136 = vmatprep.subr.mxu0 %v3129_v0  ;;  %v3509_v0 = vld [vmem:[#allocation5 + $0x2b0] sm:$0xff] }
 0x866   :  { %8137 = vmatpush3.msra.mxu0 %v3113_v2  ;;  %v3485_v2 = vld [vmem:[#allocation5 + $0x1f0] sm:$0xff]  ;;  %3617 = vmatpush1.msra.mxu1 %v3509_v0 }
 0x867   :  { %8138 = vmatprep.subr.mxu0 %v3128_v3  ;;  %v3508_v3 = vld [vmem:[#allocation5 + $0x2a8] sm:$0xff] }
 0x868   :  { %8139 = vmatpush3.msra.mxu0 %v3112_v5  ;;  %v3484_v5 = vld [vmem:[#allocation5 + $0x1e8] sm:$0xff]  ;;  %3618 = vmatprep.subr.mxu1 %v3508_v3 }
 0x869   :  { %8140 = vmatprep.subr.mxu0 %v3127_v6  ;;  %v3507_v6 = vld [vmem:[#allocation5 + $0x2a0] sm:$0xff] }
 0x86a   :  { %8141 = vmatpush3.msra.mxu0 %v3111_v7  ;;  %v3483_v7 = vld [vmem:[#allocation5 + $0x1e0] sm:$0xff]  ;;  %3619 = vmatpush1.msra.mxu1 %v3507_v6 }
 0x86b   :  { %8142 = vmatprep.subr.mxu0 %v3126_v8  ;;  %v3482_v8 = vld [vmem:[#allocation5 + $0x1d8] sm:$0xff] }
 0x86c   :  { %8143 = vmatpush3.msra.mxu0 %v3110_v9  ;;  %v3481_v9 = vld [vmem:[#allocation5 + $0x1d0] sm:$0xff] }
 0x86d   :  { %8144 = vmatprep.subr.mxu0 %v3125_v10  ;;  %v3480_v10 = vld [vmem:[#allocation5 + $0x1c8] sm:$0xff] }
 0x86e   :  { %8145 = vmatpush3.msra.mxu0 %v3109_v11  ;;  %v3479_v11 = vld [vmem:[#allocation5 + $0x1c0] sm:$0xff] }
 0x86f   :  { %8146 = vmatprep.subr.mxu0 %v3124_v12  ;;  %v3478_v12 = vld [vmem:[#allocation5 + $0x1b8] sm:$0xff] }
 0x870   :  { %8147 = vmatpush3.msra.mxu0 %v3108_v13  ;;  %v3477_v13 = vld [vmem:[#allocation5 + $0x1b0] sm:$0xff] }
 0x871   :  { %8148 = vmatprep.subr.mxu0 %v3123_v14  ;;  %v3476_v14 = vld [vmem:[#allocation5 + $0x1a8] sm:$0xff] }
 0x872   :  { %8149 = vmatpush3.msra.mxu0 %v3107_v15  ;;  %v3506_v15 = vld [vmem:[#allocation5 + $0x298] sm:$0xff] }
 0x873   :  { %8150 = vmatprep.subr.mxu0 %v3122_v17  ;;  %v3475_v17 = vld [vmem:[#allocation5 + $0x1a0] sm:$0xff]  ;;  %3620 = vmatprep.subr.mxu1 %v3506_v15 }
 0x874   :  { %8151 = vmatpush3.msra.mxu0 %v3106_v19  ;;  %v3505_v19 = vld [vmem:[#allocation5 + $0x290] sm:$0xff] }
 0x875   :  { %3317 = vmatmul.mubr.f32.vlgmr.msra.gmra.mxu0 %v9271_v30  ;;  %3531 = vmatprep.subr.mxu0 %v3454_v62  ;;  %v3445_v30 = vld [vmem:[#allocation5 + $0xb0] sm:$0xff]  ;;  %v3474_v62 = vld [vmem:[#allocation5 + $0x198] sm:$0xff] }
 0x876   :  { %3321 = vmatprep.mubr.f32.mxu0 %v9276_v28  ;;  %3532 = vmatpush1.msra.mxu0 %v3453_v21  ;;  %v3443_v28 = vld [vmem:[#allocation5 + $0xa0] sm:$0xff]  ;;  %v3504_v21 = vld [vmem:[#allocation5 + $0x288] sm:$0xff] }
 0x877   :  { %3533 = vmatprep.subr.mxu0 %v3452_v26  ;;  %3621 = vmatpush1.msra.mxu1 %v3505_v19  ;;  %v3473_v26 = vld [vmem:[#allocation5 + $0x190] sm:$0xff] }
 0x878   :  { %3534 = vmatpush1.msra.mxu0 %v3451_v35  ;;  %3622 = vmatprep.subr.mxu1 %v3504_v21  ;;  %v3503_v35 = vld [vmem:[#allocation5 + $0x280] sm:$0xff] }
 0x879   :  { %3322 = vmatmul.mubr.f32.gmra.mxu0 %v9273_v38  ;;  %3535 = vmatprep.subr.mxu0 %v3450_v33  ;;  %v3439_v38 = vld [vmem:[#allocation5 + $0x80] sm:$0xff]  ;;  %v3472_v33 = vld [vmem:[#allocation5 + $0x188] sm:$0xff] }
 0x87a   :  { %3536 = vmatpush1.msra.mxu0 %v3449_v42  ;;  %3623 = vmatpush1.msra.mxu1 %v3503_v35  ;;  %v3502_v42 = vld [vmem:[#allocation5 + $0x278] sm:$0xff] }
 0x87b   :  { %3537 = vmatprep.subr.mxu0 %v3448_v27  ;;  %3624 = vmatprep.subr.mxu1 %v3502_v42  ;;  %v3471_v27 = vld [vmem:[#allocation5 + $0x180] sm:$0xff] }
 0x87c   :  { %3538 = vmatpush1.msra.mxu0 %v3447_v29  ;;  %v3501_v29 = vld [vmem:[#allocation5 + $0x270] sm:$0xff] }
 0x87d   :  { %3539 = vmatprep.subr.mxu0 %v3446_v45  ;;  %3625 = vmatpush1.msra.mxu1 %v3501_v29  ;;  %v3470_v45 = vld [vmem:[#allocation5 + $0x178] sm:$0xff] }
 0x87e   :  { %3540 = vmatpush1.msra.mxu0 %v3445_v30  ;;  %v3500_v30 = vld [vmem:[#allocation5 + $0x268] sm:$0xff] }
 0x87f   :  { %3541 = vmatprep.subr.mxu0 %v3444_v46  ;;  %3626 = vmatprep.subr.mxu1 %v3500_v30  ;;  %v3469_v46 = vld [vmem:[#allocation5 + $0x170] sm:$0xff] }
 0x880   :  { %3542 = vmatpush1.msra.mxu0 %v3443_v28  ;;  %v3499_v28 = vld [vmem:[#allocation5 + $0x260] sm:$0xff] }
 0x881   :  { %3543 = vmatprep.subr.mxu0 %v3442_v34  ;;  %3627 = vmatpush1.msra.mxu1 %v3499_v28  ;;  %v3468_v34 = vld [vmem:[#allocation5 + $0x168] sm:$0xff] }
 0x882   :  { %3544 = vmatpush1.msra.mxu0 %v3441_v49  ;;  %v3498_v49 = vld [vmem:[#allocation5 + $0x258] sm:$0xff] }
 0x883   :  { %3545 = vmatprep.subr.mxu0 %v3440_v50  ;;  %3628 = vmatprep.subr.mxu1 %v3498_v49  ;;  %v3467_v50 = vld [vmem:[#allocation5 + $0x160] sm:$0xff] }
 0x884   :  { %3546 = vmatpush1.msra.mxu0 %v3439_v38  ;;  %v3497_v38 = vld [vmem:[#allocation5 + $0x250] sm:$0xff] }
 0x885   :  { %3547 = vmatprep.subr.mxu0 %v3438_v52  ;;  %3629 = vmatpush1.msra.mxu1 %v3497_v38  ;;  %v3466_v52 = vld [vmem:[#allocation5 + $0x158] sm:$0xff] }
 0x886   :  { %3548 = vmatpush1.msra.mxu0 %v3437_v53  ;;  %v3496_v53 = vld [vmem:[#allocation5 + $0x248] sm:$0xff] }
 0x887   :  { %3549 = vmatprep.subr.mxu0 %v3436_v54  ;;  %3630 = vmatprep.subr.mxu1 %v3496_v53  ;;  %v3465_v54 = vld [vmem:[#allocation5 + $0x150] sm:$0xff] }
 0x888   :  { %3550 = vmatpush1.msra.mxu0 %v3435_v55  ;;  %v3495_v55 = vld [vmem:[#allocation5 + $0x240] sm:$0xff] }
 0x889   :  { %3551 = vmatprep.subr.mxu0 %v3434_v56  ;;  %3631 = vmatpush1.msra.mxu1 %v3495_v55  ;;  %v3464_v56 = vld [vmem:[#allocation5 + $0x148] sm:$0xff] }
 0x88a   :  { %3552 = vmatpush1.msra.mxu0 %v3433_v20  ;;  %v3494_v20 = vld [vmem:[#allocation5 + $0x238] sm:$0xff] }
 0x88b   :  { %3553 = vmatprep.subr.mxu0 %v3432_v25  ;;  %3632 = vmatprep.subr.mxu1 %v3494_v20  ;;  %v3463_v25 = vld [vmem:[#allocation5 + $0x140] sm:$0xff] }
 0x88c   :  { %3554 = vmatpush1.msra.mxu0 %v3431_v58  ;;  %v3493_v58 = vld [vmem:[#allocation5 + $0x230] sm:$0xff] }
 0x88d   :  { %3555 = vmatprep.subr.mxu0 %v3430_v40  ;;  %3633 = vmatpush1.msra.mxu1 %v3493_v58  ;;  %v3462_v40 = vld [vmem:[#allocation5 + $0x138] sm:$0xff] }
 0x88e   :  { %3556 = vmatpush1.msra.mxu0 %v3429_v18  ;;  %v3492_v18 = vld [vmem:[#allocation5 + $0x228] sm:$0xff] }
 0x88f   :  { %3557 = vmatprep.subr.mxu0 %v3428_v44  ;;  %3634 = vmatprep.subr.mxu1 %v3492_v18  ;;  %v3460_v44 = vld [vmem:[#allocation5 + $0x128] sm:$0xff] }
 0x890   :  { %3558 = vmatpush1.msra.mxu0 %v3427_v23  ;;  %3635 = vmatpush1.msra.mxu1 %v3491_v43  ;;  %v3459_v23 = vld [vmem:[#allocation5 + $0x120] sm:$0xff]  ;;  %v3806_v18 = vld [vmem:[#allocation6 + $0x2e8] sm:$0xff] }
 0x891   :  { %3559 = vmatprep.subr.mxu0 %v3426_v51  ;;  %3636 = vmatprep.subr.mxu1 %v3490_v16  ;;  %v3488_v51 = vld [vmem:[#allocation5 + $0x208] sm:$0xff]  ;;  %v3805_v43 = vld [vmem:[#allocation6 + $0x2e0] sm:$0xff]  ;;  %v3804_v16 = vld [vmem:[#allocation6 + $0x2d8] sm:$0xff] }
 0x892   :  { %3560 = vmatpush1.msra.mxu0 %v3425_v61  ;;  %3637 = vmatpush1.msra.mxu1 %v3489_v47  ;;  %v3487_v61 = vld [vmem:[#allocation5 + $0x200] sm:$0xff]  ;;  %v3740_v47 = vld [vmem:[#allocation6 + $0xd8] sm:$0xff] }
 0x893   :  { %3561 = vmatprep.subr.mxu0 %v3424_v41  ;;  %3638 = vmatprep.subr.mxu1 %v3488_v51  ;;  %v3455_v41 = vld [vmem:[#allocation5 + $0x100] sm:$0xff]  ;;  %v3802_v51 = vld [vmem:[#allocation6 + $0x2c8] sm:$0xff] }
 0x894   :  { %3562 = vmatpush1.msra.mxu0 %v3423_v37  ;;  %3639 = vmatpush1.msra.mxu1 %v3487_v61  ;;  %v3744_v37 = vld [vmem:[#allocation6 + $0xf8] sm:$0xff]  ;;  %v3801_v61 = vld [vmem:[#allocation6 + $0x2c0] sm:$0xff] }
 0x895   :  { %3563 = vmatprep.subr.mxu0 %v3486_v32  ;;  %3917 = vmatprep.subr.mxu1 %v3744_v37  ;;  %v3799_v37 = vld [vmem:[#allocation6 + $0x2b0] sm:$0xff] }
 0x896   :  { %3564 = vmatpush2.msra.mxu0 %v3485_v2 }
 0x897   :  { %3565 = vmatprep.subr.mxu0 %v3484_v5 }
 0x898   :  { %3566 = vmatpush2.msra.mxu0 %v3483_v7  ;;  %v7835_v7 = vld [vmem:[%s9792_s7] ss:$0 sm:$0xff] }
 0x899   :  { %3567 = vmatprep.subr.mxu0 %v3482_v8 }
 0x89a   :  { %3568 = vmatpush2.msra.mxu0 %v3481_v9 }
 0x89b   :  { %3569 = vmatprep.subr.mxu0 %v3480_v10 }
 0x89c   :  { %3570 = vmatpush2.msra.mxu0 %v3479_v11 }
 0x89d   :  { %3571 = vmatprep.subr.mxu0 %v3478_v12 }
 0x89e   :  { %3572 = vmatpush2.msra.mxu0 %v3477_v13 }
 0x89f   :  { %3573 = vmatprep.subr.mxu0 %v3476_v14 }
 0x8a0   :  { %3574 = vmatpush2.msra.mxu0 %v3475_v17 }
 0x8a1   :  { %3575 = vmatprep.subr.mxu0 %v3474_v62  ;;  %v3402_v62 = vstv %s7834_s16 }
 0x8a2   :  { %3576 = vmatpush2.msra.mxu0 %v3473_v26 }
 0x8a3   :  { %3577 = vmatprep.subr.mxu0 %v3472_v33 }
 0x8a4   :  { %3578 = vmatpush2.msra.mxu0 %v3471_v27 }
 0x8a5   :  { %3579 = vmatprep.subr.mxu0 %v3470_v45  ;;  %v8777_v45 = vld [vmem:[%s9793_s8 + $0x20] sm:$0xff] }
 0x8a6   :  { %3580 = vmatpush2.msra.mxu0 %v3469_v46 }
 0x8a7   :  { %3581 = vmatprep.subr.mxu0 %v3468_v34  ;;  %v8778_v34 = vld [vmem:[%s9793_s8 + $0x28] sm:$0xff] }
 0x8a8   :  { %3582 = vmatpush2.msra.mxu0 %v3467_v50 }
 0x8a9   :  { %3583 = vmatprep.subr.mxu0 %v3466_v52 }
 0x8aa   :  { %3584 = vmatpush2.msra.mxu0 %v3465_v54  ;;  %v3743_v54 = vld [vmem:[#allocation6 + $0xf0] sm:$0xff] }
 0x8ab   :  { %3585 = vmatprep.subr.mxu0 %v3464_v56 }
 0x8ac   :  { %3586 = vmatpush2.msra.mxu0 %v3463_v25  ;;  %v3742_v25 = vld [vmem:[#allocation6 + $0xe8] sm:$0xff] }
 0x8ad   :  { %3587 = vmatprep.subr.mxu0 %v3462_v40  ;;  %v3807_v40 = vld [vmem:[#allocation6 + $0x2f0] sm:$0xff] }
 0x8ae   :  { %3588 = vmatpush2.msra.mxu0 %v3461_v24 }
 0x8af   :  { %3589 = vmatprep.subr.mxu0 %v3460_v44  ;;  %v3741_v44 = vld [vmem:[#allocation6 + $0xe0] sm:$0xff] }
 0x8b0   :  { %3590 = vmatpush2.msra.mxu0 %v3459_v23  ;;  %v3803_v23 = vld [vmem:[#allocation6 + $0x2d0] sm:$0xff] }
 0x8b1   :  { %3591 = vmatprep.subr.mxu0 %v3458_v48 }
 0x8b2   :  { %3592 = vmatpush2.msra.mxu0 %v3457_v59  ;;  %v3739_v59 = vld [vmem:[#allocation6 + $0xd0] sm:$0xff] }
 0x8b3   :  { %3593 = vmatprep.subr.mxu0 %v3456_v39  ;;  %v3738_v39 = vld [vmem:[#allocation6 + $0xc8] sm:$0xff] }
 0x8b4   :  { %3594 = vmatpush2.msra.mxu0 %v3455_v41  ;;  %v3800_v41 = vld [vmem:[#allocation6 + $0x2b8] sm:$0xff] }
 0x8b5   :  { %3994 = vmatprep.subr.mxu0 %v3808_v36  ;;  %v3737_v36 = vld [vmem:[#allocation6 + $0xc0] sm:$0xff] }
 0x913   :  { %v8190_v0 = vpop.f32.mrf.mxu1 }
 0x915   :  { %v8114_v31 = vpop.f32.mrf.mxu0  ;;  %v8191_v3 = vpop.f32.mrf.mxu1 }
 0x916   :  { %v8192_v15 = vadd.f32 %v8191_v3, %v8190_v0  ;;  %v3735_v0 = vld [vmem:[#allocation6 + $0xb0] sm:$0xff]  ;;  %v3734_v3 = vld [vmem:[#allocation6 + $0xa8] sm:$0xff] }
 0x917   :  { %v8115_v32 = vpop.f32.mrf.mxu0  ;;  %v8193_v9 = vpop.f32.mrf.mxu1 }
 0x918   :  { %v8116_v6 = vadd.f32 %v8115_v32, %v8114_v31  ;;  %v3736_v31 = vld [vmem:[#allocation6 + $0xb8] sm:$0xff]  ;;  %v3798_v32 = vld [vmem:[#allocation6 + $0x2a8] sm:$0xff] }
 0x919   :  { %v8117_v2 = vpop.f32.mrf.mxu0  ;;  %v8194_v19 = vpop.f32.mrf.mxu1 }
 0x91a   :  { %v3244_v11 = vadd.f32 %v8116_v6, %v7835_v7  ;;  %v8195_v42 = vadd.f32 %v8194_v19, %v8193_v9  ;;  %v3733_v6 = vld [vmem:[#allocation6 + $0xa0] sm:$0xff]  ;;  %v3794_v9 = vld [vmem:[#allocation6 + $0x288] sm:$0xff] }
 0x91b   :  { %v8118_v5 = vpop.f32.mrf.mxu0  ;;  %v3790_v19 = vld [vmem:[#allocation6 + $0x268] sm:$0xff] }
 0x91c   :  { %v8119_v12 = vadd.f32 %v8118_v5, %v8117_v2  ;;  %v3797_v2 = vld [vmem:[#allocation6 + $0x2a0] sm:$0xff]  ;;  %v3796_v5 = vld [vmem:[#allocation6 + $0x298] sm:$0xff] }
 0x91e   :  { %v3249_v26 = vadd.f32 %v8119_v12, %v7835_v7  ;;  %v3795_v7 = vld [vmem:[#allocation6 + $0x290] sm:$0xff]  ;;  %v3730_v12 = vld [vmem:[#allocation6 + $0x88] sm:$0xff] }
 0x935   :  { %v8152_v8 = vpop.f32.mrf.mxu0 }
 0x937   :  { %v8153_v10 = vpop.f32.mrf.mxu0 }
 0x938   :  { %v8154_v13 = vadd.f32 %v8153_v10, %v8152_v8  ;;  %v3732_v8 = vld [vmem:[#allocation6 + $0x98] sm:$0xff]  ;;  %v3731_v10 = vld [vmem:[#allocation6 + $0x90] sm:$0xff] }
 0x939   :  { %v8155_v14 = vpop.f32.mrf.mxu0 }
 0x93a   :  { %v3319_v17 = vadd.f32 %v8154_v13, %v3244_v11  ;;  %v3793_v11 = vld [vmem:[#allocation6 + $0x280] sm:$0xff]  ;;  %v3792_v13 = vld [vmem:[#allocation6 + $0x278] sm:$0xff] }
 0x93b   :  { %v8156_v21 = vpop.f32.mrf.mxu0 }
 0x93c   :  { %v3394_v35 = vadd.f32 %v8192_v15, %v3319_v17  ;;  %v8157_v33 = vadd.f32 %v8156_v21, %v8155_v14  ;;  %v3729_v14 = vld [vmem:[#allocation6 + $0x80] sm:$0xff]  ;;  %v3791_v15 = vld [vmem:[#allocation6 + $0x270] sm:$0xff]  ;;  %v3728_v17 = vld [vmem:[#allocation6 + $0x78] sm:$0xff] }
 0x93d   :  { %v3789_v21 = vld [vmem:[#allocation6 + $0x260] sm:$0xff] }
 0x93e   :  { %v3403_v27 = vmul.f32 %v3402_v62, %v3394_v35  ;;  %v3324_v29 = vadd.f32 %v8157_v33, %v3249_v26  ;;  %v3726_v26 = vld [vmem:[#allocation6 + $0x68] sm:$0xff]  ;;  %v3788_v35 = vld [vmem:[#allocation6 + $0x258] sm:$0xff]  ;;  %v3725_v33 = vld [vmem:[#allocation6 + $0x60] sm:$0xff] }
 0x940   :  { %v3405_v30 = vadd.f32 %v8777_v45, %v3403_v27  ;;  %v3399_v46 = vadd.f32 %v8195_v42, %v3324_v29  ;;  %v3787_v42 = vld [vmem:[#allocation6 + $0x250] sm:$0xff]  ;;  %v3724_v27 = vld [vmem:[#allocation6 + $0x58] sm:$0xff]  ;;  %v3786_v29 = vld [vmem:[#allocation6 + $0x248] sm:$0xff] }
 0x941   :  { %v3723_v45 = vld [vmem:[#allocation6 + $0x50] sm:$0xff] }
 0x942   :  { %7836 = vst [vmem:[%s9793_s8 + $0x30] sm:$0xff] %v3405_v30  ;;  %v3404_v28 = vmul.f32 %v3402_v62, %v3399_v46  ;;  %3595 = vmatprep.mubr.f32.mxu0 %v3405_v30  ;;  %v3417_v50 = vrot.slane %v3405_v30, 1  ;;  %v3411_v52 = vrot.slane %v3405_v30, 7  ;;  %v3727_v62 = vld [vmem:[#allocation6 + $0x70] sm:$0xff]  ;;  %v3785_v30 = vld [vmem:[#allocation6 + $0x240] sm:$0xff]  ;;  %v3722_v46 = vld [vmem:[#allocation6 + $0x48] sm:$0xff] }
 0x944   :  { %v3406_v49 = vadd.f32 %v8778_v34, %v3404_v28  ;;  %v3784_v28 = vld [vmem:[#allocation6 + $0x238] sm:$0xff]  ;;  %v3721_v34 = vld [vmem:[#allocation6 + $0x40] sm:$0xff] }
 0x946   :  { %7837 = vst [vmem:[%s9793_s8 + $0x38] sm:$0xff] %v3406_v49  ;;  %v3418_v38 = vrot.slane %v3406_v49, 1  ;;  %v3412_v53 = vrot.slane %v3406_v49, 7 }
 0x948   :  { %v3419_v55 = vsel %vm112_vm1, %v3417_v50, %v3418_v38  ;;  %v3414_v56 = vsel %vm105_vm3, %v3412_v53, %v3411_v52  ;;  %v3420_v20 = vsel %vm112_vm1, %v3418_v38, %v3417_v50  ;;  %v3413_v48 = vsel %vm105_vm3, %v3411_v52, %v3412_v53  ;;  %v3720_v50 = vld [vmem:[#allocation6 + $0x38] sm:$0xff]  ;;  %v3782_v38 = vld [vmem:[#allocation6 + $0x228] sm:$0xff]  ;;  %v3719_v52 = vld [vmem:[#allocation6 + $0x30] sm:$0xff] }
 0x949   :  { %3673 = vmatmul.mubr.f32.vlgmr.msra.gmra.mxu1 %v3419_v55  ;;  %v3415_v58 = vmul.f32 %v8971_v57, %v3414_v56  ;;  %v3422_v24 = vmul.f32 %v8957_v22, %v3420_v20  ;;  %v3781_v53 = vld [vmem:[#allocation6 + $0x220] sm:$0xff]  ;;  %v3780_v55 = vld [vmem:[#allocation6 + $0x218] sm:$0xff]  ;;  %v3779_v20 = vld [vmem:[#allocation6 + $0x210] sm:$0xff] }
 0x94a   :  { %3678 = vmatprep.mubr.f32.mxu1 %v8873_v4  ;;  %3918 = vmatpush1.msra.mxu1 %v3743_v54  ;;  %v3718_v54 = vld [vmem:[#allocation6 + $0x28] sm:$0xff]  ;;  %v3717_v56 = vld [vmem:[#allocation6 + $0x20] sm:$0xff] }
 0x94b   :  { %3596 = vmatmul.mubr.f32.vlgmr.msra.gmra.mxu0 %v3415_v58  ;;  %3919 = vmatprep.subr.mxu1 %v3742_v25  ;;  %v3716_v25 = vld [vmem:[#allocation6 + $0x18] sm:$0xff]  ;;  %v3778_v58 = vld [vmem:[#allocation6 + $0x208] sm:$0xff] }
 0x94c   :  { %3601 = vmatprep.mubr.f32.mxu0 %v3406_v49  ;;  %3995 = vmatpush1.msra.mxu0 %v3807_v40  ;;  %v3783_v49 = vld [vmem:[#allocation6 + $0x230] sm:$0xff] }
 0x94d   :  { %3679 = vmatmul.mubr.f32.gmra.mxu1 %v3422_v24  ;;  %3996 = vmatprep.subr.mxu0 %v3806_v18  ;;  %v3715_v40 = vld [vmem:[#allocation6 + $0x10] sm:$0xff]  ;;  %v3777_v18 = vld [vmem:[#allocation6 + $0x200] sm:$0xff]  ;;  %v3714_v24 = vld [vmem:[#allocation6 + $0x8] sm:$0xff] }
 0x94e   :  { %3997 = vmatpush1.msra.mxu0 %v3805_v43  ;;  %3920 = vmatpush1.msra.mxu1 %v3741_v44  ;;  %v3840_v43 = vld [vmem:[#allocation6 + $0x3f8] sm:$0xff]  ;;  %v3713_v44 = vld [vmem:[#allocation6] sm:$0xff] }
 0x94f   :  { %3602 = vmatmul.mubr.f32.gmra.mxu0 %v3413_v48  ;;  %3998 = vmatprep.subr.mxu0 %v3804_v16  ;;  %v3839_v16 = vld [vmem:[#allocation6 + $0x3f0] sm:$0xff]  ;;  %v3836_v48 = vld [vmem:[#allocation6 + $0x3d8] sm:$0xff] }
 0x950   :  { %3999 = vmatpush1.msra.mxu0 %v3803_v23  ;;  %3921 = vmatprep.subr.mxu1 %v3740_v47  ;;  %v3838_v23 = vld [vmem:[#allocation6 + $0x3e8] sm:$0xff]  ;;  %v3837_v47 = vld [vmem:[#allocation6 + $0x3e0] sm:$0xff] }
 0x951   :  { %4000 = vmatprep.subr.mxu0 %v3802_v51  ;;  %3922 = vmatpush1.msra.mxu1 %v3739_v59  ;;  %v3835_v51 = vld [vmem:[#allocation6 + $0x3d0] sm:$0xff]  ;;  %v3834_v59 = vld [vmem:[#allocation6 + $0x3c8] sm:$0xff] }
 0x952   :  { %4001 = vmatpush1.msra.mxu0 %v3801_v61  ;;  %3923 = vmatprep.subr.mxu1 %v3738_v39  ;;  %v3833_v61 = vld [vmem:[#allocation6 + $0x3c0] sm:$0xff]  ;;  %v3776_v39 = vld [vmem:[#allocation6 + $0x1f8] sm:$0xff] }
 0x953   :  { %4002 = vmatprep.subr.mxu0 %v3800_v41  ;;  %3924 = vmatpush1.msra.mxu1 %v3737_v36  ;;  %v3832_v41 = vld [vmem:[#allocation6 + $0x3b8] sm:$0xff]  ;;  %v3775_v36 = vld [vmem:[#allocation6 + $0x1f0] sm:$0xff] }
 0x954   :  { %4003 = vmatpush1.msra.mxu0 %v3799_v37  ;;  %3925 = vmatprep.subr.mxu1 %v3736_v31  ;;  %v3831_v37 = vld [vmem:[#allocation6 + $0x3b0] sm:$0xff]  ;;  %v3774_v31 = vld [vmem:[#allocation6 + $0x1e8] sm:$0xff] }
 0x955   :  { %4004 = vmatprep.subr.mxu0 %v3798_v32  ;;  %3926 = vmatpush1.msra.mxu1 %v3735_v0  ;;  %v3830_v32 = vld [vmem:[#allocation6 + $0x3a8] sm:$0xff]  ;;  %v3773_v0 = vld [vmem:[#allocation6 + $0x1e0] sm:$0xff] }
 0x956   :  { %4005 = vmatpush1.msra.mxu0 %v3797_v2  ;;  %3927 = vmatprep.subr.mxu1 %v3734_v3  ;;  %v3829_v2 = vld [vmem:[#allocation6 + $0x3a0] sm:$0xff]  ;;  %v3772_v3 = vld [vmem:[#allocation6 + $0x1d8] sm:$0xff] }
 0x957   :  { %4006 = vmatprep.subr.mxu0 %v3796_v5  ;;  %3928 = vmatpush1.msra.mxu1 %v3733_v6  ;;  %v3828_v5 = vld [vmem:[#allocation6 + $0x398] sm:$0xff]  ;;  %v3771_v6 = vld [vmem:[#allocation6 + $0x1d0] sm:$0xff] }
 0x958   :  { %4007 = vmatpush1.msra.mxu0 %v3795_v7  ;;  %3929 = vmatprep.subr.mxu1 %v3732_v8  ;;  %v3827_v7 = vld [vmem:[#allocation6 + $0x390] sm:$0xff]  ;;  %v3770_v8 = vld [vmem:[#allocation6 + $0x1c8] sm:$0xff] }
 0x959   :  { %4008 = vmatprep.subr.mxu0 %v3794_v9  ;;  %3930 = vmatpush1.msra.mxu1 %v3731_v10  ;;  %v3826_v9 = vld [vmem:[#allocation6 + $0x388] sm:$0xff]  ;;  %v3769_v10 = vld [vmem:[#allocation6 + $0x1c0] sm:$0xff] }
 0x95a   :  { %4009 = vmatpush1.msra.mxu0 %v3793_v11  ;;  %3931 = vmatprep.subr.mxu1 %v3730_v12  ;;  %v3825_v11 = vld [vmem:[#allocation6 + $0x380] sm:$0xff]  ;;  %v3768_v12 = vld [vmem:[#allocation6 + $0x1b8] sm:$0xff] }
 0x95b   :  { %4010 = vmatprep.subr.mxu0 %v3792_v13  ;;  %3932 = vmatpush1.msra.mxu1 %v3729_v14  ;;  %v3824_v13 = vld [vmem:[#allocation6 + $0x378] sm:$0xff]  ;;  %v3767_v14 = vld [vmem:[#allocation6 + $0x1b0] sm:$0xff] }
 0x95c   :  { %4011 = vmatpush1.msra.mxu0 %v3791_v15  ;;  %3933 = vmatprep.subr.mxu1 %v3728_v17  ;;  %v3823_v15 = vld [vmem:[#allocation6 + $0x370] sm:$0xff]  ;;  %v3766_v17 = vld [vmem:[#allocation6 + $0x1a8] sm:$0xff] }
 0x95d   :  { %4012 = vmatprep.subr.mxu0 %v3790_v19  ;;  %3934 = vmatpush1.msra.mxu1 %v3727_v62  ;;  %v3822_v19 = vld [vmem:[#allocation6 + $0x368] sm:$0xff]  ;;  %v3765_v62 = vld [vmem:[#allocation6 + $0x1a0] sm:$0xff] }
 0x95e   :  { %4013 = vmatpush1.msra.mxu0 %v3789_v21  ;;  %3935 = vmatprep.subr.mxu1 %v3726_v26  ;;  %v3821_v21 = vld [vmem:[#allocation6 + $0x360] sm:$0xff]  ;;  %v3764_v26 = vld [vmem:[#allocation6 + $0x198] sm:$0xff] }
 0x95f   :  { %4014 = vmatprep.subr.mxu0 %v3788_v35  ;;  %3936 = vmatpush1.msra.mxu1 %v3725_v33  ;;  %v3820_v35 = vld [vmem:[#allocation6 + $0x358] sm:$0xff]  ;;  %v3763_v33 = vld [vmem:[#allocation6 + $0x190] sm:$0xff] }
 0x960   :  { %4015 = vmatpush1.msra.mxu0 %v3787_v42  ;;  %3937 = vmatprep.subr.mxu1 %v3724_v27  ;;  %v3819_v42 = vld [vmem:[#allocation6 + $0x350] sm:$0xff]  ;;  %v3762_v27 = vld [vmem:[#allocation6 + $0x188] sm:$0xff] }
 0x961   :  { %4016 = vmatprep.subr.mxu0 %v3786_v29  ;;  %3938 = vmatpush1.msra.mxu1 %v3723_v45  ;;  %v3818_v29 = vld [vmem:[#allocation6 + $0x348] sm:$0xff]  ;;  %v3761_v45 = vld [vmem:[#allocation6 + $0x180] sm:$0xff] }
 0x962   :  { %4017 = vmatpush1.msra.mxu0 %v3785_v30  ;;  %3939 = vmatprep.subr.mxu1 %v3722_v46  ;;  %v3817_v30 = vld [vmem:[#allocation6 + $0x340] sm:$0xff]  ;;  %v3760_v46 = vld [vmem:[#allocation6 + $0x178] sm:$0xff] }
 0x963   :  { %4018 = vmatprep.subr.mxu0 %v3784_v28  ;;  %3940 = vmatpush1.msra.mxu1 %v3721_v34  ;;  %v3816_v28 = vld [vmem:[#allocation6 + $0x338] sm:$0xff]  ;;  %v3759_v34 = vld [vmem:[#allocation6 + $0x170] sm:$0xff] }
 0x964   :  { %4019 = vmatpush1.msra.mxu0 %v3783_v49  ;;  %3941 = vmatprep.subr.mxu1 %v3720_v50  ;;  %v3815_v49 = vld [vmem:[#allocation6 + $0x330] sm:$0xff]  ;;  %v3758_v50 = vld [vmem:[#allocation6 + $0x168] sm:$0xff] }
 0x965   :  { %4020 = vmatprep.subr.mxu0 %v3782_v38  ;;  %3942 = vmatpush1.msra.mxu1 %v3719_v52  ;;  %v3814_v38 = vld [vmem:[#allocation6 + $0x328] sm:$0xff]  ;;  %v3757_v52 = vld [vmem:[#allocation6 + $0x160] sm:$0xff] }
 0x966   :  { %4021 = vmatpush1.msra.mxu0 %v3781_v53  ;;  %3943 = vmatprep.subr.mxu1 %v3718_v54  ;;  %v3813_v53 = vld [vmem:[#allocation6 + $0x320] sm:$0xff]  ;;  %v3756_v54 = vld [vmem:[#allocation6 + $0x158] sm:$0xff] }
 0x967   :  { %4022 = vmatprep.subr.mxu0 %v3780_v55  ;;  %3944 = vmatpush1.msra.mxu1 %v3717_v56  ;;  %v3812_v55 = vld [vmem:[#allocation6 + $0x318] sm:$0xff]  ;;  %v3755_v56 = vld [vmem:[#allocation6 + $0x150] sm:$0xff] }
 0x968   :  { %4023 = vmatpush1.msra.mxu0 %v3779_v20  ;;  %3945 = vmatprep.subr.mxu1 %v3716_v25  ;;  %v3811_v20 = vld [vmem:[#allocation6 + $0x310] sm:$0xff]  ;;  %v3754_v25 = vld [vmem:[#allocation6 + $0x148] sm:$0xff] }
 0x969   :  { %4024 = vmatprep.subr.mxu0 %v3778_v58  ;;  %3946 = vmatpush1.msra.mxu1 %v3715_v40  ;;  %v3810_v58 = vld [vmem:[#allocation6 + $0x308] sm:$0xff]  ;;  %v3753_v40 = vld [vmem:[#allocation6 + $0x140] sm:$0xff] }
 0x96a   :  { %4025 = vmatpush1.msra.mxu0 %v3777_v18  ;;  %3947 = vmatprep.subr.mxu1 %v3714_v24  ;;  %v3809_v18 = vld [vmem:[#allocation6 + $0x300] sm:$0xff]  ;;  %v3752_v24 = vld [vmem:[#allocation6 + $0x138] sm:$0xff] }
 0x96b   :  { %4026 = vmatprep.subr.mxu0 %v3840_v43  ;;  %3948 = vmatpush1.msra.mxu1 %v3713_v44  ;;  %v3751_v43 = vld [vmem:[#allocation6 + $0x130] sm:$0xff]  ;;  %v3750_v44 = vld [vmem:[#allocation6 + $0x128] sm:$0xff] }
 0x96c   :  { %4027 = vmatpush2.msra.mxu0 %v3839_v16  ;;  %3949 = vmatprep.subr.mxu1 %v3776_v39  ;;  %v3749_v16 = vld [vmem:[#allocation6 + $0x120] sm:$0xff] }
 0x96d   :  { %4028 = vmatprep.subr.mxu0 %v3838_v23  ;;  %3950 = vmatpush2.msra.mxu1 %v3775_v36  ;;  %v3748_v23 = vld [vmem:[#allocation6 + $0x118] sm:$0xff] }
 0x96e   :  { %4029 = vmatpush2.msra.mxu0 %v3837_v47  ;;  %3951 = vmatprep.subr.mxu1 %v3774_v31  ;;  %v3747_v47 = vld [vmem:[#allocation6 + $0x110] sm:$0xff] }
 0x96f   :  { %4030 = vmatprep.subr.mxu0 %v3836_v48  ;;  %3952 = vmatpush2.msra.mxu1 %v3773_v0  ;;  %v3746_v48 = vld [vmem:[#allocation6 + $0x108] sm:$0xff] }
 0x970   :  { %4031 = vmatpush2.msra.mxu0 %v3835_v51  ;;  %3953 = vmatprep.subr.mxu1 %v3772_v3  ;;  %v3745_v51 = vld [vmem:[#allocation6 + $0x100] sm:$0xff] }
 0x971   :  { %4032 = vmatprep.subr.mxu0 %v3834_v59  ;;  %3954 = vmatpush2.msra.mxu1 %v3771_v6  ;;  %v3872_v59 = vld [vmem:[#allocation6 + $0x4f8] sm:$0xff] }
 0x972   :  { %4033 = vmatpush2.msra.mxu0 %v3833_v61  ;;  %3955 = vmatprep.subr.mxu1 %v3770_v8  ;;  %v3519_v61 = vld [vmem:[%s9788_s3] sm:$0x3] }
 0x973   :  { %4034 = vmatprep.subr.mxu0 %v3832_v41  ;;  %3956 = vmatpush2.msra.mxu1 %v3769_v10  ;;  %v3524_v39 = vrot.slane %v3519_v61, %v8980_v60  ;;  %v3528_v36 = vrot.slane %v3519_v61, %v8986_v63  ;;  %v3853_v61 = vld [vmem:[#allocation6 + $0x460] sm:$0xff] }
 0x974   :  { %4035 = vmatpush2.msra.mxu0 %v3831_v37  ;;  %3957 = vmatprep.subr.mxu1 %v3768_v12 }
 0x975   :  { %4036 = vmatprep.subr.mxu0 %v3830_v32  ;;  %3958 = vmatpush2.msra.mxu1 %v3767_v14 }
 0x976   :  { %4037 = vmatpush2.msra.mxu0 %v3829_v2  ;;  %3959 = vmatprep.subr.mxu1 %v3766_v17 }
 0x977   :  { %4038 = vmatprep.subr.mxu0 %v3828_v5  ;;  %3960 = vmatpush2.msra.mxu1 %v3765_v62 }
 0x978   :  { %4039 = vmatpush2.msra.mxu0 %v3827_v7  ;;  %3961 = vmatprep.subr.mxu1 %v3764_v26 }
 0x979   :  { %4040 = vmatprep.subr.mxu0 %v3826_v9  ;;  %3962 = vmatpush2.msra.mxu1 %v3763_v33 }
 0x97a   :  { %4041 = vmatpush2.msra.mxu0 %v3825_v11  ;;  %3963 = vmatprep.subr.mxu1 %v3762_v27 }
 0x97b   :  { %4042 = vmatprep.subr.mxu0 %v3824_v13  ;;  %3964 = vmatpush2.msra.mxu1 %v3761_v45 }
 0x97c   :  { %4043 = vmatpush2.msra.mxu0 %v3823_v15  ;;  %3965 = vmatprep.subr.mxu1 %v3760_v46 }
 0x97d   :  { %4044 = vmatprep.subr.mxu0 %v3822_v19  ;;  %3966 = vmatpush2.msra.mxu1 %v3759_v34  ;;  %v3871_v34 = vld [vmem:[#allocation6 + $0x4f0] sm:$0xff] }
 0x97e   :  { %4045 = vmatpush2.msra.mxu0 %v3821_v21  ;;  %3967 = vmatprep.subr.mxu1 %v3758_v50 }
 0x97f   :  { %4046 = vmatprep.subr.mxu0 %v3820_v35  ;;  %3968 = vmatpush2.msra.mxu1 %v3757_v52 }
 0x980   :  { %4047 = vmatpush2.msra.mxu0 %v3819_v42  ;;  %3969 = vmatprep.subr.mxu1 %v3756_v54  ;;  %v3867_v54 = vld [vmem:[#allocation6 + $0x4d0] sm:$0xff] }
 0x981   :  { %4048 = vmatprep.subr.mxu0 %v3818_v29  ;;  %3970 = vmatpush2.msra.mxu1 %v3755_v56 }
 0x982   :  { %4049 = vmatpush2.msra.mxu0 %v3817_v30  ;;  %3971 = vmatprep.subr.mxu1 %v3754_v25 }
 0x983   :  { %4050 = vmatprep.subr.mxu0 %v3816_v28  ;;  %3972 = vmatpush2.msra.mxu1 %v3753_v40  ;;  %v3864_v40 = vld [vmem:[#allocation6 + $0x4b8] sm:$0xff] }
 0x984   :  { %4051 = vmatpush2.msra.mxu0 %v3815_v49  ;;  %3973 = vmatprep.subr.mxu1 %v3752_v24  ;;  %v3870_v49 = vld [vmem:[#allocation6 + $0x4e8] sm:$0xff] }
 0x985   :  { %4052 = vmatprep.subr.mxu0 %v3814_v38  ;;  %3974 = vmatpush2.msra.mxu1 %v3751_v43  ;;  %v3869_v38 = vld [vmem:[#allocation6 + $0x4e0] sm:$0xff]  ;;  %v3862_v24 = vld [vmem:[#allocation6 + $0x4a8] sm:$0xff] }
 0x986   :  { %4053 = vmatpush2.msra.mxu0 %v3813_v53  ;;  %3975 = vmatprep.subr.mxu1 %v3750_v44  ;;  %v3868_v53 = vld [vmem:[#allocation6 + $0x4d8] sm:$0xff]  ;;  %v3861_v43 = vld [vmem:[#allocation6 + $0x4a0] sm:$0xff] }
 0x987   :  { %4054 = vmatprep.subr.mxu0 %v3812_v55  ;;  %3976 = vmatpush2.msra.mxu1 %v3749_v16  ;;  %v3860_v44 = vld [vmem:[#allocation6 + $0x498] sm:$0xff]  ;;  %v3859_v16 = vld [vmem:[#allocation6 + $0x490] sm:$0xff] }
 0x988   :  { %4055 = vmatpush2.msra.mxu0 %v3811_v20  ;;  %3977 = vmatprep.subr.mxu1 %v3748_v23  ;;  %v3866_v20 = vld [vmem:[#allocation6 + $0x4c8] sm:$0xff] }
 0x989   :  { %4056 = vmatprep.subr.mxu0 %v3810_v58  ;;  %3978 = vmatpush2.msra.mxu1 %v3747_v47  ;;  %v3865_v58 = vld [vmem:[#allocation6 + $0x4c0] sm:$0xff]  ;;  %v3858_v23 = vld [vmem:[#allocation6 + $0x488] sm:$0xff] }
 0x98a   :  { %4057 = vmatpush2.msra.mxu0 %v3809_v18  ;;  %3979 = vmatprep.subr.mxu1 %v3746_v48  ;;  %v3863_v18 = vld [vmem:[#allocation6 + $0x4b0] sm:$0xff]  ;;  %v3857_v47 = vld [vmem:[#allocation6 + $0x480] sm:$0xff]  ;;  %v3856_v48 = vld [vmem:[#allocation6 + $0x478] sm:$0xff] }
 0x98b   :  { %3980 = vmatpush2.msra.mxu1 %v3745_v51  ;;  %v3855_v51 = vld [vmem:[#allocation6 + $0x470] sm:$0xff] }
 0x98c   :  { %4071 = vmatprep.subr.mxu1 %v3872_v59  ;;  %v3854_v59 = vld [vmem:[#allocation6 + $0x468] sm:$0xff] }
 0xa09   :  { %v3674_v41 = vpop.f32.mrf.mxu1 }
 0xa0b   :  { %v3597_v37 = vpop.f32.mrf.mxu0  ;;  %v3676_v31 = vpop.f32.mrf.mxu1 }
 0xa0c   :  { %v3598_v32 = vadd.f32 %v3597_v37, %v3524_v39  ;;  %v3849_v37 = vld [vmem:[#allocation6 + $0x440] sm:$0xff] }
 0xa0d   :  { %v3599_v0 = vpop.f32.mrf.mxu0  ;;  %v3680_v5 = vpop.f32.mrf.mxu1 }
 0xa0e   :  { %v3600_v2 = vadd.f32 %v3599_v0, %v3528_v36  ;;  %v3675_v3 = vadd.f32 %v3674_v41, %v3598_v32  ;;  %v3851_v41 = vld [vmem:[#allocation6 + $0x450] sm:$0xff]  ;;  %v3846_v0 = vld [vmem:[#allocation6 + $0x428] sm:$0xff] }
 0xa0f   :  { %v3603_v6 = vpop.f32.mrf.mxu0  ;;  %v3682_v12 = vpop.f32.mrf.mxu1  ;;  %v3847_v32 = vld [vmem:[#allocation6 + $0x430] sm:$0xff] }
 0xa10   :  { %v3677_v7 = vadd.f32 %v3676_v31, %v3600_v2  ;;  %v3604_v8 = vadd.f32 %v3603_v6, %v3524_v39  ;;  %v3852_v39 = vld [vmem:[#allocation6 + $0x458] sm:$0xff]  ;;  %v3845_v2 = vld [vmem:[#allocation6 + $0x420] sm:$0xff]  ;;  %v3842_v6 = vld [vmem:[#allocation6 + $0x408] sm:$0xff] }
 0xa11   :  { %v3605_v9 = vpop.f32.mrf.mxu0  ;;  %v3848_v31 = vld [vmem:[#allocation6 + $0x438] sm:$0xff] }
 0xa12   :  { %8709 = vtanh.f32 %v3677_v7  ;;  %v3681_v10 = vadd.f32 %v3680_v5, %v3604_v8  ;;  %v3606_v11 = vadd.f32 %v3605_v9, %v3528_v36  ;;  %v3850_v36 = vld [vmem:[#allocation6 + $0x448] sm:$0xff]  ;;  %v3843_v5 = vld [vmem:[#allocation6 + $0x410] sm:$0xff]  ;;  %v3841_v7 = vld [vmem:[#allocation6 + $0x400] sm:$0xff] }
 0xa13   :  { %8711 = vtanh.f32 %v3675_v3  ;;  %v3844_v3 = vld [vmem:[#allocation6 + $0x418] sm:$0xff]  ;;  %v3903_v9 = vld [vmem:[#allocation6 + $0x5f0] sm:$0xff] }
 0xa14   :  { %8713 = vtanh.f32 %v3681_v10  ;;  %v3683_v13 = vadd.f32 %v3682_v12, %v3606_v11  ;;  %v3904_v8 = vld [vmem:[#allocation6 + $0x5f8] sm:$0xff]  ;;  %v3902_v10 = vld [vmem:[#allocation6 + $0x5e8] sm:$0xff]  ;;  %v3901_v11 = vld [vmem:[#allocation6 + $0x5e0] sm:$0xff] }
 0xa15   :  { %v3900_v12 = vld [vmem:[#allocation6 + $0x5d8] sm:$0xff] }
 0xa16   :  { %8715 = vtanh.f32 %v3683_v13  ;;  %v3899_v13 = vld [vmem:[#allocation6 + $0x5d0] sm:$0xff] }
 0xa1f   :  { %v9338_v14 = vpop.eup %8709 }
 0xa20   :  { %v8712_v15 = vpop.eup %8711  ;;  %4058 = vmatprep.mubr.f32.mxu0 %v9338_v14  ;;  %v3690_v33 = vrot.slane %v9338_v14, 7  ;;  %v3702_v55 = vrot.slane %v9338_v14, 1  ;;  %v4255_v14 = vld [vmem:[#allocation8 + $0x278] sm:$0xff] }
 0xa21   :  { %v8714_v17 = vpop.eup %8713  ;;  %4059 = vmatmul.mubr.f32.vlgmr.msra.gmra.mxu0 %v8712_v15  ;;  %v3689_v26 = vrot.slane %v8712_v15, 7  ;;  %v3701_v35 = vrot.slane %v8712_v15, 1  ;;  %v3898_v15 = vld [vmem:[#allocation6 + $0x5c8] sm:$0xff] }
 0xa22   :  { %v3691_v19 = vrot.slane %v8714_v17, 7  ;;  %v3703_v62 = vrot.slane %v8714_v17, 1 }
 0xa23   :  { %v9341_v21 = vpop.eup %8715 }
 0xa24   :  { %4064 = vmatprep.mubr.f32.mxu0 %v9341_v21  ;;  %v3692_v42 = vrot.slane %v9341_v21, 7  ;;  %v3695_v27 = vsel %vm105_vm3, %v3691_v19, %v3689_v26  ;;  %v9350_v29 = vsel %vm112_vm1, %v3701_v35, %v3703_v62  ;;  %v9354_v45 = vsel %vm112_vm1, %v3703_v62, %v3701_v35  ;;  %v3895_v62 = vld [vmem:[#allocation6 + $0x5b0] sm:$0xff]  ;;  %v3893_v35 = vld [vmem:[#allocation6 + $0x5a0] sm:$0xff] }
 0xa25   :  { %4065 = vmatmul.mubr.f32.gmra.mxu0 %v8714_v17  ;;  %v3697_v28 = vmul.f32 %v8971_v57, %v3695_v27  ;;  %v3704_v52 = vrot.slane %v9341_v21, 1  ;;  %v3693_v56 = vsel %vm105_vm3, %v3689_v26, %v3691_v19  ;;  %v3897_v17 = vld [vmem:[#allocation6 + $0x5c0] sm:$0xff]  ;;  %v3896_v19 = vld [vmem:[#allocation6 + $0x5b8] sm:$0xff]  ;;  %v3894_v26 = vld [vmem:[#allocation6 + $0x5a8] sm:$0xff] }
 0xa26   :  { %v3696_v30 = vsel %vm105_vm3, %v3692_v42, %v3690_v33  ;;  %v3694_v50 = vsel %vm105_vm3, %v3690_v33, %v3692_v42  ;;  %v3892_v33 = vld [vmem:[#allocation6 + $0x598] sm:$0xff]  ;;  %v3891_v42 = vld [vmem:[#allocation6 + $0x590] sm:$0xff]  ;;  %v3890_v27 = vld [vmem:[#allocation6 + $0x588] sm:$0xff] }
 0xa27   :  { %v3698_v46 = vmul.f32 %v8971_v57, %v3696_v30  ;;  %v3706_v25 = vsel %vm112_vm1, %v3702_v55, %v3704_v52  ;;  %v3889_v30 = vld [vmem:[#allocation6 + $0x580] sm:$0xff]  ;;  %v4191_v21 = vld [vmem:[#allocation8 + $0x78] sm:$0xff] }
 0xa29   :  { %3981 = vmatprep.mubr.f32.mxu1 %v3698_v46  ;;  %v3888_v46 = vld [vmem:[#allocation6 + $0x578] sm:$0xff] }
 0xa2a   :  { %3982 = vmatmul.mubr.f32.vlgmr.msra.gmra.mxu1 %v3697_v28  ;;  %v3887_v28 = vld [vmem:[#allocation6 + $0x570] sm:$0xff] }
 0xa2b   :  { %4072 = vmatpush1.msra.mxu1 %v3871_v34  ;;  %3987 = vmatprep.mubr.f32.mxu1 %v3694_v50  ;;  %v3886_v34 = vld [vmem:[#allocation6 + $0x568] sm:$0xff]  ;;  %v3884_v50 = vld [vmem:[#allocation6 + $0x558] sm:$0xff] }
 0xa2c   :  { %4073 = vmatprep.subr.mxu1 %v3870_v49  ;;  %v3885_v49 = vld [vmem:[#allocation6 + $0x560] sm:$0xff] }
 0xa2d   :  { %4074 = vmatpush1.msra.mxu1 %v3869_v38  ;;  %v3883_v38 = vld [vmem:[#allocation6 + $0x550] sm:$0xff] }
 0xa2e   :  { %4075 = vmatprep.subr.mxu1 %v3868_v53  ;;  %3988 = vmatmul.mubr.f32.gmra.mxu1 %v3693_v56  ;;  %v3882_v53 = vld [vmem:[#allocation6 + $0x548] sm:$0xff]  ;;  %v3880_v56 = vld [vmem:[#allocation6 + $0x538] sm:$0xff] }
 0xa2f   :  { %4076 = vmatpush1.msra.mxu1 %v3867_v54  ;;  %4135 = vmatprep.mubr.f32.mxu1 %v3706_v25  ;;  %v3881_v54 = vld [vmem:[#allocation6 + $0x540] sm:$0xff]  ;;  %v3878_v25 = vld [vmem:[#allocation6 + $0x528] sm:$0xff] }
 0xa30   :  { %4077 = vmatprep.subr.mxu1 %v3866_v20  ;;  %v3879_v20 = vld [vmem:[#allocation6 + $0x530] sm:$0xff] }
 0xa31   :  { %4078 = vmatpush1.msra.mxu1 %v3865_v58  ;;  %v3877_v58 = vld [vmem:[#allocation6 + $0x520] sm:$0xff] }
 0xa32   :  { %4079 = vmatprep.subr.mxu1 %v3864_v40  ;;  %v3876_v40 = vld [vmem:[#allocation6 + $0x518] sm:$0xff] }
 0xa33   :  { %4080 = vmatpush1.msra.mxu1 %v3863_v18  ;;  %v3875_v18 = vld [vmem:[#allocation6 + $0x510] sm:$0xff] }
 0xa34   :  { %4081 = vmatprep.subr.mxu1 %v3862_v24  ;;  %v3874_v24 = vld [vmem:[#allocation6 + $0x508] sm:$0xff] }
 0xa35   :  { %4082 = vmatpush1.msra.mxu1 %v3861_v43  ;;  %v3873_v43 = vld [vmem:[#allocation6 + $0x500] sm:$0xff] }
 0xa36   :  { %4083 = vmatprep.subr.mxu1 %v3860_v44  ;;  %v3708_v44 = vsel %vm112_vm1, %v3704_v52, %v3702_v55  ;;  %v4206_v52 = vld [vmem:[#allocation8 + $0xf0] sm:$0xff] }
 0xa37   :  { %4084 = vmatpush1.msra.mxu1 %v3859_v16  ;;  %v3712_v16 = vmul.f32 %v8957_v22, %v3708_v44  ;;  %v4254_v55 = vld [vmem:[#allocation8 + $0x270] sm:$0xff] }
 0xa38   :  { %4085 = vmatprep.subr.mxu1 %v3858_v23  ;;  %v3711_v23 = vmul.f32 %v8957_v22, %v9354_v45  ;;  %v4253_v45 = vld [vmem:[#allocation8 + $0x268] sm:$0xff]  ;;  %v4178_v44 = vld [vmem:[#allocation8 + $0x10] sm:$0xff] }
 0xa39   :  { %4086 = vmatpush1.msra.mxu1 %v3857_v47  ;;  %v4271_v47 = vld [vmem:[#allocation8 + $0x2f8] sm:$0xff] }
 0xa3a   :  { %4087 = vmatprep.subr.mxu1 %v3856_v48  ;;  %v4207_v48 = vld [vmem:[#allocation8 + $0xf8] sm:$0xff] }
 0xa3b   :  { %4088 = vmatpush1.msra.mxu1 %v3855_v51  ;;  %8196 = vmatprep.subr.mxu0 %v4207_v48  ;;  %v4270_v51 = vld [vmem:[#allocation8 + $0x2f0] sm:$0xff]  ;;  %v4177_v48 = vld [vmem:[#allocation8 + $0x8] sm:$0xff] }
 0xa3c   :  { %4089 = vmatprep.subr.mxu1 %v3854_v59  ;;  %8197 = vmatpush3.msra.mxu0 %v4191_v21  ;;  %v4190_v59 = vld [vmem:[#allocation8 + $0x70] sm:$0xff]  ;;  %v4192_v21 = vld [vmem:[#allocation8 + $0x80] sm:$0xff] }
 0xa3d   :  { %4090 = vmatpush1.msra.mxu1 %v3853_v61  ;;  %v4269_v61 = vld [vmem:[#allocation8 + $0x2e8] sm:$0xff]  ;;  %8198 = vmatprep.subr.mxu0 %v4206_v52  ;;  %v4176_v52 = vld [vmem:[#allocation8] sm:$0xff] }
 0xa3e   :  { %4091 = vmatprep.subr.mxu1 %v3852_v39  ;;  %8199 = vmatpush3.msra.mxu0 %v4190_v59  ;;  %v4189_v39 = vld [vmem:[#allocation8 + $0x68] sm:$0xff] }
 0xa3f   :  { %4092 = vmatpush1.msra.mxu1 %v3851_v41  ;;  %v4268_v41 = vld [vmem:[#allocation8 + $0x2e0] sm:$0xff] }
 0xa40   :  { %4093 = vmatprep.subr.mxu1 %v3850_v36  ;;  %v4204_v36 = vld [vmem:[#allocation8 + $0xe0] sm:$0xff] }
 0xa41   :  { %4094 = vmatpush1.msra.mxu1 %v3849_v37  ;;  %v4252_v37 = vld [vmem:[#allocation8 + $0x260] sm:$0xff] }
 0xa42   :  { %4095 = vmatprep.subr.mxu1 %v3848_v31  ;;  %v4188_v31 = vld [vmem:[#allocation8 + $0x60] sm:$0xff] }
 0xa43   :  { %4096 = vmatpush1.msra.mxu1 %v3847_v32  ;;  %v4267_v32 = vld [vmem:[#allocation8 + $0x2d8] sm:$0xff] }
 0xa44   :  { %4097 = vmatprep.subr.mxu1 %v3846_v0  ;;  %v4203_v0 = vld [vmem:[#allocation8 + $0xd8] sm:$0xff] }
 0xa45   :  { %4098 = vmatpush1.msra.mxu1 %v3845_v2  ;;  %v4251_v2 = vld [vmem:[#allocation8 + $0x258] sm:$0xff] }
 0xa46   :  { %4099 = vmatprep.subr.mxu1 %v3844_v3  ;;  %v4187_v3 = vld [vmem:[#allocation8 + $0x58] sm:$0xff] }
 0xa47   :  { %4100 = vmatpush1.msra.mxu1 %v3843_v5  ;;  %v4266_v5 = vld [vmem:[#allocation8 + $0x2d0] sm:$0xff] }
 0xa48   :  { %4101 = vmatprep.subr.mxu1 %v3842_v6  ;;  %v4202_v6 = vld [vmem:[#allocation8 + $0xd0] sm:$0xff] }
 0xa49   :  { %4102 = vmatpush1.msra.mxu1 %v3841_v7  ;;  %v4250_v7 = vld [vmem:[#allocation8 + $0x250] sm:$0xff] }
 0xa4a   :  { %4103 = vmatprep.subr.mxu1 %v3904_v8  ;;  %v4186_v8 = vld [vmem:[#allocation8 + $0x50] sm:$0xff] }
 0xa4b   :  { %4104 = vmatpush2.msra.mxu1 %v3903_v9  ;;  %v4265_v9 = vld [vmem:[#allocation8 + $0x2c8] sm:$0xff] }
 0xa4c   :  { %4105 = vmatprep.subr.mxu1 %v3902_v10  ;;  %v4201_v10 = vld [vmem:[#allocation8 + $0xc8] sm:$0xff] }
 0xa4d   :  { %4106 = vmatpush2.msra.mxu1 %v3901_v11  ;;  %v4249_v11 = vld [vmem:[#allocation8 + $0x248] sm:$0xff] }
 0xa4e   :  { %4107 = vmatprep.subr.mxu1 %v3900_v12  ;;  %v4185_v12 = vld [vmem:[#allocation8 + $0x48] sm:$0xff] }
 0xa4f   :  { %4108 = vmatpush2.msra.mxu1 %v3899_v13  ;;  %v4264_v13 = vld [vmem:[#allocation8 + $0x2c0] sm:$0xff] }
 0xa50   :  { %4109 = vmatprep.subr.mxu1 %v3898_v15  ;;  %v4200_v15 = vld [vmem:[#allocation8 + $0xc0] sm:$0xff] }
 0xa51   :  { %4110 = vmatpush2.msra.mxu1 %v3897_v17  ;;  %v4248_v17 = vld [vmem:[#allocation8 + $0x240] sm:$0xff] }
 0xa52   :  { %4111 = vmatprep.subr.mxu1 %v3896_v19  ;;  %v4184_v19 = vld [vmem:[#allocation8 + $0x40] sm:$0xff] }
 0xa53   :  { %4112 = vmatpush2.msra.mxu1 %v3895_v62  ;;  %v4263_v62 = vld [vmem:[#allocation8 + $0x2b8] sm:$0xff] }
 0xa54   :  { %4113 = vmatprep.subr.mxu1 %v3894_v26  ;;  %v4199_v26 = vld [vmem:[#allocation8 + $0xb8] sm:$0xff] }
 0xa55   :  { %4114 = vmatpush2.msra.mxu1 %v3893_v35  ;;  %v4247_v35 = vld [vmem:[#allocation8 + $0x238] sm:$0xff] }
 0xa56   :  { %4115 = vmatprep.subr.mxu1 %v3892_v33  ;;  %v4183_v33 = vld [vmem:[#allocation8 + $0x38] sm:$0xff] }
 0xa57   :  { %4116 = vmatpush2.msra.mxu1 %v3891_v42  ;;  %v4262_v42 = vld [vmem:[#allocation8 + $0x2b0] sm:$0xff] }
 0xa58   :  { %4117 = vmatprep.subr.mxu1 %v3890_v27  ;;  %v4198_v27 = vld [vmem:[#allocation8 + $0xb0] sm:$0xff] }
 0xa59   :  { %4118 = vmatpush2.msra.mxu1 %v3889_v30  ;;  %v4246_v30 = vld [vmem:[#allocation8 + $0x230] sm:$0xff] }
 0xa5a   :  { %4119 = vmatprep.subr.mxu1 %v3888_v46  ;;  %v4182_v46 = vld [vmem:[#allocation8 + $0x30] sm:$0xff] }
 0xa5b   :  { %4120 = vmatpush2.msra.mxu1 %v3887_v28  ;;  %v4261_v28 = vld [vmem:[#allocation8 + $0x2a8] sm:$0xff] }
 0xa5c   :  { %4121 = vmatprep.subr.mxu1 %v3886_v34  ;;  %v4197_v34 = vld [vmem:[#allocation8 + $0xa8] sm:$0xff] }
 0xa5d   :  { %4122 = vmatpush2.msra.mxu1 %v3885_v49  ;;  %v4245_v49 = vld [vmem:[#allocation8 + $0x228] sm:$0xff] }
 0xa5e   :  { %4123 = vmatprep.subr.mxu1 %v3884_v50  ;;  %v4181_v50 = vld [vmem:[#allocation8 + $0x28] sm:$0xff] }
 0xa5f   :  { %4124 = vmatpush2.msra.mxu1 %v3883_v38  ;;  %v4260_v38 = vld [vmem:[#allocation8 + $0x2a0] sm:$0xff] }
 0xa60   :  { %4125 = vmatprep.subr.mxu1 %v3882_v53  ;;  %v4196_v53 = vld [vmem:[#allocation8 + $0xa0] sm:$0xff] }
 0xa61   :  { %4126 = vmatpush2.msra.mxu1 %v3881_v54  ;;  %v4244_v54 = vld [vmem:[#allocation8 + $0x220] sm:$0xff] }
 0xa62   :  { %4127 = vmatprep.subr.mxu1 %v3880_v56  ;;  %v4180_v56 = vld [vmem:[#allocation8 + $0x20] sm:$0xff] }
 0xa63   :  { %4128 = vmatpush2.msra.mxu1 %v3879_v20  ;;  %v4259_v20 = vld [vmem:[#allocation8 + $0x298] sm:$0xff] }
 0xa64   :  { %4129 = vmatprep.subr.mxu1 %v3878_v25  ;;  %v4195_v25 = vld [vmem:[#allocation8 + $0x98] sm:$0xff] }
 0xa65   :  { %4130 = vmatpush2.msra.mxu1 %v3877_v58  ;;  %v4243_v58 = vld [vmem:[#allocation8 + $0x218] sm:$0xff] }
 0xa66   :  { %4131 = vmatprep.subr.mxu1 %v3876_v40  ;;  %v4179_v40 = vld [vmem:[#allocation8 + $0x18] sm:$0xff] }
 0xa67   :  { %4132 = vmatpush2.msra.mxu1 %v3875_v18  ;;  %v4258_v18 = vld [vmem:[#allocation8 + $0x290] sm:$0xff] }
 0xa68   :  { %4133 = vmatprep.subr.mxu1 %v3874_v24  ;;  %v4194_v24 = vld [vmem:[#allocation8 + $0x90] sm:$0xff] }
 0xa69   :  { %4134 = vmatpush2.msra.mxu1 %v3873_v43  ;;  %v4242_v43 = vld [vmem:[#allocation8 + $0x210] sm:$0xff] }
 0xa6a   :  { %4136 = vmatmul.mubr.f32.vlgmr.msra.gmra.mxu1 %v9350_v29  ;;  %8272 = vmatprep.subr.mxu1 %v4271_v47  ;;  %v4205_v29 = vld [vmem:[#allocation8 + $0xe8] sm:$0xff] }
 0xa6b   :  { %4141 = vmatprep.mubr.f32.mxu1 %v3712_v16  ;;  %8273 = vmatpush3.msra.mxu1 %v4255_v14  ;;  %v4257_v16 = vld [vmem:[#allocation8 + $0x288] sm:$0xff]  ;;  %v4256_v14 = vld [vmem:[#allocation8 + $0x280] sm:$0xff] }
 0xa6c   :  { %8274 = vmatprep.subr.mxu1 %v4270_v51  ;;  %8200 = vmatprep.subr.mxu0 %v4205_v29  ;;  %v4241_v47 = vld [vmem:[#allocation8 + $0x208] sm:$0xff]  ;;  %v4240_v51 = vld [vmem:[#allocation8 + $0x200] sm:$0xff] }
 0xa6d   :  { %8275 = vmatpush3.msra.mxu1 %v4254_v55  ;;  %8201 = vmatpush3.msra.mxu0 %v4189_v39  ;;  %v4239_v55 = vld [vmem:[#allocation8 + $0x1f8] sm:$0xff] }
 0xa6e   :  { %4142 = vmatmul.mubr.f32.gmra.mxu1 %v3711_v23  ;;  %8276 = vmatprep.subr.mxu1 %v4269_v61  ;;  %v4193_v23 = vld [vmem:[#allocation8 + $0x88] sm:$0xff]  ;;  %v3905_v61 = vld [vmem:[%s9790_s5] sm:$0x3] }
 0xa6f   :  { %8277 = vmatpush3.msra.mxu1 %v4253_v45  ;;  %8202 = vmatprep.subr.mxu0 %v4204_v36  ;;  %v3910_v45 = vrot.slane %v3905_v61, %v8980_v60 }
 0xa70   :  { %8278 = vmatprep.subr.mxu1 %v4268_v41  ;;  %8203 = vmatpush3.msra.mxu0 %v4188_v31  ;;  %v3914_v41 = vrot.slane %v3905_v61, %v8986_v63  ;;  %v4219_v61 = vld [vmem:[#allocation8 + $0x158] sm:$0xff] }
 0xa71   :  { %8279 = vmatpush3.msra.mxu1 %v4252_v37  ;;  %8204 = vmatprep.subr.mxu0 %v4203_v0 }
 0xa72   :  { %8280 = vmatprep.subr.mxu1 %v4267_v32  ;;  %8205 = vmatpush3.msra.mxu0 %v4187_v3 }
 0xa73   :  { %8281 = vmatpush3.msra.mxu1 %v4251_v2  ;;  %8206 = vmatprep.subr.mxu0 %v4202_v6 }
 0xa74   :  { %8282 = vmatprep.subr.mxu1 %v4266_v5  ;;  %8207 = vmatpush3.msra.mxu0 %v4186_v8 }
 0xa75   :  { %8283 = vmatpush3.msra.mxu1 %v4250_v7  ;;  %8208 = vmatprep.subr.mxu0 %v4201_v10 }
 0xa76   :  { %8284 = vmatprep.subr.mxu1 %v4265_v9  ;;  %8209 = vmatpush3.msra.mxu0 %v4185_v12 }
 0xa77   :  { %8285 = vmatpush3.msra.mxu1 %v4249_v11  ;;  %8210 = vmatprep.subr.mxu0 %v4200_v15 }
 0xa78   :  { %8286 = vmatprep.subr.mxu1 %v4264_v13  ;;  %8211 = vmatpush3.msra.mxu0 %v4184_v19 }
 0xa79   :  { %8287 = vmatpush3.msra.mxu1 %v4248_v17  ;;  %8212 = vmatprep.subr.mxu0 %v4199_v26 }
 0xa7a   :  { %8288 = vmatprep.subr.mxu1 %v4263_v62  ;;  %8213 = vmatpush3.msra.mxu0 %v4183_v33 }
 0xa7b   :  { %8289 = vmatpush3.msra.mxu1 %v4247_v35  ;;  %8214 = vmatprep.subr.mxu0 %v4198_v27 }
 0xa7c   :  { %8290 = vmatprep.subr.mxu1 %v4262_v42  ;;  %8215 = vmatpush3.msra.mxu0 %v4182_v46 }
 0xa7d   :  { %8291 = vmatpush3.msra.mxu1 %v4246_v30  ;;  %8216 = vmatprep.subr.mxu0 %v4197_v34 }
 0xa7e   :  { %8292 = vmatprep.subr.mxu1 %v4261_v28  ;;  %8217 = vmatpush3.msra.mxu0 %v4181_v50 }
 0xa7f   :  { %8293 = vmatpush3.msra.mxu1 %v4245_v49  ;;  %8218 = vmatprep.subr.mxu0 %v4196_v53 }
 0xa80   :  { %8294 = vmatprep.subr.mxu1 %v4260_v38  ;;  %8219 = vmatpush3.msra.mxu0 %v4180_v56 }
 0xa81   :  { %8295 = vmatpush3.msra.mxu1 %v4244_v54  ;;  %8220 = vmatprep.subr.mxu0 %v4195_v25 }
 0xa82   :  { %8296 = vmatprep.subr.mxu1 %v4259_v20  ;;  %8221 = vmatpush3.msra.mxu0 %v4179_v40 }
 0xa83   :  { %8297 = vmatpush3.msra.mxu1 %v4243_v58  ;;  %8222 = vmatprep.subr.mxu0 %v4194_v24 }
 0xa84   :  { %8298 = vmatprep.subr.mxu1 %v4258_v18  ;;  %8223 = vmatpush3.msra.mxu0 %v4178_v44  ;;  %v4223_v44 = vld [vmem:[#allocation8 + $0x178] sm:$0xff] }
 0xa85   :  { %8299 = vmatpush3.msra.mxu1 %v4242_v43  ;;  %8224 = vmatprep.subr.mxu0 %v4193_v23 }
 0xa86   :  { %8300 = vmatprep.subr.mxu1 %v4257_v16  ;;  %8225 = vmatpush3.msra.mxu0 %v4177_v48  ;;  %v4238_v16 = vld [vmem:[#allocation8 + $0x1f0] sm:$0xff] }
 0xa87   :  { %8301 = vmatpush3.msra.mxu1 %v4241_v47  ;;  %8226 = vmatprep.subr.mxu0 %v4192_v21  ;;  %v4222_v47 = vld [vmem:[#allocation8 + $0x170] sm:$0xff]  ;;  %v4221_v21 = vld [vmem:[#allocation8 + $0x168] sm:$0xff] }
 0xa88   :  { %8302 = vmatprep.subr.mxu1 %v4256_v14  ;;  %8227 = vmatpush3.msra.mxu0 %v4176_v52  ;;  %v4237_v14 = vld [vmem:[#allocation8 + $0x1e8] sm:$0xff]  ;;  %v4236_v52 = vld [vmem:[#allocation8 + $0x1e0] sm:$0xff] }
 0xa89   :  { %8303 = vmatpush3.msra.mxu1 %v4240_v51  ;;  %8234 = vmatprep.subr.mxu0 %v4239_v55  ;;  %v4220_v55 = vld [vmem:[#allocation8 + $0x160] sm:$0xff] }
 0xae1   :  { %v4060_v39 = vpop.f32.mrf.mxu0 }
 0xae3   :  { %v4062_v31 = vpop.f32.mrf.mxu0 }
 0xae5   :  { %v4066_v5 = vpop.f32.mrf.mxu0 }
 0xae7   :  { %v4068_v13 = vpop.f32.mrf.mxu0 }
 0xaea   :  { %v3983_v59 = vpop.f32.mrf.mxu1 }
 0xaeb   :  { %v3984_v37 = vadd.f32 %v3983_v59, %v3910_v45  ;;  %v4235_v59 = vld [vmem:[#allocation8 + $0x1d8] sm:$0xff] }
 0xaec   :  { %v3985_v29 = vpop.f32.mrf.mxu1 }
 0xaed   :  { %v3986_v32 = vadd.f32 %v3985_v29, %v3914_v41  ;;  %v4061_v3 = vadd.f32 %v4060_v39, %v3984_v37  ;;  %v4234_v29 = vld [vmem:[#allocation8 + $0x1d0] sm:$0xff]  ;;  %v4233_v39 = vld [vmem:[#allocation8 + $0x1c8] sm:$0xff]  ;;  %v4216_v37 = vld [vmem:[#allocation8 + $0x140] sm:$0xff] }
 0xaee   :  { %v3989_v36 = vpop.f32.mrf.mxu1 }
 0xaef   :  { %v3990_v2 = vadd.f32 %v3989_v36, %v3910_v45  ;;  %v4063_v9 = vadd.f32 %v4062_v31, %v3986_v32  ;;  %v4218_v45 = vld [vmem:[#allocation8 + $0x150] sm:$0xff]  ;;  %v4232_v36 = vld [vmem:[#allocation8 + $0x1c0] sm:$0xff]  ;;  %v4231_v31 = vld [vmem:[#allocation8 + $0x1b8] sm:$0xff] }
 0xaf0   :  { %v3991_v0 = vpop.f32.mrf.mxu1  ;;  %v4215_v32 = vld [vmem:[#allocation8 + $0x138] sm:$0xff] }
 0xaf1   :  { %v3992_v7 = vadd.f32 %v3991_v0, %v3914_v41  ;;  %v4067_v12 = vadd.f32 %v4066_v5, %v3990_v2  ;;  %v4217_v41 = vld [vmem:[#allocation8 + $0x148] sm:$0xff]  ;;  %v4230_v0 = vld [vmem:[#allocation8 + $0x1b0] sm:$0xff] }
 0xaf2   :  { %v4214_v2 = vld [vmem:[#allocation8 + $0x130] sm:$0xff]  ;;  %v4213_v5 = vld [vmem:[#allocation8 + $0x128] sm:$0xff] }
 0xaf3   :  { %v4069_v19 = vadd.f32 %v4068_v13, %v3992_v7  ;;  %v4212_v7 = vld [vmem:[#allocation8 + $0x120] sm:$0xff]  ;;  %v4209_v13 = vld [vmem:[#allocation8 + $0x108] sm:$0xff] }
 0xb2a   :  { %v4137_v6 = vpop.f32.mrf.mxu1 }
 0xb2b   :  { %v4138_v8 = vadd.f32 %v4137_v6, %v4061_v3  ;;  %v4229_v3 = vld [vmem:[#allocation8 + $0x1a8] sm:$0xff]  ;;  %v4228_v6 = vld [vmem:[#allocation8 + $0x1a0] sm:$0xff] }
 0xb2c   :  { %v4139_v10 = vpop.f32.mrf.mxu1 }
 0xb2d   :  { %v4140_v11 = vadd.f32 %v4139_v10, %v4063_v9  ;;  %8717 = vtanh.f32 %v4138_v8  ;;  %v4227_v8 = vld [vmem:[#allocation8 + $0x198] sm:$0xff]  ;;  %v4226_v10 = vld [vmem:[#allocation8 + $0x190] sm:$0xff] }
 0xb2e   :  { %v4143_v15 = vpop.f32.mrf.mxu1  ;;  %v4211_v9 = vld [vmem:[#allocation8 + $0x118] sm:$0xff] }
 0xb2f   :  { %v4144_v17 = vadd.f32 %v4143_v15, %v4067_v12  ;;  %8719 = vtanh.f32 %v4140_v11  ;;  %v4210_v11 = vld [vmem:[#allocation8 + $0x110] sm:$0xff]  ;;  %v4225_v12 = vld [vmem:[#allocation8 + $0x188] sm:$0xff]  ;;  %v4224_v15 = vld [vmem:[#allocation8 + $0x180] sm:$0xff] }
 0xb30   :  { %v4145_v62 = vpop.f32.mrf.mxu1 }
 0xb31   :  { %8721 = vtanh.f32 %v4144_v17  ;;  %v4146_v26 = vadd.f32 %v4145_v62, %v4069_v19  ;;  %v4208_v17 = vld [vmem:[#allocation8 + $0x100] sm:$0xff]  ;;  %v4556_v19 = vld [vmem:[#allocation5 + $0xf8] sm:$0xff]  ;;  %v4555_v62 = vld [vmem:[#allocation5 + $0xf0] sm:$0xff] }
 0xb33   :  { %8723 = vtanh.f32 %v4146_v26  ;;  %v4554_v26 = vld [vmem:[#allocation5 + $0xe8] sm:$0xff] }
 0xb3a   :  { %v9387_v35 = vpop.eup %8717 }
 0xb3b   :  { %v4152_v28 = vrot.slane %v9387_v35, 7  ;;  %v4164_v53 = vrot.slane %v9387_v35, 1 }
 0xb3c   :  { %v8720_v33 = vpop.eup %8719 }
 0xb3d   :  { %v4165_v34 = vrot.slane %v8720_v33, 1  ;;  %v4153_v50 = vrot.slane %v8720_v33, 7 }
 0xb3e   :  { %v9389_v42 = vpop.eup %8721 }
 0xb3f   :  { %v4154_v27 = vrot.slane %v9389_v42, 7  ;;  %v4166_v46 = vrot.slane %v9389_v42, 1 }
 0xb40   :  { %v9392_v30 = vpop.eup %8723 }
 0xb41   :  { %v4167_v49 = vrot.slane %v9392_v30, 1  ;;  %v4155_v38 = vrot.slane %v9392_v30, 7  ;;  %v4158_v54 = vsel %vm105_vm3, %v4154_v27, %v4152_v28  ;;  %v4168_v58 = vsel %vm112_vm1, %v4164_v53, %v4166_v46 }
 0xb42   :  { %v4170_v24 = vsel %vm112_vm1, %v4166_v46, %v4164_v53  ;;  %v4160_v43 = vmul.f32 %v8971_v57, %v4158_v54  ;;  %v4156_v51 = vsel %vm105_vm3, %v4152_v28, %v4154_v27  ;;  %v4552_v27 = vld [vmem:[#allocation5 + $0xd8] sm:$0xff]  ;;  %v4551_v46 = vld [vmem:[#allocation5 + $0xd0] sm:$0xff]  ;;  %v4550_v28 = vld [vmem:[#allocation5 + $0xc8] sm:$0xff] }
 0xb43   :  { %v4169_v56 = vsel %vm112_vm1, %v4165_v34, %v4167_v49  ;;  %v4159_v20 = vsel %vm105_vm3, %v4155_v38, %v4153_v50  ;;  %v4171_v25 = vsel %vm112_vm1, %v4167_v49, %v4165_v34  ;;  %v4157_v23 = vsel %vm105_vm3, %v4153_v50, %v4155_v38  ;;  %v4549_v34 = vld [vmem:[#allocation5 + $0xc0] sm:$0xff]  ;;  %v4548_v49 = vld [vmem:[#allocation5 + $0xb8] sm:$0xff]  ;;  %v4546_v50 = vld [vmem:[#allocation5 + $0xa8] sm:$0xff] }
 0xb44   :  { %4493 = vmatprep.mubr.f32.mxu1 %v4169_v56  ;;  %v4161_v40 = vmul.f32 %v8971_v57, %v4159_v20  ;;  %v4175_v18 = vmul.f32 %v8957_v22, %v4171_v25  ;;  %v4174_v48 = vmul.f32 %v8957_v22, %v4170_v24  ;;  %v4544_v38 = vld [vmem:[#allocation5 + $0x98] sm:$0xff]  ;;  %v4543_v53 = vld [vmem:[#allocation5 + $0x90] sm:$0xff]  ;;  %v4542_v54 = vld [vmem:[#allocation5 + $0x88] sm:$0xff] }
 0xb45   :  { %4494 = vmatmul.mubr.f32.vlgmr.msra.gmra.mxu1 %v4168_v58  ;;  %v4540_v56 = vld [vmem:[#allocation5 + $0x78] sm:$0xff]  ;;  %v4539_v20 = vld [vmem:[#allocation5 + $0x70] sm:$0xff]  ;;  %v4538_v25 = vld [vmem:[#allocation5 + $0x68] sm:$0xff] }
 0xb46   :  { %4343 = vmatprep.mubr.f32.mxu0 %v4161_v40  ;;  %4498 = vmatprep.mubr.f32.mxu1 %v4175_v18  ;;  %v4537_v58 = vld [vmem:[#allocation5 + $0x60] sm:$0xff]  ;;  %v4536_v40 = vld [vmem:[#allocation5 + $0x58] sm:$0xff]  ;;  %v4535_v18 = vld [vmem:[#allocation5 + $0x50] sm:$0xff] }
 0xb47   :  { %4344 = vmatmul.mubr.f32.vlgmr.msra.gmra.mxu0 %v4160_v43  ;;  %v4534_v24 = vld [vmem:[#allocation5 + $0x48] sm:$0xff]  ;;  %v4533_v43 = vld [vmem:[#allocation5 + $0x40] sm:$0xff] }
 0xb48   :  { %8235 = vmatpush3.msra.mxu0 %v4223_v44  ;;  %4348 = vmatprep.mubr.f32.mxu0 %v4157_v23  ;;  %v4532_v44 = vld [vmem:[#allocation5 + $0x38] sm:$0xff] }
 0xb49   :  { %8236 = vmatprep.subr.mxu0 %v4238_v16  ;;  %4499 = vmatmul.mubr.f32.gmra.mxu1 %v4174_v48  ;;  %v4531_v16 = vld [vmem:[#allocation5 + $0x30] sm:$0xff]  ;;  %v4620_v23 = vld [vmem:[#allocation5 + $0x2f8] sm:$0xff]  ;;  %v4530_v48 = vld [vmem:[#allocation5 + $0x28] sm:$0xff] }
 0xb4a   :  { %8237 = vmatpush3.msra.mxu0 %v4222_v47  ;;  %4774 = vmatprep.mubr.f32.mxu1 %v8873_v4  ;;  %v4619_v47 = vld [vmem:[#allocation5 + $0x2f0] sm:$0xff] }
 0xb4b   :  { %8238 = vmatprep.subr.mxu0 %v4237_v14  ;;  %4349 = vmatmul.mubr.f32.gmra.mxu0 %v4156_v51  ;;  %v4618_v14 = vld [vmem:[#allocation5 + $0x2e8] sm:$0xff]  ;;  %v4617_v51 = vld [vmem:[#allocation5 + $0x2e0] sm:$0xff] }
 0xb4c   :  { %8239 = vmatpush3.msra.mxu0 %v4221_v21  ;;  %4418 = vmatprep.mubr.f32.mxu0 %v8720_v33  ;;  %v4553_v33 = vld [vmem:[#allocation5 + $0xe0] sm:$0xff] }
 0xb4d   :  { %8240 = vmatprep.subr.mxu0 %v4236_v52  ;;  %4710 = vmatprep.subr.mxu1 %v4620_v23  ;;  %v4529_v21 = vld [vmem:[#allocation5 + $0x20] sm:$0xff]  ;;  %v4616_v52 = vld [vmem:[#allocation5 + $0x2d8] sm:$0xff]  ;;  %v4563_v23 = vld [vmem:[#allocation5 + $0x130] sm:$0xff] }
 0xb4e   :  { %8241 = vmatpush3.msra.mxu0 %v4220_v55  ;;  %4711 = vmatpush1.msra.mxu1 %v4619_v47  ;;  %v4528_v55 = vld [vmem:[#allocation5 + $0x18] sm:$0xff]  ;;  %v4593_v47 = vld [vmem:[#allocation5 + $0x220] sm:$0xff] }
 0xb4f   :  { %8242 = vmatprep.subr.mxu0 %v4235_v59  ;;  %4712 = vmatprep.subr.mxu1 %v4618_v14  ;;  %v4615_v59 = vld [vmem:[#allocation5 + $0x2d0] sm:$0xff]  ;;  %v4592_v14 = vld [vmem:[#allocation5 + $0x218] sm:$0xff] }
 0xb50   :  { %8243 = vmatpush3.msra.mxu0 %v4219_v61  ;;  %v4527_v61 = vld [vmem:[#allocation5 + $0x10] sm:$0xff]  ;;  %4713 = vmatpush1.msra.mxu1 %v4617_v51 }
 0xb51   :  { %8244 = vmatprep.subr.mxu0 %v4234_v29  ;;  %v4614_v29 = vld [vmem:[#allocation5 + $0x2c8] sm:$0xff]  ;;  %4714 = vmatprep.subr.mxu1 %v4616_v52  ;;  %v4591_v51 = vld [vmem:[#allocation5 + $0x210] sm:$0xff]  ;;  %v4560_v52 = vld [vmem:[#allocation5 + $0x118] sm:$0xff] }
 0xb52   :  { %8245 = vmatpush3.msra.mxu0 %v4218_v45  ;;  %v4526_v45 = vld [vmem:[#allocation5 + $0x8] sm:$0xff]  ;;  %4715 = vmatpush1.msra.mxu1 %v4615_v59  ;;  %v4559_v59 = vld [vmem:[#allocation5 + $0x110] sm:$0xff] }
 0xb53   :  { %8246 = vmatprep.subr.mxu0 %v4233_v39  ;;  %v4613_v39 = vld [vmem:[#allocation5 + $0x2c0] sm:$0xff]  ;;  %4716 = vmatprep.subr.mxu1 %v4614_v29  ;;  %v4558_v29 = vld [vmem:[#allocation5 + $0x108] sm:$0xff] }
 0xb54   :  { %8247 = vmatpush3.msra.mxu0 %v4217_v41  ;;  %v4525_v41 = vld [vmem:[#allocation5] sm:$0xff]  ;;  %4717 = vmatpush1.msra.mxu1 %v4613_v39  ;;  %v4910_v39 = vld [vmem:[#allocation6 + $0x2f8] sm:$0xff] }
 0xb55   :  { %8248 = vmatprep.subr.mxu0 %v4232_v36  ;;  %v4612_v36 = vld [vmem:[#allocation5 + $0x2b8] sm:$0xff] }
 0xb56   :  { %8249 = vmatpush3.msra.mxu0 %v4216_v37  ;;  %v4588_v37 = vld [vmem:[#allocation5 + $0x1f8] sm:$0xff]  ;;  %4718 = vmatprep.subr.mxu1 %v4612_v36 }
 0xb57   :  { %8250 = vmatprep.subr.mxu0 %v4231_v31  ;;  %v4611_v31 = vld [vmem:[#allocation5 + $0x2b0] sm:$0xff] }
 0xb58   :  { %8251 = vmatpush3.msra.mxu0 %v4215_v32  ;;  %v4587_v32 = vld [vmem:[#allocation5 + $0x1f0] sm:$0xff]  ;;  %4719 = vmatpush1.msra.mxu1 %v4611_v31 }
 0xb59   :  { %8252 = vmatprep.subr.mxu0 %v4230_v0  ;;  %v4610_v0 = vld [vmem:[#allocation5 + $0x2a8] sm:$0xff] }
 0xb5a   :  { %8253 = vmatpush3.msra.mxu0 %v4214_v2  ;;  %v4586_v2 = vld [vmem:[#allocation5 + $0x1e8] sm:$0xff]  ;;  %4720 = vmatprep.subr.mxu1 %v4610_v0 }
 0xb5b   :  { %8254 = vmatprep.subr.mxu0 %v4229_v3  ;;  %v4609_v3 = vld [vmem:[#allocation5 + $0x2a0] sm:$0xff] }
 0xb5c   :  { %8255 = vmatpush3.msra.mxu0 %v4213_v5  ;;  %v4585_v5 = vld [vmem:[#allocation5 + $0x1e0] sm:$0xff]  ;;  %4721 = vmatpush1.msra.mxu1 %v4609_v3 }
 0xb5d   :  { %8256 = vmatprep.subr.mxu0 %v4228_v6  ;;  %v4584_v6 = vld [vmem:[#allocation5 + $0x1d8] sm:$0xff] }
 0xb5e   :  { %8257 = vmatpush3.msra.mxu0 %v4212_v7  ;;  %v4583_v7 = vld [vmem:[#allocation5 + $0x1d0] sm:$0xff] }
 0xb5f   :  { %8258 = vmatprep.subr.mxu0 %v4227_v8  ;;  %v4582_v8 = vld [vmem:[#allocation5 + $0x1c8] sm:$0xff] }
 0xb60   :  { %8259 = vmatpush3.msra.mxu0 %v4211_v9  ;;  %v4581_v9 = vld [vmem:[#allocation5 + $0x1c0] sm:$0xff] }
 0xb61   :  { %8260 = vmatprep.subr.mxu0 %v4226_v10  ;;  %v4580_v10 = vld [vmem:[#allocation5 + $0x1b8] sm:$0xff] }
 0xb62   :  { %8261 = vmatpush3.msra.mxu0 %v4210_v11  ;;  %v4579_v11 = vld [vmem:[#allocation5 + $0x1b0] sm:$0xff] }
 0xb63   :  { %8262 = vmatprep.subr.mxu0 %v4225_v12  ;;  %v4578_v12 = vld [vmem:[#allocation5 + $0x1a8] sm:$0xff] }
 0xb64   :  { %8263 = vmatpush3.msra.mxu0 %v4209_v13  ;;  %v4608_v13 = vld [vmem:[#allocation5 + $0x298] sm:$0xff] }
 0xb65   :  { %8264 = vmatprep.subr.mxu0 %v4224_v15  ;;  %v4577_v15 = vld [vmem:[#allocation5 + $0x1a0] sm:$0xff]  ;;  %4722 = vmatprep.subr.mxu1 %v4608_v13 }
 0xb66   :  { %8265 = vmatpush3.msra.mxu0 %v4208_v17  ;;  %v4607_v17 = vld [vmem:[#allocation5 + $0x290] sm:$0xff] }
 0xb67   :  { %4419 = vmatmul.mubr.f32.vlgmr.msra.gmra.mxu0 %v9387_v35  ;;  %4633 = vmatprep.subr.mxu0 %v4556_v19  ;;  %v4547_v35 = vld [vmem:[#allocation5 + $0xb0] sm:$0xff]  ;;  %v4576_v19 = vld [vmem:[#allocation5 + $0x198] sm:$0xff] }
 0xb68   :  { %4423 = vmatprep.mubr.f32.mxu0 %v9392_v30  ;;  %4634 = vmatpush1.msra.mxu0 %v4555_v62  ;;  %v4545_v30 = vld [vmem:[#allocation5 + $0xa0] sm:$0xff]  ;;  %v4606_v62 = vld [vmem:[#allocation5 + $0x288] sm:$0xff] }
 0xb69   :  { %4635 = vmatprep.subr.mxu0 %v4554_v26  ;;  %4723 = vmatpush1.msra.mxu1 %v4607_v17  ;;  %v4575_v26 = vld [vmem:[#allocation5 + $0x190] sm:$0xff] }
 0xb6a   :  { %4636 = vmatpush1.msra.mxu0 %v4553_v33  ;;  %4724 = vmatprep.subr.mxu1 %v4606_v62  ;;  %v4605_v33 = vld [vmem:[#allocation5 + $0x280] sm:$0xff] }
 0xb6b   :  { %4424 = vmatmul.mubr.f32.gmra.mxu0 %v9389_v42  ;;  %4637 = vmatprep.subr.mxu0 %v4552_v27  ;;  %v4541_v42 = vld [vmem:[#allocation5 + $0x80] sm:$0xff]  ;;  %v4574_v27 = vld [vmem:[#allocation5 + $0x188] sm:$0xff] }
 0xb6c   :  { %4638 = vmatpush1.msra.mxu0 %v4551_v46  ;;  %4725 = vmatpush1.msra.mxu1 %v4605_v33  ;;  %v4604_v46 = vld [vmem:[#allocation5 + $0x278] sm:$0xff] }
 0xb6d   :  { %4639 = vmatprep.subr.mxu0 %v4550_v28  ;;  %4726 = vmatprep.subr.mxu1 %v4604_v46  ;;  %v4573_v28 = vld [vmem:[#allocation5 + $0x180] sm:$0xff] }
 0xb6e   :  { %4640 = vmatpush1.msra.mxu0 %v4549_v34  ;;  %v4603_v34 = vld [vmem:[#allocation5 + $0x270] sm:$0xff] }
 0xb6f   :  { %4641 = vmatprep.subr.mxu0 %v4548_v49  ;;  %4727 = vmatpush1.msra.mxu1 %v4603_v34  ;;  %v4572_v49 = vld [vmem:[#allocation5 + $0x178] sm:$0xff] }
 0xb70   :  { %4642 = vmatpush1.msra.mxu0 %v4547_v35  ;;  %v4602_v35 = vld [vmem:[#allocation5 + $0x268] sm:$0xff] }
 0xb71   :  { %4643 = vmatprep.subr.mxu0 %v4546_v50  ;;  %4728 = vmatprep.subr.mxu1 %v4602_v35  ;;  %v4571_v50 = vld [vmem:[#allocation5 + $0x170] sm:$0xff] }
 0xb72   :  { %4644 = vmatpush1.msra.mxu0 %v4545_v30  ;;  %v4601_v30 = vld [vmem:[#allocation5 + $0x260] sm:$0xff] }
 0xb73   :  { %4645 = vmatprep.subr.mxu0 %v4544_v38  ;;  %4729 = vmatpush1.msra.mxu1 %v4601_v30  ;;  %v4570_v38 = vld [vmem:[#allocation5 + $0x168] sm:$0xff] }
 0xb74   :  { %4646 = vmatpush1.msra.mxu0 %v4543_v53  ;;  %v4600_v53 = vld [vmem:[#allocation5 + $0x258] sm:$0xff] }
 0xb75   :  { %4647 = vmatprep.subr.mxu0 %v4542_v54  ;;  %4730 = vmatprep.subr.mxu1 %v4600_v53  ;;  %v4569_v54 = vld [vmem:[#allocation5 + $0x160] sm:$0xff] }
 0xb76   :  { %4648 = vmatpush1.msra.mxu0 %v4541_v42  ;;  %v4599_v42 = vld [vmem:[#allocation5 + $0x250] sm:$0xff] }
 0xb77   :  { %4649 = vmatprep.subr.mxu0 %v4540_v56  ;;  %4731 = vmatpush1.msra.mxu1 %v4599_v42  ;;  %v4568_v56 = vld [vmem:[#allocation5 + $0x158] sm:$0xff] }
 0xb78   :  { %4650 = vmatpush1.msra.mxu0 %v4539_v20  ;;  %v4598_v20 = vld [vmem:[#allocation5 + $0x248] sm:$0xff] }
 0xb79   :  { %4651 = vmatprep.subr.mxu0 %v4538_v25  ;;  %4732 = vmatprep.subr.mxu1 %v4598_v20  ;;  %v4567_v25 = vld [vmem:[#allocation5 + $0x150] sm:$0xff] }
 0xb7a   :  { %4652 = vmatpush1.msra.mxu0 %v4537_v58  ;;  %v4597_v58 = vld [vmem:[#allocation5 + $0x240] sm:$0xff] }
 0xb7b   :  { %4653 = vmatprep.subr.mxu0 %v4536_v40  ;;  %4733 = vmatpush1.msra.mxu1 %v4597_v58  ;;  %v4566_v40 = vld [vmem:[#allocation5 + $0x148] sm:$0xff] }
 0xb7c   :  { %4654 = vmatpush1.msra.mxu0 %v4535_v18  ;;  %v4596_v18 = vld [vmem:[#allocation5 + $0x238] sm:$0xff] }
 0xb7d   :  { %4655 = vmatprep.subr.mxu0 %v4534_v24  ;;  %4734 = vmatprep.subr.mxu1 %v4596_v18  ;;  %v4565_v24 = vld [vmem:[#allocation5 + $0x140] sm:$0xff] }
 0xb7e   :  { %4656 = vmatpush1.msra.mxu0 %v4533_v43  ;;  %v4595_v43 = vld [vmem:[#allocation5 + $0x230] sm:$0xff] }
 0xb7f   :  { %4657 = vmatprep.subr.mxu0 %v4532_v44  ;;  %4735 = vmatpush1.msra.mxu1 %v4595_v43  ;;  %v4564_v44 = vld [vmem:[#allocation5 + $0x138] sm:$0xff] }
 0xb80   :  { %4658 = vmatpush1.msra.mxu0 %v4531_v16  ;;  %v4594_v16 = vld [vmem:[#allocation5 + $0x228] sm:$0xff] }
 0xb81   :  { %4659 = vmatprep.subr.mxu0 %v4530_v48  ;;  %4736 = vmatprep.subr.mxu1 %v4594_v16  ;;  %v4562_v48 = vld [vmem:[#allocation5 + $0x128] sm:$0xff] }
 0xb82   :  { %4660 = vmatpush1.msra.mxu0 %v4529_v21  ;;  %4737 = vmatpush1.msra.mxu1 %v4593_v47  ;;  %v4561_v21 = vld [vmem:[#allocation5 + $0x120] sm:$0xff]  ;;  %v4908_v16 = vld [vmem:[#allocation6 + $0x2e8] sm:$0xff] }
 0xb83   :  { %4661 = vmatprep.subr.mxu0 %v4528_v55  ;;  %4738 = vmatprep.subr.mxu1 %v4592_v14  ;;  %v4590_v55 = vld [vmem:[#allocation5 + $0x208] sm:$0xff]  ;;  %v4907_v47 = vld [vmem:[#allocation6 + $0x2e0] sm:$0xff]  ;;  %v4906_v14 = vld [vmem:[#allocation6 + $0x2d8] sm:$0xff] }
 0xb84   :  { %4662 = vmatpush1.msra.mxu0 %v4527_v61  ;;  %4739 = vmatpush1.msra.mxu1 %v4591_v51  ;;  %v4589_v61 = vld [vmem:[#allocation5 + $0x200] sm:$0xff]  ;;  %v4842_v51 = vld [vmem:[#allocation6 + $0xd8] sm:$0xff] }
 0xb85   :  { %4663 = vmatprep.subr.mxu0 %v4526_v45  ;;  %4740 = vmatprep.subr.mxu1 %v4590_v55  ;;  %v4557_v45 = vld [vmem:[#allocation5 + $0x100] sm:$0xff]  ;;  %v4904_v55 = vld [vmem:[#allocation6 + $0x2c8] sm:$0xff] }
 0xb86   :  { %4664 = vmatpush1.msra.mxu0 %v4525_v41  ;;  %4741 = vmatpush1.msra.mxu1 %v4589_v61  ;;  %v4846_v41 = vld [vmem:[#allocation6 + $0xf8] sm:$0xff]  ;;  %v4903_v61 = vld [vmem:[#allocation6 + $0x2c0] sm:$0xff] }
 0xb87   :  { %4665 = vmatprep.subr.mxu0 %v4588_v37  ;;  %5019 = vmatprep.subr.mxu1 %v4846_v41  ;;  %v4901_v41 = vld [vmem:[#allocation6 + $0x2b0] sm:$0xff] }
 0xb88   :  { %4666 = vmatpush2.msra.mxu0 %v4587_v32 }
 0xb89   :  { %4667 = vmatprep.subr.mxu0 %v4586_v2 }
 0xb8a   :  { %4668 = vmatpush2.msra.mxu0 %v4585_v5  ;;  %v7839_v5 = vld [vmem:[%s9792_s7] ss:$0 sm:$0xff] }
 0xb8b   :  { %4669 = vmatprep.subr.mxu0 %v4584_v6 }
 0xb8c   :  { %4670 = vmatpush2.msra.mxu0 %v4583_v7 }
 0xb8d   :  { %4671 = vmatprep.subr.mxu0 %v4582_v8 }
 0xb8e   :  { %4672 = vmatpush2.msra.mxu0 %v4581_v9 }
 0xb8f   :  { %4673 = vmatprep.subr.mxu0 %v4580_v10 }
 0xb90   :  { %4674 = vmatpush2.msra.mxu0 %v4579_v11 }
 0xb91   :  { %4675 = vmatprep.subr.mxu0 %v4578_v12 }
 0xb92   :  { %4676 = vmatpush2.msra.mxu0 %v4577_v15 }
 0xb93   :  { %4677 = vmatprep.subr.mxu0 %v4576_v19  ;;  %v4504_v19 = vstv %s7838_s28 }
 0xb94   :  { %4678 = vmatpush2.msra.mxu0 %v4575_v26 }
 0xb95   :  { %4679 = vmatprep.subr.mxu0 %v4574_v27 }
 0xb96   :  { %4680 = vmatpush2.msra.mxu0 %v4573_v28 }
 0xb97   :  { %4681 = vmatprep.subr.mxu0 %v4572_v49  ;;  %v8779_v49 = vld [vmem:[%s9793_s8 + $0x30] sm:$0xff] }
 0xb98   :  { %4682 = vmatpush2.msra.mxu0 %v4571_v50 }
 0xb99   :  { %4683 = vmatprep.subr.mxu0 %v4570_v38  ;;  %v8780_v38 = vld [vmem:[%s9793_s8 + $0x38] sm:$0xff] }
 0xb9a   :  { %4684 = vmatpush2.msra.mxu0 %v4569_v54 }
 0xb9b   :  { %4685 = vmatprep.subr.mxu0 %v4568_v56 }
 0xb9c   :  { %4686 = vmatpush2.msra.mxu0 %v4567_v25  ;;  %v4845_v25 = vld [vmem:[#allocation6 + $0xf0] sm:$0xff] }
 0xb9d   :  { %4687 = vmatprep.subr.mxu0 %v4566_v40 }
 0xb9e   :  { %4688 = vmatpush2.msra.mxu0 %v4565_v24  ;;  %v4844_v24 = vld [vmem:[#allocation6 + $0xe8] sm:$0xff] }
 0xb9f   :  { %4689 = vmatprep.subr.mxu0 %v4564_v44  ;;  %v4909_v44 = vld [vmem:[#allocation6 + $0x2f0] sm:$0xff] }
 0xba0   :  { %4690 = vmatpush2.msra.mxu0 %v4563_v23 }
 0xba1   :  { %4691 = vmatprep.subr.mxu0 %v4562_v48  ;;  %v4843_v48 = vld [vmem:[#allocation6 + $0xe0] sm:$0xff] }
 0xba2   :  { %4692 = vmatpush2.msra.mxu0 %v4561_v21  ;;  %v4905_v21 = vld [vmem:[#allocation6 + $0x2d0] sm:$0xff] }
 0xba3   :  { %4693 = vmatprep.subr.mxu0 %v4560_v52 }
 0xba4   :  { %4694 = vmatpush2.msra.mxu0 %v4559_v59  ;;  %v4841_v59 = vld [vmem:[#allocation6 + $0xd0] sm:$0xff] }
 0xba5   :  { %4695 = vmatprep.subr.mxu0 %v4558_v29  ;;  %v4840_v29 = vld [vmem:[#allocation6 + $0xc8] sm:$0xff] }
 0xba6   :  { %4696 = vmatpush2.msra.mxu0 %v4557_v45  ;;  %v4902_v45 = vld [vmem:[#allocation6 + $0x2b8] sm:$0xff] }
 0xba7   :  { %5096 = vmatprep.subr.mxu0 %v4910_v39  ;;  %v4839_v39 = vld [vmem:[#allocation6 + $0xc0] sm:$0xff] }
 0xc05   :  { %v8304_v31 = vpop.f32.mrf.mxu1 }
 0xc07   :  { %v8228_v36 = vpop.f32.mrf.mxu0  ;;  %v8305_v0 = vpop.f32.mrf.mxu1 }
 0xc08   :  { %v8306_v13 = vadd.f32 %v8305_v0, %v8304_v31  ;;  %v4837_v31 = vld [vmem:[#allocation6 + $0xb0] sm:$0xff]  ;;  %v4836_v0 = vld [vmem:[#allocation6 + $0xa8] sm:$0xff] }
 0xc09   :  { %v8229_v37 = vpop.f32.mrf.mxu0  ;;  %v8307_v7 = vpop.f32.mrf.mxu1 }
 0xc0a   :  { %v8230_v3 = vadd.f32 %v8229_v37, %v8228_v36  ;;  %v4838_v36 = vld [vmem:[#allocation6 + $0xb8] sm:$0xff]  ;;  %v4900_v37 = vld [vmem:[#allocation6 + $0x2a8] sm:$0xff] }
 0xc0b   :  { %v8231_v32 = vpop.f32.mrf.mxu0  ;;  %v8308_v17 = vpop.f32.mrf.mxu1 }
 0xc0c   :  { %v4346_v9 = vadd.f32 %v8230_v3, %v7839_v5  ;;  %v8309_v46 = vadd.f32 %v8308_v17, %v8307_v7  ;;  %v4835_v3 = vld [vmem:[#allocation6 + $0xa0] sm:$0xff]  ;;  %v4896_v7 = vld [vmem:[#allocation6 + $0x288] sm:$0xff] }
 0xc0d   :  { %v8232_v2 = vpop.f32.mrf.mxu0  ;;  %v4892_v17 = vld [vmem:[#allocation6 + $0x268] sm:$0xff] }
 0xc0e   :  { %v8233_v10 = vadd.f32 %v8232_v2, %v8231_v32  ;;  %v4899_v32 = vld [vmem:[#allocation6 + $0x2a0] sm:$0xff]  ;;  %v4898_v2 = vld [vmem:[#allocation6 + $0x298] sm:$0xff] }
 0xc10   :  { %v4351_v26 = vadd.f32 %v8233_v10, %v7839_v5  ;;  %v4897_v5 = vld [vmem:[#allocation6 + $0x290] sm:$0xff]  ;;  %v4832_v10 = vld [vmem:[#allocation6 + $0x88] sm:$0xff] }
 0xc27   :  { %v8266_v6 = vpop.f32.mrf.mxu0 }
 0xc29   :  { %v8267_v8 = vpop.f32.mrf.mxu0 }
 0xc2a   :  { %v8268_v11 = vadd.f32 %v8267_v8, %v8266_v6  ;;  %v4834_v6 = vld [vmem:[#allocation6 + $0x98] sm:$0xff]  ;;  %v4833_v8 = vld [vmem:[#allocation6 + $0x90] sm:$0xff] }
 0xc2b   :  { %v8269_v12 = vpop.f32.mrf.mxu0 }
 0xc2c   :  { %v4421_v15 = vadd.f32 %v8268_v11, %v4346_v9  ;;  %v4895_v9 = vld [vmem:[#allocation6 + $0x280] sm:$0xff]  ;;  %v4894_v11 = vld [vmem:[#allocation6 + $0x278] sm:$0xff] }
 0xc2d   :  { %v8270_v62 = vpop.f32.mrf.mxu0 }
 0xc2e   :  { %v4496_v33 = vadd.f32 %v8306_v13, %v4421_v15  ;;  %v8271_v27 = vadd.f32 %v8270_v62, %v8269_v12  ;;  %v4831_v12 = vld [vmem:[#allocation6 + $0x80] sm:$0xff]  ;;  %v4893_v13 = vld [vmem:[#allocation6 + $0x270] sm:$0xff]  ;;  %v4830_v15 = vld [vmem:[#allocation6 + $0x78] sm:$0xff] }
 0xc2f   :  { %v4891_v62 = vld [vmem:[#allocation6 + $0x260] sm:$0xff] }
 0xc30   :  { %v4505_v28 = vmul.f32 %v4504_v19, %v4496_v33  ;;  %v4426_v34 = vadd.f32 %v8271_v27, %v4351_v26  ;;  %v4828_v26 = vld [vmem:[#allocation6 + $0x68] sm:$0xff]  ;;  %v4890_v33 = vld [vmem:[#allocation6 + $0x258] sm:$0xff]  ;;  %v4827_v27 = vld [vmem:[#allocation6 + $0x60] sm:$0xff] }
 0xc32   :  { %v4507_v35 = vadd.f32 %v8779_v49, %v4505_v28  ;;  %v4501_v50 = vadd.f32 %v8309_v46, %v4426_v34  ;;  %v4889_v46 = vld [vmem:[#allocation6 + $0x250] sm:$0xff]  ;;  %v4826_v28 = vld [vmem:[#allocation6 + $0x58] sm:$0xff]  ;;  %v4888_v34 = vld [vmem:[#allocation6 + $0x248] sm:$0xff] }
 0xc33   :  { %v4825_v49 = vld [vmem:[#allocation6 + $0x50] sm:$0xff] }
 0xc34   :  { %7840 = vst [vmem:[%s9793_s8 + $0x40] sm:$0xff] %v4507_v35  ;;  %v4506_v30 = vmul.f32 %v4504_v19, %v4501_v50  ;;  %4697 = vmatprep.mubr.f32.mxu0 %v4507_v35  ;;  %v4519_v54 = vrot.slane %v4507_v35, 1  ;;  %v4513_v56 = vrot.slane %v4507_v35, 7  ;;  %v4829_v19 = vld [vmem:[#allocation6 + $0x70] sm:$0xff]  ;;  %v4887_v35 = vld [vmem:[#allocation6 + $0x240] sm:$0xff]  ;;  %v4824_v50 = vld [vmem:[#allocation6 + $0x48] sm:$0xff] }
 0xc36   :  { %v4508_v53 = vadd.f32 %v8780_v38, %v4506_v30  ;;  %v4886_v30 = vld [vmem:[#allocation6 + $0x238] sm:$0xff]  ;;  %v4823_v38 = vld [vmem:[#allocation6 + $0x40] sm:$0xff] }
 0xc38   :  { %7841 = vst [vmem:[%s9793_s8 + $0x48] sm:$0xff] %v4508_v53  ;;  %v4520_v42 = vrot.slane %v4508_v53, 1  ;;  %v4514_v20 = vrot.slane %v4508_v53, 7 }
 0xc3a   :  { %v4521_v58 = vsel %vm112_vm1, %v4519_v54, %v4520_v42  ;;  %v4516_v40 = vsel %vm105_vm3, %v4514_v20, %v4513_v56  ;;  %v4522_v18 = vsel %vm112_vm1, %v4520_v42, %v4519_v54  ;;  %v4515_v52 = vsel %vm105_vm3, %v4513_v56, %v4514_v20  ;;  %v4822_v54 = vld [vmem:[#allocation6 + $0x38] sm:$0xff]  ;;  %v4884_v42 = vld [vmem:[#allocation6 + $0x228] sm:$0xff]  ;;  %v4821_v56 = vld [vmem:[#allocation6 + $0x30] sm:$0xff] }
 0xc3b   :  { %4775 = vmatmul.mubr.f32.vlgmr.msra.gmra.mxu1 %v4521_v58  ;;  %v4517_v43 = vmul.f32 %v8971_v57, %v4516_v40  ;;  %v4524_v23 = vmul.f32 %v8957_v22, %v4522_v18  ;;  %v4883_v20 = vld [vmem:[#allocation6 + $0x220] sm:$0xff]  ;;  %v4882_v58 = vld [vmem:[#allocation6 + $0x218] sm:$0xff]  ;;  %v4881_v18 = vld [vmem:[#allocation6 + $0x210] sm:$0xff] }
 0xc3c   :  { %4780 = vmatprep.mubr.f32.mxu1 %v8873_v4  ;;  %5020 = vmatpush1.msra.mxu1 %v4845_v25  ;;  %v4820_v25 = vld [vmem:[#allocation6 + $0x28] sm:$0xff]  ;;  %v4819_v40 = vld [vmem:[#allocation6 + $0x20] sm:$0xff] }
 0xc3d   :  { %4698 = vmatmul.mubr.f32.vlgmr.msra.gmra.mxu0 %v4517_v43  ;;  %5021 = vmatprep.subr.mxu1 %v4844_v24  ;;  %v4818_v24 = vld [vmem:[#allocation6 + $0x18] sm:$0xff]  ;;  %v4880_v43 = vld [vmem:[#allocation6 + $0x208] sm:$0xff] }
 0xc3e   :  { %4703 = vmatprep.mubr.f32.mxu0 %v4508_v53  ;;  %5097 = vmatpush1.msra.mxu0 %v4909_v44  ;;  %v4885_v53 = vld [vmem:[#allocation6 + $0x230] sm:$0xff] }
 0xc3f   :  { %4781 = vmatmul.mubr.f32.gmra.mxu1 %v4524_v23  ;;  %5098 = vmatprep.subr.mxu0 %v4908_v16  ;;  %v4817_v44 = vld [vmem:[#allocation6 + $0x10] sm:$0xff]  ;;  %v4879_v16 = vld [vmem:[#allocation6 + $0x200] sm:$0xff]  ;;  %v4816_v23 = vld [vmem:[#allocation6 + $0x8] sm:$0xff] }
 0xc40   :  { %5099 = vmatpush1.msra.mxu0 %v4907_v47  ;;  %5022 = vmatpush1.msra.mxu1 %v4843_v48  ;;  %v4942_v47 = vld [vmem:[#allocation6 + $0x3f8] sm:$0xff]  ;;  %v4815_v48 = vld [vmem:[#allocation6] sm:$0xff] }
 0xc41   :  { %4704 = vmatmul.mubr.f32.gmra.mxu0 %v4515_v52  ;;  %5100 = vmatprep.subr.mxu0 %v4906_v14  ;;  %v4941_v14 = vld [vmem:[#allocation6 + $0x3f0] sm:$0xff]  ;;  %v4938_v52 = vld [vmem:[#allocation6 + $0x3d8] sm:$0xff] }
 0xc42   :  { %5101 = vmatpush1.msra.mxu0 %v4905_v21  ;;  %5023 = vmatprep.subr.mxu1 %v4842_v51  ;;  %v4940_v21 = vld [vmem:[#allocation6 + $0x3e8] sm:$0xff]  ;;  %v4939_v51 = vld [vmem:[#allocation6 + $0x3e0] sm:$0xff] }
 0xc43   :  { %5102 = vmatprep.subr.mxu0 %v4904_v55  ;;  %5024 = vmatpush1.msra.mxu1 %v4841_v59  ;;  %v4937_v55 = vld [vmem:[#allocation6 + $0x3d0] sm:$0xff]  ;;  %v4936_v59 = vld [vmem:[#allocation6 + $0x3c8] sm:$0xff] }
 0xc44   :  { %5103 = vmatpush1.msra.mxu0 %v4903_v61  ;;  %5025 = vmatprep.subr.mxu1 %v4840_v29  ;;  %v4935_v61 = vld [vmem:[#allocation6 + $0x3c0] sm:$0xff]  ;;  %v4878_v29 = vld [vmem:[#allocation6 + $0x1f8] sm:$0xff] }
 0xc45   :  { %5104 = vmatprep.subr.mxu0 %v4902_v45  ;;  %5026 = vmatpush1.msra.mxu1 %v4839_v39  ;;  %v4934_v45 = vld [vmem:[#allocation6 + $0x3b8] sm:$0xff]  ;;  %v4877_v39 = vld [vmem:[#allocation6 + $0x1f0] sm:$0xff] }
 0xc46   :  { %5105 = vmatpush1.msra.mxu0 %v4901_v41  ;;  %5027 = vmatprep.subr.mxu1 %v4838_v36  ;;  %v4933_v41 = vld [vmem:[#allocation6 + $0x3b0] sm:$0xff]  ;;  %v4876_v36 = vld [vmem:[#allocation6 + $0x1e8] sm:$0xff] }
 0xc47   :  { %5106 = vmatprep.subr.mxu0 %v4900_v37  ;;  %5028 = vmatpush1.msra.mxu1 %v4837_v31  ;;  %v4932_v37 = vld [vmem:[#allocation6 + $0x3a8] sm:$0xff]  ;;  %v4875_v31 = vld [vmem:[#allocation6 + $0x1e0] sm:$0xff] }
 0xc48   :  { %5107 = vmatpush1.msra.mxu0 %v4899_v32  ;;  %5029 = vmatprep.subr.mxu1 %v4836_v0  ;;  %v4931_v32 = vld [vmem:[#allocation6 + $0x3a0] sm:$0xff]  ;;  %v4874_v0 = vld [vmem:[#allocation6 + $0x1d8] sm:$0xff] }
 0xc49   :  { %5108 = vmatprep.subr.mxu0 %v4898_v2  ;;  %5030 = vmatpush1.msra.mxu1 %v4835_v3  ;;  %v4930_v2 = vld [vmem:[#allocation6 + $0x398] sm:$0xff]  ;;  %v4873_v3 = vld [vmem:[#allocation6 + $0x1d0] sm:$0xff] }
 0xc4a   :  { %5109 = vmatpush1.msra.mxu0 %v4897_v5  ;;  %5031 = vmatprep.subr.mxu1 %v4834_v6  ;;  %v4929_v5 = vld [vmem:[#allocation6 + $0x390] sm:$0xff]  ;;  %v4872_v6 = vld [vmem:[#allocation6 + $0x1c8] sm:$0xff] }
 0xc4b   :  { %5110 = vmatprep.subr.mxu0 %v4896_v7  ;;  %5032 = vmatpush1.msra.mxu1 %v4833_v8  ;;  %v4928_v7 = vld [vmem:[#allocation6 + $0x388] sm:$0xff]  ;;  %v4871_v8 = vld [vmem:[#allocation6 + $0x1c0] sm:$0xff] }
 0xc4c   :  { %5111 = vmatpush1.msra.mxu0 %v4895_v9  ;;  %5033 = vmatprep.subr.mxu1 %v4832_v10  ;;  %v4927_v9 = vld [vmem:[#allocation6 + $0x380] sm:$0xff]  ;;  %v4870_v10 = vld [vmem:[#allocation6 + $0x1b8] sm:$0xff] }
 0xc4d   :  { %5112 = vmatprep.subr.mxu0 %v4894_v11  ;;  %5034 = vmatpush1.msra.mxu1 %v4831_v12  ;;  %v4926_v11 = vld [vmem:[#allocation6 + $0x378] sm:$0xff]  ;;  %v4869_v12 = vld [vmem:[#allocation6 + $0x1b0] sm:$0xff] }
 0xc4e   :  { %5113 = vmatpush1.msra.mxu0 %v4893_v13  ;;  %5035 = vmatprep.subr.mxu1 %v4830_v15  ;;  %v4925_v13 = vld [vmem:[#allocation6 + $0x370] sm:$0xff]  ;;  %v4868_v15 = vld [vmem:[#allocation6 + $0x1a8] sm:$0xff] }
 0xc4f   :  { %5114 = vmatprep.subr.mxu0 %v4892_v17  ;;  %5036 = vmatpush1.msra.mxu1 %v4829_v19  ;;  %v4924_v17 = vld [vmem:[#allocation6 + $0x368] sm:$0xff]  ;;  %v4867_v19 = vld [vmem:[#allocation6 + $0x1a0] sm:$0xff] }
 0xc50   :  { %5115 = vmatpush1.msra.mxu0 %v4891_v62  ;;  %5037 = vmatprep.subr.mxu1 %v4828_v26  ;;  %v4923_v62 = vld [vmem:[#allocation6 + $0x360] sm:$0xff]  ;;  %v4866_v26 = vld [vmem:[#allocation6 + $0x198] sm:$0xff] }
 0xc51   :  { %5116 = vmatprep.subr.mxu0 %v4890_v33  ;;  %5038 = vmatpush1.msra.mxu1 %v4827_v27  ;;  %v4922_v33 = vld [vmem:[#allocation6 + $0x358] sm:$0xff]  ;;  %v4865_v27 = vld [vmem:[#allocation6 + $0x190] sm:$0xff] }
 0xc52   :  { %5117 = vmatpush1.msra.mxu0 %v4889_v46  ;;  %5039 = vmatprep.subr.mxu1 %v4826_v28  ;;  %v4921_v46 = vld [vmem:[#allocation6 + $0x350] sm:$0xff]  ;;  %v4864_v28 = vld [vmem:[#allocation6 + $0x188] sm:$0xff] }
 0xc53   :  { %5118 = vmatprep.subr.mxu0 %v4888_v34  ;;  %5040 = vmatpush1.msra.mxu1 %v4825_v49  ;;  %v4920_v34 = vld [vmem:[#allocation6 + $0x348] sm:$0xff]  ;;  %v4863_v49 = vld [vmem:[#allocation6 + $0x180] sm:$0xff] }
 0xc54   :  { %5119 = vmatpush1.msra.mxu0 %v4887_v35  ;;  %5041 = vmatprep.subr.mxu1 %v4824_v50  ;;  %v4919_v35 = vld [vmem:[#allocation6 + $0x340] sm:$0xff]  ;;  %v4862_v50 = vld [vmem:[#allocation6 + $0x178] sm:$0xff] }
 0xc55   :  { %5120 = vmatprep.subr.mxu0 %v4886_v30  ;;  %5042 = vmatpush1.msra.mxu1 %v4823_v38  ;;  %v4918_v30 = vld [vmem:[#allocation6 + $0x338] sm:$0xff]  ;;  %v4861_v38 = vld [vmem:[#allocation6 + $0x170] sm:$0xff] }
 0xc56   :  { %5121 = vmatpush1.msra.mxu0 %v4885_v53  ;;  %5043 = vmatprep.subr.mxu1 %v4822_v54  ;;  %v4917_v53 = vld [vmem:[#allocation6 + $0x330] sm:$0xff]  ;;  %v4860_v54 = vld [vmem:[#allocation6 + $0x168] sm:$0xff] }
 0xc57   :  { %5122 = vmatprep.subr.mxu0 %v4884_v42  ;;  %5044 = vmatpush1.msra.mxu1 %v4821_v56  ;;  %v4916_v42 = vld [vmem:[#allocation6 + $0x328] sm:$0xff]  ;;  %v4859_v56 = vld [vmem:[#allocation6 + $0x160] sm:$0xff] }
 0xc58   :  { %5123 = vmatpush1.msra.mxu0 %v4883_v20  ;;  %5045 = vmatprep.subr.mxu1 %v4820_v25  ;;  %v4915_v20 = vld [vmem:[#allocation6 + $0x320] sm:$0xff]  ;;  %v4858_v25 = vld [vmem:[#allocation6 + $0x158] sm:$0xff] }
 0xc59   :  { %5124 = vmatprep.subr.mxu0 %v4882_v58  ;;  %5046 = vmatpush1.msra.mxu1 %v4819_v40  ;;  %v4914_v58 = vld [vmem:[#allocation6 + $0x318] sm:$0xff]  ;;  %v4857_v40 = vld [vmem:[#allocation6 + $0x150] sm:$0xff] }
 0xc5a   :  { %5125 = vmatpush1.msra.mxu0 %v4881_v18  ;;  %5047 = vmatprep.subr.mxu1 %v4818_v24  ;;  %v4913_v18 = vld [vmem:[#allocation6 + $0x310] sm:$0xff]  ;;  %v4856_v24 = vld [vmem:[#allocation6 + $0x148] sm:$0xff] }
 0xc5b   :  { %5126 = vmatprep.subr.mxu0 %v4880_v43  ;;  %5048 = vmatpush1.msra.mxu1 %v4817_v44  ;;  %v4912_v43 = vld [vmem:[#allocation6 + $0x308] sm:$0xff]  ;;  %v4855_v44 = vld [vmem:[#allocation6 + $0x140] sm:$0xff] }
 0xc5c   :  { %5127 = vmatpush1.msra.mxu0 %v4879_v16  ;;  %5049 = vmatprep.subr.mxu1 %v4816_v23  ;;  %v4911_v16 = vld [vmem:[#allocation6 + $0x300] sm:$0xff]  ;;  %v4854_v23 = vld [vmem:[#allocation6 + $0x138] sm:$0xff] }
 0xc5d   :  { %5128 = vmatprep.subr.mxu0 %v4942_v47  ;;  %5050 = vmatpush1.msra.mxu1 %v4815_v48  ;;  %v4853_v47 = vld [vmem:[#allocation6 + $0x130] sm:$0xff]  ;;  %v4852_v48 = vld [vmem:[#allocation6 + $0x128] sm:$0xff] }
 0xc5e   :  { %5129 = vmatpush2.msra.mxu0 %v4941_v14  ;;  %5051 = vmatprep.subr.mxu1 %v4878_v29  ;;  %v4851_v14 = vld [vmem:[#allocation6 + $0x120] sm:$0xff] }
 0xc5f   :  { %5130 = vmatprep.subr.mxu0 %v4940_v21  ;;  %5052 = vmatpush2.msra.mxu1 %v4877_v39  ;;  %v4850_v21 = vld [vmem:[#allocation6 + $0x118] sm:$0xff] }
 0xc60   :  { %5131 = vmatpush2.msra.mxu0 %v4939_v51  ;;  %5053 = vmatprep.subr.mxu1 %v4876_v36  ;;  %v4849_v51 = vld [vmem:[#allocation6 + $0x110] sm:$0xff] }
 0xc61   :  { %5132 = vmatprep.subr.mxu0 %v4938_v52  ;;  %5054 = vmatpush2.msra.mxu1 %v4875_v31  ;;  %v4848_v52 = vld [vmem:[#allocation6 + $0x108] sm:$0xff] }
 0xc62   :  { %5133 = vmatpush2.msra.mxu0 %v4937_v55  ;;  %5055 = vmatprep.subr.mxu1 %v4874_v0  ;;  %v4847_v55 = vld [vmem:[#allocation6 + $0x100] sm:$0xff] }
 0xc63   :  { %5134 = vmatprep.subr.mxu0 %v4936_v59  ;;  %5056 = vmatpush2.msra.mxu1 %v4873_v3  ;;  %v4974_v59 = vld [vmem:[#allocation6 + $0x4f8] sm:$0xff] }
 0xc64   :  { %5135 = vmatpush2.msra.mxu0 %v4935_v61  ;;  %5057 = vmatprep.subr.mxu1 %v4872_v6  ;;  %v4621_v61 = vld [vmem:[%s9788_s3] sm:$0x3] }
 0xc65   :  { %5136 = vmatprep.subr.mxu0 %v4934_v45  ;;  %5058 = vmatpush2.msra.mxu1 %v4871_v8  ;;  %v4626_v29 = vrot.slane %v4621_v61, %v8980_v60  ;;  %v4630_v39 = vrot.slane %v4621_v61, %v8986_v63  ;;  %v4955_v61 = vld [vmem:[#allocation6 + $0x460] sm:$0xff] }
 0xc66   :  { %5137 = vmatpush2.msra.mxu0 %v4933_v41  ;;  %5059 = vmatprep.subr.mxu1 %v4870_v10 }
 0xc67   :  { %5138 = vmatprep.subr.mxu0 %v4932_v37  ;;  %5060 = vmatpush2.msra.mxu1 %v4869_v12 }
 0xc68   :  { %5139 = vmatpush2.msra.mxu0 %v4931_v32  ;;  %5061 = vmatprep.subr.mxu1 %v4868_v15 }
 0xc69   :  { %5140 = vmatprep.subr.mxu0 %v4930_v2  ;;  %5062 = vmatpush2.msra.mxu1 %v4867_v19 }
 0xc6a   :  { %5141 = vmatpush2.msra.mxu0 %v4929_v5  ;;  %5063 = vmatprep.subr.mxu1 %v4866_v26 }
 0xc6b   :  { %5142 = vmatprep.subr.mxu0 %v4928_v7  ;;  %5064 = vmatpush2.msra.mxu1 %v4865_v27 }
 0xc6c   :  { %5143 = vmatpush2.msra.mxu0 %v4927_v9  ;;  %5065 = vmatprep.subr.mxu1 %v4864_v28 }
 0xc6d   :  { %5144 = vmatprep.subr.mxu0 %v4926_v11  ;;  %5066 = vmatpush2.msra.mxu1 %v4863_v49 }
 0xc6e   :  { %5145 = vmatpush2.msra.mxu0 %v4925_v13  ;;  %5067 = vmatprep.subr.mxu1 %v4862_v50 }
 0xc6f   :  { %5146 = vmatprep.subr.mxu0 %v4924_v17  ;;  %5068 = vmatpush2.msra.mxu1 %v4861_v38  ;;  %v4973_v38 = vld [vmem:[#allocation6 + $0x4f0] sm:$0xff] }
 0xc70   :  { %5147 = vmatpush2.msra.mxu0 %v4923_v62  ;;  %5069 = vmatprep.subr.mxu1 %v4860_v54 }
 0xc71   :  { %5148 = vmatprep.subr.mxu0 %v4922_v33  ;;  %5070 = vmatpush2.msra.mxu1 %v4859_v56 }
 0xc72   :  { %5149 = vmatpush2.msra.mxu0 %v4921_v46  ;;  %5071 = vmatprep.subr.mxu1 %v4858_v25  ;;  %v4969_v25 = vld [vmem:[#allocation6 + $0x4d0] sm:$0xff] }
 0xc73   :  { %5150 = vmatprep.subr.mxu0 %v4920_v34  ;;  %5072 = vmatpush2.msra.mxu1 %v4857_v40 }
 0xc74   :  { %5151 = vmatpush2.msra.mxu0 %v4919_v35  ;;  %5073 = vmatprep.subr.mxu1 %v4856_v24 }
 0xc75   :  { %5152 = vmatprep.subr.mxu0 %v4918_v30  ;;  %5074 = vmatpush2.msra.mxu1 %v4855_v44  ;;  %v4966_v44 = vld [vmem:[#allocation6 + $0x4b8] sm:$0xff] }
 0xc76   :  { %5153 = vmatpush2.msra.mxu0 %v4917_v53  ;;  %5075 = vmatprep.subr.mxu1 %v4854_v23  ;;  %v4972_v53 = vld [vmem:[#allocation6 + $0x4e8] sm:$0xff] }
 0xc77   :  { %5154 = vmatprep.subr.mxu0 %v4916_v42  ;;  %5076 = vmatpush2.msra.mxu1 %v4853_v47  ;;  %v4971_v42 = vld [vmem:[#allocation6 + $0x4e0] sm:$0xff]  ;;  %v4964_v23 = vld [vmem:[#allocation6 + $0x4a8] sm:$0xff] }
 0xc78   :  { %5155 = vmatpush2.msra.mxu0 %v4915_v20  ;;  %5077 = vmatprep.subr.mxu1 %v4852_v48  ;;  %v4970_v20 = vld [vmem:[#allocation6 + $0x4d8] sm:$0xff]  ;;  %v4963_v47 = vld [vmem:[#allocation6 + $0x4a0] sm:$0xff] }
 0xc79   :  { %5156 = vmatprep.subr.mxu0 %v4914_v58  ;;  %5078 = vmatpush2.msra.mxu1 %v4851_v14  ;;  %v4962_v48 = vld [vmem:[#allocation6 + $0x498] sm:$0xff]  ;;  %v4961_v14 = vld [vmem:[#allocation6 + $0x490] sm:$0xff] }
 0xc7a   :  { %5157 = vmatpush2.msra.mxu0 %v4913_v18  ;;  %5079 = vmatprep.subr.mxu1 %v4850_v21  ;;  %v4968_v18 = vld [vmem:[#allocation6 + $0x4c8] sm:$0xff] }
 0xc7b   :  { %5158 = vmatprep.subr.mxu0 %v4912_v43  ;;  %5080 = vmatpush2.msra.mxu1 %v4849_v51  ;;  %v4967_v43 = vld [vmem:[#allocation6 + $0x4c0] sm:$0xff]  ;;  %v4960_v21 = vld [vmem:[#allocation6 + $0x488] sm:$0xff] }
 0xc7c   :  { %5159 = vmatpush2.msra.mxu0 %v4911_v16  ;;  %5081 = vmatprep.subr.mxu1 %v4848_v52  ;;  %v4965_v16 = vld [vmem:[#allocation6 + $0x4b0] sm:$0xff]  ;;  %v4959_v51 = vld [vmem:[#allocation6 + $0x480] sm:$0xff]  ;;  %v4958_v52 = vld [vmem:[#allocation6 + $0x478] sm:$0xff] }
 0xc7d   :  { %5082 = vmatpush2.msra.mxu1 %v4847_v55  ;;  %v4957_v55 = vld [vmem:[#allocation6 + $0x470] sm:$0xff] }
 0xc7e   :  { %5173 = vmatprep.subr.mxu1 %v4974_v59  ;;  %v4956_v59 = vld [vmem:[#allocation6 + $0x468] sm:$0xff] }
 0xcfb   :  { %v4776_v45 = vpop.f32.mrf.mxu1 }
 0xcfd   :  { %v4699_v41 = vpop.f32.mrf.mxu0  ;;  %v4778_v36 = vpop.f32.mrf.mxu1 }
 0xcfe   :  { %v4700_v37 = vadd.f32 %v4699_v41, %v4626_v29  ;;  %v4951_v41 = vld [vmem:[#allocation6 + $0x440] sm:$0xff] }
 0xcff   :  { %v4701_v31 = vpop.f32.mrf.mxu0  ;;  %v4782_v2 = vpop.f32.mrf.mxu1 }
 0xd00   :  { %v4702_v32 = vadd.f32 %v4701_v31, %v4630_v39  ;;  %v4777_v0 = vadd.f32 %v4776_v45, %v4700_v37  ;;  %v4953_v45 = vld [vmem:[#allocation6 + $0x450] sm:$0xff]  ;;  %v4948_v31 = vld [vmem:[#allocation6 + $0x428] sm:$0xff] }
 0xd01   :  { %v4705_v3 = vpop.f32.mrf.mxu0  ;;  %v4784_v10 = vpop.f32.mrf.mxu1  ;;  %v4949_v37 = vld [vmem:[#allocation6 + $0x430] sm:$0xff] }
 0xd02   :  { %v4779_v5 = vadd.f32 %v4778_v36, %v4702_v32  ;;  %v4706_v6 = vadd.f32 %v4705_v3, %v4626_v29  ;;  %v4954_v29 = vld [vmem:[#allocation6 + $0x458] sm:$0xff]  ;;  %v4947_v32 = vld [vmem:[#allocation6 + $0x420] sm:$0xff]  ;;  %v4944_v3 = vld [vmem:[#allocation6 + $0x408] sm:$0xff] }
 0xd03   :  { %v4707_v7 = vpop.f32.mrf.mxu0  ;;  %v4950_v36 = vld [vmem:[#allocation6 + $0x438] sm:$0xff] }
 0xd04   :  { %8725 = vtanh.f32 %v4779_v5  ;;  %v4783_v8 = vadd.f32 %v4782_v2, %v4706_v6  ;;  %v4708_v9 = vadd.f32 %v4707_v7, %v4630_v39  ;;  %v4952_v39 = vld [vmem:[#allocation6 + $0x448] sm:$0xff]  ;;  %v4945_v2 = vld [vmem:[#allocation6 + $0x410] sm:$0xff]  ;;  %v4943_v5 = vld [vmem:[#allocation6 + $0x400] sm:$0xff] }
 0xd05   :  { %8727 = vtanh.f32 %v4777_v0  ;;  %v4946_v0 = vld [vmem:[#allocation6 + $0x418] sm:$0xff]  ;;  %v5005_v7 = vld [vmem:[#allocation6 + $0x5f0] sm:$0xff] }
 0xd06   :  { %8729 = vtanh.f32 %v4783_v8  ;;  %v4785_v11 = vadd.f32 %v4784_v10, %v4708_v9  ;;  %v5006_v6 = vld [vmem:[#allocation6 + $0x5f8] sm:$0xff]  ;;  %v5004_v8 = vld [vmem:[#allocation6 + $0x5e8] sm:$0xff]  ;;  %v5003_v9 = vld [vmem:[#allocation6 + $0x5e0] sm:$0xff] }
 0xd07   :  { %v5002_v10 = vld [vmem:[#allocation6 + $0x5d8] sm:$0xff] }
 0xd08   :  { %8731 = vtanh.f32 %v4785_v11  ;;  %v5001_v11 = vld [vmem:[#allocation6 + $0x5d0] sm:$0xff] }
 0xd11   :  { %v9454_v12 = vpop.eup %8725 }
 0xd12   :  { %v8728_v13 = vpop.eup %8727  ;;  %5160 = vmatprep.mubr.f32.mxu0 %v9454_v12  ;;  %v4792_v27 = vrot.slane %v9454_v12, 7  ;;  %v4804_v58 = vrot.slane %v9454_v12, 1  ;;  %v5357_v12 = vld [vmem:[#allocation8 + $0x278] sm:$0xff] }
 0xd13   :  { %v8730_v15 = vpop.eup %8729  ;;  %5161 = vmatmul.mubr.f32.vlgmr.msra.gmra.mxu0 %v8728_v13  ;;  %v4791_v26 = vrot.slane %v8728_v13, 7  ;;  %v4803_v33 = vrot.slane %v8728_v13, 1  ;;  %v5000_v13 = vld [vmem:[#allocation6 + $0x5c8] sm:$0xff] }
 0xd14   :  { %v4793_v17 = vrot.slane %v8730_v15, 7  ;;  %v4805_v19 = vrot.slane %v8730_v15, 1 }
 0xd15   :  { %v9457_v62 = vpop.eup %8731 }
 0xd16   :  { %5166 = vmatprep.mubr.f32.mxu0 %v9457_v62  ;;  %v4794_v46 = vrot.slane %v9457_v62, 7  ;;  %v4797_v28 = vsel %vm105_vm3, %v4793_v17, %v4791_v26  ;;  %v9466_v34 = vsel %vm112_vm1, %v4803_v33, %v4805_v19  ;;  %v9470_v49 = vsel %vm112_vm1, %v4805_v19, %v4803_v33  ;;  %v4997_v19 = vld [vmem:[#allocation6 + $0x5b0] sm:$0xff]  ;;  %v4995_v33 = vld [vmem:[#allocation6 + $0x5a0] sm:$0xff] }
 0xd17   :  { %5167 = vmatmul.mubr.f32.gmra.mxu0 %v8730_v15  ;;  %v4799_v30 = vmul.f32 %v8971_v57, %v4797_v28  ;;  %v4806_v56 = vrot.slane %v9457_v62, 1  ;;  %v4795_v40 = vsel %vm105_vm3, %v4791_v26, %v4793_v17  ;;  %v4999_v15 = vld [vmem:[#allocation6 + $0x5c0] sm:$0xff]  ;;  %v4998_v17 = vld [vmem:[#allocation6 + $0x5b8] sm:$0xff]  ;;  %v4996_v26 = vld [vmem:[#allocation6 + $0x5a8] sm:$0xff] }
 0xd18   :  { %v4798_v35 = vsel %vm105_vm3, %v4794_v46, %v4792_v27  ;;  %v4796_v54 = vsel %vm105_vm3, %v4792_v27, %v4794_v46  ;;  %v4994_v27 = vld [vmem:[#allocation6 + $0x598] sm:$0xff]  ;;  %v4993_v46 = vld [vmem:[#allocation6 + $0x590] sm:$0xff]  ;;  %v4992_v28 = vld [vmem:[#allocation6 + $0x588] sm:$0xff] }
 0xd19   :  { %v4800_v50 = vmul.f32 %v8971_v57, %v4798_v35  ;;  %v4808_v24 = vsel %vm112_vm1, %v4804_v58, %v4806_v56  ;;  %v4991_v35 = vld [vmem:[#allocation6 + $0x580] sm:$0xff]  ;;  %v5293_v62 = vld [vmem:[#allocation8 + $0x78] sm:$0xff] }
 0xd1b   :  { %5083 = vmatprep.mubr.f32.mxu1 %v4800_v50  ;;  %v4990_v50 = vld [vmem:[#allocation6 + $0x578] sm:$0xff] }
 0xd1c   :  { %5084 = vmatmul.mubr.f32.vlgmr.msra.gmra.mxu1 %v4799_v30  ;;  %v4989_v30 = vld [vmem:[#allocation6 + $0x570] sm:$0xff] }
 0xd1d   :  { %5174 = vmatpush1.msra.mxu1 %v4973_v38  ;;  %5089 = vmatprep.mubr.f32.mxu1 %v4796_v54  ;;  %v4988_v38 = vld [vmem:[#allocation6 + $0x568] sm:$0xff]  ;;  %v4986_v54 = vld [vmem:[#allocation6 + $0x558] sm:$0xff] }
 0xd1e   :  { %5175 = vmatprep.subr.mxu1 %v4972_v53  ;;  %v4987_v53 = vld [vmem:[#allocation6 + $0x560] sm:$0xff] }
 0xd1f   :  { %5176 = vmatpush1.msra.mxu1 %v4971_v42  ;;  %v4985_v42 = vld [vmem:[#allocation6 + $0x550] sm:$0xff] }
 0xd20   :  { %5177 = vmatprep.subr.mxu1 %v4970_v20  ;;  %5090 = vmatmul.mubr.f32.gmra.mxu1 %v4795_v40  ;;  %v4984_v20 = vld [vmem:[#allocation6 + $0x548] sm:$0xff]  ;;  %v4982_v40 = vld [vmem:[#allocation6 + $0x538] sm:$0xff] }
 0xd21   :  { %5178 = vmatpush1.msra.mxu1 %v4969_v25  ;;  %5237 = vmatprep.mubr.f32.mxu1 %v4808_v24  ;;  %v4983_v25 = vld [vmem:[#allocation6 + $0x540] sm:$0xff]  ;;  %v4980_v24 = vld [vmem:[#allocation6 + $0x528] sm:$0xff] }
 0xd22   :  { %5179 = vmatprep.subr.mxu1 %v4968_v18  ;;  %v4981_v18 = vld [vmem:[#allocation6 + $0x530] sm:$0xff] }
 0xd23   :  { %5180 = vmatpush1.msra.mxu1 %v4967_v43  ;;  %v4979_v43 = vld [vmem:[#allocation6 + $0x520] sm:$0xff] }
 0xd24   :  { %5181 = vmatprep.subr.mxu1 %v4966_v44  ;;  %v4978_v44 = vld [vmem:[#allocation6 + $0x518] sm:$0xff] }
 0xd25   :  { %5182 = vmatpush1.msra.mxu1 %v4965_v16  ;;  %v4977_v16 = vld [vmem:[#allocation6 + $0x510] sm:$0xff] }
 0xd26   :  { %5183 = vmatprep.subr.mxu1 %v4964_v23  ;;  %v4976_v23 = vld [vmem:[#allocation6 + $0x508] sm:$0xff] }
 0xd27   :  { %5184 = vmatpush1.msra.mxu1 %v4963_v47  ;;  %v4975_v47 = vld [vmem:[#allocation6 + $0x500] sm:$0xff] }
 0xd28   :  { %5185 = vmatprep.subr.mxu1 %v4962_v48  ;;  %v4810_v48 = vsel %vm112_vm1, %v4806_v56, %v4804_v58  ;;  %v5308_v56 = vld [vmem:[#allocation8 + $0xf0] sm:$0xff] }
 0xd29   :  { %5186 = vmatpush1.msra.mxu1 %v4961_v14  ;;  %v4814_v14 = vmul.f32 %v8957_v22, %v4810_v48  ;;  %v5356_v58 = vld [vmem:[#allocation8 + $0x270] sm:$0xff] }
 0xd2a   :  { %5187 = vmatprep.subr.mxu1 %v4960_v21  ;;  %v4813_v21 = vmul.f32 %v8957_v22, %v9470_v49  ;;  %v5355_v49 = vld [vmem:[#allocation8 + $0x268] sm:$0xff]  ;;  %v5280_v48 = vld [vmem:[#allocation8 + $0x10] sm:$0xff] }
 0xd2b   :  { %5188 = vmatpush1.msra.mxu1 %v4959_v51  ;;  %v5373_v51 = vld [vmem:[#allocation8 + $0x2f8] sm:$0xff] }
 0xd2c   :  { %5189 = vmatprep.subr.mxu1 %v4958_v52  ;;  %v5309_v52 = vld [vmem:[#allocation8 + $0xf8] sm:$0xff] }
 0xd2d   :  { %5190 = vmatpush1.msra.mxu1 %v4957_v55  ;;  %8310 = vmatprep.subr.mxu0 %v5309_v52  ;;  %v5372_v55 = vld [vmem:[#allocation8 + $0x2f0] sm:$0xff]  ;;  %v5279_v52 = vld [vmem:[#allocation8 + $0x8] sm:$0xff] }
 0xd2e   :  { %5191 = vmatprep.subr.mxu1 %v4956_v59  ;;  %8311 = vmatpush3.msra.mxu0 %v5293_v62  ;;  %v5292_v59 = vld [vmem:[#allocation8 + $0x70] sm:$0xff]  ;;  %v5294_v62 = vld [vmem:[#allocation8 + $0x80] sm:$0xff] }
 0xd2f   :  { %5192 = vmatpush1.msra.mxu1 %v4955_v61  ;;  %v5371_v61 = vld [vmem:[#allocation8 + $0x2e8] sm:$0xff]  ;;  %8312 = vmatprep.subr.mxu0 %v5308_v56  ;;  %v5278_v56 = vld [vmem:[#allocation8] sm:$0xff] }
 0xd30   :  { %5193 = vmatprep.subr.mxu1 %v4954_v29  ;;  %8313 = vmatpush3.msra.mxu0 %v5292_v59  ;;  %v5291_v29 = vld [vmem:[#allocation8 + $0x68] sm:$0xff] }
 0xd31   :  { %5194 = vmatpush1.msra.mxu1 %v4953_v45  ;;  %v5370_v45 = vld [vmem:[#allocation8 + $0x2e0] sm:$0xff] }
 0xd32   :  { %5195 = vmatprep.subr.mxu1 %v4952_v39  ;;  %v5306_v39 = vld [vmem:[#allocation8 + $0xe0] sm:$0xff] }
 0xd33   :  { %5196 = vmatpush1.msra.mxu1 %v4951_v41  ;;  %v5354_v41 = vld [vmem:[#allocation8 + $0x260] sm:$0xff] }
 0xd34   :  { %5197 = vmatprep.subr.mxu1 %v4950_v36  ;;  %v5290_v36 = vld [vmem:[#allocation8 + $0x60] sm:$0xff] }
 0xd35   :  { %5198 = vmatpush1.msra.mxu1 %v4949_v37  ;;  %v5369_v37 = vld [vmem:[#allocation8 + $0x2d8] sm:$0xff] }
 0xd36   :  { %5199 = vmatprep.subr.mxu1 %v4948_v31  ;;  %v5305_v31 = vld [vmem:[#allocation8 + $0xd8] sm:$0xff] }
 0xd37   :  { %5200 = vmatpush1.msra.mxu1 %v4947_v32  ;;  %v5353_v32 = vld [vmem:[#allocation8 + $0x258] sm:$0xff] }
 0xd38   :  { %5201 = vmatprep.subr.mxu1 %v4946_v0  ;;  %v5289_v0 = vld [vmem:[#allocation8 + $0x58] sm:$0xff] }
 0xd39   :  { %5202 = vmatpush1.msra.mxu1 %v4945_v2  ;;  %v5368_v2 = vld [vmem:[#allocation8 + $0x2d0] sm:$0xff] }
 0xd3a   :  { %5203 = vmatprep.subr.mxu1 %v4944_v3  ;;  %v5304_v3 = vld [vmem:[#allocation8 + $0xd0] sm:$0xff] }
 0xd3b   :  { %5204 = vmatpush1.msra.mxu1 %v4943_v5  ;;  %v5352_v5 = vld [vmem:[#allocation8 + $0x250] sm:$0xff] }
 0xd3c   :  { %5205 = vmatprep.subr.mxu1 %v5006_v6  ;;  %v5288_v6 = vld [vmem:[#allocation8 + $0x50] sm:$0xff] }
 0xd3d   :  { %5206 = vmatpush2.msra.mxu1 %v5005_v7  ;;  %v5367_v7 = vld [vmem:[#allocation8 + $0x2c8] sm:$0xff] }
 0xd3e   :  { %5207 = vmatprep.subr.mxu1 %v5004_v8  ;;  %v5303_v8 = vld [vmem:[#allocation8 + $0xc8] sm:$0xff] }
 0xd3f   :  { %5208 = vmatpush2.msra.mxu1 %v5003_v9  ;;  %v5351_v9 = vld [vmem:[#allocation8 + $0x248] sm:$0xff] }
 0xd40   :  { %5209 = vmatprep.subr.mxu1 %v5002_v10  ;;  %v5287_v10 = vld [vmem:[#allocation8 + $0x48] sm:$0xff] }
 0xd41   :  { %5210 = vmatpush2.msra.mxu1 %v5001_v11  ;;  %v5366_v11 = vld [vmem:[#allocation8 + $0x2c0] sm:$0xff] }
 0xd42   :  { %5211 = vmatprep.subr.mxu1 %v5000_v13  ;;  %v5302_v13 = vld [vmem:[#allocation8 + $0xc0] sm:$0xff] }
 0xd43   :  { %5212 = vmatpush2.msra.mxu1 %v4999_v15  ;;  %v5350_v15 = vld [vmem:[#allocation8 + $0x240] sm:$0xff] }
 0xd44   :  { %5213 = vmatprep.subr.mxu1 %v4998_v17  ;;  %v5286_v17 = vld [vmem:[#allocation8 + $0x40] sm:$0xff] }
 0xd45   :  { %5214 = vmatpush2.msra.mxu1 %v4997_v19  ;;  %v5365_v19 = vld [vmem:[#allocation8 + $0x2b8] sm:$0xff] }
 0xd46   :  { %5215 = vmatprep.subr.mxu1 %v4996_v26  ;;  %v5301_v26 = vld [vmem:[#allocation8 + $0xb8] sm:$0xff] }
 0xd47   :  { %5216 = vmatpush2.msra.mxu1 %v4995_v33  ;;  %v5349_v33 = vld [vmem:[#allocation8 + $0x238] sm:$0xff] }
 0xd48   :  { %5217 = vmatprep.subr.mxu1 %v4994_v27  ;;  %v5285_v27 = vld [vmem:[#allocation8 + $0x38] sm:$0xff] }
 0xd49   :  { %5218 = vmatpush2.msra.mxu1 %v4993_v46  ;;  %v5364_v46 = vld [vmem:[#allocation8 + $0x2b0] sm:$0xff] }
 0xd4a   :  { %5219 = vmatprep.subr.mxu1 %v4992_v28  ;;  %v5300_v28 = vld [vmem:[#allocation8 + $0xb0] sm:$0xff] }
 0xd4b   :  { %5220 = vmatpush2.msra.mxu1 %v4991_v35  ;;  %v5348_v35 = vld [vmem:[#allocation8 + $0x230] sm:$0xff] }
 0xd4c   :  { %5221 = vmatprep.subr.mxu1 %v4990_v50  ;;  %v5284_v50 = vld [vmem:[#allocation8 + $0x30] sm:$0xff] }
 0xd4d   :  { %5222 = vmatpush2.msra.mxu1 %v4989_v30  ;;  %v5363_v30 = vld [vmem:[#allocation8 + $0x2a8] sm:$0xff] }
 0xd4e   :  { %5223 = vmatprep.subr.mxu1 %v4988_v38  ;;  %v5299_v38 = vld [vmem:[#allocation8 + $0xa8] sm:$0xff] }
 0xd4f   :  { %5224 = vmatpush2.msra.mxu1 %v4987_v53  ;;  %v5347_v53 = vld [vmem:[#allocation8 + $0x228] sm:$0xff] }
 0xd50   :  { %5225 = vmatprep.subr.mxu1 %v4986_v54  ;;  %v5283_v54 = vld [vmem:[#allocation8 + $0x28] sm:$0xff] }
 0xd51   :  { %5226 = vmatpush2.msra.mxu1 %v4985_v42  ;;  %v5362_v42 = vld [vmem:[#allocation8 + $0x2a0] sm:$0xff] }
 0xd52   :  { %5227 = vmatprep.subr.mxu1 %v4984_v20  ;;  %v5298_v20 = vld [vmem:[#allocation8 + $0xa0] sm:$0xff] }
 0xd53   :  { %5228 = vmatpush2.msra.mxu1 %v4983_v25  ;;  %v5346_v25 = vld [vmem:[#allocation8 + $0x220] sm:$0xff] }
 0xd54   :  { %5229 = vmatprep.subr.mxu1 %v4982_v40  ;;  %v5282_v40 = vld [vmem:[#allocation8 + $0x20] sm:$0xff] }
 0xd55   :  { %5230 = vmatpush2.msra.mxu1 %v4981_v18  ;;  %v5361_v18 = vld [vmem:[#allocation8 + $0x298] sm:$0xff] }
 0xd56   :  { %5231 = vmatprep.subr.mxu1 %v4980_v24  ;;  %v5297_v24 = vld [vmem:[#allocation8 + $0x98] sm:$0xff] }
 0xd57   :  { %5232 = vmatpush2.msra.mxu1 %v4979_v43  ;;  %v5345_v43 = vld [vmem:[#allocation8 + $0x218] sm:$0xff] }
 0xd58   :  { %5233 = vmatprep.subr.mxu1 %v4978_v44  ;;  %v5281_v44 = vld [vmem:[#allocation8 + $0x18] sm:$0xff] }
 0xd59   :  { %5234 = vmatpush2.msra.mxu1 %v4977_v16  ;;  %v5360_v16 = vld [vmem:[#allocation8 + $0x290] sm:$0xff] }
 0xd5a   :  { %5235 = vmatprep.subr.mxu1 %v4976_v23  ;;  %v5296_v23 = vld [vmem:[#allocation8 + $0x90] sm:$0xff] }
 0xd5b   :  { %5236 = vmatpush2.msra.mxu1 %v4975_v47  ;;  %v5344_v47 = vld [vmem:[#allocation8 + $0x210] sm:$0xff] }
 0xd5c   :  { %5238 = vmatmul.mubr.f32.vlgmr.msra.gmra.mxu1 %v9466_v34  ;;  %8386 = vmatprep.subr.mxu1 %v5373_v51  ;;  %v5307_v34 = vld [vmem:[#allocation8 + $0xe8] sm:$0xff] }
 0xd5d   :  { %5243 = vmatprep.mubr.f32.mxu1 %v4814_v14  ;;  %8387 = vmatpush3.msra.mxu1 %v5357_v12  ;;  %v5359_v14 = vld [vmem:[#allocation8 + $0x288] sm:$0xff]  ;;  %v5358_v12 = vld [vmem:[#allocation8 + $0x280] sm:$0xff] }
 0xd5e   :  { %8388 = vmatprep.subr.mxu1 %v5372_v55  ;;  %8314 = vmatprep.subr.mxu0 %v5307_v34  ;;  %v5343_v51 = vld [vmem:[#allocation8 + $0x208] sm:$0xff]  ;;  %v5342_v55 = vld [vmem:[#allocation8 + $0x200] sm:$0xff] }
 0xd5f   :  { %8389 = vmatpush3.msra.mxu1 %v5356_v58  ;;  %8315 = vmatpush3.msra.mxu0 %v5291_v29  ;;  %v5341_v58 = vld [vmem:[#allocation8 + $0x1f8] sm:$0xff] }
 0xd60   :  { %5244 = vmatmul.mubr.f32.gmra.mxu1 %v4813_v21  ;;  %8390 = vmatprep.subr.mxu1 %v5371_v61  ;;  %v5295_v21 = vld [vmem:[#allocation8 + $0x88] sm:$0xff]  ;;  %v5007_v61 = vld [vmem:[%s9790_s5] sm:$0x3] }
 0xd61   :  { %8391 = vmatpush3.msra.mxu1 %v5355_v49  ;;  %8316 = vmatprep.subr.mxu0 %v5306_v39  ;;  %v5012_v49 = vrot.slane %v5007_v61, %v8980_v60 }
 0xd62   :  { %8392 = vmatprep.subr.mxu1 %v5370_v45  ;;  %8317 = vmatpush3.msra.mxu0 %v5290_v36  ;;  %v5016_v45 = vrot.slane %v5007_v61, %v8986_v63  ;;  %v5321_v61 = vld [vmem:[#allocation8 + $0x158] sm:$0xff] }
 0xd63   :  { %8393 = vmatpush3.msra.mxu1 %v5354_v41  ;;  %8318 = vmatprep.subr.mxu0 %v5305_v31 }
 0xd64   :  { %8394 = vmatprep.subr.mxu1 %v5369_v37  ;;  %8319 = vmatpush3.msra.mxu0 %v5289_v0 }
 0xd65   :  { %8395 = vmatpush3.msra.mxu1 %v5353_v32  ;;  %8320 = vmatprep.subr.mxu0 %v5304_v3 }
 0xd66   :  { %8396 = vmatprep.subr.mxu1 %v5368_v2  ;;  %8321 = vmatpush3.msra.mxu0 %v5288_v6 }
 0xd67   :  { %8397 = vmatpush3.msra.mxu1 %v5352_v5  ;;  %8322 = vmatprep.subr.mxu0 %v5303_v8 }
 0xd68   :  { %8398 = vmatprep.subr.mxu1 %v5367_v7  ;;  %8323 = vmatpush3.msra.mxu0 %v5287_v10 }
 0xd69   :  { %8399 = vmatpush3.msra.mxu1 %v5351_v9  ;;  %8324 = vmatprep.subr.mxu0 %v5302_v13 }
 0xd6a   :  { %8400 = vmatprep.subr.mxu1 %v5366_v11  ;;  %8325 = vmatpush3.msra.mxu0 %v5286_v17 }
 0xd6b   :  { %8401 = vmatpush3.msra.mxu1 %v5350_v15  ;;  %8326 = vmatprep.subr.mxu0 %v5301_v26 }
 0xd6c   :  { %8402 = vmatprep.subr.mxu1 %v5365_v19  ;;  %8327 = vmatpush3.msra.mxu0 %v5285_v27 }
 0xd6d   :  { %8403 = vmatpush3.msra.mxu1 %v5349_v33  ;;  %8328 = vmatprep.subr.mxu0 %v5300_v28 }
 0xd6e   :  { %8404 = vmatprep.subr.mxu1 %v5364_v46  ;;  %8329 = vmatpush3.msra.mxu0 %v5284_v50 }
 0xd6f   :  { %8405 = vmatpush3.msra.mxu1 %v5348_v35  ;;  %8330 = vmatprep.subr.mxu0 %v5299_v38 }
 0xd70   :  { %8406 = vmatprep.subr.mxu1 %v5363_v30  ;;  %8331 = vmatpush3.msra.mxu0 %v5283_v54 }
 0xd71   :  { %8407 = vmatpush3.msra.mxu1 %v5347_v53  ;;  %8332 = vmatprep.subr.mxu0 %v5298_v20 }
 0xd72   :  { %8408 = vmatprep.subr.mxu1 %v5362_v42  ;;  %8333 = vmatpush3.msra.mxu0 %v5282_v40 }
 0xd73   :  { %8409 = vmatpush3.msra.mxu1 %v5346_v25  ;;  %8334 = vmatprep.subr.mxu0 %v5297_v24 }
 0xd74   :  { %8410 = vmatprep.subr.mxu1 %v5361_v18  ;;  %8335 = vmatpush3.msra.mxu0 %v5281_v44 }
 0xd75   :  { %8411 = vmatpush3.msra.mxu1 %v5345_v43  ;;  %8336 = vmatprep.subr.mxu0 %v5296_v23 }
 0xd76   :  { %8412 = vmatprep.subr.mxu1 %v5360_v16  ;;  %8337 = vmatpush3.msra.mxu0 %v5280_v48  ;;  %v5325_v48 = vld [vmem:[#allocation8 + $0x178] sm:$0xff] }
 0xd77   :  { %8413 = vmatpush3.msra.mxu1 %v5344_v47  ;;  %8338 = vmatprep.subr.mxu0 %v5295_v21 }
 0xd78   :  { %8414 = vmatprep.subr.mxu1 %v5359_v14  ;;  %8339 = vmatpush3.msra.mxu0 %v5279_v52  ;;  %v5340_v14 = vld [vmem:[#allocation8 + $0x1f0] sm:$0xff] }
 0xd79   :  { %8415 = vmatpush3.msra.mxu1 %v5343_v51  ;;  %8340 = vmatprep.subr.mxu0 %v5294_v62  ;;  %v5324_v51 = vld [vmem:[#allocation8 + $0x170] sm:$0xff]  ;;  %v5323_v62 = vld [vmem:[#allocation8 + $0x168] sm:$0xff] }
 0xd7a   :  { %8416 = vmatprep.subr.mxu1 %v5358_v12  ;;  %8341 = vmatpush3.msra.mxu0 %v5278_v56  ;;  %v5339_v12 = vld [vmem:[#allocation8 + $0x1e8] sm:$0xff]  ;;  %v5338_v56 = vld [vmem:[#allocation8 + $0x1e0] sm:$0xff] }
 0xd7b   :  { %8417 = vmatpush3.msra.mxu1 %v5342_v55  ;;  %8348 = vmatprep.subr.mxu0 %v5341_v58  ;;  %v5322_v58 = vld [vmem:[#allocation8 + $0x160] sm:$0xff] }
 0xdd3   :  { %v5162_v29 = vpop.f32.mrf.mxu0 }
 0xdd5   :  { %v5164_v36 = vpop.f32.mrf.mxu0 }
 0xdd7   :  { %v5168_v2 = vpop.f32.mrf.mxu0 }
 0xdd9   :  { %v5170_v11 = vpop.f32.mrf.mxu0 }
 0xddc   :  { %v5085_v59 = vpop.f32.mrf.mxu1 }
 0xddd   :  { %v5086_v41 = vadd.f32 %v5085_v59, %v5012_v49  ;;  %v5337_v59 = vld [vmem:[#allocation8 + $0x1d8] sm:$0xff] }
 0xdde   :  { %v5087_v34 = vpop.f32.mrf.mxu1 }
 0xddf   :  { %v5088_v37 = vadd.f32 %v5087_v34, %v5016_v45  ;;  %v5163_v0 = vadd.f32 %v5162_v29, %v5086_v41  ;;  %v5336_v34 = vld [vmem:[#allocation8 + $0x1d0] sm:$0xff]  ;;  %v5335_v29 = vld [vmem:[#allocation8 + $0x1c8] sm:$0xff]  ;;  %v5318_v41 = vld [vmem:[#allocation8 + $0x140] sm:$0xff] }
 0xde0   :  { %v5091_v39 = vpop.f32.mrf.mxu1 }
 0xde1   :  { %v5092_v32 = vadd.f32 %v5091_v39, %v5012_v49  ;;  %v5165_v7 = vadd.f32 %v5164_v36, %v5088_v37  ;;  %v5320_v49 = vld [vmem:[#allocation8 + $0x150] sm:$0xff]  ;;  %v5334_v39 = vld [vmem:[#allocation8 + $0x1c0] sm:$0xff]  ;;  %v5333_v36 = vld [vmem:[#allocation8 + $0x1b8] sm:$0xff] }
 0xde2   :  { %v5093_v31 = vpop.f32.mrf.mxu1  ;;  %v5317_v37 = vld [vmem:[#allocation8 + $0x138] sm:$0xff] }
 0xde3   :  { %v5094_v5 = vadd.f32 %v5093_v31, %v5016_v45  ;;  %v5169_v10 = vadd.f32 %v5168_v2, %v5092_v32  ;;  %v5319_v45 = vld [vmem:[#allocation8 + $0x148] sm:$0xff]  ;;  %v5332_v31 = vld [vmem:[#allocation8 + $0x1b0] sm:$0xff] }
 0xde4   :  { %v5316_v32 = vld [vmem:[#allocation8 + $0x130] sm:$0xff]  ;;  %v5315_v2 = vld [vmem:[#allocation8 + $0x128] sm:$0xff] }
 0xde5   :  { %v5171_v17 = vadd.f32 %v5170_v11, %v5094_v5  ;;  %v5314_v5 = vld [vmem:[#allocation8 + $0x120] sm:$0xff]  ;;  %v5311_v11 = vld [vmem:[#allocation8 + $0x108] sm:$0xff] }
 0xe1c   :  { %v5239_v3 = vpop.f32.mrf.mxu1 }
 0xe1d   :  { %v5240_v6 = vadd.f32 %v5239_v3, %v5163_v0  ;;  %v5331_v0 = vld [vmem:[#allocation8 + $0x1a8] sm:$0xff]  ;;  %v5330_v3 = vld [vmem:[#allocation8 + $0x1a0] sm:$0xff] }
 0xe1e   :  { %v5241_v8 = vpop.f32.mrf.mxu1 }
 0xe1f   :  { %v5242_v9 = vadd.f32 %v5241_v8, %v5165_v7  ;;  %8733 = vtanh.f32 %v5240_v6  ;;  %v5329_v6 = vld [vmem:[#allocation8 + $0x198] sm:$0xff]  ;;  %v5328_v8 = vld [vmem:[#allocation8 + $0x190] sm:$0xff] }
 0xe20   :  { %v5245_v13 = vpop.f32.mrf.mxu1  ;;  %v5313_v7 = vld [vmem:[#allocation8 + $0x118] sm:$0xff] }
 0xe21   :  { %v5246_v15 = vadd.f32 %v5245_v13, %v5169_v10  ;;  %8735 = vtanh.f32 %v5242_v9  ;;  %v5312_v9 = vld [vmem:[#allocation8 + $0x110] sm:$0xff]  ;;  %v5327_v10 = vld [vmem:[#allocation8 + $0x188] sm:$0xff]  ;;  %v5326_v13 = vld [vmem:[#allocation8 + $0x180] sm:$0xff] }
 0xe22   :  { %v5247_v19 = vpop.f32.mrf.mxu1 }
 0xe23   :  { %8737 = vtanh.f32 %v5246_v15  ;;  %v5248_v26 = vadd.f32 %v5247_v19, %v5171_v17  ;;  %v5310_v15 = vld [vmem:[#allocation8 + $0x100] sm:$0xff]  ;;  %v5658_v17 = vld [vmem:[#allocation5 + $0xf8] sm:$0xff]  ;;  %v5657_v19 = vld [vmem:[#allocation5 + $0xf0] sm:$0xff] }
 0xe25   :  { %8739 = vtanh.f32 %v5248_v26  ;;  %v5656_v26 = vld [vmem:[#allocation5 + $0xe8] sm:$0xff] }
 0xe2c   :  { %v9503_v33 = vpop.eup %8733 }
 0xe2d   :  { %v5254_v30 = vrot.slane %v9503_v33, 7  ;;  %v5266_v20 = vrot.slane %v9503_v33, 1 }
 0xe2e   :  { %v8736_v27 = vpop.eup %8735 }
 0xe2f   :  { %v5267_v38 = vrot.slane %v8736_v27, 1  ;;  %v5255_v54 = vrot.slane %v8736_v27, 7 }
 0xe30   :  { %v9505_v46 = vpop.eup %8737 }
 0xe31   :  { %v5256_v28 = vrot.slane %v9505_v46, 7  ;;  %v5268_v50 = vrot.slane %v9505_v46, 1 }
 0xe32   :  { %v9508_v35 = vpop.eup %8739 }
 0xe33   :  { %v5269_v53 = vrot.slane %v9508_v35, 1  ;;  %v5257_v42 = vrot.slane %v9508_v35, 7  ;;  %v5260_v25 = vsel %vm105_vm3, %v5256_v28, %v5254_v30  ;;  %v5270_v43 = vsel %vm112_vm1, %v5266_v20, %v5268_v50 }
 0xe34   :  { %v5272_v23 = vsel %vm112_vm1, %v5268_v50, %v5266_v20  ;;  %v5262_v47 = vmul.f32 %v8971_v57, %v5260_v25  ;;  %v5258_v55 = vsel %vm105_vm3, %v5254_v30, %v5256_v28  ;;  %v5654_v28 = vld [vmem:[#allocation5 + $0xd8] sm:$0xff]  ;;  %v5653_v50 = vld [vmem:[#allocation5 + $0xd0] sm:$0xff]  ;;  %v5652_v30 = vld [vmem:[#allocation5 + $0xc8] sm:$0xff] }
 0xe35   :  { %v5271_v40 = vsel %vm112_vm1, %v5267_v38, %v5269_v53  ;;  %v5261_v18 = vsel %vm105_vm3, %v5257_v42, %v5255_v54  ;;  %v5273_v24 = vsel %vm112_vm1, %v5269_v53, %v5267_v38  ;;  %v5259_v21 = vsel %vm105_vm3, %v5255_v54, %v5257_v42  ;;  %v5651_v38 = vld [vmem:[#allocation5 + $0xc0] sm:$0xff]  ;;  %v5650_v53 = vld [vmem:[#allocation5 + $0xb8] sm:$0xff]  ;;  %v5648_v54 = vld [vmem:[#allocation5 + $0xa8] sm:$0xff] }
 0xe36   :  { %5595 = vmatprep.mubr.f32.mxu1 %v5271_v40  ;;  %v5263_v44 = vmul.f32 %v8971_v57, %v5261_v18  ;;  %v5277_v16 = vmul.f32 %v8957_v22, %v5273_v24  ;;  %v5276_v52 = vmul.f32 %v8957_v22, %v5272_v23  ;;  %v5646_v42 = vld [vmem:[#allocation5 + $0x98] sm:$0xff]  ;;  %v5645_v20 = vld [vmem:[#allocation5 + $0x90] sm:$0xff]  ;;  %v5644_v25 = vld [vmem:[#allocation5 + $0x88] sm:$0xff] }
 0xe37   :  { %5596 = vmatmul.mubr.f32.vlgmr.msra.gmra.mxu1 %v5270_v43  ;;  %v5642_v40 = vld [vmem:[#allocation5 + $0x78] sm:$0xff]  ;;  %v5641_v18 = vld [vmem:[#allocation5 + $0x70] sm:$0xff]  ;;  %v5640_v24 = vld [vmem:[#allocation5 + $0x68] sm:$0xff] }
 0xe38   :  { %5445 = vmatprep.mubr.f32.mxu0 %v5263_v44  ;;  %5600 = vmatprep.mubr.f32.mxu1 %v5277_v16  ;;  %v5639_v43 = vld [vmem:[#allocation5 + $0x60] sm:$0xff]  ;;  %v5638_v44 = vld [vmem:[#allocation5 + $0x58] sm:$0xff]  ;;  %v5637_v16 = vld [vmem:[#allocation5 + $0x50] sm:$0xff] }
 0xe39   :  { %5446 = vmatmul.mubr.f32.vlgmr.msra.gmra.mxu0 %v5262_v47  ;;  %v5636_v23 = vld [vmem:[#allocation5 + $0x48] sm:$0xff]  ;;  %v5635_v47 = vld [vmem:[#allocation5 + $0x40] sm:$0xff] }
 0xe3a   :  { %8349 = vmatpush3.msra.mxu0 %v5325_v48  ;;  %5450 = vmatprep.mubr.f32.mxu0 %v5259_v21  ;;  %v5634_v48 = vld [vmem:[#allocation5 + $0x38] sm:$0xff] }
 0xe3b   :  { %8350 = vmatprep.subr.mxu0 %v5340_v14  ;;  %5601 = vmatmul.mubr.f32.gmra.mxu1 %v5276_v52  ;;  %v5633_v14 = vld [vmem:[#allocation5 + $0x30] sm:$0xff]  ;;  %v5722_v21 = vld [vmem:[#allocation5 + $0x2f8] sm:$0xff]  ;;  %v5632_v52 = vld [vmem:[#allocation5 + $0x28] sm:$0xff] }
 0xe3c   :  { %8351 = vmatpush3.msra.mxu0 %v5324_v51  ;;  %5876 = vmatprep.mubr.f32.mxu1 %v8873_v4  ;;  %v5721_v51 = vld [vmem:[#allocation5 + $0x2f0] sm:$0xff] }
 0xe3d   :  { %8352 = vmatprep.subr.mxu0 %v5339_v12  ;;  %5451 = vmatmul.mubr.f32.gmra.mxu0 %v5258_v55  ;;  %v5720_v12 = vld [vmem:[#allocation5 + $0x2e8] sm:$0xff]  ;;  %v5719_v55 = vld [vmem:[#allocation5 + $0x2e0] sm:$0xff] }
 0xe3e   :  { %8353 = vmatpush3.msra.mxu0 %v5323_v62  ;;  %5520 = vmatprep.mubr.f32.mxu0 %v8736_v27  ;;  %v5655_v27 = vld [vmem:[#allocation5 + $0xe0] sm:$0xff] }
 0xe3f   :  { %8354 = vmatprep.subr.mxu0 %v5338_v56  ;;  %5812 = vmatprep.subr.mxu1 %v5722_v21  ;;  %v5631_v62 = vld [vmem:[#allocation5 + $0x20] sm:$0xff]  ;;  %v5718_v56 = vld [vmem:[#allocation5 + $0x2d8] sm:$0xff]  ;;  %v5665_v21 = vld [vmem:[#allocation5 + $0x130] sm:$0xff] }
 0xe40   :  { %8355 = vmatpush3.msra.mxu0 %v5322_v58  ;;  %5813 = vmatpush1.msra.mxu1 %v5721_v51  ;;  %v5630_v58 = vld [vmem:[#allocation5 + $0x18] sm:$0xff]  ;;  %v5695_v51 = vld [vmem:[#allocation5 + $0x220] sm:$0xff] }
 0xe41   :  { %8356 = vmatprep.subr.mxu0 %v5337_v59  ;;  %5814 = vmatprep.subr.mxu1 %v5720_v12  ;;  %v5717_v59 = vld [vmem:[#allocation5 + $0x2d0] sm:$0xff]  ;;  %v5694_v12 = vld [vmem:[#allocation5 + $0x218] sm:$0xff] }
 0xe42   :  { %8357 = vmatpush3.msra.mxu0 %v5321_v61  ;;  %v5629_v61 = vld [vmem:[#allocation5 + $0x10] sm:$0xff]  ;;  %5815 = vmatpush1.msra.mxu1 %v5719_v55 }
 0xe43   :  { %8358 = vmatprep.subr.mxu0 %v5336_v34  ;;  %v5716_v34 = vld [vmem:[#allocation5 + $0x2c8] sm:$0xff]  ;;  %5816 = vmatprep.subr.mxu1 %v5718_v56  ;;  %v5693_v55 = vld [vmem:[#allocation5 + $0x210] sm:$0xff]  ;;  %v5662_v56 = vld [vmem:[#allocation5 + $0x118] sm:$0xff] }
 0xe44   :  { %8359 = vmatpush3.msra.mxu0 %v5320_v49  ;;  %v5628_v49 = vld [vmem:[#allocation5 + $0x8] sm:$0xff]  ;;  %5817 = vmatpush1.msra.mxu1 %v5717_v59  ;;  %v5661_v59 = vld [vmem:[#allocation5 + $0x110] sm:$0xff] }
 0xe45   :  { %8360 = vmatprep.subr.mxu0 %v5335_v29  ;;  %v5715_v29 = vld [vmem:[#allocation5 + $0x2c0] sm:$0xff]  ;;  %5818 = vmatprep.subr.mxu1 %v5716_v34  ;;  %v5660_v34 = vld [vmem:[#allocation5 + $0x108] sm:$0xff] }
 0xe46   :  { %8361 = vmatpush3.msra.mxu0 %v5319_v45  ;;  %v5627_v45 = vld [vmem:[#allocation5] sm:$0xff]  ;;  %5819 = vmatpush1.msra.mxu1 %v5715_v29  ;;  %v6012_v29 = vld [vmem:[#allocation6 + $0x2f8] sm:$0xff] }
 0xe47   :  { %8362 = vmatprep.subr.mxu0 %v5334_v39  ;;  %v5714_v39 = vld [vmem:[#allocation5 + $0x2b8] sm:$0xff] }
 0xe48   :  { %8363 = vmatpush3.msra.mxu0 %v5318_v41  ;;  %v5690_v41 = vld [vmem:[#allocation5 + $0x1f8] sm:$0xff]  ;;  %5820 = vmatprep.subr.mxu1 %v5714_v39 }
 0xe49   :  { %8364 = vmatprep.subr.mxu0 %v5333_v36  ;;  %v5713_v36 = vld [vmem:[#allocation5 + $0x2b0] sm:$0xff] }
 0xe4a   :  { %8365 = vmatpush3.msra.mxu0 %v5317_v37  ;;  %v5689_v37 = vld [vmem:[#allocation5 + $0x1f0] sm:$0xff]  ;;  %5821 = vmatpush1.msra.mxu1 %v5713_v36 }
 0xe4b   :  { %8366 = vmatprep.subr.mxu0 %v5332_v31  ;;  %v5712_v31 = vld [vmem:[#allocation5 + $0x2a8] sm:$0xff] }
 0xe4c   :  { %8367 = vmatpush3.msra.mxu0 %v5316_v32  ;;  %v5688_v32 = vld [vmem:[#allocation5 + $0x1e8] sm:$0xff]  ;;  %5822 = vmatprep.subr.mxu1 %v5712_v31 }
 0xe4d   :  { %8368 = vmatprep.subr.mxu0 %v5331_v0  ;;  %v5711_v0 = vld [vmem:[#allocation5 + $0x2a0] sm:$0xff] }
 0xe4e   :  { %8369 = vmatpush3.msra.mxu0 %v5315_v2  ;;  %v5687_v2 = vld [vmem:[#allocation5 + $0x1e0] sm:$0xff]  ;;  %5823 = vmatpush1.msra.mxu1 %v5711_v0 }
 0xe4f   :  { %8370 = vmatprep.subr.mxu0 %v5330_v3  ;;  %v5686_v3 = vld [vmem:[#allocation5 + $0x1d8] sm:$0xff] }
 0xe50   :  { %8371 = vmatpush3.msra.mxu0 %v5314_v5  ;;  %v5685_v5 = vld [vmem:[#allocation5 + $0x1d0] sm:$0xff] }
 0xe51   :  { %8372 = vmatprep.subr.mxu0 %v5329_v6  ;;  %v5684_v6 = vld [vmem:[#allocation5 + $0x1c8] sm:$0xff] }
 0xe52   :  { %8373 = vmatpush3.msra.mxu0 %v5313_v7  ;;  %v5683_v7 = vld [vmem:[#allocation5 + $0x1c0] sm:$0xff] }
 0xe53   :  { %8374 = vmatprep.subr.mxu0 %v5328_v8  ;;  %v5682_v8 = vld [vmem:[#allocation5 + $0x1b8] sm:$0xff] }
 0xe54   :  { %8375 = vmatpush3.msra.mxu0 %v5312_v9  ;;  %v5681_v9 = vld [vmem:[#allocation5 + $0x1b0] sm:$0xff] }
 0xe55   :  { %8376 = vmatprep.subr.mxu0 %v5327_v10  ;;  %v5680_v10 = vld [vmem:[#allocation5 + $0x1a8] sm:$0xff] }
 0xe56   :  { %8377 = vmatpush3.msra.mxu0 %v5311_v11  ;;  %v5710_v11 = vld [vmem:[#allocation5 + $0x298] sm:$0xff] }
 0xe57   :  { %8378 = vmatprep.subr.mxu0 %v5326_v13  ;;  %v5679_v13 = vld [vmem:[#allocation5 + $0x1a0] sm:$0xff]  ;;  %5824 = vmatprep.subr.mxu1 %v5710_v11 }
 0xe58   :  { %8379 = vmatpush3.msra.mxu0 %v5310_v15  ;;  %v5709_v15 = vld [vmem:[#allocation5 + $0x290] sm:$0xff] }
 0xe59   :  { %5521 = vmatmul.mubr.f32.vlgmr.msra.gmra.mxu0 %v9503_v33  ;;  %5735 = vmatprep.subr.mxu0 %v5658_v17  ;;  %v5649_v33 = vld [vmem:[#allocation5 + $0xb0] sm:$0xff]  ;;  %v5678_v17 = vld [vmem:[#allocation5 + $0x198] sm:$0xff] }
 0xe5a   :  { %5525 = vmatprep.mubr.f32.mxu0 %v9508_v35  ;;  %5736 = vmatpush1.msra.mxu0 %v5657_v19  ;;  %v5647_v35 = vld [vmem:[#allocation5 + $0xa0] sm:$0xff]  ;;  %v5708_v19 = vld [vmem:[#allocation5 + $0x288] sm:$0xff] }
 0xe5b   :  { %5737 = vmatprep.subr.mxu0 %v5656_v26  ;;  %5825 = vmatpush1.msra.mxu1 %v5709_v15  ;;  %v5677_v26 = vld [vmem:[#allocation5 + $0x190] sm:$0xff] }
 0xe5c   :  { %5738 = vmatpush1.msra.mxu0 %v5655_v27  ;;  %5826 = vmatprep.subr.mxu1 %v5708_v19  ;;  %v5707_v27 = vld [vmem:[#allocation5 + $0x280] sm:$0xff] }
 0xe5d   :  { %5526 = vmatmul.mubr.f32.gmra.mxu0 %v9505_v46  ;;  %5739 = vmatprep.subr.mxu0 %v5654_v28  ;;  %v5643_v46 = vld [vmem:[#allocation5 + $0x80] sm:$0xff]  ;;  %v5676_v28 = vld [vmem:[#allocation5 + $0x188] sm:$0xff] }
 0xe5e   :  { %5740 = vmatpush1.msra.mxu0 %v5653_v50  ;;  %5827 = vmatpush1.msra.mxu1 %v5707_v27  ;;  %v5706_v50 = vld [vmem:[#allocation5 + $0x278] sm:$0xff] }
 0xe5f   :  { %5741 = vmatprep.subr.mxu0 %v5652_v30  ;;  %5828 = vmatprep.subr.mxu1 %v5706_v50  ;;  %v5675_v30 = vld [vmem:[#allocation5 + $0x180] sm:$0xff] }
 0xe60   :  { %5742 = vmatpush1.msra.mxu0 %v5651_v38  ;;  %v5705_v38 = vld [vmem:[#allocation5 + $0x270] sm:$0xff] }
 0xe61   :  { %5743 = vmatprep.subr.mxu0 %v5650_v53  ;;  %5829 = vmatpush1.msra.mxu1 %v5705_v38  ;;  %v5674_v53 = vld [vmem:[#allocation5 + $0x178] sm:$0xff] }
 0xe62   :  { %5744 = vmatpush1.msra.mxu0 %v5649_v33  ;;  %v5704_v33 = vld [vmem:[#allocation5 + $0x268] sm:$0xff] }
 0xe63   :  { %5745 = vmatprep.subr.mxu0 %v5648_v54  ;;  %5830 = vmatprep.subr.mxu1 %v5704_v33  ;;  %v5673_v54 = vld [vmem:[#allocation5 + $0x170] sm:$0xff] }
 0xe64   :  { %5746 = vmatpush1.msra.mxu0 %v5647_v35  ;;  %v5703_v35 = vld [vmem:[#allocation5 + $0x260] sm:$0xff] }
 0xe65   :  { %5747 = vmatprep.subr.mxu0 %v5646_v42  ;;  %5831 = vmatpush1.msra.mxu1 %v5703_v35  ;;  %v5672_v42 = vld [vmem:[#allocation5 + $0x168] sm:$0xff] }
 0xe66   :  { %5748 = vmatpush1.msra.mxu0 %v5645_v20  ;;  %v5702_v20 = vld [vmem:[#allocation5 + $0x258] sm:$0xff] }
 0xe67   :  { %5749 = vmatprep.subr.mxu0 %v5644_v25  ;;  %5832 = vmatprep.subr.mxu1 %v5702_v20  ;;  %v5671_v25 = vld [vmem:[#allocation5 + $0x160] sm:$0xff] }
 0xe68   :  { %5750 = vmatpush1.msra.mxu0 %v5643_v46  ;;  %v5701_v46 = vld [vmem:[#allocation5 + $0x250] sm:$0xff] }
 0xe69   :  { %5751 = vmatprep.subr.mxu0 %v5642_v40  ;;  %5833 = vmatpush1.msra.mxu1 %v5701_v46  ;;  %v5670_v40 = vld [vmem:[#allocation5 + $0x158] sm:$0xff] }
 0xe6a   :  { %5752 = vmatpush1.msra.mxu0 %v5641_v18  ;;  %v5700_v18 = vld [vmem:[#allocation5 + $0x248] sm:$0xff] }
 0xe6b   :  { %5753 = vmatprep.subr.mxu0 %v5640_v24  ;;  %5834 = vmatprep.subr.mxu1 %v5700_v18  ;;  %v5669_v24 = vld [vmem:[#allocation5 + $0x150] sm:$0xff] }
 0xe6c   :  { %5754 = vmatpush1.msra.mxu0 %v5639_v43  ;;  %v5699_v43 = vld [vmem:[#allocation5 + $0x240] sm:$0xff] }
 0xe6d   :  { %5755 = vmatprep.subr.mxu0 %v5638_v44  ;;  %5835 = vmatpush1.msra.mxu1 %v5699_v43  ;;  %v5668_v44 = vld [vmem:[#allocation5 + $0x148] sm:$0xff] }
 0xe6e   :  { %5756 = vmatpush1.msra.mxu0 %v5637_v16  ;;  %v5698_v16 = vld [vmem:[#allocation5 + $0x238] sm:$0xff] }
 0xe6f   :  { %5757 = vmatprep.subr.mxu0 %v5636_v23  ;;  %5836 = vmatprep.subr.mxu1 %v5698_v16  ;;  %v5667_v23 = vld [vmem:[#allocation5 + $0x140] sm:$0xff] }
 0xe70   :  { %5758 = vmatpush1.msra.mxu0 %v5635_v47  ;;  %v5697_v47 = vld [vmem:[#allocation5 + $0x230] sm:$0xff] }
 0xe71   :  { %5759 = vmatprep.subr.mxu0 %v5634_v48  ;;  %5837 = vmatpush1.msra.mxu1 %v5697_v47  ;;  %v5666_v48 = vld [vmem:[#allocation5 + $0x138] sm:$0xff] }
 0xe72   :  { %5760 = vmatpush1.msra.mxu0 %v5633_v14  ;;  %v5696_v14 = vld [vmem:[#allocation5 + $0x228] sm:$0xff] }
 0xe73   :  { %5761 = vmatprep.subr.mxu0 %v5632_v52  ;;  %5838 = vmatprep.subr.mxu1 %v5696_v14  ;;  %v5664_v52 = vld [vmem:[#allocation5 + $0x128] sm:$0xff] }
 0xe74   :  { %5762 = vmatpush1.msra.mxu0 %v5631_v62  ;;  %5839 = vmatpush1.msra.mxu1 %v5695_v51  ;;  %v5663_v62 = vld [vmem:[#allocation5 + $0x120] sm:$0xff]  ;;  %v6010_v14 = vld [vmem:[#allocation6 + $0x2e8] sm:$0xff] }
 0xe75   :  { %5763 = vmatprep.subr.mxu0 %v5630_v58  ;;  %5840 = vmatprep.subr.mxu1 %v5694_v12  ;;  %v5692_v58 = vld [vmem:[#allocation5 + $0x208] sm:$0xff]  ;;  %v6009_v51 = vld [vmem:[#allocation6 + $0x2e0] sm:$0xff]  ;;  %v6008_v12 = vld [vmem:[#allocation6 + $0x2d8] sm:$0xff] }
 0xe76   :  { %5764 = vmatpush1.msra.mxu0 %v5629_v61  ;;  %5841 = vmatpush1.msra.mxu1 %v5693_v55  ;;  %v5691_v61 = vld [vmem:[#allocation5 + $0x200] sm:$0xff]  ;;  %v5944_v55 = vld [vmem:[#allocation6 + $0xd8] sm:$0xff] }
 0xe77   :  { %5765 = vmatprep.subr.mxu0 %v5628_v49  ;;  %5842 = vmatprep.subr.mxu1 %v5692_v58  ;;  %v5659_v49 = vld [vmem:[#allocation5 + $0x100] sm:$0xff]  ;;  %v6006_v58 = vld [vmem:[#allocation6 + $0x2c8] sm:$0xff] }
 0xe78   :  { %5766 = vmatpush1.msra.mxu0 %v5627_v45  ;;  %5843 = vmatpush1.msra.mxu1 %v5691_v61  ;;  %v5948_v45 = vld [vmem:[#allocation6 + $0xf8] sm:$0xff]  ;;  %v6005_v61 = vld [vmem:[#allocation6 + $0x2c0] sm:$0xff] }
 0xe79   :  { %5767 = vmatprep.subr.mxu0 %v5690_v41  ;;  %6121 = vmatprep.subr.mxu1 %v5948_v45  ;;  %v6003_v45 = vld [vmem:[#allocation6 + $0x2b0] sm:$0xff] }
 0xe7a   :  { %5768 = vmatpush2.msra.mxu0 %v5689_v37 }
 0xe7b   :  { %5769 = vmatprep.subr.mxu0 %v5688_v32 }
 0xe7c   :  { %5770 = vmatpush2.msra.mxu0 %v5687_v2  ;;  %v7843_v2 = vld [vmem:[%s9792_s7] ss:$0 sm:$0xff] }
 0xe7d   :  { %5771 = vmatprep.subr.mxu0 %v5686_v3 }
 0xe7e   :  { %5772 = vmatpush2.msra.mxu0 %v5685_v5 }
 0xe7f   :  { %5773 = vmatprep.subr.mxu0 %v5684_v6 }
 0xe80   :  { %5774 = vmatpush2.msra.mxu0 %v5683_v7 }
 0xe81   :  { %5775 = vmatprep.subr.mxu0 %v5682_v8 }
 0xe82   :  { %5776 = vmatpush2.msra.mxu0 %v5681_v9 }
 0xe83   :  { %5777 = vmatprep.subr.mxu0 %v5680_v10 }
 0xe84   :  { %5778 = vmatpush2.msra.mxu0 %v5679_v13 }
 0xe85   :  { %5779 = vmatprep.subr.mxu0 %v5678_v17  ;;  %v5606_v17 = vstv %s7842_s19 }
 0xe86   :  { %5780 = vmatpush2.msra.mxu0 %v5677_v26 }
 0xe87   :  { %5781 = vmatprep.subr.mxu0 %v5676_v28 }
 0xe88   :  { %5782 = vmatpush2.msra.mxu0 %v5675_v30 }
 0xe89   :  { %5783 = vmatprep.subr.mxu0 %v5674_v53  ;;  %v8781_v53 = vld [vmem:[%s9793_s8 + $0x40] sm:$0xff] }
 0xe8a   :  { %5784 = vmatpush2.msra.mxu0 %v5673_v54 }
 0xe8b   :  { %5785 = vmatprep.subr.mxu0 %v5672_v42  ;;  %v8782_v42 = vld [vmem:[%s9793_s8 + $0x48] sm:$0xff] }
 0xe8c   :  { %5786 = vmatpush2.msra.mxu0 %v5671_v25 }
 0xe8d   :  { %5787 = vmatprep.subr.mxu0 %v5670_v40 }
 0xe8e   :  { %5788 = vmatpush2.msra.mxu0 %v5669_v24  ;;  %v5947_v24 = vld [vmem:[#allocation6 + $0xf0] sm:$0xff] }
 0xe8f   :  { %5789 = vmatprep.subr.mxu0 %v5668_v44 }
 0xe90   :  { %5790 = vmatpush2.msra.mxu0 %v5667_v23  ;;  %v5946_v23 = vld [vmem:[#allocation6 + $0xe8] sm:$0xff] }
 0xe91   :  { %5791 = vmatprep.subr.mxu0 %v5666_v48  ;;  %v6011_v48 = vld [vmem:[#allocation6 + $0x2f0] sm:$0xff] }
 0xe92   :  { %5792 = vmatpush2.msra.mxu0 %v5665_v21 }
 0xe93   :  { %5793 = vmatprep.subr.mxu0 %v5664_v52  ;;  %v5945_v52 = vld [vmem:[#allocation6 + $0xe0] sm:$0xff] }
 0xe94   :  { %5794 = vmatpush2.msra.mxu0 %v5663_v62  ;;  %v6007_v62 = vld [vmem:[#allocation6 + $0x2d0] sm:$0xff] }
 0xe95   :  { %5795 = vmatprep.subr.mxu0 %v5662_v56 }
 0xe96   :  { %5796 = vmatpush2.msra.mxu0 %v5661_v59  ;;  %v5943_v59 = vld [vmem:[#allocation6 + $0xd0] sm:$0xff] }
 0xe97   :  { %5797 = vmatprep.subr.mxu0 %v5660_v34  ;;  %v5942_v34 = vld [vmem:[#allocation6 + $0xc8] sm:$0xff] }
 0xe98   :  { %5798 = vmatpush2.msra.mxu0 %v5659_v49  ;;  %v6004_v49 = vld [vmem:[#allocation6 + $0x2b8] sm:$0xff] }
 0xe99   :  { %6198 = vmatprep.subr.mxu0 %v6012_v29  ;;  %v5941_v29 = vld [vmem:[#allocation6 + $0xc0] sm:$0xff] }
 0xef7   :  { %v8418_v36 = vpop.f32.mrf.mxu1 }
 0xef9   :  { %v8342_v39 = vpop.f32.mrf.mxu0  ;;  %v8419_v31 = vpop.f32.mrf.mxu1 }
 0xefa   :  { %v8420_v11 = vadd.f32 %v8419_v31, %v8418_v36  ;;  %v5939_v36 = vld [vmem:[#allocation6 + $0xb0] sm:$0xff]  ;;  %v5938_v31 = vld [vmem:[#allocation6 + $0xa8] sm:$0xff] }
 0xefb   :  { %v8343_v41 = vpop.f32.mrf.mxu0  ;;  %v8421_v5 = vpop.f32.mrf.mxu1 }
 0xefc   :  { %v8344_v0 = vadd.f32 %v8343_v41, %v8342_v39  ;;  %v5940_v39 = vld [vmem:[#allocation6 + $0xb8] sm:$0xff]  ;;  %v6002_v41 = vld [vmem:[#allocation6 + $0x2a8] sm:$0xff] }
 0xefd   :  { %v8345_v37 = vpop.f32.mrf.mxu0  ;;  %v8422_v15 = vpop.f32.mrf.mxu1 }
 0xefe   :  { %v5448_v7 = vadd.f32 %v8344_v0, %v7843_v2  ;;  %v8423_v50 = vadd.f32 %v8422_v15, %v8421_v5  ;;  %v5937_v0 = vld [vmem:[#allocation6 + $0xa0] sm:$0xff]  ;;  %v5998_v5 = vld [vmem:[#allocation6 + $0x288] sm:$0xff] }
 0xeff   :  { %v8346_v32 = vpop.f32.mrf.mxu0  ;;  %v5994_v15 = vld [vmem:[#allocation6 + $0x268] sm:$0xff] }
 0xf00   :  { %v8347_v8 = vadd.f32 %v8346_v32, %v8345_v37  ;;  %v6001_v37 = vld [vmem:[#allocation6 + $0x2a0] sm:$0xff]  ;;  %v6000_v32 = vld [vmem:[#allocation6 + $0x298] sm:$0xff] }
 0xf02   :  { %v5453_v26 = vadd.f32 %v8347_v8, %v7843_v2  ;;  %v5999_v2 = vld [vmem:[#allocation6 + $0x290] sm:$0xff]  ;;  %v5934_v8 = vld [vmem:[#allocation6 + $0x88] sm:$0xff] }
 0xf19   :  { %v8380_v3 = vpop.f32.mrf.mxu0 }
 0xf1b   :  { %v8381_v6 = vpop.f32.mrf.mxu0 }
 0xf1c   :  { %v8382_v9 = vadd.f32 %v8381_v6, %v8380_v3  ;;  %v5936_v3 = vld [vmem:[#allocation6 + $0x98] sm:$0xff]  ;;  %v5935_v6 = vld [vmem:[#allocation6 + $0x90] sm:$0xff] }
 0xf1d   :  { %v8383_v10 = vpop.f32.mrf.mxu0 }
 0xf1e   :  { %v5523_v13 = vadd.f32 %v8382_v9, %v5448_v7  ;;  %v5997_v7 = vld [vmem:[#allocation6 + $0x280] sm:$0xff]  ;;  %v5996_v9 = vld [vmem:[#allocation6 + $0x278] sm:$0xff] }
 0xf1f   :  { %v8384_v19 = vpop.f32.mrf.mxu0 }
 0xf20   :  { %v5598_v27 = vadd.f32 %v8420_v11, %v5523_v13  ;;  %v8385_v28 = vadd.f32 %v8384_v19, %v8383_v10  ;;  %v5933_v10 = vld [vmem:[#allocation6 + $0x80] sm:$0xff]  ;;  %v5995_v11 = vld [vmem:[#allocation6 + $0x270] sm:$0xff]  ;;  %v5932_v13 = vld [vmem:[#allocation6 + $0x78] sm:$0xff] }
 0xf21   :  { %v5993_v19 = vld [vmem:[#allocation6 + $0x260] sm:$0xff] }
 0xf22   :  { %v5607_v30 = vmul.f32 %v5606_v17, %v5598_v27  ;;  %v5528_v38 = vadd.f32 %v8385_v28, %v5453_v26  ;;  %v5930_v26 = vld [vmem:[#allocation6 + $0x68] sm:$0xff]  ;;  %v5992_v27 = vld [vmem:[#allocation6 + $0x258] sm:$0xff]  ;;  %v5929_v28 = vld [vmem:[#allocation6 + $0x60] sm:$0xff] }
 0xf24   :  { %v5609_v33 = vadd.f32 %v8781_v53, %v5607_v30  ;;  %v5603_v54 = vadd.f32 %v8423_v50, %v5528_v38  ;;  %v5991_v50 = vld [vmem:[#allocation6 + $0x250] sm:$0xff]  ;;  %v5928_v30 = vld [vmem:[#allocation6 + $0x58] sm:$0xff]  ;;  %v5990_v38 = vld [vmem:[#allocation6 + $0x248] sm:$0xff] }
 0xf25   :  { %v5927_v53 = vld [vmem:[#allocation6 + $0x50] sm:$0xff] }
 0xf26   :  { %7844 = vst [vmem:[%s9793_s8 + $0x50] sm:$0xff] %v5609_v33  ;;  %v5608_v35 = vmul.f32 %v5606_v17, %v5603_v54  ;;  %5799 = vmatprep.mubr.f32.mxu0 %v5609_v33  ;;  %v5621_v25 = vrot.slane %v5609_v33, 1  ;;  %v5615_v40 = vrot.slane %v5609_v33, 7  ;;  %v5931_v17 = vld [vmem:[#allocation6 + $0x70] sm:$0xff]  ;;  %v5989_v33 = vld [vmem:[#allocation6 + $0x240] sm:$0xff]  ;;  %v5926_v54 = vld [vmem:[#allocation6 + $0x48] sm:$0xff] }
 0xf28   :  { %v5610_v20 = vadd.f32 %v8782_v42, %v5608_v35  ;;  %v5988_v35 = vld [vmem:[#allocation6 + $0x238] sm:$0xff]  ;;  %v5925_v42 = vld [vmem:[#allocation6 + $0x40] sm:$0xff] }
 0xf2a   :  { %7845 = vst [vmem:[%s9793_s8 + $0x58] sm:$0xff] %v5610_v20  ;;  %v5622_v46 = vrot.slane %v5610_v20, 1  ;;  %v5616_v18 = vrot.slane %v5610_v20, 7 }
 0xf2c   :  { %v5623_v43 = vsel %vm112_vm1, %v5621_v25, %v5622_v46  ;;  %v5618_v44 = vsel %vm105_vm3, %v5616_v18, %v5615_v40  ;;  %v5624_v16 = vsel %vm112_vm1, %v5622_v46, %v5621_v25  ;;  %v5617_v56 = vsel %vm105_vm3, %v5615_v40, %v5616_v18  ;;  %v5924_v25 = vld [vmem:[#allocation6 + $0x38] sm:$0xff]  ;;  %v5986_v46 = vld [vmem:[#allocation6 + $0x228] sm:$0xff]  ;;  %v5923_v40 = vld [vmem:[#allocation6 + $0x30] sm:$0xff] }
 0xf2d   :  { %5877 = vmatmul.mubr.f32.vlgmr.msra.gmra.mxu1 %v5623_v43  ;;  %v5619_v47 = vmul.f32 %v8971_v57, %v5618_v44  ;;  %v5626_v21 = vmul.f32 %v8957_v22, %v5624_v16  ;;  %v5985_v18 = vld [vmem:[#allocation6 + $0x220] sm:$0xff]  ;;  %v5984_v43 = vld [vmem:[#allocation6 + $0x218] sm:$0xff]  ;;  %v5983_v16 = vld [vmem:[#allocation6 + $0x210] sm:$0xff] }
 0xf2e   :  { %5882 = vmatprep.mubr.f32.mxu1 %v8873_v4  ;;  %6122 = vmatpush1.msra.mxu1 %v5947_v24  ;;  %v5922_v24 = vld [vmem:[#allocation6 + $0x28] sm:$0xff]  ;;  %v5921_v44 = vld [vmem:[#allocation6 + $0x20] sm:$0xff] }
 0xf2f   :  { %5800 = vmatmul.mubr.f32.vlgmr.msra.gmra.mxu0 %v5619_v47  ;;  %6123 = vmatprep.subr.mxu1 %v5946_v23  ;;  %v5920_v23 = vld [vmem:[#allocation6 + $0x18] sm:$0xff]  ;;  %v5982_v47 = vld [vmem:[#allocation6 + $0x208] sm:$0xff] }
 0xf30   :  { %5805 = vmatprep.mubr.f32.mxu0 %v5610_v20  ;;  %6199 = vmatpush1.msra.mxu0 %v6011_v48  ;;  %v5987_v20 = vld [vmem:[#allocation6 + $0x230] sm:$0xff] }
 0xf31   :  { %5883 = vmatmul.mubr.f32.gmra.mxu1 %v5626_v21  ;;  %6200 = vmatprep.subr.mxu0 %v6010_v14  ;;  %v5919_v48 = vld [vmem:[#allocation6 + $0x10] sm:$0xff]  ;;  %v5981_v14 = vld [vmem:[#allocation6 + $0x200] sm:$0xff]  ;;  %v5918_v21 = vld [vmem:[#allocation6 + $0x8] sm:$0xff] }
 0xf32   :  { %6201 = vmatpush1.msra.mxu0 %v6009_v51  ;;  %6124 = vmatpush1.msra.mxu1 %v5945_v52  ;;  %v6044_v51 = vld [vmem:[#allocation6 + $0x3f8] sm:$0xff]  ;;  %v5917_v52 = vld [vmem:[#allocation6] sm:$0xff] }
 0xf33   :  { %5806 = vmatmul.mubr.f32.gmra.mxu0 %v5617_v56  ;;  %6202 = vmatprep.subr.mxu0 %v6008_v12  ;;  %v6043_v12 = vld [vmem:[#allocation6 + $0x3f0] sm:$0xff]  ;;  %v6040_v56 = vld [vmem:[#allocation6 + $0x3d8] sm:$0xff] }
 0xf34   :  { %6203 = vmatpush1.msra.mxu0 %v6007_v62  ;;  %6125 = vmatprep.subr.mxu1 %v5944_v55  ;;  %v6042_v62 = vld [vmem:[#allocation6 + $0x3e8] sm:$0xff]  ;;  %v6041_v55 = vld [vmem:[#allocation6 + $0x3e0] sm:$0xff] }
 0xf35   :  { %6204 = vmatprep.subr.mxu0 %v6006_v58  ;;  %6126 = vmatpush1.msra.mxu1 %v5943_v59  ;;  %v6039_v58 = vld [vmem:[#allocation6 + $0x3d0] sm:$0xff]  ;;  %v6038_v59 = vld [vmem:[#allocation6 + $0x3c8] sm:$0xff] }
 0xf36   :  { %6205 = vmatpush1.msra.mxu0 %v6005_v61  ;;  %6127 = vmatprep.subr.mxu1 %v5942_v34  ;;  %v6037_v61 = vld [vmem:[#allocation6 + $0x3c0] sm:$0xff]  ;;  %v5980_v34 = vld [vmem:[#allocation6 + $0x1f8] sm:$0xff] }
 0xf37   :  { %6206 = vmatprep.subr.mxu0 %v6004_v49  ;;  %6128 = vmatpush1.msra.mxu1 %v5941_v29  ;;  %v6036_v49 = vld [vmem:[#allocation6 + $0x3b8] sm:$0xff]  ;;  %v5979_v29 = vld [vmem:[#allocation6 + $0x1f0] sm:$0xff] }
 0xf38   :  { %6207 = vmatpush1.msra.mxu0 %v6003_v45  ;;  %6129 = vmatprep.subr.mxu1 %v5940_v39  ;;  %v6035_v45 = vld [vmem:[#allocation6 + $0x3b0] sm:$0xff]  ;;  %v5978_v39 = vld [vmem:[#allocation6 + $0x1e8] sm:$0xff] }
 0xf39   :  { %6208 = vmatprep.subr.mxu0 %v6002_v41  ;;  %6130 = vmatpush1.msra.mxu1 %v5939_v36  ;;  %v6034_v41 = vld [vmem:[#allocation6 + $0x3a8] sm:$0xff]  ;;  %v5977_v36 = vld [vmem:[#allocation6 + $0x1e0] sm:$0xff] }
 0xf3a   :  { %6209 = vmatpush1.msra.mxu0 %v6001_v37  ;;  %6131 = vmatprep.subr.mxu1 %v5938_v31  ;;  %v6033_v37 = vld [vmem:[#allocation6 + $0x3a0] sm:$0xff]  ;;  %v5976_v31 = vld [vmem:[#allocation6 + $0x1d8] sm:$0xff] }
 0xf3b   :  { %6210 = vmatprep.subr.mxu0 %v6000_v32  ;;  %6132 = vmatpush1.msra.mxu1 %v5937_v0  ;;  %v6032_v32 = vld [vmem:[#allocation6 + $0x398] sm:$0xff]  ;;  %v5975_v0 = vld [vmem:[#allocation6 + $0x1d0] sm:$0xff] }
 0xf3c   :  { %6211 = vmatpush1.msra.mxu0 %v5999_v2  ;;  %6133 = vmatprep.subr.mxu1 %v5936_v3  ;;  %v6031_v2 = vld [vmem:[#allocation6 + $0x390] sm:$0xff]  ;;  %v5974_v3 = vld [vmem:[#allocation6 + $0x1c8] sm:$0xff] }
 0xf3d   :  { %6212 = vmatprep.subr.mxu0 %v5998_v5  ;;  %6134 = vmatpush1.msra.mxu1 %v5935_v6  ;;  %v6030_v5 = vld [vmem:[#allocation6 + $0x388] sm:$0xff]  ;;  %v5973_v6 = vld [vmem:[#allocation6 + $0x1c0] sm:$0xff] }
 0xf3e   :  { %6213 = vmatpush1.msra.mxu0 %v5997_v7  ;;  %6135 = vmatprep.subr.mxu1 %v5934_v8  ;;  %v6029_v7 = vld [vmem:[#allocation6 + $0x380] sm:$0xff]  ;;  %v5972_v8 = vld [vmem:[#allocation6 + $0x1b8] sm:$0xff] }
 0xf3f   :  { %6214 = vmatprep.subr.mxu0 %v5996_v9  ;;  %6136 = vmatpush1.msra.mxu1 %v5933_v10  ;;  %v6028_v9 = vld [vmem:[#allocation6 + $0x378] sm:$0xff]  ;;  %v5971_v10 = vld [vmem:[#allocation6 + $0x1b0] sm:$0xff] }
 0xf40   :  { %6215 = vmatpush1.msra.mxu0 %v5995_v11  ;;  %6137 = vmatprep.subr.mxu1 %v5932_v13  ;;  %v6027_v11 = vld [vmem:[#allocation6 + $0x370] sm:$0xff]  ;;  %v5970_v13 = vld [vmem:[#allocation6 + $0x1a8] sm:$0xff] }
 0xf41   :  { %6216 = vmatprep.subr.mxu0 %v5994_v15  ;;  %6138 = vmatpush1.msra.mxu1 %v5931_v17  ;;  %v6026_v15 = vld [vmem:[#allocation6 + $0x368] sm:$0xff]  ;;  %v5969_v17 = vld [vmem:[#allocation6 + $0x1a0] sm:$0xff] }
 0xf42   :  { %6217 = vmatpush1.msra.mxu0 %v5993_v19  ;;  %6139 = vmatprep.subr.mxu1 %v5930_v26  ;;  %v6025_v19 = vld [vmem:[#allocation6 + $0x360] sm:$0xff]  ;;  %v5968_v26 = vld [vmem:[#allocation6 + $0x198] sm:$0xff] }
 0xf43   :  { %6218 = vmatprep.subr.mxu0 %v5992_v27  ;;  %6140 = vmatpush1.msra.mxu1 %v5929_v28  ;;  %v6024_v27 = vld [vmem:[#allocation6 + $0x358] sm:$0xff]  ;;  %v5967_v28 = vld [vmem:[#allocation6 + $0x190] sm:$0xff] }
 0xf44   :  { %6219 = vmatpush1.msra.mxu0 %v5991_v50  ;;  %6141 = vmatprep.subr.mxu1 %v5928_v30  ;;  %v6023_v50 = vld [vmem:[#allocation6 + $0x350] sm:$0xff]  ;;  %v5966_v30 = vld [vmem:[#allocation6 + $0x188] sm:$0xff] }
 0xf45   :  { %6220 = vmatprep.subr.mxu0 %v5990_v38  ;;  %6142 = vmatpush1.msra.mxu1 %v5927_v53  ;;  %v6022_v38 = vld [vmem:[#allocation6 + $0x348] sm:$0xff]  ;;  %v5965_v53 = vld [vmem:[#allocation6 + $0x180] sm:$0xff] }
 0xf46   :  { %6221 = vmatpush1.msra.mxu0 %v5989_v33  ;;  %6143 = vmatprep.subr.mxu1 %v5926_v54  ;;  %v6021_v33 = vld [vmem:[#allocation6 + $0x340] sm:$0xff]  ;;  %v5964_v54 = vld [vmem:[#allocation6 + $0x178] sm:$0xff] }
 0xf47   :  { %6222 = vmatprep.subr.mxu0 %v5988_v35  ;;  %6144 = vmatpush1.msra.mxu1 %v5925_v42  ;;  %v6020_v35 = vld [vmem:[#allocation6 + $0x338] sm:$0xff]  ;;  %v5963_v42 = vld [vmem:[#allocation6 + $0x170] sm:$0xff] }
 0xf48   :  { %6223 = vmatpush1.msra.mxu0 %v5987_v20  ;;  %6145 = vmatprep.subr.mxu1 %v5924_v25  ;;  %v6019_v20 = vld [vmem:[#allocation6 + $0x330] sm:$0xff]  ;;  %v5962_v25 = vld [vmem:[#allocation6 + $0x168] sm:$0xff] }
 0xf49   :  { %6224 = vmatprep.subr.mxu0 %v5986_v46  ;;  %6146 = vmatpush1.msra.mxu1 %v5923_v40  ;;  %v6018_v46 = vld [vmem:[#allocation6 + $0x328] sm:$0xff]  ;;  %v5961_v40 = vld [vmem:[#allocation6 + $0x160] sm:$0xff] }
 0xf4a   :  { %6225 = vmatpush1.msra.mxu0 %v5985_v18  ;;  %6147 = vmatprep.subr.mxu1 %v5922_v24  ;;  %v6017_v18 = vld [vmem:[#allocation6 + $0x320] sm:$0xff]  ;;  %v5960_v24 = vld [vmem:[#allocation6 + $0x158] sm:$0xff] }
 0xf4b   :  { %6226 = vmatprep.subr.mxu0 %v5984_v43  ;;  %6148 = vmatpush1.msra.mxu1 %v5921_v44  ;;  %v6016_v43 = vld [vmem:[#allocation6 + $0x318] sm:$0xff]  ;;  %v5959_v44 = vld [vmem:[#allocation6 + $0x150] sm:$0xff] }
 0xf4c   :  { %6227 = vmatpush1.msra.mxu0 %v5983_v16  ;;  %6149 = vmatprep.subr.mxu1 %v5920_v23  ;;  %v6015_v16 = vld [vmem:[#allocation6 + $0x310] sm:$0xff]  ;;  %v5958_v23 = vld [vmem:[#allocation6 + $0x148] sm:$0xff] }
 0xf4d   :  { %6228 = vmatprep.subr.mxu0 %v5982_v47  ;;  %6150 = vmatpush1.msra.mxu1 %v5919_v48  ;;  %v6014_v47 = vld [vmem:[#allocation6 + $0x308] sm:$0xff]  ;;  %v5957_v48 = vld [vmem:[#allocation6 + $0x140] sm:$0xff] }
 0xf4e   :  { %6229 = vmatpush1.msra.mxu0 %v5981_v14  ;;  %6151 = vmatprep.subr.mxu1 %v5918_v21  ;;  %v6013_v14 = vld [vmem:[#allocation6 + $0x300] sm:$0xff]  ;;  %v5956_v21 = vld [vmem:[#allocation6 + $0x138] sm:$0xff] }
 0xf4f   :  { %6230 = vmatprep.subr.mxu0 %v6044_v51  ;;  %6152 = vmatpush1.msra.mxu1 %v5917_v52  ;;  %v5955_v51 = vld [vmem:[#allocation6 + $0x130] sm:$0xff]  ;;  %v5954_v52 = vld [vmem:[#allocation6 + $0x128] sm:$0xff] }
 0xf50   :  { %6231 = vmatpush2.msra.mxu0 %v6043_v12  ;;  %6153 = vmatprep.subr.mxu1 %v5980_v34  ;;  %v5953_v12 = vld [vmem:[#allocation6 + $0x120] sm:$0xff] }
 0xf51   :  { %6232 = vmatprep.subr.mxu0 %v6042_v62  ;;  %6154 = vmatpush2.msra.mxu1 %v5979_v29  ;;  %v5952_v62 = vld [vmem:[#allocation6 + $0x118] sm:$0xff] }
 0xf52   :  { %6233 = vmatpush2.msra.mxu0 %v6041_v55  ;;  %6155 = vmatprep.subr.mxu1 %v5978_v39  ;;  %v5951_v55 = vld [vmem:[#allocation6 + $0x110] sm:$0xff] }
 0xf53   :  { %6234 = vmatprep.subr.mxu0 %v6040_v56  ;;  %6156 = vmatpush2.msra.mxu1 %v5977_v36  ;;  %v5950_v56 = vld [vmem:[#allocation6 + $0x108] sm:$0xff] }
 0xf54   :  { %6235 = vmatpush2.msra.mxu0 %v6039_v58  ;;  %6157 = vmatprep.subr.mxu1 %v5976_v31  ;;  %v5949_v58 = vld [vmem:[#allocation6 + $0x100] sm:$0xff] }
 0xf55   :  { %6236 = vmatprep.subr.mxu0 %v6038_v59  ;;  %6158 = vmatpush2.msra.mxu1 %v5975_v0  ;;  %v6076_v59 = vld [vmem:[#allocation6 + $0x4f8] sm:$0xff] }
 0xf56   :  { %6237 = vmatpush2.msra.mxu0 %v6037_v61  ;;  %6159 = vmatprep.subr.mxu1 %v5974_v3  ;;  %v5723_v61 = vld [vmem:[%s9788_s3] sm:$0x3] }
 0xf57   :  { %6238 = vmatprep.subr.mxu0 %v6036_v49  ;;  %6160 = vmatpush2.msra.mxu1 %v5973_v6  ;;  %v5728_v34 = vrot.slane %v5723_v61, %v8980_v60  ;;  %v5732_v29 = vrot.slane %v5723_v61, %v8986_v63  ;;  %v6057_v61 = vld [vmem:[#allocation6 + $0x460] sm:$0xff] }
 0xf58   :  { %6239 = vmatpush2.msra.mxu0 %v6035_v45  ;;  %6161 = vmatprep.subr.mxu1 %v5972_v8 }
 0xf59   :  { %6240 = vmatprep.subr.mxu0 %v6034_v41  ;;  %6162 = vmatpush2.msra.mxu1 %v5971_v10 }
 0xf5a   :  { %6241 = vmatpush2.msra.mxu0 %v6033_v37  ;;  %6163 = vmatprep.subr.mxu1 %v5970_v13 }
 0xf5b   :  { %6242 = vmatprep.subr.mxu0 %v6032_v32  ;;  %6164 = vmatpush2.msra.mxu1 %v5969_v17 }
 0xf5c   :  { %6243 = vmatpush2.msra.mxu0 %v6031_v2  ;;  %6165 = vmatprep.subr.mxu1 %v5968_v26 }
 0xf5d   :  { %6244 = vmatprep.subr.mxu0 %v6030_v5  ;;  %6166 = vmatpush2.msra.mxu1 %v5967_v28 }
 0xf5e   :  { %6245 = vmatpush2.msra.mxu0 %v6029_v7  ;;  %6167 = vmatprep.subr.mxu1 %v5966_v30 }
 0xf5f   :  { %6246 = vmatprep.subr.mxu0 %v6028_v9  ;;  %6168 = vmatpush2.msra.mxu1 %v5965_v53 }
 0xf60   :  { %6247 = vmatpush2.msra.mxu0 %v6027_v11  ;;  %6169 = vmatprep.subr.mxu1 %v5964_v54 }
 0xf61   :  { %6248 = vmatprep.subr.mxu0 %v6026_v15  ;;  %6170 = vmatpush2.msra.mxu1 %v5963_v42  ;;  %v6075_v42 = vld [vmem:[#allocation6 + $0x4f0] sm:$0xff] }
 0xf62   :  { %6249 = vmatpush2.msra.mxu0 %v6025_v19  ;;  %6171 = vmatprep.subr.mxu1 %v5962_v25 }
 0xf63   :  { %6250 = vmatprep.subr.mxu0 %v6024_v27  ;;  %6172 = vmatpush2.msra.mxu1 %v5961_v40 }
 0xf64   :  { %6251 = vmatpush2.msra.mxu0 %v6023_v50  ;;  %6173 = vmatprep.subr.mxu1 %v5960_v24  ;;  %v6071_v24 = vld [vmem:[#allocation6 + $0x4d0] sm:$0xff] }
 0xf65   :  { %6252 = vmatprep.subr.mxu0 %v6022_v38  ;;  %6174 = vmatpush2.msra.mxu1 %v5959_v44 }
 0xf66   :  { %6253 = vmatpush2.msra.mxu0 %v6021_v33  ;;  %6175 = vmatprep.subr.mxu1 %v5958_v23 }
 0xf67   :  { %6254 = vmatprep.subr.mxu0 %v6020_v35  ;;  %6176 = vmatpush2.msra.mxu1 %v5957_v48  ;;  %v6068_v48 = vld [vmem:[#allocation6 + $0x4b8] sm:$0xff] }
 0xf68   :  { %6255 = vmatpush2.msra.mxu0 %v6019_v20  ;;  %6177 = vmatprep.subr.mxu1 %v5956_v21  ;;  %v6074_v20 = vld [vmem:[#allocation6 + $0x4e8] sm:$0xff] }
 0xf69   :  { %6256 = vmatprep.subr.mxu0 %v6018_v46  ;;  %6178 = vmatpush2.msra.mxu1 %v5955_v51  ;;  %v6073_v46 = vld [vmem:[#allocation6 + $0x4e0] sm:$0xff]  ;;  %v6066_v21 = vld [vmem:[#allocation6 + $0x4a8] sm:$0xff] }
 0xf6a   :  { %6257 = vmatpush2.msra.mxu0 %v6017_v18  ;;  %6179 = vmatprep.subr.mxu1 %v5954_v52  ;;  %v6072_v18 = vld [vmem:[#allocation6 + $0x4d8] sm:$0xff]  ;;  %v6065_v51 = vld [vmem:[#allocation6 + $0x4a0] sm:$0xff] }
 0xf6b   :  { %6258 = vmatprep.subr.mxu0 %v6016_v43  ;;  %6180 = vmatpush2.msra.mxu1 %v5953_v12  ;;  %v6064_v52 = vld [vmem:[#allocation6 + $0x498] sm:$0xff]  ;;  %v6063_v12 = vld [vmem:[#allocation6 + $0x490] sm:$0xff] }
 0xf6c   :  { %6259 = vmatpush2.msra.mxu0 %v6015_v16  ;;  %6181 = vmatprep.subr.mxu1 %v5952_v62  ;;  %v6070_v16 = vld [vmem:[#allocation6 + $0x4c8] sm:$0xff] }
 0xf6d   :  { %6260 = vmatprep.subr.mxu0 %v6014_v47  ;;  %6182 = vmatpush2.msra.mxu1 %v5951_v55  ;;  %v6069_v47 = vld [vmem:[#allocation6 + $0x4c0] sm:$0xff]  ;;  %v6062_v62 = vld [vmem:[#allocation6 + $0x488] sm:$0xff] }
 0xf6e   :  { %6261 = vmatpush2.msra.mxu0 %v6013_v14  ;;  %6183 = vmatprep.subr.mxu1 %v5950_v56  ;;  %v6067_v14 = vld [vmem:[#allocation6 + $0x4b0] sm:$0xff]  ;;  %v6061_v55 = vld [vmem:[#allocation6 + $0x480] sm:$0xff]  ;;  %v6060_v56 = vld [vmem:[#allocation6 + $0x478] sm:$0xff] }
 0xf6f   :  { %6184 = vmatpush2.msra.mxu1 %v5949_v58  ;;  %v6059_v58 = vld [vmem:[#allocation6 + $0x470] sm:$0xff] }
 0xf70   :  { %6275 = vmatprep.subr.mxu1 %v6076_v59  ;;  %v6058_v59 = vld [vmem:[#allocation6 + $0x468] sm:$0xff] }
 0xfed   :  { %v5878_v49 = vpop.f32.mrf.mxu1 }
 0xfef   :  { %v5801_v45 = vpop.f32.mrf.mxu0  ;;  %v5880_v39 = vpop.f32.mrf.mxu1 }
 0xff0   :  { %v5802_v41 = vadd.f32 %v5801_v45, %v5728_v34  ;;  %v6053_v45 = vld [vmem:[#allocation6 + $0x440] sm:$0xff] }
 0xff1   :  { %v5803_v36 = vpop.f32.mrf.mxu0  ;;  %v5884_v32 = vpop.f32.mrf.mxu1 }
 0xff2   :  { %v5804_v37 = vadd.f32 %v5803_v36, %v5732_v29  ;;  %v5879_v31 = vadd.f32 %v5878_v49, %v5802_v41  ;;  %v6055_v49 = vld [vmem:[#allocation6 + $0x450] sm:$0xff]  ;;  %v6050_v36 = vld [vmem:[#allocation6 + $0x428] sm:$0xff] }
 0xff3   :  { %v5807_v0 = vpop.f32.mrf.mxu0  ;;  %v5886_v8 = vpop.f32.mrf.mxu1  ;;  %v6051_v41 = vld [vmem:[#allocation6 + $0x430] sm:$0xff] }
 0xff4   :  { %v5881_v2 = vadd.f32 %v5880_v39, %v5804_v37  ;;  %v5808_v3 = vadd.f32 %v5807_v0, %v5728_v34  ;;  %v6056_v34 = vld [vmem:[#allocation6 + $0x458] sm:$0xff]  ;;  %v6049_v37 = vld [vmem:[#allocation6 + $0x420] sm:$0xff]  ;;  %v6046_v0 = vld [vmem:[#allocation6 + $0x408] sm:$0xff] }
 0xff5   :  { %v5809_v5 = vpop.f32.mrf.mxu0  ;;  %v6052_v39 = vld [vmem:[#allocation6 + $0x438] sm:$0xff] }
 0xff6   :  { %8741 = vtanh.f32 %v5881_v2  ;;  %v5885_v6 = vadd.f32 %v5884_v32, %v5808_v3  ;;  %v5810_v7 = vadd.f32 %v5809_v5, %v5732_v29  ;;  %v6054_v29 = vld [vmem:[#allocation6 + $0x448] sm:$0xff]  ;;  %v6047_v32 = vld [vmem:[#allocation6 + $0x410] sm:$0xff]  ;;  %v6045_v2 = vld [vmem:[#allocation6 + $0x400] sm:$0xff] }
 0xff7   :  { %8743 = vtanh.f32 %v5879_v31  ;;  %v6048_v31 = vld [vmem:[#allocation6 + $0x418] sm:$0xff]  ;;  %v6107_v5 = vld [vmem:[#allocation6 + $0x5f0] sm:$0xff] }
 0xff8   :  { %8745 = vtanh.f32 %v5885_v6  ;;  %v5887_v9 = vadd.f32 %v5886_v8, %v5810_v7  ;;  %v6108_v3 = vld [vmem:[#allocation6 + $0x5f8] sm:$0xff]  ;;  %v6106_v6 = vld [vmem:[#allocation6 + $0x5e8] sm:$0xff]  ;;  %v6105_v7 = vld [vmem:[#allocation6 + $0x5e0] sm:$0xff] }
 0xff9   :  { %v6104_v8 = vld [vmem:[#allocation6 + $0x5d8] sm:$0xff] }
 0xffa   :  { %8747 = vtanh.f32 %v5887_v9  ;;  %v6103_v9 = vld [vmem:[#allocation6 + $0x5d0] sm:$0xff] }
0x1003   :  { %v9570_v10 = vpop.eup %8741 }
0x1004   :  { %v8744_v11 = vpop.eup %8743  ;;  %6262 = vmatprep.mubr.f32.mxu0 %v9570_v10  ;;  %v5894_v28 = vrot.slane %v9570_v10, 7  ;;  %v5906_v43 = vrot.slane %v9570_v10, 1  ;;  %v6459_v10 = vld [vmem:[#allocation8 + $0x278] sm:$0xff] }
0x1005   :  { %v8746_v13 = vpop.eup %8745  ;;  %6263 = vmatmul.mubr.f32.vlgmr.msra.gmra.mxu0 %v8744_v11  ;;  %v5893_v26 = vrot.slane %v8744_v11, 7  ;;  %v5905_v27 = vrot.slane %v8744_v11, 1  ;;  %v6102_v11 = vld [vmem:[#allocation6 + $0x5c8] sm:$0xff] }
0x1006   :  { %v5895_v15 = vrot.slane %v8746_v13, 7  ;;  %v5907_v17 = vrot.slane %v8746_v13, 1 }
0x1007   :  { %v9573_v19 = vpop.eup %8747 }
0x1008   :  { %6268 = vmatprep.mubr.f32.mxu0 %v9573_v19  ;;  %v5896_v50 = vrot.slane %v9573_v19, 7  ;;  %v5899_v30 = vsel %vm105_vm3, %v5895_v15, %v5893_v26  ;;  %v9582_v38 = vsel %vm112_vm1, %v5905_v27, %v5907_v17  ;;  %v9586_v53 = vsel %vm112_vm1, %v5907_v17, %v5905_v27  ;;  %v6099_v17 = vld [vmem:[#allocation6 + $0x5b0] sm:$0xff]  ;;  %v6097_v27 = vld [vmem:[#allocation6 + $0x5a0] sm:$0xff] }
0x1009   :  { %6269 = vmatmul.mubr.f32.gmra.mxu0 %v8746_v13  ;;  %v5901_v35 = vmul.f32 %v8971_v57, %v5899_v30  ;;  %v5908_v40 = vrot.slane %v9573_v19, 1  ;;  %v5897_v44 = vsel %vm105_vm3, %v5893_v26, %v5895_v15  ;;  %v6101_v13 = vld [vmem:[#allocation6 + $0x5c0] sm:$0xff]  ;;  %v6100_v15 = vld [vmem:[#allocation6 + $0x5b8] sm:$0xff]  ;;  %v6098_v26 = vld [vmem:[#allocation6 + $0x5a8] sm:$0xff] }
0x100a   :  { %v5900_v33 = vsel %vm105_vm3, %v5896_v50, %v5894_v28  ;;  %v5898_v25 = vsel %vm105_vm3, %v5894_v28, %v5896_v50  ;;  %v6096_v28 = vld [vmem:[#allocation6 + $0x598] sm:$0xff]  ;;  %v6095_v50 = vld [vmem:[#allocation6 + $0x590] sm:$0xff]  ;;  %v6094_v30 = vld [vmem:[#allocation6 + $0x588] sm:$0xff] }
0x100b   :  { %v5902_v54 = vmul.f32 %v8971_v57, %v5900_v33  ;;  %v5910_v23 = vsel %vm112_vm1, %v5906_v43, %v5908_v40  ;;  %v6093_v33 = vld [vmem:[#allocation6 + $0x580] sm:$0xff]  ;;  %v6395_v19 = vld [vmem:[#allocation8 + $0x78] sm:$0xff] }
0x100d   :  { %6185 = vmatprep.mubr.f32.mxu1 %v5902_v54  ;;  %v6092_v54 = vld [vmem:[#allocation6 + $0x578] sm:$0xff] }
0x100e   :  { %6186 = vmatmul.mubr.f32.vlgmr.msra.gmra.mxu1 %v5901_v35  ;;  %v6091_v35 = vld [vmem:[#allocation6 + $0x570] sm:$0xff] }
0x100f   :  { %6276 = vmatpush1.msra.mxu1 %v6075_v42  ;;  %6191 = vmatprep.mubr.f32.mxu1 %v5898_v25  ;;  %v6090_v42 = vld [vmem:[#allocation6 + $0x568] sm:$0xff]  ;;  %v6088_v25 = vld [vmem:[#allocation6 + $0x558] sm:$0xff] }
0x1010   :  { %6277 = vmatprep.subr.mxu1 %v6074_v20  ;;  %v6089_v20 = vld [vmem:[#allocation6 + $0x560] sm:$0xff] }
0x1011   :  { %6278 = vmatpush1.msra.mxu1 %v6073_v46  ;;  %v6087_v46 = vld [vmem:[#allocation6 + $0x550] sm:$0xff] }
0x1012   :  { %6279 = vmatprep.subr.mxu1 %v6072_v18  ;;  %6192 = vmatmul.mubr.f32.gmra.mxu1 %v5897_v44  ;;  %v6086_v18 = vld [vmem:[#allocation6 + $0x548] sm:$0xff]  ;;  %v6084_v44 = vld [vmem:[#allocation6 + $0x538] sm:$0xff] }
0x1013   :  { %6280 = vmatpush1.msra.mxu1 %v6071_v24  ;;  %6339 = vmatprep.mubr.f32.mxu1 %v5910_v23  ;;  %v6085_v24 = vld [vmem:[#allocation6 + $0x540] sm:$0xff]  ;;  %v6082_v23 = vld [vmem:[#allocation6 + $0x528] sm:$0xff] }
0x1014   :  { %6281 = vmatprep.subr.mxu1 %v6070_v16  ;;  %v6083_v16 = vld [vmem:[#allocation6 + $0x530] sm:$0xff] }
0x1015   :  { %6282 = vmatpush1.msra.mxu1 %v6069_v47  ;;  %v6081_v47 = vld [vmem:[#allocation6 + $0x520] sm:$0xff] }
0x1016   :  { %6283 = vmatprep.subr.mxu1 %v6068_v48  ;;  %v6080_v48 = vld [vmem:[#allocation6 + $0x518] sm:$0xff] }
0x1017   :  { %6284 = vmatpush1.msra.mxu1 %v6067_v14  ;;  %v6079_v14 = vld [vmem:[#allocation6 + $0x510] sm:$0xff] }
0x1018   :  { %6285 = vmatprep.subr.mxu1 %v6066_v21  ;;  %v6078_v21 = vld [vmem:[#allocation6 + $0x508] sm:$0xff] }
0x1019   :  { %6286 = vmatpush1.msra.mxu1 %v6065_v51  ;;  %v6077_v51 = vld [vmem:[#allocation6 + $0x500] sm:$0xff] }
0x101a   :  { %6287 = vmatprep.subr.mxu1 %v6064_v52  ;;  %v5912_v52 = vsel %vm112_vm1, %v5908_v40, %v5906_v43  ;;  %v6410_v40 = vld [vmem:[#allocation8 + $0xf0] sm:$0xff] }
0x101b   :  { %6288 = vmatpush1.msra.mxu1 %v6063_v12  ;;  %v5916_v12 = vmul.f32 %v8957_v22, %v5912_v52  ;;  %v6458_v43 = vld [vmem:[#allocation8 + $0x270] sm:$0xff] }
0x101c   :  { %6289 = vmatprep.subr.mxu1 %v6062_v62  ;;  %v5915_v62 = vmul.f32 %v8957_v22, %v9586_v53  ;;  %v6457_v53 = vld [vmem:[#allocation8 + $0x268] sm:$0xff]  ;;  %v6382_v52 = vld [vmem:[#allocation8 + $0x10] sm:$0xff] }
0x101d   :  { %6290 = vmatpush1.msra.mxu1 %v6061_v55  ;;  %v6475_v55 = vld [vmem:[#allocation8 + $0x2f8] sm:$0xff] }
0x101e   :  { %6291 = vmatprep.subr.mxu1 %v6060_v56  ;;  %v6411_v56 = vld [vmem:[#allocation8 + $0xf8] sm:$0xff] }
0x101f   :  { %6292 = vmatpush1.msra.mxu1 %v6059_v58  ;;  %8424 = vmatprep.subr.mxu0 %v6411_v56  ;;  %v6474_v58 = vld [vmem:[#allocation8 + $0x2f0] sm:$0xff]  ;;  %v6381_v56 = vld [vmem:[#allocation8 + $0x8] sm:$0xff] }
0x1020   :  { %6293 = vmatprep.subr.mxu1 %v6058_v59  ;;  %8425 = vmatpush3.msra.mxu0 %v6395_v19  ;;  %v6394_v59 = vld [vmem:[#allocation8 + $0x70] sm:$0xff]  ;;  %v6396_v19 = vld [vmem:[#allocation8 + $0x80] sm:$0xff] }
0x1021   :  { %6294 = vmatpush1.msra.mxu1 %v6057_v61  ;;  %v6473_v61 = vld [vmem:[#allocation8 + $0x2e8] sm:$0xff]  ;;  %8426 = vmatprep.subr.mxu0 %v6410_v40  ;;  %v6380_v40 = vld [vmem:[#allocation8] sm:$0xff] }
0x1022   :  { %6295 = vmatprep.subr.mxu1 %v6056_v34  ;;  %8427 = vmatpush3.msra.mxu0 %v6394_v59  ;;  %v6393_v34 = vld [vmem:[#allocation8 + $0x68] sm:$0xff] }
0x1023   :  { %6296 = vmatpush1.msra.mxu1 %v6055_v49  ;;  %v6472_v49 = vld [vmem:[#allocation8 + $0x2e0] sm:$0xff] }
0x1024   :  { %6297 = vmatprep.subr.mxu1 %v6054_v29  ;;  %v6408_v29 = vld [vmem:[#allocation8 + $0xe0] sm:$0xff] }
0x1025   :  { %6298 = vmatpush1.msra.mxu1 %v6053_v45  ;;  %v6456_v45 = vld [vmem:[#allocation8 + $0x260] sm:$0xff] }
0x1026   :  { %6299 = vmatprep.subr.mxu1 %v6052_v39  ;;  %v6392_v39 = vld [vmem:[#allocation8 + $0x60] sm:$0xff] }
0x1027   :  { %6300 = vmatpush1.msra.mxu1 %v6051_v41  ;;  %v6471_v41 = vld [vmem:[#allocation8 + $0x2d8] sm:$0xff] }
0x1028   :  { %6301 = vmatprep.subr.mxu1 %v6050_v36  ;;  %v6407_v36 = vld [vmem:[#allocation8 + $0xd8] sm:$0xff] }
0x1029   :  { %6302 = vmatpush1.msra.mxu1 %v6049_v37  ;;  %v6455_v37 = vld [vmem:[#allocation8 + $0x258] sm:$0xff] }
0x102a   :  { %6303 = vmatprep.subr.mxu1 %v6048_v31  ;;  %v6391_v31 = vld [vmem:[#allocation8 + $0x58] sm:$0xff] }
0x102b   :  { %6304 = vmatpush1.msra.mxu1 %v6047_v32  ;;  %v6470_v32 = vld [vmem:[#allocation8 + $0x2d0] sm:$0xff] }
0x102c   :  { %6305 = vmatprep.subr.mxu1 %v6046_v0  ;;  %v6406_v0 = vld [vmem:[#allocation8 + $0xd0] sm:$0xff] }
0x102d   :  { %6306 = vmatpush1.msra.mxu1 %v6045_v2  ;;  %v6454_v2 = vld [vmem:[#allocation8 + $0x250] sm:$0xff] }
0x102e   :  { %6307 = vmatprep.subr.mxu1 %v6108_v3  ;;  %v6390_v3 = vld [vmem:[#allocation8 + $0x50] sm:$0xff] }
0x102f   :  { %6308 = vmatpush2.msra.mxu1 %v6107_v5  ;;  %v6469_v5 = vld [vmem:[#allocation8 + $0x2c8] sm:$0xff] }
0x1030   :  { %6309 = vmatprep.subr.mxu1 %v6106_v6  ;;  %v6405_v6 = vld [vmem:[#allocation8 + $0xc8] sm:$0xff] }
0x1031   :  { %6310 = vmatpush2.msra.mxu1 %v6105_v7  ;;  %v6453_v7 = vld [vmem:[#allocation8 + $0x248] sm:$0xff] }
0x1032   :  { %6311 = vmatprep.subr.mxu1 %v6104_v8  ;;  %v6389_v8 = vld [vmem:[#allocation8 + $0x48] sm:$0xff] }
0x1033   :  { %6312 = vmatpush2.msra.mxu1 %v6103_v9  ;;  %v6468_v9 = vld [vmem:[#allocation8 + $0x2c0] sm:$0xff] }
0x1034   :  { %6313 = vmatprep.subr.mxu1 %v6102_v11  ;;  %v6404_v11 = vld [vmem:[#allocation8 + $0xc0] sm:$0xff] }
0x1035   :  { %6314 = vmatpush2.msra.mxu1 %v6101_v13  ;;  %v6452_v13 = vld [vmem:[#allocation8 + $0x240] sm:$0xff] }
0x1036   :  { %6315 = vmatprep.subr.mxu1 %v6100_v15  ;;  %v6388_v15 = vld [vmem:[#allocation8 + $0x40] sm:$0xff] }
0x1037   :  { %6316 = vmatpush2.msra.mxu1 %v6099_v17  ;;  %v6467_v17 = vld [vmem:[#allocation8 + $0x2b8] sm:$0xff] }
0x1038   :  { %6317 = vmatprep.subr.mxu1 %v6098_v26  ;;  %v6403_v26 = vld [vmem:[#allocation8 + $0xb8] sm:$0xff] }
0x1039   :  { %6318 = vmatpush2.msra.mxu1 %v6097_v27  ;;  %v6451_v27 = vld [vmem:[#allocation8 + $0x238] sm:$0xff] }
0x103a   :  { %6319 = vmatprep.subr.mxu1 %v6096_v28  ;;  %v6387_v28 = vld [vmem:[#allocation8 + $0x38] sm:$0xff] }
0x103b   :  { %6320 = vmatpush2.msra.mxu1 %v6095_v50  ;;  %v6466_v50 = vld [vmem:[#allocation8 + $0x2b0] sm:$0xff] }
0x103c   :  { %6321 = vmatprep.subr.mxu1 %v6094_v30  ;;  %v6402_v30 = vld [vmem:[#allocation8 + $0xb0] sm:$0xff] }
0x103d   :  { %6322 = vmatpush2.msra.mxu1 %v6093_v33  ;;  %v6450_v33 = vld [vmem:[#allocation8 + $0x230] sm:$0xff] }
0x103e   :  { %6323 = vmatprep.subr.mxu1 %v6092_v54  ;;  %v6386_v54 = vld [vmem:[#allocation8 + $0x30] sm:$0xff] }
0x103f   :  { %6324 = vmatpush2.msra.mxu1 %v6091_v35  ;;  %v6465_v35 = vld [vmem:[#allocation8 + $0x2a8] sm:$0xff] }
0x1040   :  { %6325 = vmatprep.subr.mxu1 %v6090_v42  ;;  %v6401_v42 = vld [vmem:[#allocation8 + $0xa8] sm:$0xff] }
0x1041   :  { %6326 = vmatpush2.msra.mxu1 %v6089_v20  ;;  %v6449_v20 = vld [vmem:[#allocation8 + $0x228] sm:$0xff] }
0x1042   :  { %6327 = vmatprep.subr.mxu1 %v6088_v25  ;;  %v6385_v25 = vld [vmem:[#allocation8 + $0x28] sm:$0xff] }
0x1043   :  { %6328 = vmatpush2.msra.mxu1 %v6087_v46  ;;  %v6464_v46 = vld [vmem:[#allocation8 + $0x2a0] sm:$0xff] }
0x1044   :  { %6329 = vmatprep.subr.mxu1 %v6086_v18  ;;  %v6400_v18 = vld [vmem:[#allocation8 + $0xa0] sm:$0xff] }
0x1045   :  { %6330 = vmatpush2.msra.mxu1 %v6085_v24  ;;  %v6448_v24 = vld [vmem:[#allocation8 + $0x220] sm:$0xff] }
0x1046   :  { %6331 = vmatprep.subr.mxu1 %v6084_v44  ;;  %v6384_v44 = vld [vmem:[#allocation8 + $0x20] sm:$0xff] }
0x1047   :  { %6332 = vmatpush2.msra.mxu1 %v6083_v16  ;;  %v6463_v16 = vld [vmem:[#allocation8 + $0x298] sm:$0xff] }
0x1048   :  { %6333 = vmatprep.subr.mxu1 %v6082_v23  ;;  %v6399_v23 = vld [vmem:[#allocation8 + $0x98] sm:$0xff] }
0x1049   :  { %6334 = vmatpush2.msra.mxu1 %v6081_v47  ;;  %v6447_v47 = vld [vmem:[#allocation8 + $0x218] sm:$0xff] }
0x104a   :  { %6335 = vmatprep.subr.mxu1 %v6080_v48  ;;  %v6383_v48 = vld [vmem:[#allocation8 + $0x18] sm:$0xff] }
0x104b   :  { %6336 = vmatpush2.msra.mxu1 %v6079_v14  ;;  %v6462_v14 = vld [vmem:[#allocation8 + $0x290] sm:$0xff] }
0x104c   :  { %6337 = vmatprep.subr.mxu1 %v6078_v21  ;;  %v6398_v21 = vld [vmem:[#allocation8 + $0x90] sm:$0xff] }
0x104d   :  { %6338 = vmatpush2.msra.mxu1 %v6077_v51  ;;  %v6446_v51 = vld [vmem:[#allocation8 + $0x210] sm:$0xff] }
0x104e   :  { %6340 = vmatmul.mubr.f32.vlgmr.msra.gmra.mxu1 %v9582_v38  ;;  %8500 = vmatprep.subr.mxu1 %v6475_v55  ;;  %v6409_v38 = vld [vmem:[#allocation8 + $0xe8] sm:$0xff] }
0x104f   :  { %6345 = vmatprep.mubr.f32.mxu1 %v5916_v12  ;;  %8501 = vmatpush3.msra.mxu1 %v6459_v10  ;;  %v6461_v12 = vld [vmem:[#allocation8 + $0x288] sm:$0xff]  ;;  %v6460_v10 = vld [vmem:[#allocation8 + $0x280] sm:$0xff] }
0x1050   :  { %8502 = vmatprep.subr.mxu1 %v6474_v58  ;;  %8428 = vmatprep.subr.mxu0 %v6409_v38  ;;  %v6445_v55 = vld [vmem:[#allocation8 + $0x208] sm:$0xff]  ;;  %v6444_v58 = vld [vmem:[#allocation8 + $0x200] sm:$0xff] }
0x1051   :  { %8503 = vmatpush3.msra.mxu1 %v6458_v43  ;;  %8429 = vmatpush3.msra.mxu0 %v6393_v34  ;;  %v6443_v43 = vld [vmem:[#allocation8 + $0x1f8] sm:$0xff] }
0x1052   :  { %6346 = vmatmul.mubr.f32.gmra.mxu1 %v5915_v62  ;;  %8504 = vmatprep.subr.mxu1 %v6473_v61  ;;  %v6397_v62 = vld [vmem:[#allocation8 + $0x88] sm:$0xff]  ;;  %v6109_v61 = vld [vmem:[%s9790_s5] sm:$0x3] }
0x1053   :  { %8505 = vmatpush3.msra.mxu1 %v6457_v53  ;;  %8430 = vmatprep.subr.mxu0 %v6408_v29  ;;  %v6114_v53 = vrot.slane %v6109_v61, %v8980_v60 }
0x1054   :  { %8506 = vmatprep.subr.mxu1 %v6472_v49  ;;  %8431 = vmatpush3.msra.mxu0 %v6392_v39  ;;  %v6118_v49 = vrot.slane %v6109_v61, %v8986_v63  ;;  %v6423_v61 = vld [vmem:[#allocation8 + $0x158] sm:$0xff] }
0x1055   :  { %8507 = vmatpush3.msra.mxu1 %v6456_v45  ;;  %8432 = vmatprep.subr.mxu0 %v6407_v36 }
0x1056   :  { %8508 = vmatprep.subr.mxu1 %v6471_v41  ;;  %8433 = vmatpush3.msra.mxu0 %v6391_v31 }
0x1057   :  { %8509 = vmatpush3.msra.mxu1 %v6455_v37  ;;  %8434 = vmatprep.subr.mxu0 %v6406_v0 }
0x1058   :  { %8510 = vmatprep.subr.mxu1 %v6470_v32  ;;  %8435 = vmatpush3.msra.mxu0 %v6390_v3 }
0x1059   :  { %8511 = vmatpush3.msra.mxu1 %v6454_v2  ;;  %8436 = vmatprep.subr.mxu0 %v6405_v6 }
0x105a   :  { %8512 = vmatprep.subr.mxu1 %v6469_v5  ;;  %8437 = vmatpush3.msra.mxu0 %v6389_v8 }
0x105b   :  { %8513 = vmatpush3.msra.mxu1 %v6453_v7  ;;  %8438 = vmatprep.subr.mxu0 %v6404_v11 }
0x105c   :  { %8514 = vmatprep.subr.mxu1 %v6468_v9  ;;  %8439 = vmatpush3.msra.mxu0 %v6388_v15 }
0x105d   :  { %8515 = vmatpush3.msra.mxu1 %v6452_v13  ;;  %8440 = vmatprep.subr.mxu0 %v6403_v26 }
0x105e   :  { %8516 = vmatprep.subr.mxu1 %v6467_v17  ;;  %8441 = vmatpush3.msra.mxu0 %v6387_v28 }
0x105f   :  { %8517 = vmatpush3.msra.mxu1 %v6451_v27  ;;  %8442 = vmatprep.subr.mxu0 %v6402_v30 }
0x1060   :  { %8518 = vmatprep.subr.mxu1 %v6466_v50  ;;  %8443 = vmatpush3.msra.mxu0 %v6386_v54 }
0x1061   :  { %8519 = vmatpush3.msra.mxu1 %v6450_v33  ;;  %8444 = vmatprep.subr.mxu0 %v6401_v42 }
0x1062   :  { %8520 = vmatprep.subr.mxu1 %v6465_v35  ;;  %8445 = vmatpush3.msra.mxu0 %v6385_v25 }
0x1063   :  { %8521 = vmatpush3.msra.mxu1 %v6449_v20  ;;  %8446 = vmatprep.subr.mxu0 %v6400_v18 }
0x1064   :  { %8522 = vmatprep.subr.mxu1 %v6464_v46  ;;  %8447 = vmatpush3.msra.mxu0 %v6384_v44 }
0x1065   :  { %8523 = vmatpush3.msra.mxu1 %v6448_v24  ;;  %8448 = vmatprep.subr.mxu0 %v6399_v23 }
0x1066   :  { %8524 = vmatprep.subr.mxu1 %v6463_v16  ;;  %8449 = vmatpush3.msra.mxu0 %v6383_v48 }
0x1067   :  { %8525 = vmatpush3.msra.mxu1 %v6447_v47  ;;  %8450 = vmatprep.subr.mxu0 %v6398_v21 }
0x1068   :  { %8526 = vmatprep.subr.mxu1 %v6462_v14  ;;  %8451 = vmatpush3.msra.mxu0 %v6382_v52  ;;  %v6427_v52 = vld [vmem:[#allocation8 + $0x178] sm:$0xff] }
0x1069   :  { %8527 = vmatpush3.msra.mxu1 %v6446_v51  ;;  %8452 = vmatprep.subr.mxu0 %v6397_v62 }
0x106a   :  { %8528 = vmatprep.subr.mxu1 %v6461_v12  ;;  %8453 = vmatpush3.msra.mxu0 %v6381_v56  ;;  %v6442_v12 = vld [vmem:[#allocation8 + $0x1f0] sm:$0xff] }
0x106b   :  { %8529 = vmatpush3.msra.mxu1 %v6445_v55  ;;  %8454 = vmatprep.subr.mxu0 %v6396_v19  ;;  %v6426_v55 = vld [vmem:[#allocation8 + $0x170] sm:$0xff]  ;;  %v6425_v19 = vld [vmem:[#allocation8 + $0x168] sm:$0xff] }
0x106c   :  { %8530 = vmatprep.subr.mxu1 %v6460_v10  ;;  %8455 = vmatpush3.msra.mxu0 %v6380_v40  ;;  %v6441_v10 = vld [vmem:[#allocation8 + $0x1e8] sm:$0xff]  ;;  %v6440_v40 = vld [vmem:[#allocation8 + $0x1e0] sm:$0xff] }
0x106d   :  { %8531 = vmatpush3.msra.mxu1 %v6444_v58  ;;  %8462 = vmatprep.subr.mxu0 %v6443_v43  ;;  %v6424_v43 = vld [vmem:[#allocation8 + $0x160] sm:$0xff] }
0x10c5   :  { %v6264_v34 = vpop.f32.mrf.mxu0 }
0x10c7   :  { %v6266_v39 = vpop.f32.mrf.mxu0 }
0x10c9   :  { %v6270_v32 = vpop.f32.mrf.mxu0 }
0x10cb   :  { %v6272_v9 = vpop.f32.mrf.mxu0 }
0x10ce   :  { %v6187_v59 = vpop.f32.mrf.mxu1 }
0x10cf   :  { %v6188_v45 = vadd.f32 %v6187_v59, %v6114_v53  ;;  %v6439_v59 = vld [vmem:[#allocation8 + $0x1d8] sm:$0xff] }
0x10d0   :  { %v6189_v38 = vpop.f32.mrf.mxu1 }
0x10d1   :  { %v6190_v41 = vadd.f32 %v6189_v38, %v6118_v49  ;;  %v6265_v31 = vadd.f32 %v6264_v34, %v6188_v45  ;;  %v6438_v38 = vld [vmem:[#allocation8 + $0x1d0] sm:$0xff]  ;;  %v6437_v34 = vld [vmem:[#allocation8 + $0x1c8] sm:$0xff]  ;;  %v6420_v45 = vld [vmem:[#allocation8 + $0x140] sm:$0xff] }
0x10d2   :  { %v6193_v29 = vpop.f32.mrf.mxu1 }
0x10d3   :  { %v6194_v37 = vadd.f32 %v6193_v29, %v6114_v53  ;;  %v6267_v5 = vadd.f32 %v6266_v39, %v6190_v41  ;;  %v6422_v53 = vld [vmem:[#allocation8 + $0x150] sm:$0xff]  ;;  %v6436_v29 = vld [vmem:[#allocation8 + $0x1c0] sm:$0xff]  ;;  %v6435_v39 = vld [vmem:[#allocation8 + $0x1b8] sm:$0xff] }
0x10d4   :  { %v6195_v36 = vpop.f32.mrf.mxu1  ;;  %v6419_v41 = vld [vmem:[#allocation8 + $0x138] sm:$0xff] }
0x10d5   :  { %v6196_v2 = vadd.f32 %v6195_v36, %v6118_v49  ;;  %v6271_v8 = vadd.f32 %v6270_v32, %v6194_v37  ;;  %v6421_v49 = vld [vmem:[#allocation8 + $0x148] sm:$0xff]  ;;  %v6434_v36 = vld [vmem:[#allocation8 + $0x1b0] sm:$0xff] }
0x10d6   :  { %v6418_v37 = vld [vmem:[#allocation8 + $0x130] sm:$0xff]  ;;  %v6417_v32 = vld [vmem:[#allocation8 + $0x128] sm:$0xff] }
0x10d7   :  { %v6273_v15 = vadd.f32 %v6272_v9, %v6196_v2  ;;  %v6416_v2 = vld [vmem:[#allocation8 + $0x120] sm:$0xff]  ;;  %v6413_v9 = vld [vmem:[#allocation8 + $0x108] sm:$0xff] }
0x110e   :  { %v6341_v0 = vpop.f32.mrf.mxu1 }
0x110f   :  { %v6342_v3 = vadd.f32 %v6341_v0, %v6265_v31  ;;  %v6433_v31 = vld [vmem:[#allocation8 + $0x1a8] sm:$0xff]  ;;  %v6432_v0 = vld [vmem:[#allocation8 + $0x1a0] sm:$0xff] }
0x1110   :  { %v6343_v6 = vpop.f32.mrf.mxu1 }
0x1111   :  { %v6344_v7 = vadd.f32 %v6343_v6, %v6267_v5  ;;  %8749 = vtanh.f32 %v6342_v3  ;;  %v6431_v3 = vld [vmem:[#allocation8 + $0x198] sm:$0xff]  ;;  %v6430_v6 = vld [vmem:[#allocation8 + $0x190] sm:$0xff] }
0x1112   :  { %v6347_v11 = vpop.f32.mrf.mxu1  ;;  %v6415_v5 = vld [vmem:[#allocation8 + $0x118] sm:$0xff] }
0x1113   :  { %v6348_v13 = vadd.f32 %v6347_v11, %v6271_v8  ;;  %8751 = vtanh.f32 %v6344_v7  ;;  %v6414_v7 = vld [vmem:[#allocation8 + $0x110] sm:$0xff]  ;;  %v6429_v8 = vld [vmem:[#allocation8 + $0x188] sm:$0xff]  ;;  %v6428_v11 = vld [vmem:[#allocation8 + $0x180] sm:$0xff] }
0x1114   :  { %v6349_v17 = vpop.f32.mrf.mxu1 }
0x1115   :  { %8753 = vtanh.f32 %v6348_v13  ;;  %v6350_v26 = vadd.f32 %v6349_v17, %v6273_v15  ;;  %v6412_v13 = vld [vmem:[#allocation8 + $0x100] sm:$0xff]  ;;  %v6760_v15 = vld [vmem:[#allocation5 + $0xf8] sm:$0xff]  ;;  %v6759_v17 = vld [vmem:[#allocation5 + $0xf0] sm:$0xff] }
0x1117   :  { %8755 = vtanh.f32 %v6350_v26  ;;  %v6758_v26 = vld [vmem:[#allocation5 + $0xe8] sm:$0xff] }
0x111e   :  { %v9619_v27 = vpop.eup %8749 }
0x111f   :  { %v6356_v35 = vrot.slane %v9619_v27, 7  ;;  %v6368_v18 = vrot.slane %v9619_v27, 1 }
0x1120   :  { %v8752_v28 = vpop.eup %8751 }
0x1121   :  { %v6369_v42 = vrot.slane %v8752_v28, 1  ;;  %v6357_v25 = vrot.slane %v8752_v28, 7 }
0x1122   :  { %v9621_v50 = vpop.eup %8753 }
0x1123   :  { %v6358_v30 = vrot.slane %v9621_v50, 7  ;;  %v6370_v54 = vrot.slane %v9621_v50, 1 }
0x1124   :  { %v9624_v33 = vpop.eup %8755 }
0x1125   :  { %v6371_v20 = vrot.slane %v9624_v33, 1  ;;  %v6359_v46 = vrot.slane %v9624_v33, 7  ;;  %v6362_v24 = vsel %vm105_vm3, %v6358_v30, %v6356_v35  ;;  %v6372_v47 = vsel %vm112_vm1, %v6368_v18, %v6370_v54 }
0x1126   :  { %v6374_v21 = vsel %vm112_vm1, %v6370_v54, %v6368_v18  ;;  %v6364_v51 = vmul.f32 %v8971_v57, %v6362_v24  ;;  %v6360_v58 = vsel %vm105_vm3, %v6356_v35, %v6358_v30  ;;  %v6756_v30 = vld [vmem:[#allocation5 + $0xd8] sm:$0xff]  ;;  %v6755_v54 = vld [vmem:[#allocation5 + $0xd0] sm:$0xff]  ;;  %v6754_v35 = vld [vmem:[#allocation5 + $0xc8] sm:$0xff] }
0x1127   :  { %v6373_v44 = vsel %vm112_vm1, %v6369_v42, %v6371_v20  ;;  %v6363_v16 = vsel %vm105_vm3, %v6359_v46, %v6357_v25  ;;  %v6375_v23 = vsel %vm112_vm1, %v6371_v20, %v6369_v42  ;;  %v6361_v62 = vsel %vm105_vm3, %v6357_v25, %v6359_v46  ;;  %v6753_v42 = vld [vmem:[#allocation5 + $0xc0] sm:$0xff]  ;;  %v6752_v20 = vld [vmem:[#allocation5 + $0xb8] sm:$0xff]  ;;  %v6750_v25 = vld [vmem:[#allocation5 + $0xa8] sm:$0xff] }
0x1128   :  { %6697 = vmatprep.mubr.f32.mxu1 %v6373_v44  ;;  %v6365_v48 = vmul.f32 %v8971_v57, %v6363_v16  ;;  %v6379_v14 = vmul.f32 %v8957_v22, %v6375_v23  ;;  %v6378_v56 = vmul.f32 %v8957_v22, %v6374_v21  ;;  %v6748_v46 = vld [vmem:[#allocation5 + $0x98] sm:$0xff]  ;;  %v6747_v18 = vld [vmem:[#allocation5 + $0x90] sm:$0xff]  ;;  %v6746_v24 = vld [vmem:[#allocation5 + $0x88] sm:$0xff] }
0x1129   :  { %6698 = vmatmul.mubr.f32.vlgmr.msra.gmra.mxu1 %v6372_v47  ;;  %v6744_v44 = vld [vmem:[#allocation5 + $0x78] sm:$0xff]  ;;  %v6743_v16 = vld [vmem:[#allocation5 + $0x70] sm:$0xff]  ;;  %v6742_v23 = vld [vmem:[#allocation5 + $0x68] sm:$0xff] }
0x112a   :  { %6547 = vmatprep.mubr.f32.mxu0 %v6365_v48  ;;  %6702 = vmatprep.mubr.f32.mxu1 %v6379_v14  ;;  %v6741_v47 = vld [vmem:[#allocation5 + $0x60] sm:$0xff]  ;;  %v6740_v48 = vld [vmem:[#allocation5 + $0x58] sm:$0xff]  ;;  %v6739_v14 = vld [vmem:[#allocation5 + $0x50] sm:$0xff] }
0x112b   :  { %6548 = vmatmul.mubr.f32.vlgmr.msra.gmra.mxu0 %v6364_v51  ;;  %v6738_v21 = vld [vmem:[#allocation5 + $0x48] sm:$0xff]  ;;  %v6737_v51 = vld [vmem:[#allocation5 + $0x40] sm:$0xff] }
0x112c   :  { %8463 = vmatpush3.msra.mxu0 %v6427_v52  ;;  %6552 = vmatprep.mubr.f32.mxu0 %v6361_v62  ;;  %v6736_v52 = vld [vmem:[#allocation5 + $0x38] sm:$0xff] }
0x112d   :  { %8464 = vmatprep.subr.mxu0 %v6442_v12  ;;  %6703 = vmatmul.mubr.f32.gmra.mxu1 %v6378_v56  ;;  %v6735_v12 = vld [vmem:[#allocation5 + $0x30] sm:$0xff]  ;;  %v6824_v62 = vld [vmem:[#allocation5 + $0x2f8] sm:$0xff]  ;;  %v6734_v56 = vld [vmem:[#allocation5 + $0x28] sm:$0xff] }
0x112e   :  { %8465 = vmatpush3.msra.mxu0 %v6426_v55  ;;  %6978 = vmatprep.mubr.f32.mxu1 %v8873_v4  ;;  %v6823_v55 = vld [vmem:[#allocation5 + $0x2f0] sm:$0xff] }
0x112f   :  { %8466 = vmatprep.subr.mxu0 %v6441_v10  ;;  %6553 = vmatmul.mubr.f32.gmra.mxu0 %v6360_v58  ;;  %v6822_v10 = vld [vmem:[#allocation5 + $0x2e8] sm:$0xff]  ;;  %v6821_v58 = vld [vmem:[#allocation5 + $0x2e0] sm:$0xff] }
0x1130   :  { %8467 = vmatpush3.msra.mxu0 %v6425_v19  ;;  %6622 = vmatprep.mubr.f32.mxu0 %v8752_v28  ;;  %v6757_v28 = vld [vmem:[#allocation5 + $0xe0] sm:$0xff] }
0x1131   :  { %8468 = vmatprep.subr.mxu0 %v6440_v40  ;;  %6914 = vmatprep.subr.mxu1 %v6824_v62  ;;  %v6733_v19 = vld [vmem:[#allocation5 + $0x20] sm:$0xff]  ;;  %v6820_v40 = vld [vmem:[#allocation5 + $0x2d8] sm:$0xff]  ;;  %v6767_v62 = vld [vmem:[#allocation5 + $0x130] sm:$0xff] }
0x1132   :  { %8469 = vmatpush3.msra.mxu0 %v6424_v43  ;;  %6915 = vmatpush1.msra.mxu1 %v6823_v55  ;;  %v6732_v43 = vld [vmem:[#allocation5 + $0x18] sm:$0xff]  ;;  %v6797_v55 = vld [vmem:[#allocation5 + $0x220] sm:$0xff] }
0x1133   :  { %8470 = vmatprep.subr.mxu0 %v6439_v59  ;;  %6916 = vmatprep.subr.mxu1 %v6822_v10  ;;  %v6819_v59 = vld [vmem:[#allocation5 + $0x2d0] sm:$0xff]  ;;  %v6796_v10 = vld [vmem:[#allocation5 + $0x218] sm:$0xff] }
0x1134   :  { %8471 = vmatpush3.msra.mxu0 %v6423_v61  ;;  %v6731_v61 = vld [vmem:[#allocation5 + $0x10] sm:$0xff]  ;;  %6917 = vmatpush1.msra.mxu1 %v6821_v58 }
0x1135   :  { %8472 = vmatprep.subr.mxu0 %v6438_v38  ;;  %v6818_v38 = vld [vmem:[#allocation5 + $0x2c8] sm:$0xff]  ;;  %6918 = vmatprep.subr.mxu1 %v6820_v40  ;;  %v6795_v58 = vld [vmem:[#allocation5 + $0x210] sm:$0xff]  ;;  %v6764_v40 = vld [vmem:[#allocation5 + $0x118] sm:$0xff] }
0x1136   :  { %8473 = vmatpush3.msra.mxu0 %v6422_v53  ;;  %v6730_v53 = vld [vmem:[#allocation5 + $0x8] sm:$0xff]  ;;  %6919 = vmatpush1.msra.mxu1 %v6819_v59  ;;  %v6763_v59 = vld [vmem:[#allocation5 + $0x110] sm:$0xff] }
0x1137   :  { %8474 = vmatprep.subr.mxu0 %v6437_v34  ;;  %v6817_v34 = vld [vmem:[#allocation5 + $0x2c0] sm:$0xff]  ;;  %6920 = vmatprep.subr.mxu1 %v6818_v38  ;;  %v6762_v38 = vld [vmem:[#allocation5 + $0x108] sm:$0xff] }
0x1138   :  { %8475 = vmatpush3.msra.mxu0 %v6421_v49  ;;  %v6729_v49 = vld [vmem:[#allocation5] sm:$0xff]  ;;  %6921 = vmatpush1.msra.mxu1 %v6817_v34  ;;  %v7114_v34 = vld [vmem:[#allocation6 + $0x2f8] sm:$0xff] }
0x1139   :  { %8476 = vmatprep.subr.mxu0 %v6436_v29  ;;  %v6816_v29 = vld [vmem:[#allocation5 + $0x2b8] sm:$0xff] }
0x113a   :  { %8477 = vmatpush3.msra.mxu0 %v6420_v45  ;;  %v6792_v45 = vld [vmem:[#allocation5 + $0x1f8] sm:$0xff]  ;;  %6922 = vmatprep.subr.mxu1 %v6816_v29 }
0x113b   :  { %8478 = vmatprep.subr.mxu0 %v6435_v39  ;;  %v6815_v39 = vld [vmem:[#allocation5 + $0x2b0] sm:$0xff] }
0x113c   :  { %8479 = vmatpush3.msra.mxu0 %v6419_v41  ;;  %v6791_v41 = vld [vmem:[#allocation5 + $0x1f0] sm:$0xff]  ;;  %6923 = vmatpush1.msra.mxu1 %v6815_v39 }
0x113d   :  { %8480 = vmatprep.subr.mxu0 %v6434_v36  ;;  %v6814_v36 = vld [vmem:[#allocation5 + $0x2a8] sm:$0xff] }
0x113e   :  { %8481 = vmatpush3.msra.mxu0 %v6418_v37  ;;  %v6790_v37 = vld [vmem:[#allocation5 + $0x1e8] sm:$0xff]  ;;  %6924 = vmatprep.subr.mxu1 %v6814_v36 }
0x113f   :  { %8482 = vmatprep.subr.mxu0 %v6433_v31  ;;  %v6813_v31 = vld [vmem:[#allocation5 + $0x2a0] sm:$0xff] }
0x1140   :  { %8483 = vmatpush3.msra.mxu0 %v6417_v32  ;;  %v6789_v32 = vld [vmem:[#allocation5 + $0x1e0] sm:$0xff]  ;;  %6925 = vmatpush1.msra.mxu1 %v6813_v31 }
0x1141   :  { %8484 = vmatprep.subr.mxu0 %v6432_v0  ;;  %v6788_v0 = vld [vmem:[#allocation5 + $0x1d8] sm:$0xff] }
0x1142   :  { %8485 = vmatpush3.msra.mxu0 %v6416_v2  ;;  %v6787_v2 = vld [vmem:[#allocation5 + $0x1d0] sm:$0xff] }
0x1143   :  { %8486 = vmatprep.subr.mxu0 %v6431_v3  ;;  %v6786_v3 = vld [vmem:[#allocation5 + $0x1c8] sm:$0xff] }
0x1144   :  { %8487 = vmatpush3.msra.mxu0 %v6415_v5  ;;  %v6785_v5 = vld [vmem:[#allocation5 + $0x1c0] sm:$0xff] }
0x1145   :  { %8488 = vmatprep.subr.mxu0 %v6430_v6  ;;  %v6784_v6 = vld [vmem:[#allocation5 + $0x1b8] sm:$0xff] }
0x1146   :  { %8489 = vmatpush3.msra.mxu0 %v6414_v7  ;;  %v6783_v7 = vld [vmem:[#allocation5 + $0x1b0] sm:$0xff] }
0x1147   :  { %8490 = vmatprep.subr.mxu0 %v6429_v8  ;;  %v6782_v8 = vld [vmem:[#allocation5 + $0x1a8] sm:$0xff] }
0x1148   :  { %8491 = vmatpush3.msra.mxu0 %v6413_v9  ;;  %v6812_v9 = vld [vmem:[#allocation5 + $0x298] sm:$0xff] }
0x1149   :  { %8492 = vmatprep.subr.mxu0 %v6428_v11  ;;  %v6781_v11 = vld [vmem:[#allocation5 + $0x1a0] sm:$0xff]  ;;  %6926 = vmatprep.subr.mxu1 %v6812_v9 }
0x114a   :  { %8493 = vmatpush3.msra.mxu0 %v6412_v13  ;;  %v6811_v13 = vld [vmem:[#allocation5 + $0x290] sm:$0xff] }
0x114b   :  { %6623 = vmatmul.mubr.f32.vlgmr.msra.gmra.mxu0 %v9619_v27  ;;  %6837 = vmatprep.subr.mxu0 %v6760_v15  ;;  %v6751_v27 = vld [vmem:[#allocation5 + $0xb0] sm:$0xff]  ;;  %v6780_v15 = vld [vmem:[#allocation5 + $0x198] sm:$0xff] }
0x114c   :  { %6627 = vmatprep.mubr.f32.mxu0 %v9624_v33  ;;  %6838 = vmatpush1.msra.mxu0 %v6759_v17  ;;  %v6749_v33 = vld [vmem:[#allocation5 + $0xa0] sm:$0xff]  ;;  %v6810_v17 = vld [vmem:[#allocation5 + $0x288] sm:$0xff] }
0x114d   :  { %6839 = vmatprep.subr.mxu0 %v6758_v26  ;;  %6927 = vmatpush1.msra.mxu1 %v6811_v13  ;;  %v6779_v26 = vld [vmem:[#allocation5 + $0x190] sm:$0xff] }
0x114e   :  { %6840 = vmatpush1.msra.mxu0 %v6757_v28  ;;  %6928 = vmatprep.subr.mxu1 %v6810_v17  ;;  %v6809_v28 = vld [vmem:[#allocation5 + $0x280] sm:$0xff] }
0x114f   :  { %6628 = vmatmul.mubr.f32.gmra.mxu0 %v9621_v50  ;;  %6841 = vmatprep.subr.mxu0 %v6756_v30  ;;  %v6745_v50 = vld [vmem:[#allocation5 + $0x80] sm:$0xff]  ;;  %v6778_v30 = vld [vmem:[#allocation5 + $0x188] sm:$0xff] }
0x1150   :  { %6842 = vmatpush1.msra.mxu0 %v6755_v54  ;;  %6929 = vmatpush1.msra.mxu1 %v6809_v28  ;;  %v6808_v54 = vld [vmem:[#allocation5 + $0x278] sm:$0xff] }
0x1151   :  { %6843 = vmatprep.subr.mxu0 %v6754_v35  ;;  %6930 = vmatprep.subr.mxu1 %v6808_v54  ;;  %v6777_v35 = vld [vmem:[#allocation5 + $0x180] sm:$0xff] }
0x1152   :  { %6844 = vmatpush1.msra.mxu0 %v6753_v42  ;;  %v6807_v42 = vld [vmem:[#allocation5 + $0x270] sm:$0xff] }
0x1153   :  { %6845 = vmatprep.subr.mxu0 %v6752_v20  ;;  %6931 = vmatpush1.msra.mxu1 %v6807_v42  ;;  %v6776_v20 = vld [vmem:[#allocation5 + $0x178] sm:$0xff] }
0x1154   :  { %6846 = vmatpush1.msra.mxu0 %v6751_v27  ;;  %v6806_v27 = vld [vmem:[#allocation5 + $0x268] sm:$0xff] }
0x1155   :  { %6847 = vmatprep.subr.mxu0 %v6750_v25  ;;  %6932 = vmatprep.subr.mxu1 %v6806_v27  ;;  %v6775_v25 = vld [vmem:[#allocation5 + $0x170] sm:$0xff] }
0x1156   :  { %6848 = vmatpush1.msra.mxu0 %v6749_v33  ;;  %v6805_v33 = vld [vmem:[#allocation5 + $0x260] sm:$0xff] }
0x1157   :  { %6849 = vmatprep.subr.mxu0 %v6748_v46  ;;  %6933 = vmatpush1.msra.mxu1 %v6805_v33  ;;  %v6774_v46 = vld [vmem:[#allocation5 + $0x168] sm:$0xff] }
0x1158   :  { %6850 = vmatpush1.msra.mxu0 %v6747_v18  ;;  %v6804_v18 = vld [vmem:[#allocation5 + $0x258] sm:$0xff] }
0x1159   :  { %6851 = vmatprep.subr.mxu0 %v6746_v24  ;;  %6934 = vmatprep.subr.mxu1 %v6804_v18  ;;  %v6773_v24 = vld [vmem:[#allocation5 + $0x160] sm:$0xff] }
0x115a   :  { %6852 = vmatpush1.msra.mxu0 %v6745_v50  ;;  %v6803_v50 = vld [vmem:[#allocation5 + $0x250] sm:$0xff] }
0x115b   :  { %6853 = vmatprep.subr.mxu0 %v6744_v44  ;;  %6935 = vmatpush1.msra.mxu1 %v6803_v50  ;;  %v6772_v44 = vld [vmem:[#allocation5 + $0x158] sm:$0xff] }
0x115c   :  { %6854 = vmatpush1.msra.mxu0 %v6743_v16  ;;  %v6802_v16 = vld [vmem:[#allocation5 + $0x248] sm:$0xff] }
0x115d   :  { %6855 = vmatprep.subr.mxu0 %v6742_v23  ;;  %6936 = vmatprep.subr.mxu1 %v6802_v16  ;;  %v6771_v23 = vld [vmem:[#allocation5 + $0x150] sm:$0xff] }
0x115e   :  { %6856 = vmatpush1.msra.mxu0 %v6741_v47  ;;  %v6801_v47 = vld [vmem:[#allocation5 + $0x240] sm:$0xff] }
0x115f   :  { %6857 = vmatprep.subr.mxu0 %v6740_v48  ;;  %6937 = vmatpush1.msra.mxu1 %v6801_v47  ;;  %v6770_v48 = vld [vmem:[#allocation5 + $0x148] sm:$0xff] }
0x1160   :  { %6858 = vmatpush1.msra.mxu0 %v6739_v14  ;;  %v6800_v14 = vld [vmem:[#allocation5 + $0x238] sm:$0xff] }
0x1161   :  { %6859 = vmatprep.subr.mxu0 %v6738_v21  ;;  %6938 = vmatprep.subr.mxu1 %v6800_v14  ;;  %v6769_v21 = vld [vmem:[#allocation5 + $0x140] sm:$0xff] }
0x1162   :  { %6860 = vmatpush1.msra.mxu0 %v6737_v51  ;;  %v6799_v51 = vld [vmem:[#allocation5 + $0x230] sm:$0xff] }
0x1163   :  { %6861 = vmatprep.subr.mxu0 %v6736_v52  ;;  %6939 = vmatpush1.msra.mxu1 %v6799_v51  ;;  %v6768_v52 = vld [vmem:[#allocation5 + $0x138] sm:$0xff] }
0x1164   :  { %6862 = vmatpush1.msra.mxu0 %v6735_v12  ;;  %v6798_v12 = vld [vmem:[#allocation5 + $0x228] sm:$0xff] }
0x1165   :  { %6863 = vmatprep.subr.mxu0 %v6734_v56  ;;  %6940 = vmatprep.subr.mxu1 %v6798_v12  ;;  %v6766_v56 = vld [vmem:[#allocation5 + $0x128] sm:$0xff] }
0x1166   :  { %6864 = vmatpush1.msra.mxu0 %v6733_v19  ;;  %6941 = vmatpush1.msra.mxu1 %v6797_v55  ;;  %v6765_v19 = vld [vmem:[#allocation5 + $0x120] sm:$0xff]  ;;  %v7112_v12 = vld [vmem:[#allocation6 + $0x2e8] sm:$0xff] }
0x1167   :  { %6865 = vmatprep.subr.mxu0 %v6732_v43  ;;  %6942 = vmatprep.subr.mxu1 %v6796_v10  ;;  %v6794_v43 = vld [vmem:[#allocation5 + $0x208] sm:$0xff]  ;;  %v7111_v55 = vld [vmem:[#allocation6 + $0x2e0] sm:$0xff]  ;;  %v7110_v10 = vld [vmem:[#allocation6 + $0x2d8] sm:$0xff] }
0x1168   :  { %6866 = vmatpush1.msra.mxu0 %v6731_v61  ;;  %6943 = vmatpush1.msra.mxu1 %v6795_v58  ;;  %v6793_v61 = vld [vmem:[#allocation5 + $0x200] sm:$0xff]  ;;  %v7046_v58 = vld [vmem:[#allocation6 + $0xd8] sm:$0xff] }
0x1169   :  { %6867 = vmatprep.subr.mxu0 %v6730_v53  ;;  %6944 = vmatprep.subr.mxu1 %v6794_v43  ;;  %v6761_v53 = vld [vmem:[#allocation5 + $0x100] sm:$0xff]  ;;  %v7045_v43 = vld [vmem:[#allocation6 + $0xd0] sm:$0xff] }
0x116a   :  { %6868 = vmatpush1.msra.mxu0 %v6729_v49  ;;  %6945 = vmatpush1.msra.mxu1 %v6793_v61  ;;  %v7050_v49 = vld [vmem:[#allocation6 + $0xf8] sm:$0xff]  ;;  %v7044_v61 = vld [vmem:[#allocation6 + $0xc8] sm:$0xff] }
0x116b   :  { %6869 = vmatprep.subr.mxu0 %v6792_v45  ;;  %7223 = vmatprep.subr.mxu1 %v7050_v49  ;;  %v7042_v49 = vld [vmem:[#allocation6 + $0xb8] sm:$0xff] }
0x116c   :  { %6870 = vmatpush2.msra.mxu0 %v6791_v41 }
0x116d   :  { %6871 = vmatprep.subr.mxu0 %v6790_v37 }
0x116e   :  { %6872 = vmatpush2.msra.mxu0 %v6789_v32  ;;  %v7847_v32 = vld [vmem:[%s9792_s7] ss:$0 sm:$0xff] }
0x116f   :  { %6873 = vmatprep.subr.mxu0 %v6788_v0 }
0x1170   :  { %6874 = vmatpush2.msra.mxu0 %v6787_v2 }
0x1171   :  { %6875 = vmatprep.subr.mxu0 %v6786_v3 }
0x1172   :  { %6876 = vmatpush2.msra.mxu0 %v6785_v5 }
0x1173   :  { %6877 = vmatprep.subr.mxu0 %v6784_v6 }
0x1174   :  { %6878 = vmatpush2.msra.mxu0 %v6783_v7 }
0x1175   :  { %6879 = vmatprep.subr.mxu0 %v6782_v8 }
0x1176   :  { %6880 = vmatpush2.msra.mxu0 %v6781_v11 }
0x1177   :  { %6881 = vmatprep.subr.mxu0 %v6780_v15  ;;  %v6708_v15 = vstv %s7846_s9 }
0x1178   :  { %6882 = vmatpush2.msra.mxu0 %v6779_v26 }
0x1179   :  { %6883 = vmatprep.subr.mxu0 %v6778_v30 }
0x117a   :  { %6884 = vmatpush2.msra.mxu0 %v6777_v35 }
0x117b   :  { %6885 = vmatprep.subr.mxu0 %v6776_v20  ;;  %v8783_v20 = vld [vmem:[%s9793_s8 + $0x50] sm:$0xff] }
0x117c   :  { %6886 = vmatpush2.msra.mxu0 %v6775_v25 }
0x117d   :  { %6887 = vmatprep.subr.mxu0 %v6774_v46  ;;  %v8784_v46 = vld [vmem:[%s9793_s8 + $0x58] sm:$0xff] }
0x117e   :  { %6888 = vmatpush2.msra.mxu0 %v6773_v24 }
0x117f   :  { %6889 = vmatprep.subr.mxu0 %v6772_v44 }
0x1180   :  { %6890 = vmatpush2.msra.mxu0 %v6771_v23  ;;  %v7049_v23 = vld [vmem:[#allocation6 + $0xf0] sm:$0xff] }
0x1181   :  { %6891 = vmatprep.subr.mxu0 %v6770_v48 }
0x1182   :  { %6892 = vmatpush2.msra.mxu0 %v6769_v21  ;;  %v7048_v21 = vld [vmem:[#allocation6 + $0xe8] sm:$0xff] }
0x1183   :  { %6893 = vmatprep.subr.mxu0 %v6768_v52  ;;  %v7113_v52 = vld [vmem:[#allocation6 + $0x2f0] sm:$0xff] }
0x1184   :  { %6894 = vmatpush2.msra.mxu0 %v6767_v62 }
0x1185   :  { %6895 = vmatprep.subr.mxu0 %v6766_v56  ;;  %v7047_v56 = vld [vmem:[#allocation6 + $0xe0] sm:$0xff] }
0x1186   :  { %6896 = vmatpush2.msra.mxu0 %v6765_v19  ;;  %v7109_v19 = vld [vmem:[#allocation6 + $0x2d0] sm:$0xff] }
0x1187   :  { %6897 = vmatprep.subr.mxu0 %v6764_v40 }
0x1188   :  { %6898 = vmatpush2.msra.mxu0 %v6763_v59  ;;  %v7107_v59 = vld [vmem:[#allocation6 + $0x2c0] sm:$0xff] }
0x1189   :  { %6899 = vmatprep.subr.mxu0 %v6762_v38  ;;  %v7106_v38 = vld [vmem:[#allocation6 + $0x2b8] sm:$0xff] }
0x118a   :  { %6900 = vmatpush2.msra.mxu0 %v6761_v53  ;;  %v7043_v53 = vld [vmem:[#allocation6 + $0xc0] sm:$0xff] }
0x118b   :  { %7300 = vmatprep.subr.mxu0 %v7114_v34  ;;  %v7105_v34 = vld [vmem:[#allocation6 + $0x2b0] sm:$0xff] }
0x11e9   :  { %v8532_v39 = vpop.f32.mrf.mxu1 }
0x11eb   :  { %v8456_v29 = vpop.f32.mrf.mxu0  ;;  %v8533_v36 = vpop.f32.mrf.mxu1 }
0x11ec   :  { %v8534_v9 = vadd.f32 %v8533_v36, %v8532_v39  ;;  %v7103_v39 = vld [vmem:[#allocation6 + $0x2a0] sm:$0xff]  ;;  %v7102_v36 = vld [vmem:[#allocation6 + $0x298] sm:$0xff] }
0x11ed   :  { %v8457_v45 = vpop.f32.mrf.mxu0  ;;  %v8535_v2 = vpop.f32.mrf.mxu1 }
0x11ee   :  { %v8458_v31 = vadd.f32 %v8457_v45, %v8456_v29  ;;  %v7104_v29 = vld [vmem:[#allocation6 + $0x2a8] sm:$0xff]  ;;  %v7041_v45 = vld [vmem:[#allocation6 + $0xb0] sm:$0xff] }
0x11ef   :  { %v8459_v41 = vpop.f32.mrf.mxu0  ;;  %v8536_v13 = vpop.f32.mrf.mxu1 }
0x11f0   :  { %v6550_v5 = vadd.f32 %v8458_v31, %v7847_v32  ;;  %v8537_v54 = vadd.f32 %v8536_v13, %v8535_v2  ;;  %v7101_v31 = vld [vmem:[#allocation6 + $0x290] sm:$0xff] }
0x11f1   :  { %v8460_v37 = vpop.f32.mrf.mxu0  ;;  %v7037_v2 = vld [vmem:[#allocation6 + $0x90] sm:$0xff] }
0x11f2   :  { %v8461_v6 = vadd.f32 %v8460_v37, %v8459_v41  ;;  %v7040_v41 = vld [vmem:[#allocation6 + $0xa8] sm:$0xff]  ;;  %v7039_v37 = vld [vmem:[#allocation6 + $0xa0] sm:$0xff]  ;;  %v7033_v13 = vld [vmem:[#allocation6 + $0x70] sm:$0xff] }
0x11f4   :  { %v6555_v26 = vadd.f32 %v8461_v6, %v7847_v32  ;;  %v7038_v32 = vld [vmem:[#allocation6 + $0x98] sm:$0xff] }
0x11f5   :  { %v7098_v6 = vld [vmem:[#allocation6 + $0x278] sm:$0xff] }
0x120b   :  { %v8494_v0 = vpop.f32.mrf.mxu0 }
0x120d   :  { %v8495_v3 = vpop.f32.mrf.mxu0 }
0x120e   :  { %v8496_v7 = vadd.f32 %v8495_v3, %v8494_v0  ;;  %v7100_v0 = vld [vmem:[#allocation6 + $0x288] sm:$0xff]  ;;  %v7099_v3 = vld [vmem:[#allocation6 + $0x280] sm:$0xff] }
0x120f   :  { %v8497_v8 = vpop.f32.mrf.mxu0 }
0x1210   :  { %v6625_v11 = vadd.f32 %v8496_v7, %v6550_v5  ;;  %v7036_v5 = vld [vmem:[#allocation6 + $0x88] sm:$0xff]  ;;  %v7035_v7 = vld [vmem:[#allocation6 + $0x80] sm:$0xff] }
0x1211   :  { %v8498_v17 = vpop.f32.mrf.mxu0 }
0x1212   :  { %v6700_v28 = vadd.f32 %v8534_v9, %v6625_v11  ;;  %v8499_v30 = vadd.f32 %v8498_v17, %v8497_v8  ;;  %v7097_v8 = vld [vmem:[#allocation6 + $0x270] sm:$0xff]  ;;  %v7034_v9 = vld [vmem:[#allocation6 + $0x78] sm:$0xff]  ;;  %v7096_v11 = vld [vmem:[#allocation6 + $0x268] sm:$0xff] }
0x1213   :  { %v7032_v17 = vld [vmem:[#allocation6 + $0x68] sm:$0xff] }
0x1214   :  { %v6709_v35 = vmul.f32 %v6708_v15, %v6700_v28  ;;  %v6630_v42 = vadd.f32 %v8499_v30, %v6555_v26  ;;  %v7094_v26 = vld [vmem:[#allocation6 + $0x258] sm:$0xff]  ;;  %v7031_v28 = vld [vmem:[#allocation6 + $0x60] sm:$0xff]  ;;  %v7093_v30 = vld [vmem:[#allocation6 + $0x250] sm:$0xff] }
0x1216   :  { %v6711_v27 = vadd.f32 %v8783_v20, %v6709_v35  ;;  %v6705_v25 = vadd.f32 %v8537_v54, %v6630_v42  ;;  %v7030_v54 = vld [vmem:[#allocation6 + $0x58] sm:$0xff]  ;;  %v7092_v35 = vld [vmem:[#allocation6 + $0x248] sm:$0xff]  ;;  %v7029_v42 = vld [vmem:[#allocation6 + $0x50] sm:$0xff] }
0x1217   :  { %v7091_v20 = vld [vmem:[#allocation6 + $0x240] sm:$0xff] }
0x1218   :  { %7848 = vst [vmem:[%s9793_s8 + $0x60] sm:$0xff] %v6711_v27  ;;  %v6710_v33 = vmul.f32 %v6708_v15, %v6705_v25  ;;  %6901 = vmatprep.mubr.f32.mxu0 %v6711_v27  ;;  %v6723_v24 = vrot.slane %v6711_v27, 1  ;;  %v6717_v44 = vrot.slane %v6711_v27, 7  ;;  %v7095_v15 = vld [vmem:[#allocation6 + $0x260] sm:$0xff]  ;;  %v7028_v27 = vld [vmem:[#allocation6 + $0x48] sm:$0xff]  ;;  %v7090_v25 = vld [vmem:[#allocation6 + $0x238] sm:$0xff] }
0x121a   :  { %v6712_v18 = vadd.f32 %v8784_v46, %v6710_v33  ;;  %v7027_v33 = vld [vmem:[#allocation6 + $0x40] sm:$0xff]  ;;  %v7089_v46 = vld [vmem:[#allocation6 + $0x230] sm:$0xff] }
0x121c   :  { %7849 = vst [vmem:[%s9793_s8 + $0x68] sm:$0xff] %v6712_v18  ;;  %v6724_v50 = vrot.slane %v6712_v18, 1  ;;  %v6718_v16 = vrot.slane %v6712_v18, 7 }
0x121e   :  { %v6725_v47 = vsel %vm112_vm1, %v6723_v24, %v6724_v50  ;;  %v6720_v48 = vsel %vm105_vm3, %v6718_v16, %v6717_v44  ;;  %v6726_v14 = vsel %vm112_vm1, %v6724_v50, %v6723_v24  ;;  %v6719_v40 = vsel %vm105_vm3, %v6717_v44, %v6718_v16  ;;  %v7088_v24 = vld [vmem:[#allocation6 + $0x228] sm:$0xff]  ;;  %v7025_v50 = vld [vmem:[#allocation6 + $0x30] sm:$0xff]  ;;  %v7087_v44 = vld [vmem:[#allocation6 + $0x220] sm:$0xff] }
0x121f   :  { %6979 = vmatmul.mubr.f32.vlgmr.msra.gmra.mxu1 %v6725_v47  ;;  %v6721_v51 = vmul.f32 %v8971_v57, %v6720_v48  ;;  %v6728_v62 = vmul.f32 %v8957_v22, %v6726_v14  ;;  %v7024_v16 = vld [vmem:[#allocation6 + $0x28] sm:$0xff]  ;;  %v7023_v47 = vld [vmem:[#allocation6 + $0x20] sm:$0xff]  ;;  %v7085_v48 = vld [vmem:[#allocation6 + $0x210] sm:$0xff] }
0x1220   :  { %6984 = vmatprep.mubr.f32.mxu1 %v8873_v4  ;;  %7224 = vmatpush1.msra.mxu1 %v7049_v23  ;;  %v7108_v4 = vld [vmem:[#allocation6 + $0x2c8] sm:$0xff]  ;;  %v7086_v23 = vld [vmem:[#allocation6 + $0x218] sm:$0xff] }
0x1221   :  { %6902 = vmatmul.mubr.f32.vlgmr.msra.gmra.mxu0 %v6721_v51  ;;  %7225 = vmatprep.subr.mxu1 %v7048_v21  ;;  %v7022_v14 = vld [vmem:[#allocation6 + $0x18] sm:$0xff]  ;;  %v7084_v21 = vld [vmem:[#allocation6 + $0x208] sm:$0xff]  ;;  %v7021_v51 = vld [vmem:[#allocation6 + $0x10] sm:$0xff] }
0x1222   :  { %6907 = vmatprep.mubr.f32.mxu0 %v6712_v18  ;;  %7301 = vmatpush1.msra.mxu0 %v7113_v52  ;;  %v7026_v18 = vld [vmem:[#allocation6 + $0x38] sm:$0xff]  ;;  %v7083_v52 = vld [vmem:[#allocation6 + $0x200] sm:$0xff] }
0x1223   :  { %6985 = vmatmul.mubr.f32.gmra.mxu1 %v6728_v62  ;;  %7302 = vmatprep.subr.mxu0 %v7112_v12  ;;  %v7020_v12 = vld [vmem:[#allocation6 + $0x8] sm:$0xff]  ;;  %v7146_v62 = vld [vmem:[#allocation6 + $0x3f8] sm:$0xff] }
0x1224   :  { %7303 = vmatpush1.msra.mxu0 %v7111_v55  ;;  %7226 = vmatpush1.msra.mxu1 %v7047_v56  ;;  %v7019_v55 = vld [vmem:[#allocation6] sm:$0xff]  ;;  %v7145_v56 = vld [vmem:[#allocation6 + $0x3f0] sm:$0xff] }
0x1225   :  { %6908 = vmatmul.mubr.f32.gmra.mxu0 %v6719_v40  ;;  %7304 = vmatprep.subr.mxu0 %v7110_v10  ;;  %v7144_v10 = vld [vmem:[#allocation6 + $0x3e8] sm:$0xff]  ;;  %v7141_v40 = vld [vmem:[#allocation6 + $0x3d0] sm:$0xff] }
0x1226   :  { %7305 = vmatpush1.msra.mxu0 %v7109_v19  ;;  %7227 = vmatprep.subr.mxu1 %v7046_v58  ;;  %v7143_v19 = vld [vmem:[#allocation6 + $0x3e0] sm:$0xff]  ;;  %v7142_v58 = vld [vmem:[#allocation6 + $0x3d8] sm:$0xff] }
0x1227   :  { %7306 = vmatprep.subr.mxu0 %v7108_v4  ;;  %7228 = vmatpush1.msra.mxu1 %v7045_v43  ;;  %v7140_v4 = vld [vmem:[#allocation6 + $0x3c8] sm:$0xff]  ;;  %v7139_v43 = vld [vmem:[#allocation6 + $0x3c0] sm:$0xff] }
0x1228   :  { %7307 = vmatpush1.msra.mxu0 %v7107_v59  ;;  %7229 = vmatprep.subr.mxu1 %v7044_v61  ;;  %v7082_v59 = vld [vmem:[#allocation6 + $0x1f8] sm:$0xff] }
0x1229   :  { %7308 = vmatprep.subr.mxu0 %v7106_v38  ;;  %7230 = vmatpush1.msra.mxu1 %v7043_v53  ;;  %v7138_v61 = vld [vmem:[#allocation6 + $0x3b8] sm:$0xff]  ;;  %v7081_v38 = vld [vmem:[#allocation6 + $0x1f0] sm:$0xff] }
0x122a   :  { %7309 = vmatpush1.msra.mxu0 %v7105_v34  ;;  %7231 = vmatprep.subr.mxu1 %v7042_v49  ;;  %v7137_v53 = vld [vmem:[#allocation6 + $0x3b0] sm:$0xff]  ;;  %v7080_v34 = vld [vmem:[#allocation6 + $0x1e8] sm:$0xff] }
0x122b   :  { %7310 = vmatprep.subr.mxu0 %v7104_v29  ;;  %7232 = vmatpush1.msra.mxu1 %v7041_v45  ;;  %v7136_v49 = vld [vmem:[#allocation6 + $0x3a8] sm:$0xff]  ;;  %v7079_v29 = vld [vmem:[#allocation6 + $0x1e0] sm:$0xff] }
0x122c   :  { %7311 = vmatpush1.msra.mxu0 %v7103_v39  ;;  %7233 = vmatprep.subr.mxu1 %v7040_v41  ;;  %v7135_v45 = vld [vmem:[#allocation6 + $0x3a0] sm:$0xff]  ;;  %v7078_v39 = vld [vmem:[#allocation6 + $0x1d8] sm:$0xff] }
0x122d   :  { %7312 = vmatprep.subr.mxu0 %v7102_v36  ;;  %7234 = vmatpush1.msra.mxu1 %v7039_v37  ;;  %v7134_v41 = vld [vmem:[#allocation6 + $0x398] sm:$0xff]  ;;  %v7077_v36 = vld [vmem:[#allocation6 + $0x1d0] sm:$0xff] }
0x122e   :  { %7313 = vmatpush1.msra.mxu0 %v7101_v31  ;;  %7235 = vmatprep.subr.mxu1 %v7038_v32  ;;  %v7133_v37 = vld [vmem:[#allocation6 + $0x390] sm:$0xff]  ;;  %v7076_v31 = vld [vmem:[#allocation6 + $0x1c8] sm:$0xff] }
0x122f   :  { %7314 = vmatprep.subr.mxu0 %v7100_v0  ;;  %7236 = vmatpush1.msra.mxu1 %v7037_v2  ;;  %v7132_v32 = vld [vmem:[#allocation6 + $0x388] sm:$0xff]  ;;  %v7075_v0 = vld [vmem:[#allocation6 + $0x1c0] sm:$0xff] }
0x1230   :  { %7315 = vmatpush1.msra.mxu0 %v7099_v3  ;;  %7237 = vmatprep.subr.mxu1 %v7036_v5  ;;  %v7131_v2 = vld [vmem:[#allocation6 + $0x380] sm:$0xff]  ;;  %v7074_v3 = vld [vmem:[#allocation6 + $0x1b8] sm:$0xff] }
0x1231   :  { %7316 = vmatprep.subr.mxu0 %v7098_v6  ;;  %7238 = vmatpush1.msra.mxu1 %v7035_v7  ;;  %v7130_v5 = vld [vmem:[#allocation6 + $0x378] sm:$0xff]  ;;  %v7073_v6 = vld [vmem:[#allocation6 + $0x1b0] sm:$0xff] }
0x1232   :  { %7317 = vmatpush1.msra.mxu0 %v7097_v8  ;;  %7239 = vmatprep.subr.mxu1 %v7034_v9  ;;  %v7129_v7 = vld [vmem:[#allocation6 + $0x370] sm:$0xff]  ;;  %v7072_v8 = vld [vmem:[#allocation6 + $0x1a8] sm:$0xff] }
0x1233   :  { %7318 = vmatprep.subr.mxu0 %v7096_v11  ;;  %7240 = vmatpush1.msra.mxu1 %v7033_v13  ;;  %v7128_v9 = vld [vmem:[#allocation6 + $0x368] sm:$0xff]  ;;  %v7071_v11 = vld [vmem:[#allocation6 + $0x1a0] sm:$0xff] }
0x1234   :  { %7319 = vmatpush1.msra.mxu0 %v7095_v15  ;;  %7241 = vmatprep.subr.mxu1 %v7032_v17  ;;  %v7127_v13 = vld [vmem:[#allocation6 + $0x360] sm:$0xff]  ;;  %v7070_v15 = vld [vmem:[#allocation6 + $0x198] sm:$0xff] }
0x1235   :  { %7320 = vmatprep.subr.mxu0 %v7094_v26  ;;  %7242 = vmatpush1.msra.mxu1 %v7031_v28  ;;  %v7126_v17 = vld [vmem:[#allocation6 + $0x358] sm:$0xff]  ;;  %v7069_v26 = vld [vmem:[#allocation6 + $0x190] sm:$0xff] }
0x1236   :  { %7321 = vmatpush1.msra.mxu0 %v7093_v30  ;;  %7243 = vmatprep.subr.mxu1 %v7030_v54  ;;  %v7125_v28 = vld [vmem:[#allocation6 + $0x350] sm:$0xff]  ;;  %v7068_v30 = vld [vmem:[#allocation6 + $0x188] sm:$0xff] }
0x1237   :  { %7322 = vmatprep.subr.mxu0 %v7092_v35  ;;  %7244 = vmatpush1.msra.mxu1 %v7029_v42  ;;  %v7124_v54 = vld [vmem:[#allocation6 + $0x348] sm:$0xff]  ;;  %v7067_v35 = vld [vmem:[#allocation6 + $0x180] sm:$0xff] }
0x1238   :  { %7323 = vmatpush1.msra.mxu0 %v7091_v20  ;;  %7245 = vmatprep.subr.mxu1 %v7028_v27  ;;  %v7123_v42 = vld [vmem:[#allocation6 + $0x340] sm:$0xff]  ;;  %v7066_v20 = vld [vmem:[#allocation6 + $0x178] sm:$0xff] }
0x1239   :  { %7324 = vmatprep.subr.mxu0 %v7090_v25  ;;  %7246 = vmatpush1.msra.mxu1 %v7027_v33  ;;  %v7122_v27 = vld [vmem:[#allocation6 + $0x338] sm:$0xff]  ;;  %v7065_v25 = vld [vmem:[#allocation6 + $0x170] sm:$0xff] }
0x123a   :  { %7325 = vmatpush1.msra.mxu0 %v7089_v46  ;;  %7247 = vmatprep.subr.mxu1 %v7026_v18  ;;  %v7121_v33 = vld [vmem:[#allocation6 + $0x330] sm:$0xff]  ;;  %v7064_v46 = vld [vmem:[#allocation6 + $0x168] sm:$0xff] }
0x123b   :  { %7326 = vmatprep.subr.mxu0 %v7088_v24  ;;  %7248 = vmatpush1.msra.mxu1 %v7025_v50  ;;  %v7120_v18 = vld [vmem:[#allocation6 + $0x328] sm:$0xff]  ;;  %v7063_v24 = vld [vmem:[#allocation6 + $0x160] sm:$0xff] }
0x123c   :  { %7327 = vmatpush1.msra.mxu0 %v7087_v44  ;;  %7249 = vmatprep.subr.mxu1 %v7024_v16  ;;  %v7119_v50 = vld [vmem:[#allocation6 + $0x320] sm:$0xff]  ;;  %v7062_v44 = vld [vmem:[#allocation6 + $0x158] sm:$0xff] }
0x123d   :  { %7328 = vmatprep.subr.mxu0 %v7086_v23  ;;  %7250 = vmatpush1.msra.mxu1 %v7023_v47  ;;  %v7118_v16 = vld [vmem:[#allocation6 + $0x318] sm:$0xff]  ;;  %v7061_v23 = vld [vmem:[#allocation6 + $0x150] sm:$0xff] }
0x123e   :  { %7329 = vmatpush1.msra.mxu0 %v7085_v48  ;;  %7251 = vmatprep.subr.mxu1 %v7022_v14  ;;  %v7117_v47 = vld [vmem:[#allocation6 + $0x310] sm:$0xff]  ;;  %v7060_v48 = vld [vmem:[#allocation6 + $0x148] sm:$0xff] }
0x123f   :  { %7330 = vmatprep.subr.mxu0 %v7084_v21  ;;  %7252 = vmatpush1.msra.mxu1 %v7021_v51  ;;  %v7116_v14 = vld [vmem:[#allocation6 + $0x308] sm:$0xff]  ;;  %v7059_v21 = vld [vmem:[#allocation6 + $0x140] sm:$0xff] }
0x1240   :  { %7331 = vmatpush1.msra.mxu0 %v7083_v52  ;;  %7253 = vmatprep.subr.mxu1 %v7020_v12  ;;  %v7115_v51 = vld [vmem:[#allocation6 + $0x300] sm:$0xff]  ;;  %v7058_v52 = vld [vmem:[#allocation6 + $0x138] sm:$0xff]  ;;  %v7057_v12 = vld [vmem:[#allocation6 + $0x130] sm:$0xff] }
0x1241   :  { %7332 = vmatprep.subr.mxu0 %v7146_v62  ;;  %7254 = vmatpush1.msra.mxu1 %v7019_v55  ;;  %v7056_v62 = vld [vmem:[#allocation6 + $0x128] sm:$0xff]  ;;  %v7055_v55 = vld [vmem:[#allocation6 + $0x120] sm:$0xff] }
0x1242   :  { %7333 = vmatpush2.msra.mxu0 %v7145_v56  ;;  %7255 = vmatprep.subr.mxu1 %v7082_v59  ;;  %v7054_v56 = vld [vmem:[#allocation6 + $0x118] sm:$0xff] }
0x1243   :  { %7334 = vmatprep.subr.mxu0 %v7144_v10  ;;  %7256 = vmatpush2.msra.mxu1 %v7081_v38  ;;  %v7053_v10 = vld [vmem:[#allocation6 + $0x110] sm:$0xff] }
0x1244   :  { %7335 = vmatpush2.msra.mxu0 %v7143_v19  ;;  %7257 = vmatprep.subr.mxu1 %v7080_v34  ;;  %v7052_v19 = vld [vmem:[#allocation6 + $0x108] sm:$0xff] }
0x1245   :  { %7336 = vmatprep.subr.mxu0 %v7142_v58  ;;  %7258 = vmatpush2.msra.mxu1 %v7079_v29  ;;  %v7051_v58 = vld [vmem:[#allocation6 + $0x100] sm:$0xff] }
0x1246   :  { %7337 = vmatpush2.msra.mxu0 %v7141_v40  ;;  %7259 = vmatprep.subr.mxu1 %v7078_v39  ;;  %v7178_v40 = vld [vmem:[#allocation6 + $0x4f8] sm:$0xff] }
0x1247   :  { %7338 = vmatprep.subr.mxu0 %v7140_v4  ;;  %7260 = vmatpush2.msra.mxu1 %v7077_v36  ;;  %v6825_v4 = vld [vmem:[%s9788_s3] sm:$0x3] }
0x1248   :  { %7339 = vmatpush2.msra.mxu0 %v7139_v43  ;;  %7261 = vmatprep.subr.mxu1 %v7076_v31  ;;  %v6830_v43 = vrot.slane %v6825_v4, %v8980_v60 }
0x1249   :  { %7340 = vmatprep.subr.mxu0 %v7138_v61  ;;  %7262 = vmatpush2.msra.mxu1 %v7075_v0  ;;  %v6834_v61 = vrot.slane %v6825_v4, %v8986_v63  ;;  %v7158_v4 = vld [vmem:[#allocation6 + $0x458] sm:$0xff] }
0x124a   :  { %7341 = vmatpush2.msra.mxu0 %v7137_v53  ;;  %7263 = vmatprep.subr.mxu1 %v7074_v3 }
0x124b   :  { %7342 = vmatprep.subr.mxu0 %v7136_v49  ;;  %7264 = vmatpush2.msra.mxu1 %v7073_v6 }
0x124c   :  { %7343 = vmatpush2.msra.mxu0 %v7135_v45  ;;  %7265 = vmatprep.subr.mxu1 %v7072_v8 }
0x124d   :  { %7344 = vmatprep.subr.mxu0 %v7134_v41  ;;  %7266 = vmatpush2.msra.mxu1 %v7071_v11 }
0x124e   :  { %7345 = vmatpush2.msra.mxu0 %v7133_v37  ;;  %7267 = vmatprep.subr.mxu1 %v7070_v15 }
0x124f   :  { %7346 = vmatprep.subr.mxu0 %v7132_v32  ;;  %7268 = vmatpush2.msra.mxu1 %v7069_v26 }
0x1250   :  { %7347 = vmatpush2.msra.mxu0 %v7131_v2  ;;  %7269 = vmatprep.subr.mxu1 %v7068_v30 }
0x1251   :  { %7348 = vmatprep.subr.mxu0 %v7130_v5  ;;  %7270 = vmatpush2.msra.mxu1 %v7067_v35 }
0x1252   :  { %7349 = vmatpush2.msra.mxu0 %v7129_v7  ;;  %7271 = vmatprep.subr.mxu1 %v7066_v20 }
0x1253   :  { %7350 = vmatprep.subr.mxu0 %v7128_v9  ;;  %7272 = vmatpush2.msra.mxu1 %v7065_v25  ;;  %v7176_v25 = vld [vmem:[#allocation6 + $0x4e8] sm:$0xff] }
0x1254   :  { %7351 = vmatpush2.msra.mxu0 %v7127_v13  ;;  %7273 = vmatprep.subr.mxu1 %v7064_v46  ;;  %v7175_v46 = vld [vmem:[#allocation6 + $0x4e0] sm:$0xff] }
0x1255   :  { %7352 = vmatprep.subr.mxu0 %v7126_v17  ;;  %7274 = vmatpush2.msra.mxu1 %v7063_v24  ;;  %v7174_v24 = vld [vmem:[#allocation6 + $0x4d8] sm:$0xff] }
0x1256   :  { %7353 = vmatpush2.msra.mxu0 %v7125_v28  ;;  %7275 = vmatprep.subr.mxu1 %v7062_v44 }
0x1257   :  { %7354 = vmatprep.subr.mxu0 %v7124_v54  ;;  %7276 = vmatpush2.msra.mxu1 %v7061_v23  ;;  %v7172_v23 = vld [vmem:[#allocation6 + $0x4c8] sm:$0xff] }
0x1258   :  { %7355 = vmatpush2.msra.mxu0 %v7123_v42  ;;  %7277 = vmatprep.subr.mxu1 %v7060_v48  ;;  %v7171_v48 = vld [vmem:[#allocation6 + $0x4c0] sm:$0xff] }
0x1259   :  { %7356 = vmatprep.subr.mxu0 %v7122_v27  ;;  %7278 = vmatpush2.msra.mxu1 %v7059_v21  ;;  %v7177_v27 = vld [vmem:[#allocation6 + $0x4f0] sm:$0xff] }
0x125a   :  { %7357 = vmatpush2.msra.mxu0 %v7121_v33  ;;  %7279 = vmatprep.subr.mxu1 %v7058_v52  ;;  %v7169_v21 = vld [vmem:[#allocation6 + $0x4b0] sm:$0xff]  ;;  %v7167_v52 = vld [vmem:[#allocation6 + $0x4a0] sm:$0xff] }
0x125b   :  { %7358 = vmatprep.subr.mxu0 %v7120_v18  ;;  %7280 = vmatpush2.msra.mxu1 %v7057_v12  ;;  %v7166_v12 = vld [vmem:[#allocation6 + $0x498] sm:$0xff] }
0x125c   :  { %7359 = vmatpush2.msra.mxu0 %v7119_v50  ;;  %7281 = vmatprep.subr.mxu1 %v7056_v62  ;;  %v7173_v50 = vld [vmem:[#allocation6 + $0x4d0] sm:$0xff] }
0x125d   :  { %7360 = vmatprep.subr.mxu0 %v7118_v16  ;;  %7282 = vmatpush2.msra.mxu1 %v7055_v55  ;;  %v7165_v62 = vld [vmem:[#allocation6 + $0x490] sm:$0xff]  ;;  %v7164_v55 = vld [vmem:[#allocation6 + $0x488] sm:$0xff] }
0x125e   :  { %7361 = vmatpush2.msra.mxu0 %v7117_v47  ;;  %7283 = vmatprep.subr.mxu1 %v7054_v56  ;;  %v7163_v56 = vld [vmem:[#allocation6 + $0x480] sm:$0xff] }
0x125f   :  { %7362 = vmatprep.subr.mxu0 %v7116_v14  ;;  %7284 = vmatpush2.msra.mxu1 %v7053_v10  ;;  %v7170_v14 = vld [vmem:[#allocation6 + $0x4b8] sm:$0xff] }
0x1260   :  { %7363 = vmatpush2.msra.mxu0 %v7115_v51  ;;  %7285 = vmatprep.subr.mxu1 %v7052_v19  ;;  %v7168_v51 = vld [vmem:[#allocation6 + $0x4a8] sm:$0xff]  ;;  %v7162_v10 = vld [vmem:[#allocation6 + $0x478] sm:$0xff]  ;;  %v7161_v19 = vld [vmem:[#allocation6 + $0x470] sm:$0xff] }
0x1261   :  { %7286 = vmatpush2.msra.mxu1 %v7051_v58  ;;  %v7160_v58 = vld [vmem:[#allocation6 + $0x468] sm:$0xff] }
0x1262   :  { %7377 = vmatprep.subr.mxu1 %v7178_v40  ;;  %v7159_v40 = vld [vmem:[#allocation6 + $0x460] sm:$0xff] }
0x12df   :  { %v6980_v59 = vpop.f32.mrf.mxu1 }
0x12e1   :  { %v6903_v38 = vpop.f32.mrf.mxu0  ;;  %v6982_v53 = vpop.f32.mrf.mxu1 }
0x12e2   :  { %v6904_v34 = vadd.f32 %v6903_v38, %v6830_v43  ;;  %v7154_v38 = vld [vmem:[#allocation6 + $0x438] sm:$0xff] }
0x12e3   :  { %v6905_v49 = vpop.f32.mrf.mxu0  ;;  %v6986_v39 = vpop.f32.mrf.mxu1 }
0x12e4   :  { %v6906_v29 = vadd.f32 %v6905_v49, %v6834_v61  ;;  %v6981_v45 = vadd.f32 %v6980_v59, %v6904_v34  ;;  %v7156_v59 = vld [vmem:[#allocation6 + $0x448] sm:$0xff]  ;;  %v7151_v49 = vld [vmem:[#allocation6 + $0x420] sm:$0xff] }
0x12e5   :  { %v6909_v41 = vpop.f32.mrf.mxu0  ;;  %v6988_v2 = vpop.f32.mrf.mxu1  ;;  %v7152_v34 = vld [vmem:[#allocation6 + $0x428] sm:$0xff] }
0x12e6   :  { %v6983_v36 = vadd.f32 %v6982_v53, %v6906_v29  ;;  %v6910_v37 = vadd.f32 %v6909_v41, %v6830_v43  ;;  %v7157_v43 = vld [vmem:[#allocation6 + $0x450] sm:$0xff]  ;;  %v7150_v29 = vld [vmem:[#allocation6 + $0x418] sm:$0xff]  ;;  %v7147_v41 = vld [vmem:[#allocation6 + $0x400] sm:$0xff] }
0x12e7   :  { %v6911_v31 = vpop.f32.mrf.mxu0  ;;  %v7153_v53 = vld [vmem:[#allocation6 + $0x430] sm:$0xff] }
0x12e8   :  { %8757 = vtanh.f32 %v6983_v36  ;;  %v6987_v32 = vadd.f32 %v6986_v39, %v6910_v37  ;;  %v6912_v0 = vadd.f32 %v6911_v31, %v6834_v61  ;;  %v7155_v61 = vld [vmem:[#allocation6 + $0x440] sm:$0xff]  ;;  %v7148_v39 = vld [vmem:[#allocation6 + $0x408] sm:$0xff]  ;;  %v7210_v36 = vld [vmem:[#allocation6 + $0x5f8] sm:$0xff] }
0x12e9   :  { %8759 = vtanh.f32 %v6981_v45  ;;  %v7149_v45 = vld [vmem:[#allocation6 + $0x410] sm:$0xff]  ;;  %v7208_v31 = vld [vmem:[#allocation6 + $0x5e8] sm:$0xff] }
0x12ea   :  { %8761 = vtanh.f32 %v6987_v32  ;;  %v6989_v3 = vadd.f32 %v6988_v2, %v6912_v0  ;;  %v7209_v37 = vld [vmem:[#allocation6 + $0x5f0] sm:$0xff]  ;;  %v7207_v32 = vld [vmem:[#allocation6 + $0x5e0] sm:$0xff]  ;;  %v7206_v0 = vld [vmem:[#allocation6 + $0x5d8] sm:$0xff] }
0x12eb   :  { %v7205_v2 = vld [vmem:[#allocation6 + $0x5d0] sm:$0xff] }
0x12ec   :  { %8763 = vtanh.f32 %v6989_v3  ;;  %v7204_v3 = vld [vmem:[#allocation6 + $0x5c8] sm:$0xff] }
0x12f5   :  { %v9686_v5 = vpop.eup %8757 }
0x12f6   :  { %v8760_v6 = vpop.eup %8759  ;;  %7364 = vmatprep.mubr.f32.mxu0 %v9686_v5  ;;  %v6996_v17 = vrot.slane %v9686_v5, 7  ;;  %v7008_v44 = vrot.slane %v9686_v5, 1  ;;  %v7561_v5 = vld [vmem:[#allocation8 + $0x278] sm:$0xff] }
0x12f7   :  { %v8762_v7 = vpop.eup %8761  ;;  %7365 = vmatmul.mubr.f32.vlgmr.msra.gmra.mxu0 %v8760_v6  ;;  %v6995_v13 = vrot.slane %v8760_v6, 7  ;;  %v7007_v15 = vrot.slane %v8760_v6, 1  ;;  %v7203_v6 = vld [vmem:[#allocation6 + $0x5c0] sm:$0xff] }
0x12f8   :  { %v6997_v8 = vrot.slane %v8762_v7, 7  ;;  %v7009_v9 = vrot.slane %v8762_v7, 1 }
0x12f9   :  { %v9689_v11 = vpop.eup %8763 }
0x12fa   :  { %7370 = vmatprep.mubr.f32.mxu0 %v9689_v11  ;;  %v6998_v26 = vrot.slane %v9689_v11, 7  ;;  %v7001_v28 = vsel %vm105_vm3, %v6997_v8, %v6995_v13  ;;  %v9698_v30 = vsel %vm112_vm1, %v7007_v15, %v7009_v9  ;;  %v9702_v54 = vsel %vm112_vm1, %v7009_v9, %v7007_v15  ;;  %v7200_v9 = vld [vmem:[#allocation6 + $0x5a8] sm:$0xff]  ;;  %v7198_v15 = vld [vmem:[#allocation6 + $0x598] sm:$0xff] }
0x12fb   :  { %7371 = vmatmul.mubr.f32.gmra.mxu0 %v8762_v7  ;;  %v7003_v20 = vmul.f32 %v8971_v57, %v7001_v28  ;;  %v7010_v18 = vrot.slane %v9689_v11, 1  ;;  %v6999_v16 = vsel %vm105_vm3, %v6995_v13, %v6997_v8  ;;  %v7202_v7 = vld [vmem:[#allocation6 + $0x5b8] sm:$0xff]  ;;  %v7201_v8 = vld [vmem:[#allocation6 + $0x5b0] sm:$0xff]  ;;  %v7199_v13 = vld [vmem:[#allocation6 + $0x5a0] sm:$0xff] }
0x12fc   :  { %v7002_v35 = vsel %vm105_vm3, %v6998_v26, %v6996_v17  ;;  %v7000_v33 = vsel %vm105_vm3, %v6996_v17, %v6998_v26  ;;  %v7197_v17 = vld [vmem:[#allocation6 + $0x590] sm:$0xff]  ;;  %v7196_v26 = vld [vmem:[#allocation6 + $0x588] sm:$0xff]  ;;  %v7195_v28 = vld [vmem:[#allocation6 + $0x580] sm:$0xff] }
0x12fd   :  { %v7004_v42 = vmul.f32 %v8971_v57, %v7002_v35  ;;  %v7012_v47 = vsel %vm112_vm1, %v7008_v44, %v7010_v18  ;;  %v7194_v35 = vld [vmem:[#allocation6 + $0x578] sm:$0xff] }
0x12fe   :  { %v7497_v11 = vld [vmem:[#allocation8 + $0x78] sm:$0xff] }
0x12ff   :  { %7287 = vmatprep.mubr.f32.mxu1 %v7004_v42  ;;  %v7193_v42 = vld [vmem:[#allocation6 + $0x570] sm:$0xff] }
0x1300   :  { %7288 = vmatmul.mubr.f32.vlgmr.msra.gmra.mxu1 %v7003_v20  ;;  %v7192_v20 = vld [vmem:[#allocation6 + $0x568] sm:$0xff] }
0x1301   :  { %7378 = vmatpush1.msra.mxu1 %v7177_v27  ;;  %7293 = vmatprep.mubr.f32.mxu1 %v7000_v33  ;;  %v7191_v27 = vld [vmem:[#allocation6 + $0x560] sm:$0xff]  ;;  %v7189_v33 = vld [vmem:[#allocation6 + $0x550] sm:$0xff] }
0x1302   :  { %7379 = vmatprep.subr.mxu1 %v7176_v25  ;;  %v7190_v25 = vld [vmem:[#allocation6 + $0x558] sm:$0xff] }
0x1303   :  { %7380 = vmatpush1.msra.mxu1 %v7175_v46  ;;  %v7188_v46 = vld [vmem:[#allocation6 + $0x548] sm:$0xff] }
0x1304   :  { %7381 = vmatprep.subr.mxu1 %v7174_v24  ;;  %7294 = vmatmul.mubr.f32.gmra.mxu1 %v6999_v16  ;;  %v7187_v24 = vld [vmem:[#allocation6 + $0x540] sm:$0xff]  ;;  %v7185_v16 = vld [vmem:[#allocation6 + $0x530] sm:$0xff] }
0x1305   :  { %7382 = vmatpush1.msra.mxu1 %v7173_v50  ;;  %7441 = vmatprep.mubr.f32.mxu1 %v7012_v47  ;;  %v7186_v50 = vld [vmem:[#allocation6 + $0x538] sm:$0xff]  ;;  %v7183_v47 = vld [vmem:[#allocation6 + $0x520] sm:$0xff] }
0x1306   :  { %7383 = vmatprep.subr.mxu1 %v7172_v23  ;;  %v7184_v23 = vld [vmem:[#allocation6 + $0x528] sm:$0xff] }
0x1307   :  { %7384 = vmatpush1.msra.mxu1 %v7171_v48  ;;  %v7182_v48 = vld [vmem:[#allocation6 + $0x518] sm:$0xff] }
0x1308   :  { %7385 = vmatprep.subr.mxu1 %v7170_v14  ;;  %v7181_v14 = vld [vmem:[#allocation6 + $0x510] sm:$0xff] }
0x1309   :  { %7386 = vmatpush1.msra.mxu1 %v7169_v21  ;;  %v7180_v21 = vld [vmem:[#allocation6 + $0x508] sm:$0xff] }
0x130a   :  { %7387 = vmatprep.subr.mxu1 %v7168_v51  ;;  %v7179_v51 = vld [vmem:[#allocation6 + $0x500] sm:$0xff] }
0x130b   :  { %7388 = vmatpush1.msra.mxu1 %v7167_v52  ;;  %v7014_v52 = vsel %vm112_vm1, %v7010_v18, %v7008_v44  ;;  %v7512_v18 = vld [vmem:[#allocation8 + $0xf0] sm:$0xff] }
0x130c   :  { %7389 = vmatprep.subr.mxu1 %v7166_v12  ;;  %v7018_v12 = vmul.f32 %v8957_v22, %v7014_v52  ;;  %v7560_v44 = vld [vmem:[#allocation8 + $0x270] sm:$0xff]  ;;  %v7563_v52 = vld [vmem:[#allocation8 + $0x288] sm:$0xff] }
0x130d   :  { %7390 = vmatpush1.msra.mxu1 %v7165_v62  ;;  %v7017_v62 = vmul.f32 %v8957_v22, %v9702_v54  ;;  %v7559_v54 = vld [vmem:[#allocation8 + $0x268] sm:$0xff] }
0x130e   :  { %7391 = vmatprep.subr.mxu1 %v7164_v55  ;;  %v7577_v55 = vld [vmem:[#allocation8 + $0x2f8] sm:$0xff] }
0x130f   :  { %7392 = vmatpush1.msra.mxu1 %v7163_v56  ;;  %v7513_v56 = vld [vmem:[#allocation8 + $0xf8] sm:$0xff] }
0x1310   :  { %7393 = vmatprep.subr.mxu1 %v7162_v10  ;;  %8538 = vmatprep.subr.mxu0 %v7513_v56  ;;  %v7576_v10 = vld [vmem:[#allocation8 + $0x2f0] sm:$0xff]  ;;  %v7562_v56 = vld [vmem:[#allocation8 + $0x280] sm:$0xff] }
0x1311   :  { %7394 = vmatpush1.msra.mxu1 %v7161_v19  ;;  %8539 = vmatpush3.msra.mxu0 %v7497_v11  ;;  %v7496_v19 = vld [vmem:[#allocation8 + $0x70] sm:$0xff]  ;;  %v7546_v11 = vld [vmem:[#allocation8 + $0x200] sm:$0xff] }
0x1312   :  { %7395 = vmatprep.subr.mxu1 %v7160_v58  ;;  %v7575_v58 = vld [vmem:[#allocation8 + $0x2e8] sm:$0xff]  ;;  %8540 = vmatprep.subr.mxu0 %v7512_v18  ;;  %v7545_v18 = vld [vmem:[#allocation8 + $0x1f8] sm:$0xff] }
0x1313   :  { %7396 = vmatpush1.msra.mxu1 %v7159_v40  ;;  %8541 = vmatpush3.msra.mxu0 %v7496_v19  ;;  %v7495_v40 = vld [vmem:[#allocation8 + $0x68] sm:$0xff]  ;;  %v7211_v19 = vld [vmem:[%s9790_s5] sm:$0x3]  ;;  %s7850_s5 = sld [smem:[#allocation2 + $0x6]] }
0x1314   :  { %7397 = vmatprep.subr.mxu1 %v7158_v4  ;;  %v7574_v4 = vld [vmem:[#allocation8 + $0x2e0] sm:$0xff] }
0x1315   :  { %7398 = vmatpush1.msra.mxu1 %v7157_v43  ;;  %v7510_v43 = vld [vmem:[#allocation8 + $0xe0] sm:$0xff] }
0x1316   :  { %7399 = vmatprep.subr.mxu1 %v7156_v59  ;;  %v7558_v59 = vld [vmem:[#allocation8 + $0x260] sm:$0xff] }
0x1317   :  { %7400 = vmatpush1.msra.mxu1 %v7155_v61  ;;  %v7494_v61 = vld [vmem:[#allocation8 + $0x60] sm:$0xff] }
0x1318   :  { %7401 = vmatprep.subr.mxu1 %v7154_v38  ;;  %v7573_v38 = vld [vmem:[#allocation8 + $0x2d8] sm:$0xff] }
0x1319   :  { %7402 = vmatpush1.msra.mxu1 %v7153_v53  ;;  %v7509_v53 = vld [vmem:[#allocation8 + $0xd8] sm:$0xff] }
0x131a   :  { %7403 = vmatprep.subr.mxu1 %v7152_v34  ;;  %v7557_v34 = vld [vmem:[#allocation8 + $0x258] sm:$0xff] }
0x131b   :  { %7404 = vmatpush1.msra.mxu1 %v7151_v49  ;;  %v7493_v49 = vld [vmem:[#allocation8 + $0x58] sm:$0xff] }
0x131c   :  { %7405 = vmatprep.subr.mxu1 %v7150_v29  ;;  %v7572_v29 = vld [vmem:[#allocation8 + $0x2d0] sm:$0xff] }
0x131d   :  { %7406 = vmatpush1.msra.mxu1 %v7149_v45  ;;  %v7508_v45 = vld [vmem:[#allocation8 + $0xd0] sm:$0xff] }
0x131e   :  { %7407 = vmatprep.subr.mxu1 %v7148_v39  ;;  %v7556_v39 = vld [vmem:[#allocation8 + $0x250] sm:$0xff] }
0x131f   :  { %7408 = vmatpush1.msra.mxu1 %v7147_v41  ;;  %v7492_v41 = vld [vmem:[#allocation8 + $0x50] sm:$0xff] }
0x1320   :  { %7409 = vmatprep.subr.mxu1 %v7210_v36  ;;  %v7571_v36 = vld [vmem:[#allocation8 + $0x2c8] sm:$0xff] }
0x1321   :  { %7410 = vmatpush2.msra.mxu1 %v7209_v37  ;;  %v7507_v37 = vld [vmem:[#allocation8 + $0xc8] sm:$0xff] }
0x1322   :  { %7411 = vmatprep.subr.mxu1 %v7208_v31  ;;  %v7555_v31 = vld [vmem:[#allocation8 + $0x248] sm:$0xff] }
0x1323   :  { %7412 = vmatpush2.msra.mxu1 %v7207_v32  ;;  %v7491_v32 = vld [vmem:[#allocation8 + $0x48] sm:$0xff] }
0x1324   :  { %7413 = vmatprep.subr.mxu1 %v7206_v0  ;;  %v7570_v0 = vld [vmem:[#allocation8 + $0x2c0] sm:$0xff] }
0x1325   :  { %7414 = vmatpush2.msra.mxu1 %v7205_v2  ;;  %v7506_v2 = vld [vmem:[#allocation8 + $0xc0] sm:$0xff] }
0x1326   :  { %7415 = vmatprep.subr.mxu1 %v7204_v3  ;;  %v7554_v3 = vld [vmem:[#allocation8 + $0x240] sm:$0xff] }
0x1327   :  { %7416 = vmatpush2.msra.mxu1 %v7203_v6  ;;  %v7490_v6 = vld [vmem:[#allocation8 + $0x40] sm:$0xff] }
0x1328   :  { %7417 = vmatprep.subr.mxu1 %v7202_v7  ;;  %v7569_v7 = vld [vmem:[#allocation8 + $0x2b8] sm:$0xff] }
0x1329   :  { %7418 = vmatpush2.msra.mxu1 %v7201_v8  ;;  %v7505_v8 = vld [vmem:[#allocation8 + $0xb8] sm:$0xff] }
0x132a   :  { %7419 = vmatprep.subr.mxu1 %v7200_v9  ;;  %v7553_v9 = vld [vmem:[#allocation8 + $0x238] sm:$0xff] }
0x132b   :  { %7420 = vmatpush2.msra.mxu1 %v7199_v13  ;;  %v7489_v13 = vld [vmem:[#allocation8 + $0x38] sm:$0xff] }
0x132c   :  { %7421 = vmatprep.subr.mxu1 %v7198_v15  ;;  %v7568_v15 = vld [vmem:[#allocation8 + $0x2b0] sm:$0xff] }
0x132d   :  { %7422 = vmatpush2.msra.mxu1 %v7197_v17  ;;  %v7504_v17 = vld [vmem:[#allocation8 + $0xb0] sm:$0xff] }
0x132e   :  { %7423 = vmatprep.subr.mxu1 %v7196_v26  ;;  %v7552_v26 = vld [vmem:[#allocation8 + $0x230] sm:$0xff] }
0x132f   :  { %7424 = vmatpush2.msra.mxu1 %v7195_v28  ;;  %v7488_v28 = vld [vmem:[#allocation8 + $0x30] sm:$0xff] }
0x1330   :  { %7425 = vmatprep.subr.mxu1 %v7194_v35  ;;  %v7567_v35 = vld [vmem:[#allocation8 + $0x2a8] sm:$0xff] }
0x1331   :  { %7426 = vmatpush2.msra.mxu1 %v7193_v42  ;;  %v7503_v42 = vld [vmem:[#allocation8 + $0xa8] sm:$0xff] }
0x1332   :  { %7427 = vmatprep.subr.mxu1 %v7192_v20  ;;  %v7551_v20 = vld [vmem:[#allocation8 + $0x228] sm:$0xff] }
0x1333   :  { %7428 = vmatpush2.msra.mxu1 %v7191_v27  ;;  %v7487_v27 = vld [vmem:[#allocation8 + $0x28] sm:$0xff] }
0x1334   :  { %7429 = vmatprep.subr.mxu1 %v7190_v25  ;;  %v7566_v25 = vld [vmem:[#allocation8 + $0x2a0] sm:$0xff] }
0x1335   :  { %7430 = vmatpush2.msra.mxu1 %v7189_v33  ;;  %v7502_v33 = vld [vmem:[#allocation8 + $0xa0] sm:$0xff] }
0x1336   :  { %7431 = vmatprep.subr.mxu1 %v7188_v46  ;;  %v7550_v46 = vld [vmem:[#allocation8 + $0x220] sm:$0xff] }
0x1337   :  { %7432 = vmatpush2.msra.mxu1 %v7187_v24  ;;  %v7486_v24 = vld [vmem:[#allocation8 + $0x20] sm:$0xff] }
0x1338   :  { %7433 = vmatprep.subr.mxu1 %v7186_v50  ;;  %v7565_v50 = vld [vmem:[#allocation8 + $0x298] sm:$0xff] }
0x1339   :  { %7434 = vmatpush2.msra.mxu1 %v7185_v16  ;;  %v7501_v16 = vld [vmem:[#allocation8 + $0x98] sm:$0xff] }
0x133a   :  { %7435 = vmatprep.subr.mxu1 %v7184_v23  ;;  %v7549_v23 = vld [vmem:[#allocation8 + $0x218] sm:$0xff] }
0x133b   :  { %7436 = vmatpush2.msra.mxu1 %v7183_v47  ;;  %v7485_v47 = vld [vmem:[#allocation8 + $0x18] sm:$0xff] }
0x133c   :  { %7437 = vmatprep.subr.mxu1 %v7182_v48  ;;  %v7564_v48 = vld [vmem:[#allocation8 + $0x290] sm:$0xff] }
0x133d   :  { %7438 = vmatpush2.msra.mxu1 %v7181_v14  ;;  %v7500_v14 = vld [vmem:[#allocation8 + $0x90] sm:$0xff] }
0x133e   :  { %7439 = vmatprep.subr.mxu1 %v7180_v21  ;;  %v7548_v21 = vld [vmem:[#allocation8 + $0x210] sm:$0xff] }
0x133f   :  { %7440 = vmatpush2.msra.mxu1 %v7179_v51  ;;  %v7484_v51 = vld [vmem:[#allocation8 + $0x10] sm:$0xff] }
0x1340   :  { %7442 = vmatmul.mubr.f32.vlgmr.msra.gmra.mxu1 %v9698_v30  ;;  %8614 = vmatprep.subr.mxu1 %v7577_v55  ;;  %v7511_v30 = vld [vmem:[#allocation8 + $0xe8] sm:$0xff] }
0x1341   :  { %7447 = vmatprep.mubr.f32.mxu1 %v7018_v12  ;;  %8615 = vmatpush3.msra.mxu1 %v7561_v5  ;;  %v7499_v12 = vld [vmem:[#allocation8 + $0x88] sm:$0xff]  ;;  %v7498_v5 = vld [vmem:[#allocation8 + $0x80] sm:$0xff] }
0x1342   :  { %8616 = vmatprep.subr.mxu1 %v7576_v10  ;;  %8542 = vmatprep.subr.mxu0 %v7511_v30  ;;  %v7483_v55 = vld [vmem:[#allocation8 + $0x8] sm:$0xff]  ;;  %v7482_v10 = vld [vmem:[#allocation8] sm:$0xff]  ;;  %v7216_v30 = vrot.slane %v7211_v19, %v8980_v60 }
0x1343   :  { %8617 = vmatpush3.msra.mxu1 %v7560_v44  ;;  %8543 = vmatpush3.msra.mxu0 %v7495_v40  ;;  %v7220_v40 = vrot.slane %v7211_v19, %v8986_v63  ;;  %v7522_v19 = vld [vmem:[#allocation8 + $0x140] sm:$0xff] }
0x1344   :  { %7448 = vmatmul.mubr.f32.gmra.mxu1 %v7017_v62  ;;  %8618 = vmatprep.subr.mxu1 %v7575_v58  ;;  %v7547_v62 = vld [vmem:[#allocation8 + $0x208] sm:$0xff] }
0x1345   :  { %8619 = vmatpush3.msra.mxu1 %v7559_v54  ;;  %8544 = vmatprep.subr.mxu0 %v7510_v43 }
0x1346   :  { %8620 = vmatprep.subr.mxu1 %v7574_v4  ;;  %8545 = vmatpush3.msra.mxu0 %v7494_v61 }
0x1347   :  { %8621 = vmatpush3.msra.mxu1 %v7558_v59  ;;  %8546 = vmatprep.subr.mxu0 %v7509_v53 }
0x1348   :  { %8622 = vmatprep.subr.mxu1 %v7573_v38  ;;  %8547 = vmatpush3.msra.mxu0 %v7493_v49 }
0x1349   :  { %8623 = vmatpush3.msra.mxu1 %v7557_v34  ;;  %8548 = vmatprep.subr.mxu0 %v7508_v45 }
0x134a   :  { %8624 = vmatprep.subr.mxu1 %v7572_v29  ;;  %8549 = vmatpush3.msra.mxu0 %v7492_v41 }
0x134b   :  { %8625 = vmatpush3.msra.mxu1 %v7556_v39  ;;  %8550 = vmatprep.subr.mxu0 %v7507_v37 }
0x134c   :  { %8626 = vmatprep.subr.mxu1 %v7571_v36  ;;  %8551 = vmatpush3.msra.mxu0 %v7491_v32 }
0x134d   :  { %8627 = vmatpush3.msra.mxu1 %v7555_v31  ;;  %8552 = vmatprep.subr.mxu0 %v7506_v2 }
0x134e   :  { %8628 = vmatprep.subr.mxu1 %v7570_v0  ;;  %8553 = vmatpush3.msra.mxu0 %v7490_v6 }
0x134f   :  { %8629 = vmatpush3.msra.mxu1 %v7554_v3  ;;  %8554 = vmatprep.subr.mxu0 %v7505_v8 }
0x1350   :  { %8630 = vmatprep.subr.mxu1 %v7569_v7  ;;  %8555 = vmatpush3.msra.mxu0 %v7489_v13 }
0x1351   :  { %8631 = vmatpush3.msra.mxu1 %v7553_v9  ;;  %8556 = vmatprep.subr.mxu0 %v7504_v17 }
0x1352   :  { %8632 = vmatprep.subr.mxu1 %v7568_v15  ;;  %8557 = vmatpush3.msra.mxu0 %v7488_v28 }
0x1353   :  { %8633 = vmatpush3.msra.mxu1 %v7552_v26  ;;  %8558 = vmatprep.subr.mxu0 %v7503_v42 }
0x1354   :  { %8634 = vmatprep.subr.mxu1 %v7567_v35  ;;  %8559 = vmatpush3.msra.mxu0 %v7487_v27 }
0x1355   :  { %8635 = vmatpush3.msra.mxu1 %v7551_v20  ;;  %8560 = vmatprep.subr.mxu0 %v7502_v33 }
0x1356   :  { %8636 = vmatprep.subr.mxu1 %v7566_v25  ;;  %8561 = vmatpush3.msra.mxu0 %v7486_v24 }
0x1357   :  { %8637 = vmatpush3.msra.mxu1 %v7550_v46  ;;  %8562 = vmatprep.subr.mxu0 %v7501_v16 }
0x1358   :  { %8638 = vmatprep.subr.mxu1 %v7565_v50  ;;  %8563 = vmatpush3.msra.mxu0 %v7485_v47 }
0x1359   :  { %8639 = vmatpush3.msra.mxu1 %v7549_v23  ;;  %8564 = vmatprep.subr.mxu0 %v7500_v14  ;;  %v7544_v14 = vld [vmem:[#allocation8 + $0x1f0] sm:$0xff] }
0x135a   :  { %8640 = vmatprep.subr.mxu1 %v7564_v48  ;;  %8565 = vmatpush3.msra.mxu0 %v7484_v51  ;;  %v7529_v48 = vld [vmem:[#allocation8 + $0x178] sm:$0xff]  ;;  %v7528_v51 = vld [vmem:[#allocation8 + $0x170] sm:$0xff] }
0x135b   :  { %8641 = vmatpush3.msra.mxu1 %v7548_v21  ;;  %8566 = vmatprep.subr.mxu0 %v7499_v12  ;;  %v7543_v12 = vld [vmem:[#allocation8 + $0x1e8] sm:$0xff] }
0x135c   :  { %8642 = vmatprep.subr.mxu1 %v7563_v52  ;;  %8567 = vmatpush3.msra.mxu0 %v7483_v55  ;;  %v7542_v55 = vld [vmem:[#allocation8 + $0x1e0] sm:$0xff] }
0x135d   :  { %8643 = vmatpush3.msra.mxu1 %v7547_v62  ;;  %8568 = vmatprep.subr.mxu0 %v7498_v5  ;;  %v7527_v62 = vld [vmem:[#allocation8 + $0x168] sm:$0xff]  ;;  %v7541_v5 = vld [vmem:[#allocation8 + $0x1d8] sm:$0xff] }
0x135e   :  { %8644 = vmatprep.subr.mxu1 %v7562_v56  ;;  %8569 = vmatpush3.msra.mxu0 %v7482_v10  ;;  %v7526_v56 = vld [vmem:[#allocation8 + $0x160] sm:$0xff]  ;;  %v7524_v10 = vld [vmem:[#allocation8 + $0x150] sm:$0xff] }
0x135f   :  { %8645 = vmatpush3.msra.mxu1 %v7546_v11  ;;  %8576 = vmatprep.subr.mxu0 %v7545_v18  ;;  %v7525_v11 = vld [vmem:[#allocation8 + $0x158] sm:$0xff]  ;;  %v7539_v18 = vld [vmem:[#allocation8 + $0x1c8] sm:$0xff] }
0x13b7   :  { %v7366_v54 = vpop.f32.mrf.mxu0 }
0x13b9   :  { %v7368_v59 = vpop.f32.mrf.mxu0 }
0x13bb   :  { %v7372_v49 = vpop.f32.mrf.mxu0 }
0x13bd   :  { %v7374_v32 = vpop.f32.mrf.mxu0 }
0x13c0   :  { %v7289_v44 = vpop.f32.mrf.mxu1 }
0x13c1   :  { %v7290_v43 = vadd.f32 %v7289_v44, %v7216_v30  ;;  %v7523_v44 = vld [vmem:[#allocation8 + $0x148] sm:$0xff] }
0x13c2   :  { %v7291_v58 = vpop.f32.mrf.mxu1 }
0x13c3   :  { %v7292_v61 = vadd.f32 %v7291_v58, %v7220_v40  ;;  %v7367_v34 = vadd.f32 %v7366_v54, %v7290_v43  ;;  %v7537_v58 = vld [vmem:[#allocation8 + $0x1b8] sm:$0xff]  ;;  %v7536_v54 = vld [vmem:[#allocation8 + $0x1b0] sm:$0xff]  ;;  %v7519_v43 = vld [vmem:[#allocation8 + $0x128] sm:$0xff] }
0x13c4   :  { %v7295_v4 = vpop.f32.mrf.mxu1 }
0x13c5   :  { %v7296_v53 = vadd.f32 %v7295_v4, %v7216_v30  ;;  %v7369_v41 = vadd.f32 %v7368_v59, %v7292_v61  ;;  %v7521_v30 = vld [vmem:[#allocation8 + $0x138] sm:$0xff]  ;;  %v7535_v4 = vld [vmem:[#allocation8 + $0x1a8] sm:$0xff]  ;;  %v7534_v59 = vld [vmem:[#allocation8 + $0x1a0] sm:$0xff] }
0x13c6   :  { %v7297_v38 = vpop.f32.mrf.mxu1  ;;  %v7518_v61 = vld [vmem:[#allocation8 + $0x120] sm:$0xff] }
0x13c7   :  { %v7298_v45 = vadd.f32 %v7297_v38, %v7220_v40  ;;  %v7373_v31 = vadd.f32 %v7372_v49, %v7296_v53  ;;  %v7520_v40 = vld [vmem:[#allocation8 + $0x130] sm:$0xff]  ;;  %v7533_v38 = vld [vmem:[#allocation8 + $0x198] sm:$0xff] }
0x13c8   :  { %v7517_v53 = vld [vmem:[#allocation8 + $0x118] sm:$0xff]  ;;  %v7516_v49 = vld [vmem:[#allocation8 + $0x110] sm:$0xff] }
0x13c9   :  { %v7375_v63 = vadd.f32 %v7374_v32, %v7298_v45  ;;  %v7515_v45 = vld [vmem:[#allocation8 + $0x108] sm:$0xff] }
0x1400   :  { %v7443_v29 = vpop.f32.mrf.mxu1 }
0x1401   :  { %v7444_v39 = vadd.f32 %v7443_v29, %v7367_v34  ;;  %v7532_v34 = vld [vmem:[#allocation8 + $0x190] sm:$0xff]  ;;  %v7531_v29 = vld [vmem:[#allocation8 + $0x188] sm:$0xff] }
0x1402   :  { %v7445_v36 = vpop.f32.mrf.mxu1 }
0x1403   :  { %v7446_v37 = vadd.f32 %v7445_v36, %v7369_v41  ;;  %8765 = vtanh.f32 %v7444_v39  ;;  %v7530_v39 = vld [vmem:[#allocation8 + $0x180] sm:$0xff] }
0x1404   :  { %v7449_v60 = vpop.f32.mrf.mxu1  ;;  %v7514_v41 = vld [vmem:[#allocation8 + $0x100] sm:$0xff] }
0x1405   :  { %v7450_v0 = vadd.f32 %v7449_v60, %v7373_v31  ;;  %8767 = vtanh.f32 %v7446_v37 }
0x1406   :  { %v7451_v2 = vpop.f32.mrf.mxu1 }
0x1407   :  { %8769 = vtanh.f32 %v7450_v0  ;;  %v7452_v3 = vadd.f32 %v7451_v2, %v7375_v63  ;;  %v7851_v2 = vld [vmem:[%s9792_s7] ss:$0 sm:$0xff] }
0x1409   :  { %8771 = vtanh.f32 %v7452_v3 }
0x1410   :  { %v9735_v6 = vpop.eup %8765 }
0x1411   :  { %v7458_v17 = vrot.slane %v9735_v6, 7  ;;  %v7470_v20 = vrot.slane %v9735_v6, 1 }
0x1412   :  { %v8768_v7 = vpop.eup %8767 }
0x1413   :  { %v7471_v26 = vrot.slane %v8768_v7, 1  ;;  %v7459_v35 = vrot.slane %v8768_v7, 7 }
0x1414   :  { %v9737_v8 = vpop.eup %8769 }
0x1415   :  { %v7460_v9 = vrot.slane %v9737_v8, 7  ;;  %v7472_v15 = vrot.slane %v9737_v8, 1 }
0x1416   :  { %v9740_v13 = vpop.eup %8771 }
0x1417   :  { %v7473_v28 = vrot.slane %v9740_v13, 1  ;;  %v7461_v42 = vrot.slane %v9740_v13, 7  ;;  %v7464_v27 = vsel %vm105_vm3, %v7460_v9, %v7458_v17  ;;  %v7474_v24 = vsel %vm112_vm1, %v7470_v20, %v7472_v15 }
0x1418   :  { %v7476_v23 = vsel %vm112_vm1, %v7472_v15, %v7470_v20  ;;  %v7466_v47 = vmul.f32 %v8971_v57, %v7464_v27 }
0x1419   :  { %v7475_v25 = vsel %vm112_vm1, %v7471_v26, %v7473_v28  ;;  %v7465_v33 = vsel %vm105_vm3, %v7461_v42, %v7459_v35  ;;  %v7477_v46 = vsel %vm112_vm1, %v7473_v28, %v7471_v26  ;;  %v7463_v21 = vsel %vm105_vm3, %v7459_v35, %v7461_v42 }
0x141a   :  { %7799 = vmatprep.mubr.f32.mxu1 %v7475_v25  ;;  %v7467_v50 = vmul.f32 %v8971_v57, %v7465_v33  ;;  %v7481_v16 = vmul.f32 %v8957_v22, %v7477_v46  ;;  %v7480_v52 = vmul.f32 %v8957_v22, %v7476_v23  ;;  %v7462_v57 = vsel %vm105_vm3, %v7458_v17, %v7460_v9  ;;  %v7540_v22 = vld [vmem:[#allocation8 + $0x1d0] sm:$0xff] }
0x141b   :  { %7800 = vmatmul.mubr.f32.vlgmr.msra.gmra.mxu1 %v7474_v24  ;;  %v7810_v35 = vstv %s7850_s5 }
0x141c   :  { %7649 = vmatprep.mubr.f32.mxu0 %v7467_v50  ;;  %7804 = vmatprep.mubr.f32.mxu1 %v7481_v16  ;;  %v8785_v50 = vld [vmem:[%s9793_s8 + $0x60] sm:$0xff] }
0x141d   :  { %7650 = vmatmul.mubr.f32.vlgmr.msra.gmra.mxu0 %v7466_v47 }
0x141e   :  { %8577 = vmatpush3.msra.mxu0 %v7529_v48  ;;  %7654 = vmatprep.mubr.f32.mxu0 %v7463_v21  ;;  %v8786_v48 = vld [vmem:[%s9793_s8 + $0x68] sm:$0xff] }
0x141f   :  { %8578 = vmatprep.subr.mxu0 %v7544_v14  ;;  %7805 = vmatmul.mubr.f32.gmra.mxu1 %v7480_v52 }
0x1420   :  { %8579 = vmatpush3.msra.mxu0 %v7528_v51 }
0x1421   :  { %8580 = vmatprep.subr.mxu0 %v7543_v12  ;;  %7655 = vmatmul.mubr.f32.gmra.mxu0 %v7462_v57 }
0x1422   :  { %8581 = vmatpush3.msra.mxu0 %v7527_v62  ;;  %7724 = vmatprep.mubr.f32.mxu0 %v8768_v7 }
0x1423   :  { %8582 = vmatprep.subr.mxu0 %v7542_v55 }
0x1424   :  { %8583 = vmatpush3.msra.mxu0 %v7526_v56 }
0x1425   :  { %8584 = vmatprep.subr.mxu0 %v7541_v5 }
0x1426   :  { %8585 = vmatpush3.msra.mxu0 %v7525_v11 }
0x1427   :  { %8586 = vmatprep.subr.mxu0 %v7540_v22 }
0x1428   :  { %8587 = vmatpush3.msra.mxu0 %v7524_v10 }
0x1429   :  { %8588 = vmatprep.subr.mxu0 %v7539_v18 }
0x142a   :  { %8589 = vmatpush3.msra.mxu0 %v7523_v44 }
0x142b   :  { %8590 = vmatprep.subr.mxu0 %v7538_v1 }
0x142c   :  { %8591 = vmatpush3.msra.mxu0 %v7522_v19 }
0x142d   :  { %8592 = vmatprep.subr.mxu0 %v7537_v58 }
0x142e   :  { %8593 = vmatpush3.msra.mxu0 %v7521_v30 }
0x142f   :  { %8594 = vmatprep.subr.mxu0 %v7536_v54 }
0x1430   :  { %8595 = vmatpush3.msra.mxu0 %v7520_v40 }
0x1431   :  { %8596 = vmatprep.subr.mxu0 %v7535_v4 }
0x1432   :  { %8597 = vmatpush3.msra.mxu0 %v7519_v43 }
0x1433   :  { %8598 = vmatprep.subr.mxu0 %v7534_v59 }
0x1434   :  { %8599 = vmatpush3.msra.mxu0 %v7518_v61 }
0x1435   :  { %8600 = vmatprep.subr.mxu0 %v7533_v38 }
0x1436   :  { %8601 = vmatpush3.msra.mxu0 %v7517_v53 }
0x1437   :  { %8602 = vmatprep.subr.mxu0 %v7532_v34 }
0x1438   :  { %8603 = vmatpush3.msra.mxu0 %v7516_v49 }
0x1439   :  { %8604 = vmatprep.subr.mxu0 %v7531_v29 }
0x143a   :  { %8605 = vmatpush3.msra.mxu0 %v7515_v45 }
0x143b   :  { %8606 = vmatprep.subr.mxu0 %v7530_v39 }
0x143c   :  { %8607 = vmatpush3.msra.mxu0 %v7514_v41 }
0x143d   :  { %7725 = vmatmul.mubr.f32.vlgmr.msra.gmra.mxu0 %v9735_v6 }
0x143e   :  { %7729 = vmatprep.mubr.f32.mxu0 %v9740_v13 }
0x1441   :  { %7730 = vmatmul.mubr.f32.gmra.mxu0 %v9737_v8 }
0x14db   :  { %v8646_v31 = vpop.f32.mrf.mxu1 }
0x14dd   :  { %v8570_v36 = vpop.f32.mrf.mxu0  ;;  %v8647_v60 = vpop.f32.mrf.mxu1 }
0x14de   :  { %v8648_v8 = vadd.f32 %v8647_v60, %v8646_v31 }
0x14df   :  { %v8571_v37 = vpop.f32.mrf.mxu0  ;;  %v8649_v7 = vpop.f32.mrf.mxu1 }
0x14e0   :  { %v8572_v63 = vadd.f32 %v8571_v37, %v8570_v36 }
0x14e1   :  { %v8573_v32 = vpop.f32.mrf.mxu0  ;;  %v8650_v28 = vpop.f32.mrf.mxu1 }
0x14e2   :  { %v7652_v6 = vadd.f32 %v8572_v63, %v7851_v2  ;;  %v8651_v33 = vadd.f32 %v8650_v28, %v8649_v7 }
0x14e3   :  { %v8574_v0 = vpop.f32.mrf.mxu0 }
0x14e4   :  { %v8575_v15 = vadd.f32 %v8574_v0, %v8573_v32 }
0x14e6   :  { %v7657_v20 = vadd.f32 %v8575_v15, %v7851_v2 }
0x14fd   :  { %v8608_v3 = vpop.f32.mrf.mxu0 }
0x14ff   :  { %v8609_v9 = vpop.f32.mrf.mxu0 }
0x1500   :  { %v8610_v13 = vadd.f32 %v8609_v9, %v8608_v3 }
0x1501   :  { %v8611_v17 = vpop.f32.mrf.mxu0 }
0x1502   :  { %v7727_v26 = vadd.f32 %v8610_v13, %v7652_v6 }
0x1503   :  { %v8612_v42 = vpop.f32.mrf.mxu0 }
0x1504   :  { %v7802_v27 = vadd.f32 %v8648_v8, %v7727_v26  ;;  %v8613_v25 = vadd.f32 %v8612_v42, %v8611_v17 }
0x1506   :  { %v7811_v46 = vmul.f32 %v7810_v35, %v7802_v27  ;;  %v7732_v24 = vadd.f32 %v8613_v25, %v7657_v20 }
0x1508   :  { %v7813_v16 = vadd.f32 %v8785_v50, %v7811_v46  ;;  %v7807_v23 = vadd.f32 %v8651_v33, %v7732_v24 }
0x150a   :  { %7852 = vst [vmem:[%s9793_s8 + $0x70] sm:$0xff] %v7813_v16  ;;  %v7812_v47 = vmul.f32 %v7810_v35, %v7807_v23 }
0x150c   :  { %v7814_v14 = vadd.f32 %v8786_v48, %v7812_v47 }
0x150e   :  { %7853 = vst [vmem:[%s9793_s8 + $0x78] sm:$0xff] %v7814_v14 }
0x150f   :  { %7822 = vsyncpa [#allocation3], 1 }
0x1510   :  { %7823 = vsyncpa [#allocation7], 1 }
0x1511   :  { %7824 = vsyncpa [#allocation4], 1 }

</bundles_post_ra>
